<compile_context>
chip_gen: v7x
topology: tpu7x:2x2x1
jax: 0.10.0
libtpu: 0.0.40
codegen_flags: <defaults>
</compile_context>

<pallas_src>
import functools

import numpy as np
import jax
import jax.numpy as jnp
from jax import lax
from jax.experimental import pallas as pl
from jax.experimental.pallas import tpu as pltpu

BN_EPS = 1e-5
# MXU operand dtype (review item 3): bf16 operands + f32 accumulation cut MXU
# pass count ~3x and halve vreg/VMEM traffic.  Flip to jnp.float32 if tighter
# than ~1e-2 agreement with an f32/f64 reference is required.
MATMUL_DTYPE = jnp.bfloat16


# ---------------------------------------------------------------------------
# Trace-time (numpy) helpers
# ---------------------------------------------------------------------------
def _bilinear_matrix(out_size, in_size):
    """PyTorch F.interpolate(mode='bilinear', align_corners=False) as a matrix."""
    a = np.zeros((out_size, in_size), dtype=np.float64)
    scale = in_size / out_size
    for i in range(out_size):
        src = max((i + 0.5) * scale - 0.5, 0.0)
        lo = min(int(np.floor(src)), in_size - 1)
        hi = min(lo + 1, in_size - 1)
        frac = src - lo
        a[i, lo] += 1.0 - frac
        a[i, hi] += frac
    return a


def _flat_resize_matrix(h, w, h2, w2):
    """Bilinear (h2,w2)->(h,w) resize acting on the flattened per-image spatial
    index s = hh*w + ww of the *un-compacted* conv output.  Columns for invalid
    positions (hh>=h2 or ww>=w2) are zero, so garbage rows never contribute.
    Entries are multiples of 1/64 -> exactly representable in bf16."""
    a_h = np.zeros((h, h), dtype=np.float64)
    a_h[:, :h2] = _bilinear_matrix(h, h2)
    a_w = np.zeros((w, w), dtype=np.float64)
    a_w[:, :w2] = _bilinear_matrix(w, w2)
    return np.kron(a_h, a_w)  # (h*w, h*w)


def _bn_masks(n, h, w):
    """Host-precomputed BatchNorm validity masks, pre-scaled by 1/count
    (review item 4: no in-kernel iota / div / mod mask construction)."""
    hw = h * w
    m = n * hw
    m1 = m + 2 * w + 2
    p = np.arange(m1)
    hh = (p % hw) // w
    ww = p % w
    valid1 = (p < m) & (hh < h - 2) & (ww < w - 2)          # conv1 'valid' rows
    mask_a = np.zeros((m1, 64), np.float32)
    mask_a[:, :32] = (valid1 / float(n * (h - 2) * (w - 2)))[:, None]
    mask_a[:, 32:] = ((p < m) / float(m))[:, None]          # branch-1 1x1: all rows
    p2 = np.arange(m)
    valid2 = (((p2 % hw) // w) < h - 4) & ((p2 % w) < w - 4)  # conv2 'valid' rows
    mask_2 = (valid2 / float(n * (h - 4) * (w - 4))).astype(np.float32)[:, None]
    return mask_a, mask_2


# ---------------------------------------------------------------------------
# In-kernel helper
# ---------------------------------------------------------------------------
def _bn_relu(y, mask_over_count, gamma, beta):
    """Train-mode BatchNorm2d (biased stats over the valid rows) + ReLU.
    One-pass masked moments (review item 5): var = E[x^2] - mean^2.
    `mask_over_count` = validity_mask / count, precomputed on the host."""
    mean = jnp.sum(y * mask_over_count, axis=0, keepdims=True)
    ex2 = jnp.sum(y * y * mask_over_count, axis=0, keepdims=True)
    var = jnp.maximum(ex2 - mean * mean, 0.0)
    out = (y - mean) * lax.rsqrt(var + BN_EPS) * gamma + beta
    return jnp.maximum(out, 0.0)


# ---------------------------------------------------------------------------
# The fused Pallas kernel
# ---------------------------------------------------------------------------
def _vgg_trunk_kernel(xcat_ref, wA_ref, maskA_ref, gA_ref, bA_ref,
                      w2_ref, mask2_ref, g2_ref, b2_ref,
                      w03_ref, w12_ref, rmat_ref, hw1_ref, hw2p_ref, clsb_ref,
                      o_ref,
                      yb_ref, ycat_ref, x0b_ref, s_ref,
                      *, n, h, w, mm_dtype):
    f32 = jnp.float32
    hw = h * w
    m = n * hw                 # rows of full-resolution activations
    m1 = m + 2 * w + 2         # rows of conv1/branch1 activations (extra rows feed conv2 taps)
    mc = m + 2 * w             # rows of the dx-concatenated conv2 im2col buffer

    # ---- fused [branch0 conv3x3 (im2col, K=9*Cin) | branch1 conv1x1] ------
    # One deep-K matmul, N widened to 64 (review items 1 & 6); per-lane masked
    # BN handles the two different stat sets (valid-conv rows vs all rows).
    yA = jnp.dot(xcat_ref[...], wA_ref[...], preferred_element_type=f32)   # (m1, 64)
    yA = _bn_relu(yA, maskA_ref[...], gA_ref[...], bA_ref[...])
    yb_ref[...] = yA

    # ---- branch 0: conv 3x3 (32->32): deep-K im2col, 3 matmuls (K=192) ----
    # dx = 1, 2 row shifts are the ONLY unaligned reads; each is materialized
    # once into the lane-concatenated buffer (review item 2).  The per-dy LHS
    # slices (offsets 0, w, 2w) are aligned.  Weight rows for the fused
    # branch-1 lanes are zero, so K padding is free on the MXU (K <= 256).
    ycat_ref[...] = jnp.concatenate(
        [yb_ref[pl.ds(0, mc), :], yb_ref[pl.ds(1, mc), :], yb_ref[pl.ds(2, mc), :]],
        axis=1).astype(mm_dtype)                                            # (mc, 192)
    acc2 = jnp.dot(ycat_ref[pl.ds(0, m), :], w2_ref[0], preferred_element_type=f32)
    acc2 = acc2 + jnp.dot(ycat_ref[pl.ds(w, m), :], w2_ref[1],
                          preferred_element_type=f32)
    acc2 = acc2 + jnp.dot(ycat_ref[pl.ds(2 * w, m), :], w2_ref[2],
                          preferred_element_type=f32)
    y2 = _bn_relu(acc2, mask2_ref[...], g2_ref[...], b2_ref[...])           # (m, 32)

    # ---- branch 0: conv 1x1 (32->64) + ReLU --------------------------------
    x0 = jnp.maximum(jnp.dot(y2.astype(mm_dtype), w03_ref[...],
                             preferred_element_type=f32), 0.0)
    x0b_ref[...] = x0.astype(mm_dtype)

    # ---- branch 1: conv 1x1 (32->64) + ReLU (weight rows 0:32 are zero) ----
    x1 = jnp.maximum(jnp.dot(yb_ref[pl.ds(0, m), :].astype(mm_dtype), w12_ref[...],
                             preferred_element_type=f32), 0.0)
    s_ref[...] = x1

    # ---- bilinear (h-4,w-4) -> (h,w) per image, accumulated into s_ref -----
    # pl.loop + VMEM scratch instead of Python list + concatenate (review item):
    # program size stays flat in batch; offsets are hw-aligned.
    @pl.loop(0, n)
    def _(i):
        off = pl.multiple_of(i * hw, hw)
        up = jnp.dot(rmat_ref[...], x0b_ref[pl.ds(off, hw), :],
                     preferred_element_type=f32)
        s_ref[pl.ds(off, hw), :] = s_ref[pl.ds(off, hw), :] + up

    # ---- head: 1x1 (64->64)+ReLU, 1x1 (64->ncls lane-padded), Softmax2d ----
    s = s_ref[...]
    hid = jnp.maximum(jnp.dot(s.astype(mm_dtype), hw1_ref[...],
                              preferred_element_type=f32), 0.0)
    logits = jnp.dot(hid.astype(mm_dtype), hw2p_ref[...],
                     preferred_element_type=f32) + clsb_ref[...]            # (m, 128)
    mx = jnp.max(logits, axis=-1, keepdims=True)
    e = jnp.exp(logits - mx)                       # padding lanes -> exactly 0
    den = jnp.sum(e, axis=-1, keepdims=True)
    # Exact reciprocal so per-pixel distributions sum to 1 (review note).
    o_ref[...] = e * pl.reciprocal(den, approx=False)


# ---------------------------------------------------------------------------
# Wrapper: single pallas_call, whole problem resident in VMEM (no grid).
# Scaling note: for larger batch/resolution, add a row grid ("parallel") so
# both v7x TensorCores are used and its 64 MiB VMEM is respected (with a
# two-pass / cross-core BatchNorm).  At batch=2 the call is launch-bound.
# ---------------------------------------------------------------------------
def vgg_trunk_forward(params, x_nchw, *, input_size=16):
    n, cin, h, w = x_nchw.shape
    if h != input_size or w != input_size:
        raise ValueError("`out = x_0 + x_1` requires spatial size == input_size")
    hw = h * w
    m = n * hw
    m1 = m + 2 * w + 2               # conv1 rows needed by conv2's shifted taps
    mc = m + 2 * w
    pad_rows = 2 * (2 * w + 2)       # zero rows so every conv1 tap read is in bounds
    ncls = params["h_w2"].shape[-1]
    ncls_pad = 128                   # lane-dense logits / output store (review)
    mmd = MATMUL_DTYPE
    f32 = jnp.float32

    # --- input: flat (n*h*w, Cin) rows ordered (n, h, w) + 3x3 im2col (K=9*Cin)
    x_flat = jnp.transpose(x_nchw, (0, 2, 3, 1)).reshape(m, cin).astype(f32)
    x_pad = jnp.concatenate([x_flat, jnp.zeros((pad_rows, cin), f32)], axis=0)
    xcat = jnp.concatenate(
        [x_pad[dy * w + dx: dy * w + dx + m1, :]
         for dy in range(3) for dx in range(3)],
        axis=1).astype(mmd)                                         # (m1, 9*cin)

    # --- fused branch0-conv1 / branch1-conv1 weights + BN params -----------
    w11 = jnp.zeros((9 * cin, 32), f32).at[:cin, :].set(params["c1_w1"].reshape(cin, 32))
    wA = jnp.concatenate([params["c0_w1"].reshape(9 * cin, 32), w11], axis=1).astype(mmd)
    gA = jnp.concatenate([params["c0_g1"], params["c1_g1"]], axis=1)
    bA = jnp.concatenate([params["c0_b1"], params["c1_b1"]], axis=1)

    # conv2 weights, per-dy (K = 3*64); rows for the fused branch-1 lanes are zero.
    w2 = jnp.zeros((3, 3, 64, 32), f32).at[:, :, :32, :].set(params["c0_w2"])
    w2 = w2.reshape(3, 3 * 64, 32).astype(mmd)

    w03 = params["c0_w3"].reshape(32, 64).astype(mmd)
    w12 = jnp.zeros((64, 64), f32).at[32:, :].set(
        params["c1_w2"].reshape(32, 64)).astype(mmd)
    hw1 = params["h_w1"].reshape(64, 64).astype(mmd)
    hw2p = jnp.zeros((64, ncls_pad), f32).at[:, :ncls].set(
        params["h_w2"].reshape(64, ncls)).astype(mmd)
    # Large negative bias on the padding lanes so they vanish under softmax.
    clsb = jnp.where(jnp.arange(ncls_pad) < ncls, 0.0, -1e30).reshape(1, ncls_pad)
    clsb = clsb.astype(f32)

    # --- host-precomputed BN masks and the flat bilinear resize matrix -----
    mask_a, mask_2 = _bn_masks(n, h, w)
    rmat = jnp.asarray(_flat_resize_matrix(h, w, h - 4, w - 4), mmd)

    out_flat = pl.pallas_call(
        functools.partial(_vgg_trunk_kernel, n=n, h=h, w=w, mm_dtype=mmd),
        out_shape=jax.ShapeDtypeStruct((m, ncls_pad), f32),
        in_specs=[pl.BlockSpec(memory_space=pltpu.MemorySpace.VMEM)] * 15,
        out_specs=pl.BlockSpec(memory_space=pltpu.MemorySpace.VMEM),
        scratch_shapes=[
            pltpu.VMEM((m1, 64), f32),        # fused conv1 / branch1 activations
            pltpu.VMEM((mc, 3 * 64), mmd),    # conv2 im2col (dx-concatenated)
            pltpu.VMEM((m, 64), mmd),         # x0 (pre-resize), matmul dtype
            pltpu.VMEM((m, 64), f32),         # x1, then x1 + upsample(x0)
        ],
    )(xcat, wA, jnp.asarray(mask_a), gA, bA,
      w2, jnp.asarray(mask_2), params["c0_g2"], params["c0_b2"],
      w03, w12, rmat, hw1, hw2p, clsb)

    out = out_flat[:, :ncls].reshape(n, h, w, ncls)
    return jnp.transpose(out, (0, 3, 1, 2))               # NCHW, like the module


# ---------------------------------------------------------------------------
# Pure-JAX (XLA) reference of the same forward, for in-script checks.
# operand_dtype=bf16 reproduces the kernel's matmul-operand rounding exactly
# (f32 accumulation everywhere), for a tight structural check.
# ---------------------------------------------------------------------------
def _reference_forward(params, x_nchw, *, input_size=16, operand_dtype=jnp.float32):
    hp = jax.lax.Precision.HIGHEST
    f32 = jnp.float32
    od = operand_dtype
    x = jnp.transpose(x_nchw, (0, 2, 3, 1)).astype(f32)

    def conv(v, wgt):
        return lax.conv_general_dilated(
            v.astype(od), wgt.astype(od), window_strides=(1, 1), padding="VALID",
            dimension_numbers=("NHWC", "HWIO", "NHWC"), precision=hp,
            preferred_element_type=f32)

    def bn_relu(v, g, b):
        mean = jnp.mean(v, axis=(0, 1, 2), keepdims=True)
        var = jnp.mean(jnp.square(v - mean), axis=(0, 1, 2), keepdims=True)
        y = (v - mean) * lax.rsqrt(var + BN_EPS)
        return jnp.maximum(y * g.reshape(1, 1, 1, -1) + b.reshape(1, 1, 1, -1), 0.0)

    y = bn_relu(conv(x, params["c0_w1"]), params["c0_g1"], params["c0_b1"])
    y = bn_relu(conv(y, params["c0_w2"]), params["c0_g2"], params["c0_b2"])
    x0 = jnp.maximum(conv(y, params["c0_w3"]), 0.0)

    z = bn_relu(conv(x, params["c1_w1"]), params["c1_g1"], params["c1_b1"])
    x1 = jnp.maximum(conv(z, params["c1_w2"]), 0.0)

    a_h = jnp.asarray(_bilinear_matrix(input_size, x0.shape[1]), od)
    a_w = jnp.asarray(_bilinear_matrix(input_size, x0.shape[2]), od)
    x0u = jnp.einsum("oh,nhwc->nowc", a_h, x0.astype(od), precision=hp,
                     preferred_element_type=f32)
    x0u = jnp.einsum("pw,nowc->nopc", a_w, x0u, precision=hp,
                     preferred_element_type=f32)

    s = x0u + x1
    hid = jnp.maximum(jnp.einsum("nhwc,cd->nhwd", s.astype(od),
                                 params["h_w1"].reshape(64, 64).astype(od),
                                 precision=hp, preferred_element_type=f32), 0.0)
    ncls = params["h_w2"].shape[-1]
    logits = jnp.einsum("nhwc,cd->nhwd", hid.astype(od),
                        params["h_w2"].reshape(64, ncls).astype(od),
                        precision=hp, preferred_element_type=f32)
    probs = jax.nn.softmax(logits, axis=-1)
    return jnp.transpose(probs, (0, 3, 1, 2))


# ---------------------------------------------------------------------------
# Parameters (deterministic; shapes from the module __init__, conv bias=False)
# ---------------------------------------------------------------------------
def init_params(key, input_channels, nr_classes):
    def conv_w(k, kh, kw, cin, cout):
        fan_in = kh * kw * cin
        std = float(np.sqrt(2.0 / fan_in))
        return jax.random.normal(k, (kh, kw, cin, cout), jnp.float32) * std

    ks = jax.random.split(key, 7)
    return {
        # branch 0: Conv3x3(in->32)+BN+ReLU, Conv3x3(32->32)+BN+ReLU, Conv1x1(32->64)+ReLU
        "c0_w1": conv_w(ks[0], 3, 3, input_channels, 32),
        "c0_g1": jnp.ones((1, 32), jnp.float32),
        "c0_b1": jnp.zeros((1, 32), jnp.float32),
        "c0_w2": conv_w(ks[1], 3, 3, 32, 32),
        "c0_g2": jnp.ones((1, 32), jnp.float32),
        "c0_b2": jnp.zeros((1, 32), jnp.float32),
        "c0_w3": conv_w(ks[2], 1, 1, 32, 64),
        # branch 1: Conv1x1(in->32)+BN+ReLU, Conv1x1(32->64)+ReLU
        "c1_w1": conv_w(ks[3], 1, 1, input_channels, 32),
        "c1_g1": jnp.ones((1, 32), jnp.float32),
        "c1_b1": jnp.zeros((1, 32), jnp.float32),
        "c1_w2": conv_w(ks[4], 1, 1, 32, 64),
        # head: Conv1x1(64->64)+ReLU, Conv1x1(64->nr_classes), Softmax2d
        "h_w1": conv_w(ks[5], 1, 1, 64, 64),
        "h_w2": conv_w(ks[6], 1, 1, 64, nr_classes),
    }


# ---------------------------------------------------------------------------
if __name__ == "__main__":
    key = jax.random.PRNGKey(0)
    k_params, k_x = jax.random.split(key)

    input_channels, nr_classes, input_size = 4, 10, 16
    batch = 2

    params = init_params(k_params, input_channels, nr_classes)
    x = jax.random.normal(
        k_x, (batch, input_channels, input_size, input_size), jnp.float32)

    fwd = jax.jit(functools.partial(vgg_trunk_forward, input_size=input_size))
    out = jax.block_until_ready(fwd(params, x))

    assert out.shape == (batch, nr_classes, input_size, input_size), out.shape
    assert bool(jnp.all(jnp.isfinite(out)))
    # Softmax2d: per-pixel channel distribution sums to 1 (exact reciprocal).
    assert bool(jnp.allclose(jnp.sum(out, axis=1), 1.0, atol=1e-3))

    # Matched-precision reference (bf16 matmul operands, f32 accumulation):
    # tight structural check of the fused im2col / BN / resize / head plumbing.
    ref_bf16 = jax.jit(functools.partial(
        _reference_forward, input_size=input_size,
        operand_dtype=MATMUL_DTYPE))(params, x)
    err_bf16 = float(jnp.max(jnp.abs(out - ref_bf16)))
    assert err_bf16 < 5e-3, err_bf16

    # Full-f32 reference: loose bound on the bf16-operand drift (the module
    # itself is f64; with MATMUL_DTYPE = f32 this error drops to ~1e-5).
    ref_f32 = jax.jit(functools.partial(
        _reference_forward, input_size=input_size))(params, x)
    err_f32 = float(jnp.max(jnp.abs(out - ref_f32)))
    assert err_f32 < 1e-1, err_f32

    print("KERNEL_OK")
</pallas_src>

<mosaic_0001>
module attributes {stable_mosaic.version = 11 : i64} {
  func.func @_vgg_trunk_kernel(%arg0: memref<546x36xbf16, #tpu.memory_space<vmem>>, %arg1: memref<36x64xbf16, #tpu.memory_space<vmem>>, %arg2: memref<546x64xf32, #tpu.memory_space<vmem>>, %arg3: memref<1x64xf32, #tpu.memory_space<vmem>>, %arg4: memref<1x64xf32, #tpu.memory_space<vmem>>, %arg5: memref<3x192x32xbf16, #tpu.memory_space<vmem>>, %arg6: memref<512x1xf32, #tpu.memory_space<vmem>>, %arg7: memref<1x32xf32, #tpu.memory_space<vmem>>, %arg8: memref<1x32xf32, #tpu.memory_space<vmem>>, %arg9: memref<32x64xbf16, #tpu.memory_space<vmem>>, %arg10: memref<64x64xbf16, #tpu.memory_space<vmem>>, %arg11: memref<256x256xbf16, #tpu.memory_space<vmem>>, %arg12: memref<64x64xbf16, #tpu.memory_space<vmem>>, %arg13: memref<64x128xbf16, #tpu.memory_space<vmem>>, %arg14: memref<1x128xf32, #tpu.memory_space<vmem>>, %arg15: memref<512x128xf32, #tpu.memory_space<vmem>>, %arg16: memref<546x64xf32, #tpu.memory_space<vmem>>, %arg17: memref<544x192xbf16, #tpu.memory_space<vmem>>, %arg18: memref<512x64xbf16, #tpu.memory_space<vmem>>, %arg19: memref<512x64xf32, #tpu.memory_space<vmem>>) attributes {dimension_semantics = [], scalar_prefetch = 0 : i64, scratch_operands = 4 : i64, tpu.core_type = #tpu.core_type<tc>} {
    %c0 = arith.constant 0 : index
    %c0_0 = arith.constant 0 : index
    %0 = vector.load %arg0[%c0, %c0_0] : memref<546x36xbf16, #tpu.memory_space<vmem>>, vector<546x36xbf16>
    %c0_1 = arith.constant 0 : index
    %c0_2 = arith.constant 0 : index
    %1 = vector.load %arg1[%c0_1, %c0_2] : memref<36x64xbf16, #tpu.memory_space<vmem>>, vector<36x64xbf16>
    %cst = arith.constant dense<0.000000e+00> : vector<546x64xf32>
    %2 = tpu.matmul %0, %1, %cst {dimension_numbers = #tpu.dot_dimension_numbers<[1], [0], [0], [1], [0, 0, 1, 1], [], []>} : vector<546x36xbf16>, vector<36x64xbf16>, vector<546x64xf32> -> vector<546x64xf32>
    %c0_3 = arith.constant 0 : index
    %c0_4 = arith.constant 0 : index
    %3 = vector.load %arg2[%c0_3, %c0_4] : memref<546x64xf32, #tpu.memory_space<vmem>>, vector<546x64xf32>
    %c0_5 = arith.constant 0 : index
    %c0_6 = arith.constant 0 : index
    %4 = vector.load %arg3[%c0_5, %c0_6] : memref<1x64xf32, #tpu.memory_space<vmem>>, vector<1x64xf32>
    %c0_7 = arith.constant 0 : index
    %c0_8 = arith.constant 0 : index
    %5 = vector.load %arg4[%c0_7, %c0_8] : memref<1x64xf32, #tpu.memory_space<vmem>>, vector<1x64xf32>
    %6 = arith.mulf %2, %3 : vector<546x64xf32>
    %cst_9 = arith.constant dense<0.000000e+00> : vector<64xf32>
    %7 = vector.multi_reduction <add>, %6, %cst_9 [0] : vector<546x64xf32> to vector<64xf32>
    %8 = vector.shape_cast %7 : vector<64xf32> to vector<1x64xf32>
    %9 = arith.mulf %2, %2 : vector<546x64xf32>
    %10 = arith.mulf %9, %3 : vector<546x64xf32>
    %cst_10 = arith.constant dense<0.000000e+00> : vector<64xf32>
    %11 = vector.multi_reduction <add>, %10, %cst_10 [0] : vector<546x64xf32> to vector<64xf32>
    %12 = vector.shape_cast %11 : vector<64xf32> to vector<1x64xf32>
    %13 = arith.mulf %8, %8 : vector<1x64xf32>
    %14 = arith.subf %12, %13 : vector<1x64xf32>
    %cst_11 = arith.constant 0.000000e+00 : f32
    %15 = vector.broadcast %cst_11 : f32 to vector<1x64xf32>
    %16 = arith.maximumf %14, %15 : vector<1x64xf32>
    %17 = vector.broadcast %8 : vector<1x64xf32> to vector<546x64xf32>
    %18 = arith.subf %2, %17 : vector<546x64xf32>
    %cst_12 = arith.constant 9.99999974E-6 : f32
    %19 = vector.broadcast %cst_12 : f32 to vector<1x64xf32>
    %20 = arith.addf %16, %19 : vector<1x64xf32>
    %21 = math.rsqrt %20 : vector<1x64xf32>
    %22 = vector.broadcast %21 : vector<1x64xf32> to vector<546x64xf32>
    %23 = arith.mulf %18, %22 : vector<546x64xf32>
    %24 = vector.broadcast %4 : vector<1x64xf32> to vector<546x64xf32>
    %25 = arith.mulf %23, %24 : vector<546x64xf32>
    %26 = vector.broadcast %5 : vector<1x64xf32> to vector<546x64xf32>
    %27 = arith.addf %25, %26 : vector<546x64xf32>
    %cst_13 = arith.constant 0.000000e+00 : f32
    %28 = vector.broadcast %cst_13 : f32 to vector<546x64xf32>
    %29 = arith.maximumf %27, %28 : vector<546x64xf32>
    %c0_14 = arith.constant 0 : index
    %c0_15 = arith.constant 0 : index
    %30 = vector.load %arg16[%c0_14, %c0_15] : memref<546x64xf32, #tpu.memory_space<vmem>>, vector<546x64xf32>
    tpu.vector_store %arg16[%c0_14, %c0_15], %29 {strides = array<i32>} : memref<546x64xf32, #tpu.memory_space<vmem>>, vector<546x64xf32>,
    %c0_16 = arith.constant 0 : index
    %c0_17 = arith.constant 0 : index
    %31 = vector.load %arg16[%c0_16, %c0_17] : memref<546x64xf32, #tpu.memory_space<vmem>>, vector<544x64xf32>
    %c1 = arith.constant 1 : index
    %c0_18 = arith.constant 0 : index
    %32 = vector.load %arg16[%c1, %c0_18] : memref<546x64xf32, #tpu.memory_space<vmem>>, vector<544x64xf32>
    %c2 = arith.constant 2 : index
    %c0_19 = arith.constant 0 : index
    %33 = vector.load %arg16[%c2, %c0_19] : memref<546x64xf32, #tpu.memory_space<vmem>>, vector<544x64xf32>
    %34 = tpu.concatenate %31, %32, %33 in 1 : vector<544x64xf32>, vector<544x64xf32>, vector<544x64xf32> -> vector<544x192xf32>
    %35 = arith.truncf %34 : vector<544x192xf32> to vector<544x192xbf16>
    %c0_20 = arith.constant 0 : index
    %c0_21 = arith.constant 0 : index
    %36 = vector.load %arg17[%c0_20, %c0_21] : memref<544x192xbf16, #tpu.memory_space<vmem>>, vector<544x192xbf16>
    tpu.vector_store %arg17[%c0_20, %c0_21], %35 {strides = array<i32>} : memref<544x192xbf16, #tpu.memory_space<vmem>>, vector<544x192xbf16>,
    %c0_22 = arith.constant 0 : index
    %c0_23 = arith.constant 0 : index
    %37 = vector.load %arg17[%c0_22, %c0_23] : memref<544x192xbf16, #tpu.memory_space<vmem>>, vector<512x192xbf16>
    %c0_24 = arith.constant 0 : index
    %c0_25 = arith.constant 0 : index
    %c0_26 = arith.constant 0 : index
    %38 = vector.load %arg5[%c0_24, %c0_25, %c0_26] : memref<3x192x32xbf16, #tpu.memory_space<vmem>>, vector<1x192x32xbf16>
    %39 = vector.shape_cast %38 : vector<1x192x32xbf16> to vector<192x32xbf16>
    %cst_27 = arith.constant dense<0.000000e+00> : vector<512x32xf32>
    %40 = tpu.matmul %37, %39, %cst_27 {dimension_numbers = #tpu.dot_dimension_numbers<[1], [0], [0], [1], [0, 0, 1, 1], [], []>} : vector<512x192xbf16>, vector<192x32xbf16>, vector<512x32xf32> -> vector<512x32xf32>
    %c16 = arith.constant 16 : index
    %c0_28 = arith.constant 0 : index
    %41 = vector.load %arg17[%c16, %c0_28] : memref<544x192xbf16, #tpu.memory_space<vmem>>, vector<512x192xbf16>
    %c1_29 = arith.constant 1 : index
    %c0_30 = arith.constant 0 : index
    %c0_31 = arith.constant 0 : index
    %42 = vector.load %arg5[%c1_29, %c0_30, %c0_31] : memref<3x192x32xbf16, #tpu.memory_space<vmem>>, vector<1x192x32xbf16>
    %43 = vector.shape_cast %42 : vector<1x192x32xbf16> to vector<192x32xbf16>
    %cst_32 = arith.constant dense<0.000000e+00> : vector<512x32xf32>
    %44 = tpu.matmul %41, %43, %cst_32 {dimension_numbers = #tpu.dot_dimension_numbers<[1], [0], [0], [1], [0, 0, 1, 1], [], []>} : vector<512x192xbf16>, vector<192x32xbf16>, vector<512x32xf32> -> vector<512x32xf32>
    %45 = arith.addf %40, %44 : vector<512x32xf32>
    %c32 = arith.constant 32 : index
    %c0_33 = arith.constant 0 : index
    %46 = vector.load %arg17[%c32, %c0_33] : memref<544x192xbf16, #tpu.memory_space<vmem>>, vector<512x192xbf16>
    %c2_34 = arith.constant 2 : index
    %c0_35 = arith.constant 0 : index
    %c0_36 = arith.constant 0 : index
    %47 = vector.load %arg5[%c2_34, %c0_35, %c0_36] : memref<3x192x32xbf16, #tpu.memory_space<vmem>>, vector<1x192x32xbf16>
    %48 = vector.shape_cast %47 : vector<1x192x32xbf16> to vector<192x32xbf16>
    %cst_37 = arith.constant dense<0.000000e+00> : vector<512x32xf32>
    %49 = tpu.matmul %46, %48, %cst_37 {dimension_numbers = #tpu.dot_dimension_numbers<[1], [0], [0], [1], [0, 0, 1, 1], [], []>} : vector<512x192xbf16>, vector<192x32xbf16>, vector<512x32xf32> -> vector<512x32xf32>
    %50 = arith.addf %45, %49 : vector<512x32xf32>
    %c0_38 = arith.constant 0 : index
    %c0_39 = arith.constant 0 : index
    %51 = vector.load %arg6[%c0_38, %c0_39] : memref<512x1xf32, #tpu.memory_space<vmem>>, vector<512x1xf32>
    %c0_40 = arith.constant 0 : index
    %c0_41 = arith.constant 0 : index
    %52 = vector.load %arg7[%c0_40, %c0_41] : memref<1x32xf32, #tpu.memory_space<vmem>>, vector<1x32xf32>
    %c0_42 = arith.constant 0 : index
    %c0_43 = arith.constant 0 : index
    %53 = vector.load %arg8[%c0_42, %c0_43] : memref<1x32xf32, #tpu.memory_space<vmem>>, vector<1x32xf32>
    %54 = vector.broadcast %51 : vector<512x1xf32> to vector<512x32xf32>
    %55 = arith.mulf %50, %54 : vector<512x32xf32>
    %cst_44 = arith.constant dense<0.000000e+00> : vector<32xf32>
    %56 = vector.multi_reduction <add>, %55, %cst_44 [0] : vector<512x32xf32> to vector<32xf32>
    %57 = vector.shape_cast %56 : vector<32xf32> to vector<1x32xf32>
    %58 = arith.mulf %50, %50 : vector<512x32xf32>
    %59 = vector.broadcast %51 : vector<512x1xf32> to vector<512x32xf32>
    %60 = arith.mulf %58, %59 : vector<512x32xf32>
    %cst_45 = arith.constant dense<0.000000e+00> : vector<32xf32>
    %61 = vector.multi_reduction <add>, %60, %cst_45 [0] : vector<512x32xf32> to vector<32xf32>
    %62 = vector.shape_cast %61 : vector<32xf32> to vector<1x32xf32>
    %63 = arith.mulf %57, %57 : vector<1x32xf32>
    %64 = arith.subf %62, %63 : vector<1x32xf32>
    %cst_46 = arith.constant 0.000000e+00 : f32
    %65 = vector.broadcast %cst_46 : f32 to vector<1x32xf32>
    %66 = arith.maximumf %64, %65 : vector<1x32xf32>
    %67 = vector.broadcast %57 : vector<1x32xf32> to vector<512x32xf32>
    %68 = arith.subf %50, %67 : vector<512x32xf32>
    %cst_47 = arith.constant 9.99999974E-6 : f32
    %69 = vector.broadcast %cst_47 : f32 to vector<1x32xf32>
    %70 = arith.addf %66, %69 : vector<1x32xf32>
    %71 = math.rsqrt %70 : vector<1x32xf32>
    %72 = vector.broadcast %71 : vector<1x32xf32> to vector<512x32xf32>
    %73 = arith.mulf %68, %72 : vector<512x32xf32>
    %74 = vector.broadcast %52 : vector<1x32xf32> to vector<512x32xf32>
    %75 = arith.mulf %73, %74 : vector<512x32xf32>
    %76 = vector.broadcast %53 : vector<1x32xf32> to vector<512x32xf32>
    %77 = arith.addf %75, %76 : vector<512x32xf32>
    %cst_48 = arith.constant 0.000000e+00 : f32
    %78 = vector.broadcast %cst_48 : f32 to vector<512x32xf32>
    %79 = arith.maximumf %77, %78 : vector<512x32xf32>
    %80 = arith.truncf %79 : vector<512x32xf32> to vector<512x32xbf16>
    %c0_49 = arith.constant 0 : index
    %c0_50 = arith.constant 0 : index
    %81 = vector.load %arg9[%c0_49, %c0_50] : memref<32x64xbf16, #tpu.memory_space<vmem>>, vector<32x64xbf16>
    %cst_51 = arith.constant dense<0.000000e+00> : vector<512x64xf32>
    %82 = tpu.matmul %80, %81, %cst_51 {dimension_numbers = #tpu.dot_dimension_numbers<[1], [0], [0], [1], [0, 0, 1, 1], [], []>} : vector<512x32xbf16>, vector<32x64xbf16>, vector<512x64xf32> -> vector<512x64xf32>
    %cst_52 = arith.constant 0.000000e+00 : f32
    %83 = vector.broadcast %cst_52 : f32 to vector<512x64xf32>
    %84 = arith.maximumf %82, %83 : vector<512x64xf32>
    %85 = arith.truncf %84 : vector<512x64xf32> to vector<512x64xbf16>
    %c0_53 = arith.constant 0 : index
    %c0_54 = arith.constant 0 : index
    %86 = vector.load %arg18[%c0_53, %c0_54] : memref<512x64xbf16, #tpu.memory_space<vmem>>, vector<512x64xbf16>
    tpu.vector_store %arg18[%c0_53, %c0_54], %85 {strides = array<i32>} : memref<512x64xbf16, #tpu.memory_space<vmem>>, vector<512x64xbf16>,
    %c0_55 = arith.constant 0 : index
    %c0_56 = arith.constant 0 : index
    %87 = vector.load %arg16[%c0_55, %c0_56] : memref<546x64xf32, #tpu.memory_space<vmem>>, vector<512x64xf32>
    %88 = arith.truncf %87 : vector<512x64xf32> to vector<512x64xbf16>
    %c0_57 = arith.constant 0 : index
    %c0_58 = arith.constant 0 : index
    %89 = vector.load %arg10[%c0_57, %c0_58] : memref<64x64xbf16, #tpu.memory_space<vmem>>, vector<64x64xbf16>
    %cst_59 = arith.constant dense<0.000000e+00> : vector<512x64xf32>
    %90 = tpu.matmul %88, %89, %cst_59 {dimension_numbers = #tpu.dot_dimension_numbers<[1], [0], [0], [1], [0, 0, 1, 1], [], []>} : vector<512x64xbf16>, vector<64x64xbf16>, vector<512x64xf32> -> vector<512x64xf32>
    %cst_60 = arith.constant 0.000000e+00 : f32
    %91 = vector.broadcast %cst_60 : f32 to vector<512x64xf32>
    %92 = arith.maximumf %90, %91 : vector<512x64xf32>
    %c0_61 = arith.constant 0 : index
    %c0_62 = arith.constant 0 : index
    %93 = vector.load %arg19[%c0_61, %c0_62] : memref<512x64xf32, #tpu.memory_space<vmem>>, vector<512x64xf32>
    tpu.vector_store %arg19[%c0_61, %c0_62], %92 {strides = array<i32>} : memref<512x64xf32, #tpu.memory_space<vmem>>, vector<512x64xf32>,
    %c0_i32 = arith.constant 0 : i32
    %c2_i32 = arith.constant 2 : i32
    %94 = arith.addi %c0_i32, %c2_i32 : i32
    %c1_i32 = arith.constant 1 : i32
    scf.for %arg20 = %c0_i32 to %94 step %c1_i32  : i32 {
      %c1_i32_79 = arith.constant 1 : i32
      %118 = arith.muli %arg20, %c1_i32_79 : i32
      %c0_i32_80 = arith.constant 0 : i32
      %119 = arith.addi %c0_i32_80, %118 : i32
      %c256_i32 = arith.constant 256 : i32
      %120 = arith.muli %119, %c256_i32 : i32
      %121 = tpu.assume_multiple %120, 256 : i32
      %c0_81 = arith.constant 0 : index
      %c0_82 = arith.constant 0 : index
      %122 = vector.load %arg11[%c0_81, %c0_82] : memref<256x256xbf16, #tpu.memory_space<vmem>>, vector<256x256xbf16>
      %123 = arith.index_cast %121 : i32 to index
      %c0_83 = arith.constant 0 : index
      %124 = vector.load %arg18[%123, %c0_83] : memref<512x64xbf16, #tpu.memory_space<vmem>>, vector<256x64xbf16>
      %cst_84 = arith.constant dense<0.000000e+00> : vector<256x64xf32>
      %125 = tpu.matmul %122, %124, %cst_84 {dimension_numbers = #tpu.dot_dimension_numbers<[1], [0], [0], [1], [0, 0, 1, 1], [], []>} : vector<256x256xbf16>, vector<256x64xbf16>, vector<256x64xf32> -> vector<256x64xf32>
      %126 = arith.index_cast %121 : i32 to index
      %c0_85 = arith.constant 0 : index
      %127 = vector.load %arg19[%126, %c0_85] : memref<512x64xf32, #tpu.memory_space<vmem>>, vector<256x64xf32>
      %128 = arith.addf %127, %125 : vector<256x64xf32>
      %129 = arith.index_cast %121 : i32 to index
      %c0_86 = arith.constant 0 : index
      %130 = vector.load %arg19[%129, %c0_86] : memref<512x64xf32, #tpu.memory_space<vmem>>, vector<256x64xf32>
      tpu.vector_store %arg19[%129, %c0_86], %128 {strides = array<i32>} : memref<512x64xf32, #tpu.memory_space<vmem>>, vector<256x64xf32>,
    }
    %c2_i32_63 = arith.constant 2 : i32
    %c0_64 = arith.constant 0 : index
    %c0_65 = arith.constant 0 : index
    %95 = vector.load %arg19[%c0_64, %c0_65] : memref<512x64xf32, #tpu.memory_space<vmem>>, vector<512x64xf32>
    %96 = arith.truncf %95 : vector<512x64xf32> to vector<512x64xbf16>
    %c0_66 = arith.constant 0 : index
    %c0_67 = arith.constant 0 : index
    %97 = vector.load %arg12[%c0_66, %c0_67] : memref<64x64xbf16, #tpu.memory_space<vmem>>, vector<64x64xbf16>
    %cst_68 = arith.constant dense<0.000000e+00> : vector<512x64xf32>
    %98 = tpu.matmul %96, %97, %cst_68 {dimension_numbers = #tpu.dot_dimension_numbers<[1], [0], [0], [1], [0, 0, 1, 1], [], []>} : vector<512x64xbf16>, vector<64x64xbf16>, vector<512x64xf32> -> vector<512x64xf32>
    %cst_69 = arith.constant 0.000000e+00 : f32
    %99 = vector.broadcast %cst_69 : f32 to vector<512x64xf32>
    %100 = arith.maximumf %98, %99 : vector<512x64xf32>
    %101 = arith.truncf %100 : vector<512x64xf32> to vector<512x64xbf16>
    %c0_70 = arith.constant 0 : index
    %c0_71 = arith.constant 0 : index
    %102 = vector.load %arg13[%c0_70, %c0_71] : memref<64x128xbf16, #tpu.memory_space<vmem>>, vector<64x128xbf16>
    %cst_72 = arith.constant dense<0.000000e+00> : vector<512x128xf32>
    %103 = tpu.matmul %101, %102, %cst_72 {dimension_numbers = #tpu.dot_dimension_numbers<[1], [0], [0], [1], [0, 0, 1, 1], [], []>} : vector<512x64xbf16>, vector<64x128xbf16>, vector<512x128xf32> -> vector<512x128xf32>
    %c0_73 = arith.constant 0 : index
    %c0_74 = arith.constant 0 : index
    %104 = vector.load %arg14[%c0_73, %c0_74] : memref<1x128xf32, #tpu.memory_space<vmem>>, vector<1x128xf32>
    %105 = vector.broadcast %104 : vector<1x128xf32> to vector<512x128xf32>
    %106 = arith.addf %103, %105 : vector<512x128xf32>
    %cst_75 = arith.constant dense<0xFF800000> : vector<512xf32>
    %107 = vector.multi_reduction <maximumf>, %106, %cst_75 [1] : vector<512x128xf32> to vector<512xf32>
    %108 = vector.shape_cast %107 : vector<512xf32> to vector<512x1xf32>
    %109 = vector.broadcast %108 : vector<512x1xf32> to vector<512x128xf32>
    %110 = arith.subf %106, %109 : vector<512x128xf32>
    %111 = math.exp %110 : vector<512x128xf32>
    %cst_76 = arith.constant dense<0.000000e+00> : vector<512xf32>
    %112 = vector.multi_reduction <add>, %111, %cst_76 [1] : vector<512x128xf32> to vector<512xf32>
    %113 = vector.shape_cast %112 : vector<512xf32> to vector<512x1xf32>
    %114 = tpu.reciprocal %113 : vector<512x1xf32> -> vector<512x1xf32>
    %115 = vector.broadcast %114 : vector<512x1xf32> to vector<512x128xf32>
    %116 = arith.mulf %111, %115 : vector<512x128xf32>
    %c0_77 = arith.constant 0 : index
    %c0_78 = arith.constant 0 : index
    %117 = vector.load %arg15[%c0_77, %c0_78] : memref<512x128xf32, #tpu.memory_space<vmem>>, vector<512x128xf32>
    tpu.vector_store %arg15[%c0_77, %c0_78], %116 {strides = array<i32>} : memref<512x128xf32, #tpu.memory_space<vmem>>, vector<512x128xf32>,
    return
  }
}

</mosaic_0001>

<bundles_post_ra>
// kernel: vgg_trunk_forward.1
= control target key start
LH: loop header
LB: loop body
LE: loop exit
PB: predicated region body
PF: predicated region fallthrough
CT: control target
= control target key end

     0   :  { %v10518_v0 = vmov 0.0   ;;  %vm10519_vm0 = vmmov 0   ;;  %vm419_vm1 = vcmask 1041408   ;;  %vm313_vm2 = vcmask 293888   ;;  %s16206_s11 = inlined_call_operand.vmem [shape: bf16[256,256], index: 11, kind: input, shape index: {}]   ;;  %s16207_s12 = inlined_call_operand.vmem [shape: bf16[64,64], index: 12, kind: input, shape index: {}]   ;;  %s16208_s13 = inlined_call_operand.vmem [shape: bf16[64,128], index: 13, kind: input, shape index: {}]   ;;  %s16209_s14 = inlined_call_operand.vmem [shape: f32[1,128], index: 14, kind: input, shape index: {}]   ;;  %s16210_s15 = inlined_call_operand.vmem [shape: f32[512,128], index: 15, kind: output, shape index: {}]   ;;  %s16211_s1 = inlined_call_operand.vmem [shape: bf16[36,64], index: 1, kind: input, shape index: {}]   ;;  %s16212_s0 = inlined_call_operand.vmem [shape: bf16[546,36], index: 0, kind: input, shape index: {}]   ;;  %s16213_s2 = inlined_call_operand.vmem [shape: f32[546,64], index: 2, kind: input, shape index: {}]   ;;  %s16214_s3 = inlined_call_operand.vmem [shape: f32[1,64], index: 3, kind: input, shape index: {}]   ;;  %s16215_s4 = inlined_call_operand.vmem [shape: f32[1,64], index: 4, kind: input, shape index: {}]   ;;  %s16216_s5 = inlined_call_operand.vmem [shape: bf16[3,192,32], index: 5, kind: input, shape index: {}]   ;;  %s16217_s6 = inlined_call_operand.vmem [shape: f32[512,1], index: 6, kind: input, shape index: {}]   ;;  %s16218_s9 = inlined_call_operand.vmem [shape: bf16[32,64], index: 9, kind: input, shape index: {}]   ;;  %s16219_s10 = inlined_call_operand.vmem [shape: bf16[64,64], index: 10, kind: input, shape index: {}]   ;;  %s16220_s7 = inlined_call_operand.vmem [shape: f32[1,32], index: 7, kind: input, shape index: {}]   ;;  %s16221_s8 = inlined_call_operand.vmem [shape: f32[1,32], index: 8, kind: input, shape index: {}]  }
   0x1   :  { %9231 = vmatprep.subr.bf16.mxu0 %v10518_v0  ;;  %v10109_v1 = vld [vmem:[%s16211_s1] sm:$0xff]   ;;  %9237 = vmatprep.mubr.msk.bf16.mxu0 %vm10519_vm0, %v10518_v0  ;;  %v10110_v2 = vld [vmem:[%s16211_s1 + $0x8] sm:$0xff]   ;;  %v10111_v3 = vld [vmem:[%s16211_s1 + $0x10] ss:$0 sps:$4 sm:$0x33]   ;;  %vm875_vm3 = vcmask 523264  }
   0x2   :  { %9232 = vmatpush3.bf16.msra.mxu0 %v10109_v1  ;;  %v421_v4 = vsel %vm419_vm1, %v10111_v3, 0  ;;  %v10112_v5 = vld [vmem:[%s16212_s0] sm:$0xff]   ;;  %v10113_v6 = vld [vmem:[%s16212_s0 + $0x8] sm:$0xff]   ;;  %v10114_v7 = vld [vmem:[%s16212_s0 + $0x10] sm:$0xff]   ;;  %vm1011_vm4 = vcmask 517120   ;;  %vm4408_vm5 = vcmask 261120  }
   0x3   :  { %9233 = vmatprep.subr.bf16.mxu0 %v10518_v0  ;;  %v10115_v8 = vld [vmem:[%s16212_s0 + $0x18] sm:$0xff]   ;;  %v10116_v9 = vld [vmem:[%s16212_s0 + $0x20] sm:$0xff]   ;;  %v10117_v10 = vld [vmem:[%s16212_s0 + $0x28] sm:$0xff]  }
   0x4   :  { %v10118_v11 = vld [vmem:[%s16212_s0 + $0x30] sm:$0xff]   ;;  %v10119_v12 = vld [vmem:[%s16212_s0 + $0x38] sm:$0xff]   ;;  %v10120_v13 = vld [vmem:[%s16212_s0 + $0x40] sm:$0xff]  }
   0x5   :  { %v10121_v14 = vld [vmem:[%s16212_s0 + $0x48] sm:$0xff]   ;;  %v10122_v15 = vld [vmem:[%s16212_s0 + $0x50] sm:$0xff]   ;;  %v10123_v16 = vld [vmem:[%s16212_s0 + $0x58] sm:$0xff]  }
   0x6   :  { %9234 = vmatpush3.bf16.msra.mxu0 %v10110_v2  ;;  %v10124_v17 = vld [vmem:[%s16212_s0 + $0x60] sm:$0xff]   ;;  %v10125_v18 = vld [vmem:[%s16212_s0 + $0x68] sm:$0xff]   ;;  %v10126_v19 = vld [vmem:[%s16212_s0 + $0x70] sm:$0xff]  }
   0x7   :  { %9235 = vmatprep.subr.bf16.mxu0 %v10518_v0  ;;  %v10127_v20 = vld [vmem:[%s16212_s0 + $0x78] sm:$0xff]   ;;  %v10128_v21 = vld [vmem:[%s16212_s0 + $0x80] sm:$0xff]   ;;  %v10129_v22 = vld [vmem:[%s16212_s0 + $0x88] sm:$0xff]  }
   0x8   :  { %v10130_v23 = vld [vmem:[%s16212_s0 + $0x90] sm:$0xff]   ;;  %v10131_v24 = vld [vmem:[%s16212_s0 + $0x98] sm:$0xff]   ;;  %v10132_v25 = vld [vmem:[%s16212_s0 + $0xa0] sm:$0xff]  }
   0x9   :  { %v10133_v26 = vld [vmem:[%s16212_s0 + $0xa8] sm:$0xff]   ;;  %v10134_v27 = vld [vmem:[%s16212_s0 + $0xb0] sm:$0xff]   ;;  %v10135_v28 = vld [vmem:[%s16212_s0 + $0xb8] sm:$0xff]  }
   0xa   :  { %9236 = vmatpush3.bf16.msra.mxu0 %v421_v4  ;;  %v10136_v29 = vld [vmem:[%s16212_s0 + $0xc0] sm:$0xff]   ;;  %v10137_v30 = vld [vmem:[%s16212_s0 + $0xc8] sm:$0xff]   ;;  %v10138_v31 = vld [vmem:[%s16212_s0 + $0xd0] sm:$0xff]  }
   0xb   :  { %v735_v32 = vld [vmem:[%s16213_s2] sm:$0xff]  ;;  %v736_v34 = vld [vmem:[%s16213_s2 + $0x8] sm:$0xff]  ;;  %v10139_v38 = vld [vmem:[%s16212_s0 + $0xd8] sm:$0xff]  }
   0xc   :  { %v737_v48 = vld [vmem:[%s16213_s2 + $0x10] sm:$0xff]  ;;  %v738_v53 = vld [vmem:[%s16213_s2 + $0x18] sm:$0xff]  ;;  %v10140_v57 = vld [vmem:[%s16212_s0 + $0xe0] sm:$0xff]  }
   0xd   :  { %9238 = vmatmul.mubr.msk.bf16.vlgmr.msra.gmra.mrb[0].mxu0 %vm313_vm2, %v10112_v5 }
   0xe   :  { %9241 = vmatprep.mubr.msk.bf16.mxu0 %vm10519_vm0, %v10518_v0 }
  0x15   :  { %9242 = vmatmul.mubr.msk.bf16.gmra.mrb[4].mxu0 %vm313_vm2, %v10113_v6 }
  0x16   :  { %9245 = vmatprep.mubr.msk.bf16.mxu0 %vm10519_vm0, %v10518_v0 }
  0x1d   :  { %9246 = vmatmul.mubr.msk.bf16.gmra.mrb[8].mxu0 %vm313_vm2, %v10114_v7  ;;  %v739_v7 = vld [vmem:[%s16213_s2 + $0x20] sm:$0xff] }
  0x1e   :  { %9249 = vmatprep.mubr.msk.bf16.mxu0 %vm10519_vm0, %v10518_v0 }
  0x25   :  { %9250 = vmatmul.mubr.msk.bf16.gmra.mrb[12].mxu0 %vm313_vm2, %v10115_v8 }
  0x26   :  { %9253 = vmatprep.mubr.msk.bf16.mxu0 %vm10519_vm0, %v10518_v0 }
  0x2d   :  { %9254 = vmatmul.mubr.msk.bf16.gmra.mrb[16].mxu0 %vm313_vm2, %v10116_v9 }
  0x2e   :  { %9257 = vmatprep.mubr.msk.bf16.mxu0 %vm10519_vm0, %v10518_v0 }
  0x35   :  { %9258 = vmatmul.mubr.msk.bf16.gmra.mrb[20].mxu0 %vm313_vm2, %v10117_v10 }
  0x36   :  { %9261 = vmatprep.mubr.msk.bf16.mxu0 %vm10519_vm0, %v10518_v0 }
  0x3d   :  { %9262 = vmatmul.mubr.msk.bf16.gmra.mrb[24].mxu0 %vm313_vm2, %v10118_v11  ;;  %v740_v11 = vld [vmem:[%s16213_s2 + $0x28] sm:$0xff] }
  0x3e   :  { %9265 = vmatprep.mubr.msk.bf16.mxu0 %vm10519_vm0, %v10518_v0 }
  0x45   :  { %9266 = vmatmul.mubr.msk.bf16.gmra.mrb[28].mxu0 %vm313_vm2, %v10119_v12 }
  0x46   :  { %9269 = vmatprep.mubr.msk.bf16.mxu0 %vm10519_vm0, %v10518_v0 }
  0x4d   :  { %9270 = vmatmul.mubr.msk.bf16.gmra.mrb[32].mxu0 %vm313_vm2, %v10120_v13 }
  0x4e   :  { %9273 = vmatprep.mubr.msk.bf16.mxu0 %vm10519_vm0, %v10518_v0 }
  0x55   :  { %9274 = vmatmul.mubr.msk.bf16.gmra.mrb[36].mxu0 %vm313_vm2, %v10121_v14 }
  0x56   :  { %9277 = vmatprep.mubr.msk.bf16.mxu0 %vm10519_vm0, %v10518_v0 }
  0x5d   :  { %9278 = vmatmul.mubr.msk.bf16.gmra.mrb[40].mxu0 %vm313_vm2, %v10122_v15  ;;  %v10141_v15 = vld [vmem:[%s16212_s0 + $0xe8] sm:$0xff]  }
  0x5e   :  { %9281 = vmatprep.mubr.msk.bf16.mxu0 %vm10519_vm0, %v10518_v0 }
  0x65   :  { %9282 = vmatmul.mubr.msk.bf16.gmra.mrb[44].mxu0 %vm313_vm2, %v10123_v16 }
  0x66   :  { %9285 = vmatprep.mubr.msk.bf16.mxu0 %vm10519_vm0, %v10518_v0 }
  0x6d   :  { %9286 = vmatmul.mubr.msk.bf16.gmra.mrb[48].mxu0 %vm313_vm2, %v10124_v17 }
  0x6e   :  { %9289 = vmatprep.mubr.msk.bf16.mxu0 %vm10519_vm0, %v10518_v0 }
  0x75   :  { %9290 = vmatmul.mubr.msk.bf16.gmra.mrb[52].mxu0 %vm313_vm2, %v10125_v18 }
  0x76   :  { %9293 = vmatprep.mubr.msk.bf16.mxu0 %vm10519_vm0, %v10518_v0 }
  0x7d   :  { %9294 = vmatmul.mubr.msk.bf16.gmra.mrb[56].mxu0 %vm313_vm2, %v10126_v19 }
  0x7e   :  { %9297 = vmatprep.mubr.msk.bf16.mxu0 %vm10519_vm0, %v10518_v0 }
  0x85   :  { %9298 = vmatmul.mubr.msk.bf16.gmra.mrb[60].mxu0 %vm313_vm2, %v10127_v20 }
  0x86   :  { %9301 = vmatprep.mubr.msk.bf16.mxu0 %vm10519_vm0, %v10518_v0 }
  0x8d   :  { %9302 = vmatmul.mubr.msk.bf16.gmra.mrb[64].mxu0 %vm313_vm2, %v10128_v21 }
  0x8e   :  { %9305 = vmatprep.mubr.msk.bf16.mxu0 %vm10519_vm0, %v10518_v0 }
  0x95   :  { %9306 = vmatmul.mubr.msk.bf16.gmra.mrb[68].mxu0 %vm313_vm2, %v10129_v22 }
  0x96   :  { %9309 = vmatprep.mubr.msk.bf16.mxu0 %vm10519_vm0, %v10518_v0 }
  0x9d   :  { %9310 = vmatmul.mubr.msk.bf16.gmra.mrb[72].mxu0 %vm313_vm2, %v10130_v23 }
  0x9e   :  { %9313 = vmatprep.mubr.msk.bf16.mxu0 %vm10519_vm0, %v10518_v0 }
  0xa5   :  { %9314 = vmatmul.mubr.msk.bf16.gmra.mrb[76].mxu0 %vm313_vm2, %v10131_v24 }
  0xa6   :  { %9317 = vmatprep.mubr.msk.bf16.mxu0 %vm10519_vm0, %v10518_v0 }
  0xad   :  { %9318 = vmatmul.mubr.msk.bf16.gmra.mrb[80].mxu0 %vm313_vm2, %v10132_v25 }
  0xae   :  { %9321 = vmatprep.mubr.msk.bf16.mxu0 %vm10519_vm0, %v10518_v0 }
  0xb5   :  { %9322 = vmatmul.mubr.msk.bf16.gmra.mrb[84].mxu0 %vm313_vm2, %v10133_v26 }
  0xb6   :  { %9325 = vmatprep.mubr.msk.bf16.mxu0 %vm10519_vm0, %v10518_v0 }
  0xbd   :  { %9326 = vmatmul.mubr.msk.bf16.gmra.mrb[88].mxu0 %vm313_vm2, %v10134_v27 }
  0xbe   :  { %9329 = vmatprep.mubr.msk.bf16.mxu0 %vm10519_vm0, %v10518_v0 }
  0xc5   :  { %9330 = vmatmul.mubr.msk.bf16.gmra.mrb[92].mxu0 %vm313_vm2, %v10135_v28  ;;  %v741_v28 = vld [vmem:[%s16213_s2 + $0x30] sm:$0xff] }
  0xc6   :  { %9333 = vmatprep.mubr.msk.bf16.mxu0 %vm10519_vm0, %v10518_v0 }
  0xcd   :  { %9334 = vmatmul.mubr.msk.bf16.gmra.mrb[96].mxu0 %vm313_vm2, %v10136_v29 }
  0xce   :  { %9337 = vmatprep.mubr.msk.bf16.mxu0 %vm10519_vm0, %v10518_v0 }
  0xd5   :  { %9338 = vmatmul.mubr.msk.bf16.gmra.mrb[100].mxu0 %vm313_vm2, %v10137_v30 }
  0xd6   :  { %9341 = vmatprep.mubr.msk.bf16.mxu0 %vm10519_vm0, %v10518_v0 }
  0xdd   :  { %9342 = vmatmul.mubr.msk.bf16.gmra.mrb[104].mxu0 %vm313_vm2, %v10138_v31 }
  0xde   :  { %9345 = vmatprep.mubr.msk.bf16.mxu0 %vm10519_vm0, %v10518_v0 }
  0xe0   :  { %v10781_v33 = vpop.f32.mrb[0].mxu0 }
  0xe1   :  { %v806_v35 = vmul.f32 %v735_v32, %v10781_v33  ;;  %v1020_v36 = vmul.f32 %v10781_v33, %v10781_v33  ;;  %v9239_v37 = vpop.f32.mrb[1].mxu0 }
  0xe2   :  { %v10792_v39 = vpop.f32.mrb[2].mxu0  ;;  %v10142_v37 = vld [vmem:[%s16212_s0 + $0xf0] sm:$0xff]  }
  0xe3   :  { %v1089_v40 = vmul.f32 %v1020_v36, %v735_v32  ;;  %v807_v41 = vmul.f32 %v736_v34, %v10792_v39  ;;  %v1021_v42 = vmul.f32 %v10792_v39, %v10792_v39  ;;  %v9240_v43 = vpop.f32.mrb[3].mxu0  ;;  %v876_v44 = vsel %vm875_vm3, %v806_v35, 0.0  ;;  %v742_v32 = vld [vmem:[%s16213_s2 + $0x38] sm:$0xff] }
  0xe5   :  { %v877_v45 = vsel %vm875_vm3, %v807_v41, 0.0  ;;  %v1090_v46 = vmul.f32 %v1021_v42, %v736_v34  ;;  %9346 = vmatmul.mubr.msk.bf16.gmra.mrb[108].mxu0 %vm313_vm2, %v10139_v38  ;;  %v1158_v49 = vsel %vm875_vm3, %v1089_v40, 0.0 }
  0xe6   :  { %v878_v47 = vadd.f32 %v877_v45, %v876_v44  ;;  %9349 = vmatprep.mubr.msk.bf16.mxu0 %vm10519_vm0, %v10518_v0 }
  0xe7   :  { %v1159_v50 = vsel %vm875_vm3, %v1090_v46, 0.0 }
  0xe8   :  { %v1160_v51 = vadd.f32 %v1159_v50, %v1158_v49  ;;  %v10807_v52 = vpop.f32.mrb[4].mxu0 }
  0xe9   :  { %v808_v54 = vmul.f32 %v737_v48, %v10807_v52  ;;  %v1022_v55 = vmul.f32 %v10807_v52, %v10807_v52  ;;  %v9243_v56 = vpop.f32.mrb[5].mxu0 }
  0xea   :  { %v10818_v58 = vpop.f32.mrb[6].mxu0  ;;  %v744_v56 = vld [vmem:[%s16213_s2 + $0x48] sm:$0xff] }
  0xeb   :  { %v879_v59 = vsel %vm875_vm3, %v808_v54, 0.0  ;;  %v1091_v60 = vmul.f32 %v1022_v55, %v737_v48  ;;  %v809_v61 = vmul.f32 %v738_v53, %v10818_v58  ;;  %v1023_v62 = vmul.f32 %v10818_v58, %v10818_v58  ;;  %v9244_v63 = vpop.f32.mrb[7].mxu0 }
  0xec   :  { %v880_v1 = vadd.f32 %v879_v59, %v878_v47 }
  0xed   :  { %v1161_v2 = vsel %vm875_vm3, %v1091_v60, 0.0  ;;  %v881_v3 = vsel %vm875_vm3, %v809_v61, 0.0  ;;  %v1092_v4 = vmul.f32 %v1023_v62, %v738_v53  ;;  %9350 = vmatmul.mubr.msk.bf16.gmra.mrb[112].mxu0 %vm313_vm2, %v10140_v57  ;;  %v10143_v61 = vld [vmem:[%s16212_s0 + $0xf8] sm:$0xff]  }
  0xee   :  { %v1162_v5 = vadd.f32 %v1161_v2, %v1160_v51  ;;  %v882_v6 = vadd.f32 %v881_v3, %v880_v1  ;;  %9353 = vmatprep.mubr.msk.bf16.mxu0 %vm10519_vm0, %v10518_v0  ;;  %v743_v51 = vld [vmem:[%s16213_s2 + $0x40] sm:$0xff] }
  0xef   :  { %v1163_v8 = vsel %vm875_vm3, %v1092_v4, 0.0 }
  0xf0   :  { %v1164_v9 = vadd.f32 %v1163_v8, %v1162_v5  ;;  %v10833_v10 = vpop.f32.mrb[8].mxu0 }
  0xf1   :  { %v810_v12 = vmul.f32 %v739_v7, %v10833_v10  ;;  %v1024_v13 = vmul.f32 %v10833_v10, %v10833_v10  ;;  %v9247_v14 = vpop.f32.mrb[9].mxu0 }
  0xf2   :  { %v10844_v16 = vpop.f32.mrb[10].mxu0 }
  0xf3   :  { %v883_v17 = vsel %vm875_vm3, %v810_v12, 0.0  ;;  %v1093_v18 = vmul.f32 %v1024_v13, %v739_v7  ;;  %v811_v19 = vmul.f32 %v740_v11, %v10844_v16  ;;  %v1025_v20 = vmul.f32 %v10844_v16, %v10844_v16  ;;  %v9248_v21 = vpop.f32.mrb[11].mxu0  ;;  %v745_v12 = vld [vmem:[%s16213_s2 + $0x50] sm:$0xff] }
  0xf4   :  { %v884_v22 = vadd.f32 %v883_v17, %v882_v6  ;;  %v746_v17 = vld [vmem:[%s16213_s2 + $0x58] sm:$0xff]  ;;  %v10144_v21 = vld [vmem:[%s16212_s0 + $0x100] sm:$0xff]  }
  0xf5   :  { %v1165_v23 = vsel %vm875_vm3, %v1093_v18, 0.0  ;;  %v885_v24 = vsel %vm875_vm3, %v811_v19, 0.0  ;;  %v1094_v25 = vmul.f32 %v1025_v20, %v740_v11  ;;  %9354 = vmatmul.mubr.msk.bf16.gmra.mrb[116].mxu0 %vm313_vm2, %v10141_v15 }
  0xf6   :  { %v1166_v26 = vadd.f32 %v1165_v23, %v1164_v9  ;;  %v886_v27 = vadd.f32 %v885_v24, %v884_v22  ;;  %9357 = vmatprep.mubr.msk.bf16.mxu0 %vm10519_vm0, %v10518_v0 }
  0xf7   :  { %v1167_v29 = vsel %vm875_vm3, %v1094_v25, 0.0 }
  0xf8   :  { %v1168_v30 = vadd.f32 %v1167_v29, %v1166_v26  ;;  %v10859_v31 = vpop.f32.mrb[12].mxu0 }
  0xf9   :  { %v812_v34 = vmul.f32 %v741_v28, %v10859_v31  ;;  %v1026_v35 = vmul.f32 %v10859_v31, %v10859_v31  ;;  %v9251_v36 = vpop.f32.mrb[13].mxu0 }
  0xfa   :  { %v10870_v38 = vpop.f32.mrb[14].mxu0  ;;  %v747_v36 = vld [vmem:[%s16213_s2 + $0x60] sm:$0xff] }
  0xfb   :  { %v887_v40 = vsel %vm875_vm3, %v812_v34, 0.0  ;;  %v1095_v41 = vmul.f32 %v1026_v35, %v741_v28  ;;  %v813_v42 = vmul.f32 %v742_v32, %v10870_v38  ;;  %v1027_v43 = vmul.f32 %v10870_v38, %v10870_v38  ;;  %v9252_v44 = vpop.f32.mrb[15].mxu0 }
  0xfc   :  { %v888_v45 = vadd.f32 %v887_v40, %v886_v27 }
  0xfd   :  { %v1169_v46 = vsel %vm875_vm3, %v1095_v41, 0.0  ;;  %v889_v47 = vsel %vm875_vm3, %v813_v42, 0.0  ;;  %v1096_v48 = vmul.f32 %v1027_v43, %v742_v32  ;;  %9358 = vmatmul.mubr.msk.bf16.gmra.mrb[120].mxu0 %vm313_vm2, %v10142_v37  ;;  %v748_v42 = vld [vmem:[%s16213_s2 + $0x68] sm:$0xff] }
  0xfe   :  { %v1170_v49 = vadd.f32 %v1169_v46, %v1168_v30  ;;  %v890_v50 = vadd.f32 %v889_v47, %v888_v45  ;;  %9361 = vmatprep.mubr.msk.bf16.mxu0 %vm10519_vm0, %v10518_v0  ;;  %v10145_v46 = vld [vmem:[%s16212_s0 + $0x108] sm:$0xff]  }
  0xff   :  { %v1171_v53 = vsel %vm875_vm3, %v1096_v48, 0.0 }
 0x100   :  { %v1172_v54 = vadd.f32 %v1171_v53, %v1170_v49  ;;  %v10885_v55 = vpop.f32.mrb[16].mxu0 }
 0x101   :  { %v814_v57 = vmul.f32 %v743_v51, %v10885_v55  ;;  %v1028_v59 = vmul.f32 %v10885_v55, %v10885_v55  ;;  %v9255_v60 = vpop.f32.mrb[17].mxu0 }
 0x102   :  { %v10896_v62 = vpop.f32.mrb[18].mxu0 }
 0x103   :  { %v891_v63 = vsel %vm875_vm3, %v814_v57, 0.0  ;;  %v1097_v1 = vmul.f32 %v1028_v59, %v743_v51  ;;  %v815_v2 = vmul.f32 %v744_v56, %v10896_v62  ;;  %v1029_v3 = vmul.f32 %v10896_v62, %v10896_v62  ;;  %v9256_v4 = vpop.f32.mrb[19].mxu0 }
 0x104   :  { %v892_v5 = vadd.f32 %v891_v63, %v890_v50  ;;  %v749_v63 = vld [vmem:[%s16213_s2 + $0x70] sm:$0xff]  ;;  %v750_v4 = vld [vmem:[%s16213_s2 + $0x78] sm:$0xff] }
 0x105   :  { %v1173_v6 = vsel %vm875_vm3, %v1097_v1, 0.0  ;;  %v893_v7 = vsel %vm875_vm3, %v815_v2, 0.0  ;;  %v1098_v8 = vmul.f32 %v1029_v3, %v744_v56  ;;  %9362 = vmatmul.mubr.msk.bf16.gmra.mrb[124].mxu0 %vm313_vm2, %v10143_v61 }
 0x106   :  { %v1174_v9 = vadd.f32 %v1173_v6, %v1172_v54  ;;  %v894_v11 = vadd.f32 %v893_v7, %v892_v5  ;;  %9365 = vmatprep.mubr.msk.bf16.mxu0 %vm10519_vm0, %v10518_v0 }
 0x107   :  { %v1175_v13 = vsel %vm875_vm3, %v1098_v8, 0.0  ;;  %v10146_v8 = vld [vmem:[%s16212_s0 + $0x110] ss:$0 sps:$4 sm:$0x11]  }
 0x108   :  { %v1176_v14 = vadd.f32 %v1175_v13, %v1174_v9  ;;  %v10911_v15 = vpop.f32.mrb[20].mxu0 }
 0x109   :  { %v816_v18 = vmul.f32 %v745_v12, %v10911_v15  ;;  %v1030_v19 = vmul.f32 %v10911_v15, %v10911_v15  ;;  %v9259_v20 = vpop.f32.mrb[21].mxu0 }
 0x10a   :  { %v10922_v22 = vpop.f32.mrb[22].mxu0 }
 0x10b   :  { %v895_v23 = vsel %vm875_vm3, %v816_v18, 0.0  ;;  %v1099_v24 = vmul.f32 %v1030_v19, %v745_v12  ;;  %v817_v25 = vmul.f32 %v746_v17, %v10922_v22  ;;  %v1031_v26 = vmul.f32 %v10922_v22, %v10922_v22  ;;  %v9260_v27 = vpop.f32.mrb[23].mxu0 }
 0x10c   :  { %v896_v28 = vadd.f32 %v895_v23, %v894_v11 }
 0x10d   :  { %v1177_v29 = vsel %vm875_vm3, %v1099_v24, 0.0  ;;  %v897_v30 = vsel %vm875_vm3, %v817_v25, 0.0  ;;  %v1100_v32 = vmul.f32 %v1031_v26, %v746_v17  ;;  %9366 = vmatmul.mubr.msk.bf16.gmra.mrb[128].mxu0 %vm313_vm2, %v10144_v21  ;;  %v751_v24 = vld [vmem:[%s16213_s2 + $0x80] sm:$0xff] }
 0x10e   :  { %v1178_v34 = vadd.f32 %v1177_v29, %v1176_v14  ;;  %v898_v35 = vadd.f32 %v897_v30, %v896_v28  ;;  %9369 = vmatprep.mubr.msk.bf16.mxu0 %vm10519_vm0, %v10518_v0  ;;  %v752_v28 = vld [vmem:[%s16213_s2 + $0x88] sm:$0xff] }
 0x10f   :  { %v1179_v37 = vsel %vm875_vm3, %v1100_v32, 0.0 }
 0x110   :  { %v1180_v40 = vadd.f32 %v1179_v37, %v1178_v34  ;;  %v10937_v41 = vpop.f32.mrb[24].mxu0 }
 0x111   :  { %v818_v43 = vmul.f32 %v747_v36, %v10937_v41  ;;  %v1032_v44 = vmul.f32 %v10937_v41, %v10937_v41  ;;  %v9263_v45 = vpop.f32.mrb[25].mxu0 }
 0x112   :  { %v10948_v47 = vpop.f32.mrb[26].mxu0 }
 0x113   :  { %v899_v48 = vsel %vm875_vm3, %v818_v43, 0.0  ;;  %v1101_v49 = vmul.f32 %v1032_v44, %v747_v36  ;;  %v819_v50 = vmul.f32 %v748_v42, %v10948_v47  ;;  %v1033_v51 = vmul.f32 %v10948_v47, %v10948_v47  ;;  %v9264_v53 = vpop.f32.mrb[27].mxu0 }
 0x114   :  { %v900_v54 = vadd.f32 %v899_v48, %v898_v35 }
 0x115   :  { %v1181_v56 = vsel %vm875_vm3, %v1101_v49, 0.0  ;;  %v901_v57 = vsel %vm875_vm3, %v819_v50, 0.0  ;;  %v1102_v59 = vmul.f32 %v1033_v51, %v748_v42  ;;  %9370 = vmatmul.mubr.msk.bf16.gmra.mrb[132].mxu0 %vm313_vm2, %v10145_v46  ;;  %v753_v50 = vld [vmem:[%s16213_s2 + $0x90] sm:$0xff] }
 0x116   :  { %v1182_v60 = vadd.f32 %v1181_v56, %v1180_v40  ;;  %v902_v61 = vadd.f32 %v901_v57, %v900_v54  ;;  %9373 = vmatprep.mubr.msk.bf16.mxu0 %vm10519_vm0, %v10518_v0  ;;  %v754_v56 = vld [vmem:[%s16213_s2 + $0x98] sm:$0xff] }
 0x117   :  { %v1183_v1 = vsel %vm875_vm3, %v1102_v59, 0.0 }
 0x118   :  { %v1184_v2 = vadd.f32 %v1183_v1, %v1182_v60  ;;  %v10963_v3 = vpop.f32.mrb[28].mxu0 }
 0x119   :  { %v820_v5 = vmul.f32 %v749_v63, %v10963_v3  ;;  %v1034_v6 = vmul.f32 %v10963_v3, %v10963_v3  ;;  %v9267_v7 = vpop.f32.mrb[29].mxu0 }
 0x11a   :  { %v10974_v0 = vpop.f32.mrb[30].mxu0 }
 0x11b   :  { %v903_v9 = vsel %vm875_vm3, %v820_v5, 0.0  ;;  %v1103_v11 = vmul.f32 %v1034_v6, %v749_v63  ;;  %v821_v12 = vmul.f32 %v750_v4, %v10974_v0  ;;  %v1035_v13 = vmul.f32 %v10974_v0, %v10974_v0  ;;  %v9268_v14 = vpop.f32.mrb[31].mxu0 }
 0x11c   :  { %v904_v17 = vadd.f32 %v903_v9, %v902_v61 }
 0x11d   :  { %v1185_v18 = vsel %vm875_vm3, %v1103_v11, 0.0  ;;  %v905_v19 = vsel %vm875_vm3, %v821_v12, 0.0  ;;  %v1104_v20 = vmul.f32 %v1035_v13, %v750_v4  ;;  %9374 = vmatmul.mubr.msk.bf16.gmra.mrb[136].mxu0 %vm313_vm2, %v10146_v8  ;;  %v755_v13 = vld [vmem:[%s16213_s2 + $0xa0] sm:$0xff] }
 0x11e   :  { %v1186_v21 = vadd.f32 %v1185_v18, %v1184_v2  ;;  %v906_v23 = vadd.f32 %v905_v19, %v904_v17  ;;  %v756_v19 = vld [vmem:[%s16213_s2 + $0xa8] sm:$0xff] }
 0x11f   :  { %v1187_v25 = vsel %vm875_vm3, %v1104_v20, 0.0 }
 0x120   :  { %v1188_v26 = vadd.f32 %v1187_v25, %v1186_v21  ;;  %v10987_v27 = vpop.f32.mrb[32].mxu0 }
 0x121   :  { %v822_v29 = vmul.f32 %v751_v24, %v10987_v27  ;;  %v1036_v30 = vmul.f32 %v10987_v27, %v10987_v27  ;;  %v9271_v32 = vpop.f32.mrb[33].mxu0 }
 0x122   :  { %v10995_v34 = vpop.f32.mrb[34].mxu0 }
 0x123   :  { %v907_v35 = vsel %vm875_vm3, %v822_v29, 0.0  ;;  %v1105_v36 = vmul.f32 %v1036_v30, %v751_v24  ;;  %v823_v37 = vmul.f32 %v752_v28, %v10995_v34  ;;  %v1037_v40 = vmul.f32 %v10995_v34, %v10995_v34  ;;  %v9272_v42 = vpop.f32.mrb[35].mxu0 }
 0x124   :  { %v908_v43 = vadd.f32 %v907_v35, %v906_v23 }
 0x125   :  { %v1189_v44 = vsel %vm875_vm3, %v1105_v36, 0.0  ;;  %v909_v45 = vsel %vm875_vm3, %v823_v37, 0.0  ;;  %v1106_v46 = vmul.f32 %v1037_v40, %v752_v28 }
 0x126   :  { %v1190_v48 = vadd.f32 %v1189_v44, %v1188_v26  ;;  %v910_v49 = vadd.f32 %v909_v45, %v908_v43  ;;  %v757_v43 = vld [vmem:[%s16213_s2 + $0xb0] sm:$0xff] }
 0x127   :  { %v1191_v51 = vsel %vm875_vm3, %v1106_v46, 0.0 }
 0x128   :  { %v1192_v53 = vadd.f32 %v1191_v51, %v1190_v48  ;;  %v11007_v54 = vpop.f32.mrb[36].mxu0  ;;  %v758_v48 = vld [vmem:[%s16213_s2 + $0xb8] sm:$0xff] }
 0x129   :  { %v824_v57 = vmul.f32 %v753_v50, %v11007_v54  ;;  %v1038_v59 = vmul.f32 %v11007_v54, %v11007_v54  ;;  %v9275_v60 = vpop.f32.mrb[37].mxu0 }
 0x12a   :  { %v11015_v61 = vpop.f32.mrb[38].mxu0 }
 0x12b   :  { %v911_v63 = vsel %vm875_vm3, %v824_v57, 0.0  ;;  %v1107_v1 = vmul.f32 %v1038_v59, %v753_v50  ;;  %v825_v2 = vmul.f32 %v754_v56, %v11015_v61  ;;  %v1039_v4 = vmul.f32 %v11015_v61, %v11015_v61  ;;  %v9276_v5 = vpop.f32.mrb[39].mxu0 }
 0x12c   :  { %v912_v6 = vadd.f32 %v911_v63, %v910_v49 }
 0x12d   :  { %v1193_v7 = vsel %vm875_vm3, %v1107_v1, 0.0  ;;  %v913_v8 = vsel %vm875_vm3, %v825_v2, 0.0  ;;  %v1108_v9 = vmul.f32 %v1039_v4, %v754_v56 }
 0x12e   :  { %v1194_v11 = vadd.f32 %v1193_v7, %v1192_v53  ;;  %v914_v12 = vadd.f32 %v913_v8, %v912_v6  ;;  %v759_v8 = vld [vmem:[%s16213_s2 + $0xc0] sm:$0xff] }
 0x12f   :  { %v1195_v14 = vsel %vm875_vm3, %v1108_v9, 0.0 }
 0x130   :  { %v1196_v17 = vadd.f32 %v1195_v14, %v1194_v11  ;;  %v11027_v18 = vpop.f32.mrb[40].mxu0 }
 0x131   :  { %v826_v20 = vmul.f32 %v755_v13, %v11027_v18  ;;  %v1040_v21 = vmul.f32 %v11027_v18, %v11027_v18  ;;  %v9279_v23 = vpop.f32.mrb[41].mxu0 }
 0x132   :  { %v11035_v24 = vpop.f32.mrb[42].mxu0 }
 0x133   :  { %v915_v25 = vsel %vm875_vm3, %v826_v20, 0.0  ;;  %v1109_v26 = vmul.f32 %v1040_v21, %v755_v13  ;;  %v827_v28 = vmul.f32 %v756_v19, %v11035_v24  ;;  %v1041_v29 = vmul.f32 %v11035_v24, %v11035_v24  ;;  %v9280_v30 = vpop.f32.mrb[43].mxu0  ;;  %v760_v13 = vld [vmem:[%s16213_s2 + $0xc8] sm:$0xff] }
 0x134   :  { %v916_v32 = vadd.f32 %v915_v25, %v914_v12 }
 0x135   :  { %v1197_v35 = vsel %vm875_vm3, %v1109_v26, 0.0  ;;  %v917_v36 = vsel %vm875_vm3, %v827_v28, 0.0  ;;  %v1110_v37 = vmul.f32 %v1041_v29, %v756_v19 }
 0x136   :  { %v1198_v40 = vadd.f32 %v1197_v35, %v1196_v17  ;;  %v918_v42 = vadd.f32 %v917_v36, %v916_v32 }
 0x137   :  { %v1199_v44 = vsel %vm875_vm3, %v1110_v37, 0.0 }
 0x138   :  { %v1200_v45 = vadd.f32 %v1199_v44, %v1198_v40  ;;  %v11047_v46 = vpop.f32.mrb[44].mxu0  ;;  %v761_v40 = vld [vmem:[%s16213_s2 + $0xd0] sm:$0xff] }
 0x139   :  { %v828_v49 = vmul.f32 %v757_v43, %v11047_v46  ;;  %v1042_v50 = vmul.f32 %v11047_v46, %v11047_v46  ;;  %v9283_v51 = vpop.f32.mrb[45].mxu0 }
 0x13a   :  { %v11055_v53 = vpop.f32.mrb[46].mxu0 }
 0x13b   :  { %v919_v56 = vsel %vm875_vm3, %v828_v49, 0.0  ;;  %v1111_v57 = vmul.f32 %v1042_v50, %v757_v43  ;;  %v829_v59 = vmul.f32 %v758_v48, %v11055_v53  ;;  %v1043_v60 = vmul.f32 %v11055_v53, %v11055_v53  ;;  %v9284_v63 = vpop.f32.mrb[47].mxu0 }
 0x13c   :  { %v920_v1 = vadd.f32 %v919_v56, %v918_v42 }
 0x13d   :  { %v1201_v2 = vsel %vm875_vm3, %v1111_v57, 0.0  ;;  %v921_v4 = vsel %vm875_vm3, %v829_v59, 0.0  ;;  %v1112_v5 = vmul.f32 %v1043_v60, %v758_v48 }
 0x13e   :  { %v1202_v6 = vadd.f32 %v1201_v2, %v1200_v45  ;;  %v922_v7 = vadd.f32 %v921_v4, %v920_v1  ;;  %v762_v45 = vld [vmem:[%s16213_s2 + $0xd8] sm:$0xff] }
 0x13f   :  { %v1203_v9 = vsel %vm875_vm3, %v1112_v5, 0.0 }
 0x140   :  { %v1204_v11 = vadd.f32 %v1203_v9, %v1202_v6  ;;  %v11067_v12 = vpop.f32.mrb[48].mxu0 }
 0x141   :  { %v830_v14 = vmul.f32 %v759_v8, %v11067_v12  ;;  %v1044_v17 = vmul.f32 %v11067_v12, %v11067_v12  ;;  %v9287_v19 = vpop.f32.mrb[49].mxu0 }
 0x142   :  { %v11075_v20 = vpop.f32.mrb[50].mxu0 }
 0x143   :  { %v923_v21 = vsel %vm875_vm3, %v830_v14, 0.0  ;;  %v1113_v23 = vmul.f32 %v1044_v17, %v759_v8  ;;  %v831_v25 = vmul.f32 %v760_v13, %v11075_v20  ;;  %v1045_v26 = vmul.f32 %v11075_v20, %v11075_v20  ;;  %v9288_v28 = vpop.f32.mrb[51].mxu0  ;;  %v763_v8 = vld [vmem:[%s16213_s2 + $0xe0] sm:$0xff]  ;;  %v764_v14 = vld [vmem:[%s16213_s2 + $0xe8] sm:$0xff] }
 0x144   :  { %v924_v29 = vadd.f32 %v923_v21, %v922_v7 }
 0x145   :  { %v1205_v30 = vsel %vm875_vm3, %v1113_v23, 0.0  ;;  %v925_v32 = vsel %vm875_vm3, %v831_v25, 0.0  ;;  %v1114_v35 = vmul.f32 %v1045_v26, %v760_v13 }
 0x146   :  { %v1206_v36 = vadd.f32 %v1205_v30, %v1204_v11  ;;  %v926_v37 = vadd.f32 %v925_v32, %v924_v29 }
 0x147   :  { %v1207_v42 = vsel %vm875_vm3, %v1114_v35, 0.0 }
 0x148   :  { %v1208_v43 = vadd.f32 %v1207_v42, %v1206_v36  ;;  %v11087_v44 = vpop.f32.mrb[52].mxu0 }
 0x149   :  { %v832_v48 = vmul.f32 %v761_v40, %v11087_v44  ;;  %v1046_v49 = vmul.f32 %v11087_v44, %v11087_v44  ;;  %v9291_v50 = vpop.f32.mrb[53].mxu0 }
 0x14a   :  { %v11095_v51 = vpop.f32.mrb[54].mxu0  ;;  %v766_v50 = vld [vmem:[%s16213_s2 + $0xf8] sm:$0xff] }
 0x14b   :  { %v927_v56 = vsel %vm875_vm3, %v832_v48, 0.0  ;;  %v1115_v57 = vmul.f32 %v1046_v49, %v761_v40  ;;  %v833_v59 = vmul.f32 %v762_v45, %v11095_v51  ;;  %v1047_v60 = vmul.f32 %v11095_v51, %v11095_v51  ;;  %v9292_v63 = vpop.f32.mrb[55].mxu0 }
 0x14c   :  { %v928_v1 = vadd.f32 %v927_v56, %v926_v37 }
 0x14d   :  { %v1209_v2 = vsel %vm875_vm3, %v1115_v57, 0.0  ;;  %v929_v4 = vsel %vm875_vm3, %v833_v59, 0.0  ;;  %v1116_v5 = vmul.f32 %v1047_v60, %v762_v45 }
 0x14e   :  { %v1210_v6 = vadd.f32 %v1209_v2, %v1208_v43  ;;  %v930_v7 = vadd.f32 %v929_v4, %v928_v1  ;;  %v765_v43 = vld [vmem:[%s16213_s2 + $0xf0] sm:$0xff] }
 0x14f   :  { %v1211_v9 = vsel %vm875_vm3, %v1116_v5, 0.0 }
 0x150   :  { %v1212_v11 = vadd.f32 %v1211_v9, %v1210_v6  ;;  %v11107_v13 = vpop.f32.mrb[56].mxu0 }
 0x151   :  { %v834_v17 = vmul.f32 %v763_v8, %v11107_v13  ;;  %v1048_v19 = vmul.f32 %v11107_v13, %v11107_v13  ;;  %v9295_v21 = vpop.f32.mrb[57].mxu0 }
 0x152   :  { %v11115_v23 = vpop.f32.mrb[58].mxu0 }
 0x153   :  { %v931_v25 = vsel %vm875_vm3, %v834_v17, 0.0  ;;  %v1117_v26 = vmul.f32 %v1048_v19, %v763_v8  ;;  %v835_v28 = vmul.f32 %v764_v14, %v11115_v23  ;;  %v1049_v29 = vmul.f32 %v11115_v23, %v11115_v23  ;;  %v9296_v30 = vpop.f32.mrb[59].mxu0  ;;  %v767_v17 = vld [vmem:[%s16213_s2 + $0x100] sm:$0xff] }
 0x154   :  { %v932_v32 = vadd.f32 %v931_v25, %v930_v7 }
 0x155   :  { %v1213_v35 = vsel %vm875_vm3, %v1117_v26, 0.0  ;;  %v933_v36 = vsel %vm875_vm3, %v835_v28, 0.0  ;;  %v1118_v37 = vmul.f32 %v1049_v29, %v764_v14  ;;  %v768_v26 = vld [vmem:[%s16213_s2 + $0x108] sm:$0xff] }
 0x156   :  { %v1214_v40 = vadd.f32 %v1213_v35, %v1212_v11  ;;  %v934_v42 = vadd.f32 %v933_v36, %v932_v32 }
 0x157   :  { %v1215_v45 = vsel %vm875_vm3, %v1118_v37, 0.0 }
 0x158   :  { %v1216_v48 = vadd.f32 %v1215_v45, %v1214_v40  ;;  %v11127_v49 = vpop.f32.mrb[60].mxu0 }
 0x159   :  { %v836_v56 = vmul.f32 %v765_v43, %v11127_v49  ;;  %v1050_v57 = vmul.f32 %v11127_v49, %v11127_v49  ;;  %v9299_v59 = vpop.f32.mrb[61].mxu0 }
 0x15a   :  { %v11135_v60 = vpop.f32.mrb[62].mxu0  ;;  %v769_v59 = vld [vmem:[%s16213_s2 + $0x110] sm:$0xff] }
 0x15b   :  { %v935_v63 = vsel %vm875_vm3, %v836_v56, 0.0  ;;  %v1119_v1 = vmul.f32 %v1050_v57, %v765_v43  ;;  %v837_v2 = vmul.f32 %v766_v50, %v11135_v60  ;;  %v1051_v4 = vmul.f32 %v11135_v60, %v11135_v60  ;;  %v9300_v5 = vpop.f32.mrb[63].mxu0 }
 0x15c   :  { %v936_v6 = vadd.f32 %v935_v63, %v934_v42 }
 0x15d   :  { %v1217_v7 = vsel %vm875_vm3, %v1119_v1, 0.0  ;;  %v937_v8 = vsel %vm875_vm3, %v837_v2, 0.0  ;;  %v1120_v9 = vmul.f32 %v1051_v4, %v766_v50  ;;  %v770_v4 = vld [vmem:[%s16213_s2 + $0x118] sm:$0xff] }
 0x15e   :  { %v1218_v11 = vadd.f32 %v1217_v7, %v1216_v48  ;;  %v938_v14 = vadd.f32 %v937_v8, %v936_v6 }
 0x15f   :  { %v1219_v19 = vsel %vm875_vm3, %v1120_v9, 0.0 }
 0x160   :  { %v1220_v21 = vadd.f32 %v1219_v19, %v1218_v11  ;;  %v11147_v25 = vpop.f32.mrb[64].mxu0 }
 0x161   :  { %v838_v28 = vmul.f32 %v767_v17, %v11147_v25  ;;  %v1052_v29 = vmul.f32 %v11147_v25, %v11147_v25  ;;  %v9303_v30 = vpop.f32.mrb[65].mxu0 }
 0x162   :  { %v11155_v32 = vpop.f32.mrb[66].mxu0 }
 0x163   :  { %v939_v35 = vsel %vm875_vm3, %v838_v28, 0.0  ;;  %v1121_v36 = vmul.f32 %v1052_v29, %v767_v17  ;;  %v839_v37 = vmul.f32 %v768_v26, %v11155_v32  ;;  %v1053_v40 = vmul.f32 %v11155_v32, %v11155_v32  ;;  %v9304_v42 = vpop.f32.mrb[67].mxu0 }
 0x164   :  { %v940_v43 = vadd.f32 %v939_v35, %v938_v14 }
 0x165   :  { %v1221_v45 = vsel %vm875_vm3, %v1121_v36, 0.0  ;;  %v941_v48 = vsel %vm875_vm3, %v839_v37, 0.0  ;;  %v1122_v50 = vmul.f32 %v1053_v40, %v768_v26  ;;  %v771_v36 = vld [vmem:[%s16213_s2 + $0x120] sm:$0xff] }
 0x166   :  { %v1222_v56 = vadd.f32 %v1221_v45, %v1220_v21  ;;  %v942_v57 = vadd.f32 %v941_v48, %v940_v43  ;;  %v772_v43 = vld [vmem:[%s16213_s2 + $0x128] sm:$0xff] }
 0x167   :  { %v1223_v63 = vsel %vm875_vm3, %v1122_v50, 0.0 }
 0x168   :  { %v1224_v1 = vadd.f32 %v1223_v63, %v1222_v56  ;;  %v11167_v2 = vpop.f32.mrb[68].mxu0 }
 0x169   :  { %v840_v5 = vmul.f32 %v769_v59, %v11167_v2  ;;  %v1054_v6 = vmul.f32 %v11167_v2, %v11167_v2  ;;  %v9307_v7 = vpop.f32.mrb[69].mxu0 }
 0x16a   :  { %v11175_v8 = vpop.f32.mrb[70].mxu0 }
 0x16b   :  { %v943_v9 = vsel %vm875_vm3, %v840_v5, 0.0  ;;  %v1123_v11 = vmul.f32 %v1054_v6, %v769_v59  ;;  %v841_v14 = vmul.f32 %v770_v4, %v11175_v8  ;;  %v1055_v17 = vmul.f32 %v11175_v8, %v11175_v8  ;;  %v9308_v19 = vpop.f32.mrb[71].mxu0 }
 0x16c   :  { %v944_v21 = vadd.f32 %v943_v9, %v942_v57 }
 0x16d   :  { %v1225_v26 = vsel %vm875_vm3, %v1123_v11, 0.0  ;;  %v945_v28 = vsel %vm875_vm3, %v841_v14, 0.0  ;;  %v1124_v29 = vmul.f32 %v1055_v17, %v770_v4  ;;  %v773_v17 = vld [vmem:[%s16213_s2 + $0x130] sm:$0xff] }
 0x16e   :  { %v1226_v30 = vadd.f32 %v1225_v26, %v1224_v1  ;;  %v946_v35 = vadd.f32 %v945_v28, %v944_v21  ;;  %v774_v28 = vld [vmem:[%s16213_s2 + $0x138] sm:$0xff] }
 0x16f   :  { %v1227_v37 = vsel %vm875_vm3, %v1124_v29, 0.0 }
 0x170   :  { %v1228_v40 = vadd.f32 %v1227_v37, %v1226_v30  ;;  %v11187_v42 = vpop.f32.mrb[72].mxu0 }
 0x171   :  { %v842_v45 = vmul.f32 %v771_v36, %v11187_v42  ;;  %v1056_v48 = vmul.f32 %v11187_v42, %v11187_v42  ;;  %v9311_v50 = vpop.f32.mrb[73].mxu0 }
 0x172   :  { %v11195_v56 = vpop.f32.mrb[74].mxu0 }
 0x173   :  { %v947_v57 = vsel %vm875_vm3, %v842_v45, 0.0  ;;  %v1125_v59 = vmul.f32 %v1056_v48, %v771_v36  ;;  %v843_v63 = vmul.f32 %v772_v43, %v11195_v56  ;;  %v1057_v1 = vmul.f32 %v11195_v56, %v11195_v56  ;;  %v9312_v4 = vpop.f32.mrb[75].mxu0 }
 0x174   :  { %v948_v5 = vadd.f32 %v947_v57, %v946_v35 }
 0x175   :  { %v1229_v6 = vsel %vm875_vm3, %v1125_v59, 0.0  ;;  %v949_v7 = vsel %vm875_vm3, %v843_v63, 0.0  ;;  %v1126_v9 = vmul.f32 %v1057_v1, %v772_v43 }
 0x176   :  { %v1230_v11 = vadd.f32 %v1229_v6, %v1228_v40  ;;  %v950_v14 = vadd.f32 %v949_v7, %v948_v5  ;;  %v775_v5 = vld [vmem:[%s16213_s2 + $0x140] sm:$0xff] }
 0x177   :  { %v1231_v19 = vsel %vm875_vm3, %v1126_v9, 0.0 }
 0x178   :  { %v1232_v21 = vadd.f32 %v1231_v19, %v1230_v11  ;;  %v11207_v26 = vpop.f32.mrb[76].mxu0  ;;  %v776_v11 = vld [vmem:[%s16213_s2 + $0x148] sm:$0xff] }
 0x179   :  { %v844_v29 = vmul.f32 %v773_v17, %v11207_v26  ;;  %v1058_v30 = vmul.f32 %v11207_v26, %v11207_v26  ;;  %v9315_v35 = vpop.f32.mrb[77].mxu0 }
 0x17a   :  { %v11215_v36 = vpop.f32.mrb[78].mxu0 }
 0x17b   :  { %v951_v37 = vsel %vm875_vm3, %v844_v29, 0.0  ;;  %v1127_v40 = vmul.f32 %v1058_v30, %v773_v17  ;;  %v845_v43 = vmul.f32 %v774_v28, %v11215_v36  ;;  %v1059_v45 = vmul.f32 %v11215_v36, %v11215_v36  ;;  %v9316_v48 = vpop.f32.mrb[79].mxu0 }
 0x17c   :  { %v952_v50 = vadd.f32 %v951_v37, %v950_v14 }
 0x17d   :  { %v1233_v57 = vsel %vm875_vm3, %v1127_v40, 0.0  ;;  %v953_v59 = vsel %vm875_vm3, %v845_v43, 0.0  ;;  %v1128_v63 = vmul.f32 %v1059_v45, %v774_v28 }
 0x17e   :  { %v1234_v1 = vadd.f32 %v1233_v57, %v1232_v21  ;;  %v954_v4 = vadd.f32 %v953_v59, %v952_v50  ;;  %v777_v59 = vld [vmem:[%s16213_s2 + $0x150] sm:$0xff] }
 0x17f   :  { %v1235_v6 = vsel %vm875_vm3, %v1128_v63, 0.0 }
 0x180   :  { %v1236_v7 = vadd.f32 %v1235_v6, %v1234_v1  ;;  %v11227_v9 = vpop.f32.mrb[80].mxu0 }
 0x181   :  { %16352 = vst [vmem:[#allocation6_spill] sm:$0xff] %v11227_v9  ;;  %v846_v14 = vmul.f32 %v775_v5, %v11227_v9  ;;  %v1060_v17 = vmul.f32 %v11227_v9, %v11227_v9  ;;  %v9319_v19 = vpop.f32.mrb[81].mxu0 }
 0x182   :  { %v11235_v21 = vpop.f32.mrb[82].mxu0 }
 0x183   :  { %16353 = vst [vmem:[#allocation7_spill] sm:$0xff] %v11235_v21  ;;  %v955_v28 = vsel %vm875_vm3, %v846_v14, 0.0  ;;  %v1129_v29 = vmul.f32 %v1060_v17, %v775_v5  ;;  %v847_v30 = vmul.f32 %v776_v11, %v11235_v21  ;;  %v1061_v35 = vmul.f32 %v11235_v21, %v11235_v21  ;;  %v9320_v37 = vpop.f32.mrb[83].mxu0 }
 0x184   :  { %v956_v40 = vadd.f32 %v955_v28, %v954_v4  ;;  %v778_v4 = vld [vmem:[%s16213_s2 + $0x158] sm:$0xff] }
 0x185   :  { %v1237_v43 = vsel %vm875_vm3, %v1129_v29, 0.0  ;;  %v957_v45 = vsel %vm875_vm3, %v847_v30, 0.0  ;;  %v1130_v48 = vmul.f32 %v1061_v35, %v776_v11 }
 0x186   :  { %v1238_v50 = vadd.f32 %v1237_v43, %v1236_v7  ;;  %v958_v57 = vadd.f32 %v957_v45, %v956_v40 }
 0x187   :  { %v1239_v63 = vsel %vm875_vm3, %v1130_v48, 0.0 }
 0x188   :  { %v1240_v1 = vadd.f32 %v1239_v63, %v1238_v50  ;;  %v11247_v5 = vpop.f32.mrb[84].mxu0  ;;  %v779_v50 = vld [vmem:[%s16213_s2 + $0x160] sm:$0xff] }
 0x189   :  { %16354 = vst [vmem:[#allocation8_spill] sm:$0xff] %v11247_v5  ;;  %v848_v6 = vmul.f32 %v777_v59, %v11247_v5  ;;  %v1062_v11 = vmul.f32 %v11247_v5, %v11247_v5  ;;  %v9323_v7 = vpop.f32.mrb[85].mxu0 }
 0x18a   :  { %v11255_v14 = vpop.f32.mrb[86].mxu0 }
 0x18b   :  { %16355 = vst [vmem:[#allocation9_spill] sm:$0xff] %v11255_v14  ;;  %v959_v17 = vsel %vm875_vm3, %v848_v6, 0.0  ;;  %v1131_v19 = vmul.f32 %v1062_v11, %v777_v59  ;;  %v849_v28 = vmul.f32 %v778_v4, %v11255_v14  ;;  %v1063_v29 = vmul.f32 %v11255_v14, %v11255_v14  ;;  %v9324_v30 = vpop.f32.mrb[87].mxu0 }
 0x18c   :  { %v960_v35 = vadd.f32 %v959_v17, %v958_v57  ;;  %v780_v57 = vld [vmem:[%s16213_s2 + $0x168] sm:$0xff] }
 0x18d   :  { %v1241_v37 = vsel %vm875_vm3, %v1131_v19, 0.0  ;;  %v961_v40 = vsel %vm875_vm3, %v849_v28, 0.0  ;;  %v1132_v43 = vmul.f32 %v1063_v29, %v778_v4 }
 0x18e   :  { %v1242_v45 = vadd.f32 %v1241_v37, %v1240_v1  ;;  %v962_v48 = vadd.f32 %v961_v40, %v960_v35 }
 0x18f   :  { %v1243_v59 = vsel %vm875_vm3, %v1132_v43, 0.0 }
 0x190   :  { %v1244_v63 = vadd.f32 %v1243_v59, %v1242_v45  ;;  %v11267_v6 = vpop.f32.mrb[88].mxu0 }
 0x191   :  { %16356 = vst [vmem:[#allocation10_spill] sm:$0xff] %v11267_v6  ;;  %v850_v11 = vmul.f32 %v779_v50, %v11267_v6  ;;  %v1064_v4 = vmul.f32 %v11267_v6, %v11267_v6  ;;  %v9327_v1 = vpop.f32.mrb[89].mxu0 }
 0x192   :  { %v11275_v7 = vpop.f32.mrb[90].mxu0  ;;  %v781_v1 = vld [vmem:[%s16213_s2 + $0x170] sm:$0xff] }
 0x193   :  { %16357 = vst [vmem:[#allocation11_spill] sm:$0xff] %v11275_v7  ;;  %v963_v17 = vsel %vm875_vm3, %v850_v11, 0.0  ;;  %v1133_v19 = vmul.f32 %v1064_v4, %v779_v50  ;;  %v851_v28 = vmul.f32 %v780_v57, %v11275_v7  ;;  %v1065_v29 = vmul.f32 %v11275_v7, %v11275_v7  ;;  %v9328_v30 = vpop.f32.mrb[91].mxu0 }
 0x194   :  { %v964_v35 = vadd.f32 %v963_v17, %v962_v48  ;;  %v782_v48 = vld [vmem:[%s16213_s2 + $0x178] sm:$0xff] }
 0x195   :  { %v1245_v37 = vsel %vm875_vm3, %v1133_v19, 0.0  ;;  %v965_v40 = vsel %vm875_vm3, %v851_v28, 0.0  ;;  %v1134_v43 = vmul.f32 %v1065_v29, %v780_v57 }
 0x196   :  { %v1246_v45 = vadd.f32 %v1245_v37, %v1244_v63  ;;  %v966_v59 = vadd.f32 %v965_v40, %v964_v35 }
 0x197   :  { %v1247_v50 = vsel %vm875_vm3, %v1134_v43, 0.0 }
 0x198   :  { %v1248_v11 = vadd.f32 %v1247_v50, %v1246_v45  ;;  %v11287_v4 = vpop.f32.mrb[92].mxu0 }
 0x199   :  { %16358 = vst [vmem:[#allocation12_spill] sm:$0xff] %v11287_v4  ;;  %v852_v17 = vmul.f32 %v781_v1, %v11287_v4  ;;  %v1066_v57 = vmul.f32 %v11287_v4, %v11287_v4  ;;  %v9331_v63 = vpop.f32.mrb[93].mxu0 }
 0x19a   :  { %v11295_v19 = vpop.f32.mrb[94].mxu0  ;;  %v783_v63 = vld [vmem:[%s16213_s2 + $0x180] sm:$0xff] }
 0x19b   :  { %16359 = vst [vmem:[#allocation13_spill] sm:$0xff] %v11295_v19  ;;  %v967_v28 = vsel %vm875_vm3, %v852_v17, 0.0  ;;  %v1135_v29 = vmul.f32 %v1066_v57, %v781_v1  ;;  %v853_v30 = vmul.f32 %v782_v48, %v11295_v19  ;;  %v1067_v35 = vmul.f32 %v11295_v19, %v11295_v19  ;;  %v9332_v37 = vpop.f32.mrb[95].mxu0 }
 0x19c   :  { %v968_v40 = vadd.f32 %v967_v28, %v966_v59  ;;  %v784_v59 = vld [vmem:[%s16213_s2 + $0x188] sm:$0xff] }
 0x19d   :  { %v1249_v43 = vsel %vm875_vm3, %v1135_v29, 0.0  ;;  %v969_v45 = vsel %vm875_vm3, %v853_v30, 0.0  ;;  %v1136_v50 = vmul.f32 %v1067_v35, %v782_v48 }
 0x19e   :  { %v1250_v7 = vadd.f32 %v1249_v43, %v1248_v11  ;;  %v970_v4 = vadd.f32 %v969_v45, %v968_v40 }
 0x19f   :  { %v1251_v1 = vsel %vm875_vm3, %v1136_v50, 0.0 }
 0x1a0   :  { %v1252_v17 = vadd.f32 %v1251_v1, %v1250_v7  ;;  %v11307_v57 = vpop.f32.mrb[96].mxu0 }
 0x1a1   :  { %16360 = vst [vmem:[#allocation14_spill] sm:$0xff] %v11307_v57  ;;  %v854_v28 = vmul.f32 %v783_v63, %v11307_v57  ;;  %v1068_v48 = vmul.f32 %v11307_v57, %v11307_v57  ;;  %v9335_v11 = vpop.f32.mrb[97].mxu0 }
 0x1a2   :  { %v11315_v29 = vpop.f32.mrb[98].mxu0  ;;  %v785_v11 = vld [vmem:[%s16213_s2 + $0x190] sm:$0xff] }
 0x1a3   :  { %16361 = vst [vmem:[#allocation15_spill] sm:$0xff] %v11315_v29  ;;  %v971_v30 = vsel %vm875_vm3, %v854_v28, 0.0  ;;  %v1137_v35 = vmul.f32 %v1068_v48, %v783_v63  ;;  %v855_v37 = vmul.f32 %v784_v59, %v11315_v29  ;;  %v1069_v7 = vmul.f32 %v11315_v29, %v11315_v29  ;;  %v9336_v40 = vpop.f32.mrb[99].mxu0 }
 0x1a4   :  { %v972_v43 = vadd.f32 %v971_v30, %v970_v4  ;;  %v786_v4 = vld [vmem:[%s16213_s2 + $0x198] sm:$0xff] }
 0x1a5   :  { %v1253_v45 = vsel %vm875_vm3, %v1137_v35, 0.0  ;;  %v973_v50 = vsel %vm875_vm3, %v855_v37, 0.0  ;;  %v1138_v1 = vmul.f32 %v1069_v7, %v784_v59 }
 0x1a6   :  { %v1254_v19 = vadd.f32 %v1253_v45, %v1252_v17  ;;  %v974_v57 = vadd.f32 %v973_v50, %v972_v43 }
 0x1a7   :  { %v1255_v63 = vsel %vm875_vm3, %v1138_v1, 0.0 }
 0x1a8   :  { %v1256_v28 = vadd.f32 %v1255_v63, %v1254_v19  ;;  %v11327_v48 = vpop.f32.mrb[100].mxu0 }
 0x1a9   :  { %16362 = vst [vmem:[#allocation16_spill] sm:$0xff] %v11327_v48  ;;  %v856_v30 = vmul.f32 %v785_v11, %v11327_v48  ;;  %v1070_v59 = vmul.f32 %v11327_v48, %v11327_v48  ;;  %v9339_v17 = vpop.f32.mrb[101].mxu0 }
 0x1aa   :  { %v11335_v35 = vpop.f32.mrb[102].mxu0  ;;  %v787_v17 = vld [vmem:[%s16213_s2 + $0x1a0] sm:$0xff] }
 0x1ab   :  { %16363 = vst [vmem:[#allocation17_spill] sm:$0xff] %v11335_v35  ;;  %v975_v37 = vsel %vm875_vm3, %v856_v30, 0.0  ;;  %v1139_v7 = vmul.f32 %v1070_v59, %v785_v11  ;;  %v857_v40 = vmul.f32 %v786_v4, %v11335_v35  ;;  %v1071_v19 = vmul.f32 %v11335_v35, %v11335_v35  ;;  %v9340_v43 = vpop.f32.mrb[103].mxu0 }
 0x1ac   :  { %v976_v45 = vadd.f32 %v975_v37, %v974_v57  ;;  %v788_v57 = vld [vmem:[%s16213_s2 + $0x1a8] sm:$0xff] }
 0x1ad   :  { %v1257_v50 = vsel %vm875_vm3, %v1139_v7, 0.0  ;;  %v977_v1 = vsel %vm875_vm3, %v857_v40, 0.0  ;;  %v1140_v63 = vmul.f32 %v1071_v19, %v786_v4 }
 0x1ae   :  { %v1258_v29 = vadd.f32 %v1257_v50, %v1256_v28  ;;  %v978_v48 = vadd.f32 %v977_v1, %v976_v45 }
 0x1af   :  { %v1259_v11 = vsel %vm875_vm3, %v1140_v63, 0.0 }
 0x1b0   :  { %v1260_v30 = vadd.f32 %v1259_v11, %v1258_v29  ;;  %v11347_v59 = vpop.f32.mrb[104].mxu0 }
 0x1b1   :  { %16364 = vst [vmem:[#allocation18_spill] sm:$0xff] %v11347_v59  ;;  %v858_v37 = vmul.f32 %v787_v17, %v11347_v59  ;;  %v1072_v4 = vmul.f32 %v11347_v59, %v11347_v59  ;;  %v9343_v28 = vpop.f32.mrb[105].mxu0 }
 0x1b2   :  { %v11355_v7 = vpop.f32.mrb[106].mxu0  ;;  %v789_v28 = vld [vmem:[%s16213_s2 + $0x1b0] sm:$0xff] }
 0x1b3   :  { %16365 = vst [vmem:[#allocation19_spill] sm:$0xff] %v11355_v7  ;;  %v979_v40 = vsel %vm875_vm3, %v858_v37, 0.0  ;;  %v1141_v19 = vmul.f32 %v1072_v4, %v787_v17  ;;  %v859_v43 = vmul.f32 %v788_v57, %v11355_v7  ;;  %v1073_v29 = vmul.f32 %v11355_v7, %v11355_v7  ;;  %v9344_v45 = vpop.f32.mrb[107].mxu0 }
 0x1b4   :  { %v980_v50 = vadd.f32 %v979_v40, %v978_v48  ;;  %v790_v48 = vld [vmem:[%s16213_s2 + $0x1b8] sm:$0xff] }
 0x1b5   :  { %v1261_v1 = vsel %vm875_vm3, %v1141_v19, 0.0  ;;  %v981_v63 = vsel %vm875_vm3, %v859_v43, 0.0  ;;  %v1142_v11 = vmul.f32 %v1073_v29, %v788_v57 }
 0x1b6   :  { %v1262_v35 = vadd.f32 %v1261_v1, %v1260_v30  ;;  %v982_v59 = vadd.f32 %v981_v63, %v980_v50 }
 0x1b7   :  { %v1263_v17 = vsel %vm875_vm3, %v1142_v11, 0.0 }
 0x1b8   :  { %v1264_v37 = vadd.f32 %v1263_v17, %v1262_v35  ;;  %v11367_v4 = vpop.f32.mrb[108].mxu0 }
 0x1b9   :  { %16366 = vst [vmem:[#allocation20_spill] sm:$0xff] %v11367_v4  ;;  %v860_v40 = vmul.f32 %v789_v28, %v11367_v4  ;;  %v1074_v57 = vmul.f32 %v11367_v4, %v11367_v4  ;;  %v9347_v30 = vpop.f32.mrb[109].mxu0 }
 0x1ba   :  { %v11375_v19 = vpop.f32.mrb[110].mxu0  ;;  %v791_v30 = vld [vmem:[%s16213_s2 + $0x1c0] sm:$0xff] }
 0x1bb   :  { %16367 = vst [vmem:[#allocation21_spill] sm:$0xff] %v11375_v19  ;;  %v983_v43 = vsel %vm875_vm3, %v860_v40, 0.0  ;;  %v1143_v29 = vmul.f32 %v1074_v57, %v789_v28  ;;  %v861_v45 = vmul.f32 %v790_v48, %v11375_v19  ;;  %v1075_v35 = vmul.f32 %v11375_v19, %v11375_v19  ;;  %v9348_v50 = vpop.f32.mrb[111].mxu0 }
 0x1bc   :  { %v984_v1 = vadd.f32 %v983_v43, %v982_v59  ;;  %v792_v59 = vld [vmem:[%s16213_s2 + $0x1c8] sm:$0xff] }
 0x1bd   :  { %v1265_v63 = vsel %vm875_vm3, %v1143_v29, 0.0  ;;  %v985_v11 = vsel %vm875_vm3, %v861_v45, 0.0  ;;  %v1144_v17 = vmul.f32 %v1075_v35, %v790_v48 }
 0x1be   :  { %v1266_v7 = vadd.f32 %v1265_v63, %v1264_v37  ;;  %v986_v4 = vadd.f32 %v985_v11, %v984_v1 }
 0x1bf   :  { %v1267_v28 = vsel %vm875_vm3, %v1144_v17, 0.0 }
 0x1c0   :  { %v1268_v40 = vadd.f32 %v1267_v28, %v1266_v7  ;;  %v11387_v57 = vpop.f32.mrb[112].mxu0 }
 0x1c1   :  { %16368 = vst [vmem:[#allocation22_spill] sm:$0xff] %v11387_v57  ;;  %v862_v43 = vmul.f32 %v791_v30, %v11387_v57  ;;  %v1076_v48 = vmul.f32 %v11387_v57, %v11387_v57  ;;  %v9351_v37 = vpop.f32.mrb[113].mxu0 }
 0x1c2   :  { %v11395_v29 = vpop.f32.mrb[114].mxu0  ;;  %v793_v37 = vld [vmem:[%s16213_s2 + $0x1d0] sm:$0xff] }
 0x1c3   :  { %16369 = vst [vmem:[#allocation23_spill] sm:$0xff] %v11395_v29  ;;  %v987_v45 = vsel %vm875_vm3, %v862_v43, 0.0  ;;  %v1145_v35 = vmul.f32 %v1076_v48, %v791_v30  ;;  %v863_v50 = vmul.f32 %v792_v59, %v11395_v29  ;;  %v1077_v7 = vmul.f32 %v11395_v29, %v11395_v29  ;;  %v9352_v1 = vpop.f32.mrb[115].mxu0 }
 0x1c4   :  { %v988_v63 = vadd.f32 %v987_v45, %v986_v4  ;;  %v794_v4 = vld [vmem:[%s16213_s2 + $0x1d8] sm:$0xff] }
 0x1c5   :  { %v1269_v11 = vsel %vm875_vm3, %v1145_v35, 0.0  ;;  %v989_v17 = vsel %vm875_vm3, %v863_v50, 0.0  ;;  %v1146_v28 = vmul.f32 %v1077_v7, %v792_v59 }
 0x1c6   :  { %v1270_v19 = vadd.f32 %v1269_v11, %v1268_v40  ;;  %v990_v57 = vadd.f32 %v989_v17, %v988_v63 }
 0x1c7   :  { %v1271_v30 = vsel %vm875_vm3, %v1146_v28, 0.0 }
 0x1c8   :  { %v1272_v43 = vadd.f32 %v1271_v30, %v1270_v19  ;;  %v11407_v48 = vpop.f32.mrb[116].mxu0 }
 0x1c9   :  { %16370 = vst [vmem:[#allocation24_spill] sm:$0xff] %v11407_v48  ;;  %v864_v45 = vmul.f32 %v793_v37, %v11407_v48  ;;  %v1078_v59 = vmul.f32 %v11407_v48, %v11407_v48  ;;  %v9355_v40 = vpop.f32.mrb[117].mxu0 }
 0x1ca   :  { %v11415_v35 = vpop.f32.mrb[118].mxu0  ;;  %v795_v40 = vld [vmem:[%s16213_s2 + $0x1e0] sm:$0xff] }
 0x1cb   :  { %16371 = vst [vmem:[#allocation25_spill] sm:$0xff] %v11415_v35  ;;  %v991_v50 = vsel %vm875_vm3, %v864_v45, 0.0  ;;  %v1147_v7 = vmul.f32 %v1078_v59, %v793_v37  ;;  %v865_v1 = vmul.f32 %v794_v4, %v11415_v35  ;;  %v1079_v19 = vmul.f32 %v11415_v35, %v11415_v35  ;;  %v9356_v63 = vpop.f32.mrb[119].mxu0 }
 0x1cc   :  { %v992_v11 = vadd.f32 %v991_v50, %v990_v57  ;;  %v796_v57 = vld [vmem:[%s16213_s2 + $0x1e8] sm:$0xff] }
 0x1cd   :  { %v1273_v17 = vsel %vm875_vm3, %v1147_v7, 0.0  ;;  %v993_v28 = vsel %vm875_vm3, %v865_v1, 0.0  ;;  %v1148_v30 = vmul.f32 %v1079_v19, %v794_v4 }
 0x1ce   :  { %v1274_v29 = vadd.f32 %v1273_v17, %v1272_v43  ;;  %v994_v48 = vadd.f32 %v993_v28, %v992_v11 }
 0x1cf   :  { %v1275_v37 = vsel %vm875_vm3, %v1148_v30, 0.0 }
 0x1d0   :  { %v1276_v45 = vadd.f32 %v1275_v37, %v1274_v29  ;;  %v11427_v59 = vpop.f32.mrb[120].mxu0 }
 0x1d1   :  { %16372 = vst [vmem:[#allocation26_spill] sm:$0xff] %v11427_v59  ;;  %v866_v50 = vmul.f32 %v795_v40, %v11427_v59  ;;  %v1080_v4 = vmul.f32 %v11427_v59, %v11427_v59  ;;  %v9359_v43 = vpop.f32.mrb[121].mxu0 }
 0x1d2   :  { %v11435_v7 = vpop.f32.mrb[122].mxu0  ;;  %v797_v43 = vld [vmem:[%s16213_s2 + $0x1f0] sm:$0xff] }
 0x1d3   :  { %16373 = vst [vmem:[#allocation27_spill] sm:$0xff] %v11435_v7  ;;  %v995_v1 = vsel %vm875_vm3, %v866_v50, 0.0  ;;  %v1149_v19 = vmul.f32 %v1080_v4, %v795_v40  ;;  %v867_v63 = vmul.f32 %v796_v57, %v11435_v7  ;;  %v1081_v29 = vmul.f32 %v11435_v7, %v11435_v7  ;;  %v9360_v11 = vpop.f32.mrb[123].mxu0 }
 0x1d4   :  { %v996_v17 = vadd.f32 %v995_v1, %v994_v48  ;;  %v798_v48 = vld [vmem:[%s16213_s2 + $0x1f8] sm:$0xff] }
 0x1d5   :  { %v1277_v28 = vsel %vm875_vm3, %v1149_v19, 0.0  ;;  %v997_v30 = vsel %vm875_vm3, %v867_v63, 0.0  ;;  %v1150_v37 = vmul.f32 %v1081_v29, %v796_v57 }
 0x1d6   :  { %v1278_v35 = vadd.f32 %v1277_v28, %v1276_v45  ;;  %v998_v59 = vadd.f32 %v997_v30, %v996_v17 }
 0x1d7   :  { %v1279_v40 = vsel %vm875_vm3, %v1150_v37, 0.0 }
 0x1d8   :  { %v1280_v50 = vadd.f32 %v1279_v40, %v1278_v35  ;;  %v11447_v4 = vpop.f32.mrb[124].mxu0 }
 0x1d9   :  { %16374 = vst [vmem:[#allocation28_spill] sm:$0xff] %v11447_v4  ;;  %v868_v1 = vmul.f32 %v797_v43, %v11447_v4  ;;  %v1082_v57 = vmul.f32 %v11447_v4, %v11447_v4  ;;  %v9363_v45 = vpop.f32.mrb[125].mxu0 }
 0x1da   :  { %v11455_v19 = vpop.f32.mrb[126].mxu0  ;;  %v799_v45 = vld [vmem:[%s16213_s2 + $0x200] sm:$0xff] }
 0x1db   :  { %16375 = vst [vmem:[#allocation29_spill] sm:$0xff] %v11455_v19  ;;  %v999_v63 = vsel %vm875_vm3, %v868_v1, 0.0  ;;  %v1151_v29 = vmul.f32 %v1082_v57, %v797_v43  ;;  %v869_v11 = vmul.f32 %v798_v48, %v11455_v19  ;;  %v1083_v35 = vmul.f32 %v11455_v19, %v11455_v19  ;;  %v9364_v17 = vpop.f32.mrb[127].mxu0 }
 0x1dc   :  { %v1000_v28 = vadd.f32 %v999_v63, %v998_v59  ;;  %v800_v59 = vld [vmem:[%s16213_s2 + $0x208] sm:$0xff] }
 0x1dd   :  { %v1281_v30 = vsel %vm875_vm3, %v1151_v29, 0.0  ;;  %v1001_v37 = vsel %vm875_vm3, %v869_v11, 0.0  ;;  %v1152_v40 = vmul.f32 %v1083_v35, %v798_v48 }
 0x1de   :  { %v1282_v7 = vadd.f32 %v1281_v30, %v1280_v50  ;;  %v1002_v4 = vadd.f32 %v1001_v37, %v1000_v28 }
 0x1df   :  { %v1283_v43 = vsel %vm875_vm3, %v1152_v40, 0.0 }
 0x1e0   :  { %v1284_v1 = vadd.f32 %v1283_v43, %v1282_v7  ;;  %v11467_v57 = vpop.f32.mrb[128].mxu0 }
 0x1e1   :  { %16376 = vst [vmem:[#allocation30_spill] sm:$0xff] %v11467_v57  ;;  %v870_v63 = vmul.f32 %v799_v45, %v11467_v57  ;;  %v1084_v48 = vmul.f32 %v11467_v57, %v11467_v57  ;;  %v9367_v50 = vpop.f32.mrb[129].mxu0 }
 0x1e2   :  { %v11475_v29 = vpop.f32.mrb[130].mxu0  ;;  %v801_v50 = vld [vmem:[%s16213_s2 + $0x210] sm:$0xff] }
 0x1e3   :  { %16377 = vst [vmem:[#allocation31_spill] sm:$0xff] %v11475_v29  ;;  %v1003_v11 = vsel %vm875_vm3, %v870_v63, 0.0  ;;  %v1153_v35 = vmul.f32 %v1084_v48, %v799_v45  ;;  %v871_v17 = vmul.f32 %v800_v59, %v11475_v29  ;;  %v1085_v7 = vmul.f32 %v11475_v29, %v11475_v29  ;;  %v9368_v28 = vpop.f32.mrb[131].mxu0 }
 0x1e4   :  { %v1004_v30 = vadd.f32 %v1003_v11, %v1002_v4  ;;  %v802_v4 = vld [vmem:[%s16213_s2 + $0x218] sm:$0xff] }
 0x1e5   :  { %v1285_v37 = vsel %vm875_vm3, %v1153_v35, 0.0  ;;  %v1005_v40 = vsel %vm875_vm3, %v871_v17, 0.0  ;;  %v1154_v43 = vmul.f32 %v1085_v7, %v800_v59 }
 0x1e6   :  { %v1286_v19 = vadd.f32 %v1285_v37, %v1284_v1  ;;  %v1006_v57 = vadd.f32 %v1005_v40, %v1004_v30 }
 0x1e7   :  { %v1287_v45 = vsel %vm875_vm3, %v1154_v43, 0.0 }
 0x1e8   :  { %v1288_v63 = vadd.f32 %v1287_v45, %v1286_v19  ;;  %v11487_v48 = vpop.f32.mrb[132].mxu0 }
 0x1e9   :  { %16378 = vst [vmem:[#allocation32_spill] sm:$0xff] %v11487_v48  ;;  %v872_v11 = vmul.f32 %v801_v50, %v11487_v48  ;;  %v1086_v59 = vmul.f32 %v11487_v48, %v11487_v48  ;;  %v9371_v1 = vpop.f32.mrb[133].mxu0 }
 0x1ea   :  { %v11495_v35 = vpop.f32.mrb[134].mxu0  ;;  %v803_v1 = vld [vmem:[%s16213_s2 + $0x220] sm:$0x3] }
 0x1eb   :  { %16379 = vst [vmem:[#allocation33_spill] sm:$0xff] %v11495_v35  ;;  %v1007_v17 = vsel %vm875_vm3, %v872_v11, 0.0  ;;  %v1155_v7 = vmul.f32 %v1086_v59, %v801_v50  ;;  %v873_v28 = vmul.f32 %v802_v4, %v11495_v35  ;;  %v1087_v19 = vmul.f32 %v11495_v35, %v11495_v35  ;;  %v9372_v30 = vpop.f32.mrb[135].mxu0 }
 0x1ec   :  { %v1008_v37 = vadd.f32 %v1007_v17, %v1006_v57 }
 0x1ed   :  { %v1289_v40 = vsel %vm875_vm3, %v1155_v7, 0.0  ;;  %v1009_v43 = vsel %vm875_vm3, %v873_v28, 0.0  ;;  %v1156_v45 = vmul.f32 %v1087_v19, %v802_v4 }
 0x1ee   :  { %v1290_v29 = vadd.f32 %v1289_v40, %v1288_v63  ;;  %v1010_v48 = vadd.f32 %v1009_v43, %v1008_v37 }
 0x1ef   :  { %v1291_v50 = vsel %vm875_vm3, %v1156_v45, 0.0 }
 0x1f0   :  { %v1292_v11 = vadd.f32 %v1291_v50, %v1290_v29  ;;  %v11507_v59 = vpop.f32.mrb[136].mxu0 }
 0x1f1   :  { %v874_v30 = vmul.f32 %v803_v1, %v11507_v59  ;;  %v1088_v57 = vmul.f32 %v11507_v59, %v11507_v59  ;;  %v9375_v17 = vpop.f32.mrb[137].mxu0 }
 0x1f2   :  { %v732_v7 = vpop.f32.mrb[138].mxu0 }
 0x1f3   :  { %v1012_v63 = vsel %vm1011_vm4, %v874_v30, 0.0  ;;  %v1157_v4 = vmul.f32 %v1088_v57, %v803_v1  ;;  %v9376_v28 = vpop.f32.mrb[139].mxu0  ;;  %v16398_v57 = vld [vmem:[#allocation24_spill] sm:$0xff]  ;;  %v16399_v30 = vld [vmem:[#allocation25_spill] sm:$0xff] }
 0x1f4   :  { %v1013_v19 = vadd.f32 %v1012_v63, %v1010_v48 }
 0x1f5   :  { %v1293_v37 = vsel %vm1011_vm4, %v1157_v4, 0.0  ;;  %v11655_v4 = vld [vmem:[%s16214_s3] ss:$0 sm:$0xff] }
 0x1f6   :  { %v1014_v40 = vrot.slane %v1013_v19, 4  ;;  %v1294_v43 = vadd.f32 %v1293_v37, %v1292_v11  ;;  %v16400_v11 = vld [vmem:[#allocation26_spill] sm:$0xff] }
 0x1f8   :  { %v1015_v29 = vadd.f32 %v1014_v40, %v1013_v19  ;;  %v1295_v45 = vrot.slane %v1294_v43, 4 }
 0x1fa   :  { %v1016_v50 = vrot.slane %v1015_v29, 2  ;;  %v1296_v35 = vadd.f32 %v1295_v45, %v1294_v43  ;;  %v16380_v43 = vld [vmem:[#allocation6_spill] sm:$0xff]  ;;  %v16382_v45 = vld [vmem:[#allocation8_spill] sm:$0xff] }
 0x1fc   :  { %v1017_v6 = vadd.f32 %v1016_v50, %v1015_v29  ;;  %v1297_v14 = vrot.slane %v1296_v35, 2  ;;  %v16381_v29 = vld [vmem:[#allocation7_spill] sm:$0xff]  ;;  %v16383_v50 = vld [vmem:[#allocation9_spill] sm:$0xff] }
 0x1fe   :  { %v1018_v5 = vrot.slane %v1017_v6, 1  ;;  %v1298_v21 = vadd.f32 %v1297_v14, %v1296_v35  ;;  %v16406_v35 = vld [vmem:[#allocation32_spill] sm:$0xff] }
 0x200   :  { %v11514_v9 = vadd.f32 %v1018_v5, %v1017_v6  ;;  %v1299_v17 = vrot.slane %v1298_v21, 1  ;;  %v16407_v6 = vld [vmem:[#allocation33_spill] sm:$0xff] }
 0x202   :  { %v1300_v7 = vadd.f32 %v1299_v17, %v1298_v21  ;;  %v1301_v1 = vmul.f32 %v11514_v9, %v11514_v9  ;;  %v16384_v17 = vld [vmem:[#allocation10_spill] sm:$0xff]  ;;  %v16408_v21 = vsub.f32 %v11507_v59, %v11514_v9  ;;  %v16409_v19 = vsub.f32 %v10781_v33, %v11514_v9  ;;  %v11688_v59 = vld [vmem:[%s16215_s4] ss:$0 sm:$0xff]  ;;  %s10520_s4 = smov 64  }
 0x203   :  { %v16410_v28 = vsub.f32 %v10792_v39, %v11514_v9  ;;  %16412 = vst [vmem:[#allocation6_spill] sm:$0xff] %v11688_v59  ;;  %v16413_v33 = vsub.f32 %v10818_v58, %v11514_v9  ;;  %v16414_v39 = vsub.f32 %v10833_v10, %v11514_v9  ;;  %v16417_v10 = vsub.f32 %v10870_v38, %v11514_v9 }
 0x204   :  { %v1302_v14 = vsub.f32 %v1300_v7, %v1301_v1  ;;  %v16385_v7 = vld [vmem:[#allocation11_spill] sm:$0xff]  ;;  %v16411_v1 = vsub.f32 %v10807_v52, %v11514_v9  ;;  %v16415_v52 = vsub.f32 %v10844_v16, %v11514_v9  ;;  %v16418_v16 = vsub.f32 %v10885_v55, %v11514_v9 }
 0x206   :  { %v1303_v40 = vmax.f32 %v1302_v14, 0.0 }
 0x208   :  { %v1373_v14 = vadd.f32 1e-05, %v1303_v40 }
 0x20a   :  { %10189 = vrsqrt.f32 %v1373_v14  ;;  %v16386_v14 = vld [vmem:[#allocation12_spill] sm:$0xff] }
 0x214   :  { %v11650_v40 = vpop.eup %10189 }
 0x215   :  { %v1443_v5 = vmul.f32 %v11650_v40, %v16408_v21  ;;  %v11671_v37 = vmul.f32 %v11650_v40, %v16409_v19  ;;  %v11677_v63 = vmul.f32 %v11650_v40, %v16410_v28  ;;  %v11683_v48 = vmul.f32 %v11650_v40, %v16411_v1 }
 0x216   :  { %v11694_v21 = vmul.f32 %v11650_v40, %v16413_v33  ;;  %v11700_v28 = vmul.f32 %v11650_v40, %v16414_v39  ;;  %v11706_v19 = vmul.f32 %v11650_v40, %v16415_v52  ;;  %v16416_v1 = vsub.f32 %v10859_v31, %v11514_v9 }
 0x217   :  { %v1518_v33 = vmul.f32 %v11655_v4, %v1443_v5  ;;  %v11719_v39 = vmul.f32 %v11650_v40, %v16417_v10  ;;  %v11725_v52 = vmul.f32 %v11650_v40, %v16418_v16  ;;  %v16419_v31 = vsub.f32 %v10896_v62, %v11514_v9 }
 0x218   :  { %v11712_v58 = vmul.f32 %v11650_v40, %v16416_v1  ;;  %v16420_v5 = vsub.f32 %v10911_v15, %v11514_v9  ;;  %v16421_v10 = vsub.f32 %v10922_v22, %v11514_v9  ;;  %v16422_v16 = vsub.f32 %v10937_v41, %v11514_v9 }
 0x219   :  { %v11731_v1 = vmul.f32 %v11650_v40, %v16419_v31  ;;  %v16423_v31 = vsub.f32 %v10948_v47, %v11514_v9  ;;  %v16424_v22 = vsub.f32 %v10963_v3, %v11514_v9  ;;  %v16425_v41 = vsub.f32 %v10974_v0, %v11514_v9 }
 0x21a   :  { %v11737_v38 = vmul.f32 %v11650_v40, %v16420_v5  ;;  %v11743_v55 = vmul.f32 %v11650_v40, %v16421_v10  ;;  %v11749_v62 = vmul.f32 %v11650_v40, %v16422_v16  ;;  %v1593_v5 = vadd.f32 %v11688_v59, %v1518_v33 }
 0x21b   :  { %v11755_v15 = vmul.f32 %v11650_v40, %v16423_v31  ;;  %v11762_v10 = vmul.f32 %v11650_v40, %v16424_v22  ;;  %v11768_v16 = vmul.f32 %v11650_v40, %v16425_v41  ;;  %v16426_v47 = vsub.f32 %v10987_v27, %v11514_v9 }
 0x21c   :  { %v16427_v33 = vsub.f32 %v10995_v34, %v11514_v9  ;;  %v16428_v22 = vsub.f32 %v11007_v54, %v11514_v9  ;;  %v16429_v41 = vsub.f32 %v11015_v61, %v11514_v9  ;;  %v16431_v59 = vsub.f32 %v11035_v24, %v11514_v9 }
 0x21d   :  { %v11774_v31 = vmul.f32 %v11650_v40, %v16426_v47  ;;  %v16430_v47 = vsub.f32 %v11027_v18, %v11514_v9 }
 0x21e   :  { %v11780_v3 = vmul.f32 %v11650_v40, %v16427_v33  ;;  %v11786_v0 = vmul.f32 %v11650_v40, %v16428_v22  ;;  %v11792_v27 = vmul.f32 %v11650_v40, %v16429_v41  ;;  %v1662_v33 = vmax.f32 %v1593_v5, 0.0 }
 0x21f   :  { %v11798_v34 = vmul.f32 %v11650_v40, %v16430_v47  ;;  %v11804_v54 = vmul.f32 %v11650_v40, %v16431_v59  ;;  %v16432_v22 = vsub.f32 %v11047_v46, %v11514_v9  ;;  %v16433_v41 = vsub.f32 %v11055_v53, %v11514_v9 }
 0x220   :  { %v16434_v5 = vsub.f32 %v11067_v12, %v11514_v9  ;;  %v16435_v59 = vsub.f32 %v11075_v20, %v11514_v9  ;;  %v16436_v47 = vsub.f32 %v11087_v44, %v11514_v9  ;;  %1731 = vst.msk [vmem:[#allocation2 + $0x220] sm:$0x3] %vm1011_vm4, %v1662_v33  ;;  %v16438_v20 = vsub.f32 %v11107_v13, %v11514_v9 }
 0x221   :  { %v11810_v61 = vmul.f32 %v11650_v40, %v16432_v22  ;;  %v11816_v18 = vmul.f32 %v11650_v40, %v16433_v41  ;;  %v16437_v22 = vsub.f32 %v11095_v51, %v11514_v9  ;;  %v16439_v44 = vsub.f32 %v11115_v23, %v11514_v9 }
 0x222   :  { %v11822_v24 = vmul.f32 %v11650_v40, %v16434_v5  ;;  %v11828_v46 = vmul.f32 %v11650_v40, %v16435_v59  ;;  %v11834_v53 = vmul.f32 %v11650_v40, %v16436_v47  ;;  %v11847_v41 = vmul.f32 %v11650_v40, %v16438_v20 }
 0x223   :  { %v11840_v12 = vmul.f32 %v11650_v40, %v16437_v22  ;;  %v11853_v5 = vmul.f32 %v11650_v40, %v16439_v44  ;;  %v16440_v51 = vsub.f32 %v11127_v49, %v11514_v9  ;;  %v16441_v33 = vsub.f32 %v11135_v60, %v11514_v9 }
 0x224   :  { %v16442_v47 = vsub.f32 %v11147_v25, %v11514_v9  ;;  %v16443_v22 = vsub.f32 %v11155_v32, %v11514_v9  ;;  %v16444_v20 = vsub.f32 %v11167_v2, %v11514_v9  ;;  %v16445_v44 = vsub.f32 %v11175_v8, %v11514_v9 }
 0x225   :  { %v11859_v59 = vmul.f32 %v11650_v40, %v16440_v51  ;;  %v11865_v13 = vmul.f32 %v11650_v40, %v16441_v33  ;;  %v16446_v51 = vsub.f32 %v11187_v42, %v11514_v9  ;;  %v16447_v33 = vsub.f32 %v11195_v56, %v11514_v9 }
 0x226   :  { %v11871_v23 = vmul.f32 %v11650_v40, %v16442_v47  ;;  %v11877_v49 = vmul.f32 %v11650_v40, %v16443_v22  ;;  %v11883_v60 = vmul.f32 %v11650_v40, %v16444_v20  ;;  %v11889_v25 = vmul.f32 %v11650_v40, %v16445_v44 }
 0x227   :  { %v11895_v32 = vmul.f32 %v11650_v40, %v16446_v51  ;;  %v11901_v2 = vmul.f32 %v11650_v40, %v16447_v33  ;;  %v16448_v47 = vsub.f32 %v11207_v26, %v11514_v9  ;;  %v16449_v22 = vsub.f32 %v11215_v36, %v11514_v9 }
 0x228   :  { %v16450_v20 = vsub.f32 %v16380_v43, %v11514_v9  ;;  %v16451_v44 = vsub.f32 %v16381_v29, %v11514_v9  ;;  %v16452_v51 = vsub.f32 %v16382_v45, %v11514_v9  ;;  %v16453_v33 = vsub.f32 %v16383_v50, %v11514_v9 }
 0x229   :  { %v11907_v8 = vmul.f32 %v11650_v40, %v16448_v47  ;;  %v11913_v42 = vmul.f32 %v11650_v40, %v16449_v22  ;;  %v16454_v47 = vsub.f32 %v16384_v17, %v11514_v9  ;;  %v16455_v22 = vsub.f32 %v16385_v7, %v11514_v9 }
 0x22a   :  { %v11919_v56 = vmul.f32 %v11650_v40, %v16450_v20  ;;  %v11925_v26 = vmul.f32 %v11650_v40, %v16451_v44  ;;  %v11931_v36 = vmul.f32 %v11650_v40, %v16452_v51  ;;  %v11937_v43 = vmul.f32 %v11650_v40, %v16453_v33  ;;  %v16459_v44 = vld [vmem:[#allocation13_spill] sm:$0xff]  ;;  %v16462_v33 = vld [vmem:[#allocation14_spill] sm:$0xff] }
 0x22b   :  { %v11943_v29 = vmul.f32 %v11650_v40, %v16454_v47  ;;  %v11949_v45 = vmul.f32 %v11650_v40, %v16455_v22  ;;  %v16457_v20 = vsub.f32 %v16386_v14, %v11514_v9  ;;  %v16460_v51 = vsub.f32 %v16459_v44, %v11514_v9  ;;  %v16465_v22 = vld [vmem:[#allocation15_spill] sm:$0xff] }
 0x22c   :  { %v16463_v47 = vsub.f32 %v16462_v33, %v11514_v9 }
 0x22d   :  { %16456 = vst [vmem:[#allocation7_spill] sm:$0xff] %v11949_v45  ;;  %v11955_v50 = vmul.f32 %v11650_v40, %v16457_v20  ;;  %v11961_v17 = vmul.f32 %v11650_v40, %v16460_v51  ;;  %v16466_v45 = vsub.f32 %v16465_v22, %v11514_v9  ;;  %v16468_v20 = vld [vmem:[#allocation16_spill] sm:$0xff]  ;;  %v16471_v51 = vld [vmem:[#allocation17_spill] sm:$0xff] }
 0x22e   :  { %v11967_v7 = vmul.f32 %v11650_v40, %v16463_v47  ;;  %v16474_v47 = vld [vmem:[#allocation18_spill] sm:$0xff] }
 0x22f   :  { %16458 = vst [vmem:[#allocation8_spill] sm:$0xff] %v11955_v50  ;;  %16461 = vst [vmem:[#allocation9_spill] sm:$0xff] %v11961_v17  ;;  %v11973_v14 = vmul.f32 %v11650_v40, %v16466_v45  ;;  %v16469_v50 = vsub.f32 %v16468_v20, %v11514_v9  ;;  %v16472_v17 = vsub.f32 %v16471_v51, %v11514_v9  ;;  %v16477_v45 = vld [vmem:[#allocation19_spill] sm:$0xff] }
 0x230   :  { %16464 = vst [vmem:[#allocation10_spill] sm:$0xff] %v11967_v7  ;;  %v16475_v7 = vsub.f32 %v16474_v47, %v11514_v9 }
 0x231   :  { %16467 = vst [vmem:[#allocation11_spill] sm:$0xff] %v11973_v14  ;;  %v11979_v44 = vmul.f32 %v11650_v40, %v16469_v50  ;;  %v11985_v33 = vmul.f32 %v11650_v40, %v16472_v17  ;;  %v16478_v14 = vsub.f32 %v16477_v45, %v11514_v9  ;;  %v16480_v50 = vld [vmem:[#allocation20_spill] sm:$0xff]  ;;  %v16482_v17 = vld [vmem:[#allocation21_spill] sm:$0xff] }
 0x232   :  { %v11991_v22 = vmul.f32 %v11650_v40, %v16475_v7  ;;  %v16484_v7 = vld [vmem:[#allocation22_spill] sm:$0xff] }
 0x233   :  { %16470 = vst [vmem:[#allocation12_spill] sm:$0xff] %v11979_v44  ;;  %16473 = vst [vmem:[#allocation24_spill] sm:$0xff] %v11985_v33  ;;  %v11997_v20 = vmul.f32 %v11650_v40, %v16478_v14  ;;  %v16481_v44 = vsub.f32 %v16480_v50, %v11514_v9  ;;  %v16483_v33 = vsub.f32 %v16482_v17, %v11514_v9  ;;  %v16486_v14 = vld [vmem:[#allocation23_spill] sm:$0xff] }
 0x234   :  { %16476 = vst [vmem:[#allocation25_spill] sm:$0xff] %v11991_v22  ;;  %v16485_v22 = vsub.f32 %v16484_v7, %v11514_v9 }
 0x235   :  { %16479 = vst [vmem:[#allocation26_spill] sm:$0xff] %v11997_v20  ;;  %v12003_v51 = vmul.f32 %v11650_v40, %v16481_v44  ;;  %v12009_v47 = vmul.f32 %v11650_v40, %v16483_v33  ;;  %v16487_v20 = vsub.f32 %v16486_v14, %v11514_v9  ;;  %v16489_v44 = vsub.f32 %v16398_v57, %v11514_v9 }
 0x236   :  { %v12015_v45 = vmul.f32 %v11650_v40, %v16485_v22  ;;  %v16491_v33 = vsub.f32 %v16399_v30, %v11514_v9  ;;  %v16493_v22 = vsub.f32 %v16400_v11, %v11514_v9 }
 0x237   :  { %v12021_v50 = vmul.f32 %v11650_v40, %v16487_v20  ;;  %v12027_v17 = vmul.f32 %v11650_v40, %v16489_v44  ;;  %v16495_v20 = vld [vmem:[#allocation27_spill] sm:$0xff]  ;;  %v16498_v44 = vld [vmem:[#allocation28_spill] sm:$0xff] }
 0x238   :  { %v12033_v7 = vmul.f32 %v11650_v40, %v16491_v33  ;;  %v12039_v14 = vmul.f32 %v11650_v40, %v16493_v22  ;;  %v16500_v33 = vld [vmem:[#allocation29_spill] sm:$0xff]  ;;  %v16502_v22 = vld [vmem:[#allocation30_spill] sm:$0xff] }
 0x239   :  { %16488 = vst [vmem:[#allocation32_spill] sm:$0xff] %v12021_v50  ;;  %16490 = vst [vmem:[#allocation33_spill] sm:$0xff] %v12027_v17  ;;  %v16496_v50 = vsub.f32 %v16495_v20, %v11514_v9  ;;  %v16499_v17 = vsub.f32 %v16498_v44, %v11514_v9 }
 0x23a   :  { %16492 = vst [vmem:[#allocation13_spill] sm:$0xff] %v12033_v7  ;;  %16494 = vst [vmem:[#allocation14_spill] sm:$0xff] %v12039_v14  ;;  %v16501_v7 = vsub.f32 %v16500_v33, %v11514_v9  ;;  %v16503_v14 = vsub.f32 %v16502_v22, %v11514_v9 }
 0x23b   :  { %v12045_v57 = vmul.f32 %v11650_v40, %v16496_v50  ;;  %v12051_v30 = vmul.f32 %v11650_v40, %v16499_v17  ;;  %v16504_v50 = vld [vmem:[#allocation31_spill] sm:$0xff]  ;;  %v16506_v17 = vsub.f32 %v16406_v35, %v11514_v9  ;;  %v12093_v35 = vmul.f32 %v11655_v4, %v11683_v48 }
 0x23c   :  { %v12057_v11 = vmul.f32 %v11650_v40, %v16501_v7  ;;  %v12063_v20 = vmul.f32 %v11650_v40, %v16503_v14  ;;  %v16507_v7 = vsub.f32 %v16407_v6, %v11514_v9  ;;  %v12085_v14 = vmul.f32 %v11655_v4, %v11671_v37 }
 0x23d   :  { %16497 = vst [vmem:[#allocation15_spill] sm:$0xff] %v12045_v57  ;;  %v16505_v57 = vsub.f32 %v16504_v50, %v11514_v9  ;;  %v12075_v33 = vmul.f32 %v11650_v40, %v16506_v17  ;;  %v12097_v50 = vmul.f32 %v11655_v4, %v11694_v21  ;;  %v12101_v9 = vmul.f32 %v11655_v4, %v11700_v28  ;;  %v16514_v17 = vld [vmem:[#allocation9_spill] sm:$0xff] }
 0x23e   :  { %v12081_v22 = vmul.f32 %v11650_v40, %v16507_v7  ;;  %v12105_v6 = vmul.f32 %v11655_v4, %v11706_v19  ;;  %v12113_v48 = vmul.f32 %v11655_v4, %v11719_v39  ;;  %v12117_v37 = vmul.f32 %v11655_v4, %v11725_v52  ;;  %v16516_v7 = vld [vmem:[#allocation10_spill] sm:$0xff] }
 0x23f   :  { %v12069_v44 = vmul.f32 %v11650_v40, %v16505_v57  ;;  %v12089_v57 = vmul.f32 %v11655_v4, %v11677_v63  ;;  %v12109_v63 = vmul.f32 %v11655_v4, %v11712_v58  ;;  %v12121_v40 = vmul.f32 %v11655_v4, %v11731_v1 }
 0x240   :  { %v12125_v21 = vmul.f32 %v11655_v4, %v11737_v38  ;;  %v12129_v28 = vmul.f32 %v11655_v4, %v11743_v55  ;;  %v12133_v19 = vmul.f32 %v11655_v4, %v11749_v62  ;;  %v12137_v58 = vmul.f32 %v11655_v4, %v11755_v15 }
 0x241   :  { %v12141_v39 = vmul.f32 %v11655_v4, %v11762_v10  ;;  %v12145_v52 = vmul.f32 %v11655_v4, %v11768_v16  ;;  %v12149_v1 = vmul.f32 %v11655_v4, %v11774_v31  ;;  %v12153_v38 = vmul.f32 %v11655_v4, %v11780_v3 }
 0x242   :  { %v12157_v55 = vmul.f32 %v11655_v4, %v11786_v0  ;;  %v12161_v62 = vmul.f32 %v11655_v4, %v11792_v27  ;;  %v12165_v15 = vmul.f32 %v11655_v4, %v11798_v34  ;;  %v12169_v10 = vmul.f32 %v11655_v4, %v11804_v54 }
 0x243   :  { %v12173_v16 = vmul.f32 %v11655_v4, %v11810_v61  ;;  %v12177_v31 = vmul.f32 %v11655_v4, %v11816_v18  ;;  %v12181_v3 = vmul.f32 %v11655_v4, %v11822_v24  ;;  %v12185_v0 = vmul.f32 %v11655_v4, %v11828_v46 }
 0x244   :  { %v12189_v27 = vmul.f32 %v11655_v4, %v11834_v53  ;;  %v12193_v34 = vmul.f32 %v11655_v4, %v11840_v12  ;;  %v12197_v54 = vmul.f32 %v11655_v4, %v11847_v41  ;;  %v12201_v61 = vmul.f32 %v11655_v4, %v11853_v5 }
 0x245   :  { %v12205_v18 = vmul.f32 %v11655_v4, %v11859_v59  ;;  %v12209_v24 = vmul.f32 %v11655_v4, %v11865_v13  ;;  %v12213_v46 = vmul.f32 %v11655_v4, %v11871_v23  ;;  %v12217_v53 = vmul.f32 %v11655_v4, %v11877_v49 }
 0x246   :  { %v12221_v12 = vmul.f32 %v11655_v4, %v11883_v60  ;;  %v12225_v41 = vmul.f32 %v11655_v4, %v11889_v25  ;;  %v12229_v5 = vmul.f32 %v11655_v4, %v11895_v32  ;;  %v12233_v59 = vmul.f32 %v11655_v4, %v11901_v2 }
 0x247   :  { %v12237_v13 = vmul.f32 %v11655_v4, %v11907_v8  ;;  %v12241_v23 = vmul.f32 %v11655_v4, %v11913_v42  ;;  %v12245_v49 = vmul.f32 %v11655_v4, %v11919_v56  ;;  %v12249_v60 = vmul.f32 %v11655_v4, %v11925_v26  ;;  %v16510_v8 = vld [vmem:[#allocation7_spill] sm:$0xff]  ;;  %v16512_v56 = vld [vmem:[#allocation8_spill] sm:$0xff] }
 0x248   :  { %v12253_v25 = vmul.f32 %v11655_v4, %v11931_v36  ;;  %v12257_v32 = vmul.f32 %v11655_v4, %v11937_v43  ;;  %v12261_v2 = vmul.f32 %v11655_v4, %v11943_v29  ;;  %v12265_v42 = vmul.f32 %v11655_v4, %v16510_v8 }
 0x249   :  { %v12269_v26 = vmul.f32 %v11655_v4, %v16512_v56  ;;  %v12273_v36 = vmul.f32 %v11655_v4, %v16514_v17  ;;  %v12277_v43 = vmul.f32 %v11655_v4, %v16516_v7 }
 0x24a   :  { %16508 = vst [vmem:[#allocation16_spill] sm:$0xff] %v12257_v32  ;;  %16509 = vst [vmem:[#allocation17_spill] sm:$0xff] %v12261_v2  ;;  %v16517_v32 = vld [vmem:[#allocation11_spill] sm:$0xff]  ;;  %v16518_v2 = vld [vmem:[#allocation12_spill] sm:$0xff] }
 0x24b   :  { %16511 = vst [vmem:[#allocation18_spill] sm:$0xff] %v12265_v42  ;;  %16513 = vst [vmem:[#allocation19_spill] sm:$0xff] %v12269_v26  ;;  %v12281_v29 = vmul.f32 %v11655_v4, %v16517_v32  ;;  %v12285_v8 = vmul.f32 %v11655_v4, %v16518_v2  ;;  %v16519_v42 = vld [vmem:[#allocation24_spill] sm:$0xff]  ;;  %v16521_v26 = vld [vmem:[#allocation25_spill] sm:$0xff]  ;;  %v12301_v32 = vmul.f32 %v11655_v4, %v12003_v51 }
 0x24c   :  { %16515 = vst [vmem:[#allocation20_spill] sm:$0xff] %v12273_v36  ;;  %v12289_v56 = vmul.f32 %v11655_v4, %v16519_v42  ;;  %v12293_v17 = vmul.f32 %v11655_v4, %v16521_v26  ;;  %v16523_v36 = vld [vmem:[#allocation26_spill] sm:$0xff]  ;;  %v12305_v2 = vmul.f32 %v11655_v4, %v12009_v47  ;;  %v12309_v42 = vmul.f32 %v11655_v4, %v12015_v45 }
 0x24d   :  { %v12297_v7 = vmul.f32 %v11655_v4, %v16523_v36  ;;  %16525 = vst [vmem:[#allocation27_spill] sm:$0xff] %v12301_v32  ;;  %v16530_v32 = vld [vmem:[#allocation14_spill] sm:$0xff] }
 0x24e   :  { %16520 = vst [vmem:[#allocation21_spill] sm:$0xff] %v12289_v56  ;;  %16522 = vst [vmem:[#allocation22_spill] sm:$0xff] %v12293_v17  ;;  %v16527_v56 = vld [vmem:[#allocation32_spill] sm:$0xff]  ;;  %v16528_v17 = vld [vmem:[#allocation33_spill] sm:$0xff]  ;;  %v12325_v47 = vmul.f32 %v11655_v4, %v16530_v32  ;;  %v12345_v32 = vmul.f32 %v11655_v4, %v12069_v44 }
 0x24f   :  { %16524 = vst [vmem:[#allocation23_spill] sm:$0xff] %v12297_v7  ;;  %16526 = vst [vmem:[#allocation28_spill] sm:$0xff] %v12305_v2  ;;  %v12313_v26 = vmul.f32 %v11655_v4, %v16527_v56  ;;  %v12317_v36 = vmul.f32 %v11655_v4, %v16528_v17  ;;  %v16529_v7 = vld [vmem:[#allocation13_spill] sm:$0xff]  ;;  %v16531_v2 = vld [vmem:[#allocation15_spill] sm:$0xff]  ;;  %v12333_v56 = vmul.f32 %v11655_v4, %v12051_v30 }
 0x250   :  { %v12321_v51 = vmul.f32 %v11655_v4, %v16529_v7  ;;  %v12329_v45 = vmul.f32 %v11655_v4, %v16531_v2  ;;  %v12337_v17 = vmul.f32 %v11655_v4, %v12057_v11  ;;  %v12341_v7 = vmul.f32 %v11655_v4, %v12063_v20 }
 0x251   :  { %16532 = vst [vmem:[#allocation29_spill] sm:$0xff] %v12333_v56  ;;  %v12349_v2 = vmul.f32 %v11655_v4, %v12075_v33  ;;  %v12353_v30 = vmul.f32 %v11655_v4, %v12081_v22  ;;  %v16533_v56 = vld [vmem:[#allocation6_spill] sm:$0xff] }
 0x252   :  { %v12357_v11 = vadd.f32 %v16533_v56, %v12085_v14  ;;  %v12361_v20 = vadd.f32 %v16533_v56, %v12089_v57  ;;  %v12365_v44 = vadd.f32 %v16533_v56, %v12093_v35  ;;  %v12369_v33 = vadd.f32 %v16533_v56, %v12097_v50 }
 0x253   :  { %v12373_v4 = vadd.f32 %v16533_v56, %v12101_v9  ;;  %v12377_v22 = vadd.f32 %v16533_v56, %v12105_v6  ;;  %v12381_v14 = vadd.f32 %v16533_v56, %v12109_v63  ;;  %v12385_v57 = vadd.f32 %v16533_v56, %v12113_v48 }
 0x254   :  { %v12389_v35 = vadd.f32 %v16533_v56, %v12117_v37  ;;  %v12393_v50 = vadd.f32 %v16533_v56, %v12121_v40  ;;  %v12397_v9 = vadd.f32 %v16533_v56, %v12125_v21  ;;  %v12401_v6 = vadd.f32 %v16533_v56, %v12129_v28 }
 0x255   :  { %v12405_v63 = vadd.f32 %v16533_v56, %v12133_v19  ;;  %v12409_v48 = vadd.f32 %v16533_v56, %v12137_v58  ;;  %v12413_v37 = vadd.f32 %v16533_v56, %v12141_v39  ;;  %v12417_v40 = vadd.f32 %v16533_v56, %v12145_v52 }
 0x256   :  { %v12421_v21 = vadd.f32 %v16533_v56, %v12149_v1  ;;  %v12425_v28 = vadd.f32 %v16533_v56, %v12153_v38  ;;  %v12429_v19 = vadd.f32 %v16533_v56, %v12157_v55  ;;  %v12433_v58 = vadd.f32 %v16533_v56, %v12161_v62 }
 0x257   :  { %v12437_v39 = vadd.f32 %v16533_v56, %v12165_v15  ;;  %v12441_v52 = vadd.f32 %v16533_v56, %v12169_v10  ;;  %v12445_v1 = vadd.f32 %v16533_v56, %v12173_v16  ;;  %v12449_v38 = vadd.f32 %v16533_v56, %v12177_v31 }
 0x258   :  { %v12453_v55 = vadd.f32 %v16533_v56, %v12181_v3  ;;  %v12457_v62 = vadd.f32 %v16533_v56, %v12185_v0  ;;  %v12461_v15 = vadd.f32 %v16533_v56, %v12189_v27  ;;  %v12465_v10 = vadd.f32 %v16533_v56, %v12193_v34 }
 0x259   :  { %v12469_v16 = vadd.f32 %v16533_v56, %v12197_v54  ;;  %v12473_v31 = vadd.f32 %v16533_v56, %v12201_v61  ;;  %v12477_v3 = vadd.f32 %v16533_v56, %v12205_v18  ;;  %v12481_v0 = vadd.f32 %v16533_v56, %v12209_v24 }
 0x25a   :  { %v12485_v27 = vadd.f32 %v16533_v56, %v12213_v46  ;;  %v12489_v34 = vadd.f32 %v16533_v56, %v12217_v53  ;;  %v12493_v54 = vadd.f32 %v16533_v56, %v12221_v12  ;;  %v12497_v61 = vadd.f32 %v16533_v56, %v12225_v41 }
 0x25b   :  { %v12501_v18 = vadd.f32 %v16533_v56, %v12229_v5  ;;  %v12505_v24 = vadd.f32 %v16533_v56, %v12233_v59  ;;  %v1563_v46 = vadd.f32 %v16533_v56, %v12237_v13  ;;  %v1564_v53 = vadd.f32 %v16533_v56, %v12241_v23  ;;  %v16540_v23 = vld [vmem:[#allocation18_spill] sm:$0xff] }
 0x25c   :  { %16534 = vst [vmem:[#allocation30_spill] sm:$0xff] %v12497_v61  ;;  %v1565_v12 = vadd.f32 %v16533_v56, %v12245_v49  ;;  %v12515_v41 = vadd.f32 %v16533_v56, %v12249_v60  ;;  %v12519_v5 = vadd.f32 %v16533_v56, %v12253_v25  ;;  %v12531_v61 = vadd.f32 %v16533_v56, %v16540_v23  ;;  %v16542_v49 = vld [vmem:[#allocation19_spill] sm:$0xff] }
 0x25d   :  { %16535 = vst [vmem:[#allocation31_spill] sm:$0xff] %v12501_v18  ;;  %16536 = vst [vmem:[#allocation7_spill] sm:$0xff] %v12505_v24  ;;  %v16538_v18 = vld [vmem:[#allocation16_spill] sm:$0xff]  ;;  %v16539_v24 = vld [vmem:[#allocation17_spill] sm:$0xff]  ;;  %v12535_v60 = vadd.f32 %v16533_v56, %v16542_v49  ;;  %v12551_v23 = vadd.f32 %v16533_v56, %v12285_v8 }
 0x25e   :  { %16537 = vst [vmem:[#allocation8_spill] sm:$0xff] %v12515_v41  ;;  %v12523_v59 = vadd.f32 %v16533_v56, %v16538_v18  ;;  %v12527_v13 = vadd.f32 %v16533_v56, %v16539_v24  ;;  %16541 = vst [vmem:[#allocation9_spill] sm:$0xff] %v12531_v61  ;;  %v16544_v41 = vld [vmem:[#allocation20_spill] sm:$0xff]  ;;  %v12543_v18 = vadd.f32 %v16533_v56, %v12277_v43  ;;  %v16548_v61 = vld [vmem:[#allocation21_spill] sm:$0xff] }
 0x25f   :  { %16543 = vst [vmem:[#allocation10_spill] sm:$0xff] %v12535_v60  ;;  %v12539_v25 = vadd.f32 %v16533_v56, %v16544_v41  ;;  %v12547_v24 = vadd.f32 %v16533_v56, %v12281_v29  ;;  %v12555_v49 = vadd.f32 %v16533_v56, %v16548_v61  ;;  %v16549_v60 = vld [vmem:[#allocation22_spill] sm:$0xff]  ;;  %v12575_v61 = vadd.f32 %v16533_v56, %v12309_v42 }
 0x260   :  { %16546 = vst [vmem:[#allocation12_spill] sm:$0xff] %v12543_v18  ;;  %v12559_v41 = vadd.f32 %v16533_v56, %v16549_v60  ;;  %v16551_v18 = vld [vmem:[#allocation27_spill] sm:$0xff]  ;;  %v12579_v60 = vadd.f32 %v16533_v56, %v12313_v26  ;;  %v12595_v42 = vadd.f32 %v16533_v56, %v12329_v45  ;;  %v12615_v45 = vadd.f32 %v16533_v56, %v12349_v2 }
 0x261   :  { %16545 = vst [vmem:[#allocation11_spill] sm:$0xff] %v12539_v25  ;;  %16547 = vst [vmem:[#allocation24_spill] sm:$0xff] %v12547_v24  ;;  %v16550_v25 = vld [vmem:[#allocation23_spill] sm:$0xff]  ;;  %v12567_v29 = vadd.f32 %v16533_v56, %v16551_v18  ;;  %v16552_v24 = vld [vmem:[#allocation28_spill] sm:$0xff]  ;;  %v12587_v18 = vadd.f32 %v16533_v56, %v12321_v51  ;;  %v12607_v51 = vadd.f32 %v16533_v56, %v12341_v7  ;;  %v1595_v7 = vmax.f32 %v12361_v20, 0.0 }
 0x262   :  { %v12563_v43 = vadd.f32 %v16533_v56, %v16550_v25  ;;  %v12571_v8 = vadd.f32 %v16533_v56, %v16552_v24  ;;  %16553 = vst [vmem:[#allocation25_spill] sm:$0xff] %v12575_v61  ;;  %v12583_v25 = vadd.f32 %v16533_v56, %v12317_v36  ;;  %v12591_v24 = vadd.f32 %v16533_v56, %v12325_v47  ;;  %v16555_v61 = vld [vmem:[#allocation29_spill] sm:$0xff] }
 0x263   :  { %16554 = vst [vmem:[#allocation26_spill] sm:$0xff] %v12595_v42  ;;  %v12599_v26 = vadd.f32 %v16533_v56, %v16555_v61  ;;  %v12603_v36 = vadd.f32 %v16533_v56, %v12337_v17  ;;  %16558 = vst [vmem:[#allocation13_spill] sm:$0xff] %v12607_v51  ;;  %v12611_v47 = vadd.f32 %v16533_v56, %v12345_v32  ;;  %v1633_v42 = vmax.f32 %v1564_v53, 0.0 }
 0x264   :  { %v12619_v61 = vadd.f32 %v16533_v56, %v12353_v30  ;;  %v1634_v17 = vmax.f32 %v1565_v12, 0.0  ;;  %v1596_v51 = vmax.f32 %v12365_v44, 0.0  ;;  %v1597_v32 = vmax.f32 %v12369_v33, 0.0  ;;  %1664 = vst.msk [vmem:[#allocation2 + $0x8] sm:$0xff] %vm875_vm3, %v1595_v7  ;;  %v16562_v53 = vld [vmem:[#allocation7_spill] sm:$0xff] }
 0x265   :  { %16556 = vst [vmem:[#allocation32_spill] sm:$0xff] %v12599_v26  ;;  %16557 = vst [vmem:[#allocation33_spill] sm:$0xff] %v12603_v36  ;;  %v1632_v26 = vmax.f32 %v1563_v46, 0.0  ;;  %v1594_v36 = vmax.f32 %v12357_v11, 0.0  ;;  %v1599_v56 = vmax.f32 %v12377_v22, 0.0  ;;  %v1600_v2 = vmax.f32 %v12381_v14, 0.0 }
 0x266   :  { %16559 = vst [vmem:[#allocation14_spill] sm:$0xff] %v12611_v47  ;;  %v1598_v47 = vmax.f32 %v12373_v4, 0.0  ;;  %1702 = vst.msk [vmem:[#allocation2 + $0x138] sm:$0xff] %vm875_vm3, %v1633_v42  ;;  %v1601_v30 = vmax.f32 %v12385_v57, 0.0  ;;  %v1602_v11 = vmax.f32 %v12389_v35, 0.0  ;;  %v1603_v20 = vmax.f32 %v12393_v50, 0.0 }
 0x267   :  { %1701 = vst.msk [vmem:[#allocation2 + $0x130] sm:$0xff] %vm875_vm3, %v1632_v26  ;;  %1703 = vst.msk [vmem:[#allocation2 + $0x140] sm:$0xff] %vm875_vm3, %v1634_v17  ;;  %v1604_v44 = vmax.f32 %v12397_v9, 0.0  ;;  %v1605_v33 = vmax.f32 %v12401_v6, 0.0  ;;  %v1606_v4 = vmax.f32 %v12405_v63, 0.0  ;;  %v1607_v22 = vmax.f32 %v12409_v48, 0.0 }
 0x268   :  { %1663 = vst.msk [vmem:[#allocation2] sm:$0xff] %vm875_vm3, %v1594_v36  ;;  %1665 = vst.msk [vmem:[#allocation2 + $0x10] sm:$0xff] %vm875_vm3, %v1596_v51  ;;  %v1608_v14 = vmax.f32 %v12413_v37, 0.0  ;;  %v1609_v57 = vmax.f32 %v12417_v40, 0.0  ;;  %v1610_v35 = vmax.f32 %v12421_v21, 0.0  ;;  %v1611_v50 = vmax.f32 %v12425_v28, 0.0 }
 0x269   :  { %1666 = vst.msk [vmem:[#allocation2 + $0x18] sm:$0xff] %vm875_vm3, %v1597_v32  ;;  %1667 = vst.msk [vmem:[#allocation2 + $0x20] sm:$0xff] %vm875_vm3, %v1598_v47  ;;  %v1612_v9 = vmax.f32 %v12429_v19, 0.0  ;;  %v1613_v6 = vmax.f32 %v12433_v58, 0.0  ;;  %v1614_v63 = vmax.f32 %v12437_v39, 0.0  ;;  %v1615_v48 = vmax.f32 %v12441_v52, 0.0 }
 0x26a   :  { %1668 = vst.msk [vmem:[#allocation2 + $0x28] sm:$0xff] %vm875_vm3, %v1599_v56  ;;  %1669 = vst.msk [vmem:[#allocation2 + $0x30] sm:$0xff] %vm875_vm3, %v1600_v2  ;;  %v1616_v37 = vmax.f32 %v12445_v1, 0.0  ;;  %v1617_v40 = vmax.f32 %v12449_v38, 0.0  ;;  %v1618_v21 = vmax.f32 %v12453_v55, 0.0  ;;  %v1619_v28 = vmax.f32 %v12457_v62, 0.0 }
 0x26b   :  { %1670 = vst.msk [vmem:[#allocation2 + $0x38] sm:$0xff] %vm875_vm3, %v1601_v30  ;;  %1671 = vst.msk [vmem:[#allocation2 + $0x40] sm:$0xff] %vm875_vm3, %v1602_v11  ;;  %v1620_v19 = vmax.f32 %v12461_v15, 0.0  ;;  %v1621_v58 = vmax.f32 %v12465_v10, 0.0  ;;  %v1622_v39 = vmax.f32 %v12469_v16, 0.0  ;;  %v1623_v52 = vmax.f32 %v12473_v31, 0.0 }
 0x26c   :  { %1672 = vst.msk [vmem:[#allocation2 + $0x48] sm:$0xff] %vm875_vm3, %v1603_v20  ;;  %1673 = vst.msk [vmem:[#allocation2 + $0x50] sm:$0xff] %vm875_vm3, %v1604_v44  ;;  %v1624_v1 = vmax.f32 %v12477_v3, 0.0  ;;  %v1625_v38 = vmax.f32 %v12481_v0, 0.0  ;;  %v1626_v55 = vmax.f32 %v12485_v27, 0.0  ;;  %v1627_v10 = vmax.f32 %v12489_v34, 0.0 }
 0x26d   :  { %1674 = vst.msk [vmem:[#allocation2 + $0x58] sm:$0xff] %vm875_vm3, %v1605_v33  ;;  %1675 = vst.msk [vmem:[#allocation2 + $0x60] sm:$0xff] %vm875_vm3, %v1606_v4  ;;  %v1628_v16 = vmax.f32 %v12493_v54, 0.0  ;;  %v16560_v31 = vld [vmem:[#allocation30_spill] sm:$0xff]  ;;  %v16561_v46 = vld [vmem:[#allocation31_spill] sm:$0xff]  ;;  %v1631_v12 = vmax.f32 %v16562_v53, 0.0 }
 0x26e   :  { %1676 = vst.msk [vmem:[#allocation2 + $0x68] sm:$0xff] %vm875_vm3, %v1607_v22  ;;  %1677 = vst.msk [vmem:[#allocation2 + $0x70] sm:$0xff] %vm875_vm3, %v1608_v14  ;;  %v1838_v62 = vld [vmem:[#allocation2 + $0x131] sm:$0xff]  ;;  %v1839_v15 = vld [vmem:[#allocation2 + $0x139] sm:$0xff]  ;;  %v1629_v3 = vmax.f32 %v16560_v31, 0.0  ;;  %v1630_v0 = vmax.f32 %v16561_v46, 0.0 }
 0x26f   :  { %1678 = vst.msk [vmem:[#allocation2 + $0x78] sm:$0xff] %vm875_vm3, %v1609_v57  ;;  %1679 = vst.msk [vmem:[#allocation2 + $0x80] sm:$0xff] %vm875_vm3, %v1610_v35  ;;  %v9947_v27 = vpack.i.bf16 %v1839_v15, %v1838_v62  ;;  %v16563_v42 = vld [vmem:[#allocation8_spill] sm:$0xff]  ;;  %v1636_v34 = vmax.f32 %v12519_v5, 0.0  ;;  %v1637_v54 = vmax.f32 %v12523_v59, 0.0  ;;  %v1638_v36 = vmax.f32 %v12527_v13, 0.0 }
 0x270   :  { %1680 = vst.msk [vmem:[#allocation2 + $0x88] sm:$0xff] %vm875_vm3, %v1611_v50  ;;  %1681 = vst.msk [vmem:[#allocation2 + $0x90] sm:$0xff] %vm875_vm3, %v1612_v9  ;;  %v1635_v26 = vmax.f32 %v16563_v42, 0.0  ;;  %v16564_v51 = vld [vmem:[#allocation9_spill] sm:$0xff]  ;;  %v16565_v17 = vld [vmem:[#allocation10_spill] sm:$0xff]  ;;  %v1644_v30 = vmax.f32 %v12551_v23, 0.0 }
 0x271   :  { %1682 = vst.msk [vmem:[#allocation2 + $0x98] sm:$0xff] %vm875_vm3, %v1613_v6  ;;  %1683 = vst.msk [vmem:[#allocation2 + $0xa0] sm:$0xff] %vm875_vm3, %v1614_v63  ;;  %v1639_v47 = vmax.f32 %v16564_v51, 0.0  ;;  %v1640_v7 = vmax.f32 %v16565_v17, 0.0  ;;  %9948 = vrot.lane.b32.xlu1 %v9947_v27, %s10520_s4  ;;  %v16566_v5 = vld [vmem:[#allocation11_spill] sm:$0xff]  ;;  %v16567_v59 = vld [vmem:[#allocation12_spill] sm:$0xff] }
 0x272   :  { %1684 = vst.msk [vmem:[#allocation2 + $0xa8] sm:$0xff] %vm875_vm3, %v1615_v48  ;;  %1685 = vst.msk [vmem:[#allocation2 + $0xb0] sm:$0xff] %vm875_vm3, %v1616_v37  ;;  %v1641_v32 = vmax.f32 %v16566_v5, 0.0  ;;  %v1642_v56 = vmax.f32 %v16567_v59, 0.0  ;;  %v16568_v13 = vld [vmem:[#allocation24_spill] sm:$0xff]  ;;  %v1645_v11 = vmax.f32 %v12555_v49, 0.0 }
 0x273   :  { %1686 = vst.msk [vmem:[#allocation2 + $0xb8] sm:$0xff] %vm875_vm3, %v1617_v40  ;;  %1687 = vst.msk [vmem:[#allocation2 + $0xc0] sm:$0xff] %vm875_vm3, %v1618_v21  ;;  %v1643_v2 = vmax.f32 %v16568_v13, 0.0  ;;  %v1646_v20 = vmax.f32 %v12559_v41, 0.0  ;;  %v1647_v44 = vmax.f32 %v12563_v43, 0.0  ;;  %v1648_v33 = vmax.f32 %v12567_v29, 0.0 }
 0x274   :  { %1688 = vst.msk [vmem:[#allocation2 + $0xc8] sm:$0xff] %vm875_vm3, %v1619_v28  ;;  %1689 = vst.msk [vmem:[#allocation2 + $0xd0] sm:$0xff] %vm875_vm3, %v1620_v19  ;;  %v1649_v23 = vmax.f32 %v12571_v8, 0.0  ;;  %v16569_v4 = vld [vmem:[#allocation25_spill] sm:$0xff]  ;;  %v1651_v49 = vmax.f32 %v12579_v60, 0.0  ;;  %v1652_v41 = vmax.f32 %v12583_v25, 0.0 }
 0x275   :  { %1690 = vst.msk [vmem:[#allocation2 + $0xd8] sm:$0xff] %vm875_vm3, %v1621_v58  ;;  %1691 = vst.msk [vmem:[#allocation2 + $0xe0] sm:$0xff] %vm875_vm3, %v1622_v39  ;;  %v1650_v22 = vmax.f32 %v16569_v4, 0.0  ;;  %v1870_v43 = vld [vmem:[#allocation2 + $0x12] sm:$0xff]  ;;  %v1871_v29 = vld [vmem:[#allocation2 + $0x1a] sm:$0xff]  ;;  %v1653_v14 = vmax.f32 %v12587_v18, 0.0 }
 0x276   :  { %1692 = vst.msk [vmem:[#allocation2 + $0xe8] sm:$0xff] %vm875_vm3, %v1623_v52  ;;  %1693 = vst.msk [vmem:[#allocation2 + $0xf0] sm:$0xff] %vm875_vm3, %v1624_v1  ;;  %v1654_v8 = vmax.f32 %v12591_v24, 0.0  ;;  %v16570_v57 = vld [vmem:[#allocation26_spill] sm:$0xff]  ;;  %v16571_v50 = vld [vmem:[#allocation32_spill] sm:$0xff]  ;;  %v1660_v24 = vmax.f32 %v12615_v45, 0.0  ;;  %v2279_v40 = vpack.c.bf16 %v1871_v29, %v1870_v43 }
 0x277   :  { %1694 = vst.msk [vmem:[#allocation2 + $0xf8] sm:$0xff] %vm875_vm3, %v1625_v38  ;;  %1695 = vst.msk [vmem:[#allocation2 + $0x100] sm:$0xff] %vm875_vm3, %v1626_v55  ;;  %v1655_v35 = vmax.f32 %v16570_v57, 0.0  ;;  %v1656_v60 = vmax.f32 %v16571_v50, 0.0  ;;  %v16572_v25 = vld [vmem:[#allocation33_spill] sm:$0xff]  ;;  %v16574_v48 = vld [vmem:[#allocation14_spill] sm:$0xff] }
 0x278   :  { %1697 = vst.msk [vmem:[#allocation2 + $0x110] sm:$0xff] %vm875_vm3, %v1628_v16  ;;  %1698 = vst.msk [vmem:[#allocation2 + $0x118] sm:$0xff] %vm875_vm3, %v1629_v3  ;;  %v1657_v9 = vmax.f32 %v16572_v25, 0.0  ;;  %v16573_v6 = vld [vmem:[#allocation13_spill] sm:$0xff]  ;;  %v1659_v18 = vmax.f32 %v16574_v48, 0.0  ;;  %v1661_v37 = vmax.f32 %v12619_v61, 0.0 }
 0x279   :  { %1699 = vst.msk [vmem:[#allocation2 + $0x120] sm:$0xff] %vm875_vm3, %v1630_v0  ;;  %1696 = vst.msk [vmem:[#allocation2 + $0x108] sm:$0xff] %vm875_vm3, %v1627_v10  ;;  %v1658_v63 = vmax.f32 %v16573_v6, 0.0  ;;  %v10147_v45 = vld [vmem:[%s16216_s5 + $0x60] sm:$0xff]   ;;  %v16280_v55 = vmov 0   ;;  %v10148_v62 = vld [vmem:[%s16216_s5 + $0x68] sm:$0xff]  }
 0x27a   :  { %1700 = vst.msk [vmem:[#allocation2 + $0x128] sm:$0xff] %vm875_vm3, %v1631_v12  ;;  %1704 = vst.msk [vmem:[#allocation2 + $0x148] sm:$0xff] %vm875_vm3, %v1635_v26  ;;  %9661 = vmatprep.subr.bf16.mxu1 %v16280_v55  ;;  %2695 = vmatprep.subr.bf16.mxu0 %v16280_v55  ;;  %v10149_v42 = vld [vmem:[%s16216_s5 + $0x70] sm:$0xff]  }
 0x27b   :  { %1705 = vst.msk [vmem:[#allocation2 + $0x150] sm:$0xff] %vm875_vm3, %v1636_v34  ;;  %1706 = vst.msk [vmem:[#allocation2 + $0x158] sm:$0xff] %vm875_vm3, %v1637_v54  ;;  %9673 = vmatpush1.bf16.msra.mxu1 %v10147_v45  ;;  %2696 = vmatpush1.bf16.msra.mxu0 %v10147_v45 }
 0x27c   :  { %1707 = vst.msk [vmem:[#allocation2 + $0x160] sm:$0xff] %vm875_vm3, %v1638_v36  ;;  %1708 = vst.msk [vmem:[#allocation2 + $0x168] sm:$0xff] %vm875_vm3, %v1639_v47  ;;  %9662 = vmatprep.subr.bf16.mxu1 %v16280_v55  ;;  %10108 = vset.pattern.permute.xlu1 %v16280_v55 }
 0x27d   :  { %1709 = vst.msk [vmem:[#allocation2 + $0x170] sm:$0xff] %vm875_vm3, %v1640_v7  ;;  %1710 = vst.msk [vmem:[#allocation2 + $0x178] sm:$0xff] %vm875_vm3, %v1641_v32  ;;  %2697 = vmatprep.subr.bf16.mxu0 %v16280_v55  ;;  %10107 = vset.pattern.permute.xlu0 %v16280_v55  ;;  %v10150_v7 = vld [vmem:[%s16216_s5 + $0x78] sm:$0xff]  }
 0x27e   :  { %1711 = vst.msk [vmem:[#allocation2 + $0x180] sm:$0xff] %vm875_vm3, %v1642_v56  ;;  %1712 = vst.msk [vmem:[#allocation2 + $0x188] sm:$0xff] %vm875_vm3, %v1643_v2 }
 0x27f   :  { %1713 = vst.msk [vmem:[#allocation2 + $0x190] sm:$0xff] %vm875_vm3, %v1644_v30  ;;  %1714 = vst.msk [vmem:[#allocation2 + $0x198] sm:$0xff] %vm875_vm3, %v1645_v11  ;;  %v1834_v21 = vld [vmem:[#allocation2 + $0x111] sm:$0xff]  ;;  %9674 = vmatpush1.bf16.msra.mxu1 %v10148_v62  ;;  %2698 = vmatpush1.bf16.msra.mxu0 %v10148_v62  ;;  %v10151_v11 = vld [vmem:[%s16216_s5 + $0x80] sm:$0xff]  }
 0x280   :  { %1715 = vst.msk [vmem:[#allocation2 + $0x1a0] sm:$0xff] %vm875_vm3, %v1646_v20  ;;  %1716 = vst.msk [vmem:[#allocation2 + $0x1a8] sm:$0xff] %vm875_vm3, %v1647_v44  ;;  %v1835_v28 = vld [vmem:[#allocation2 + $0x119] sm:$0xff]  ;;  %9663 = vmatprep.subr.bf16.mxu1 %v16280_v55  ;;  %2699 = vmatprep.subr.bf16.mxu0 %v16280_v55 }
 0x281   :  { %1717 = vst.msk [vmem:[#allocation2 + $0x1b0] sm:$0xff] %vm875_vm3, %v1648_v33  ;;  %1718 = vst.msk [vmem:[#allocation2 + $0x1b8] sm:$0xff] %vm875_vm3, %v1649_v23  ;;  %v9937_v61 = vpack.i.bf16 %v1835_v28, %v1834_v21  ;;  %v1840_v19 = vld [vmem:[#allocation2 + $0x141] sm:$0xff]  ;;  %v1902_v39 = vld [vmem:[#allocation2 + $0x112] sm:$0xff] }
 0x282   :  { %1719 = vst.msk [vmem:[#allocation2 + $0x1c0] sm:$0xff] %vm875_vm3, %v1650_v22  ;;  %1720 = vst.msk [vmem:[#allocation2 + $0x1c8] sm:$0xff] %vm875_vm3, %v1651_v49  ;;  %v1841_v58 = vld [vmem:[#allocation2 + $0x149] sm:$0xff]  ;;  %v1836_v1 = vld [vmem:[#allocation2 + $0x121] sm:$0xff] }
 0x283   :  { %1721 = vst.msk [vmem:[#allocation2 + $0x1d0] sm:$0xff] %vm875_vm3, %v1652_v41  ;;  %1722 = vst.msk [vmem:[#allocation2 + $0x1d8] sm:$0xff] %vm875_vm3, %v1653_v14  ;;  %v9952_v52 = vpack.i.bf16 %v1841_v58, %v1840_v19  ;;  %v1837_v38 = vld [vmem:[#allocation2 + $0x129] sm:$0xff]  ;;  %9938 = vrot.lane.b32.xlu0 %v9937_v61, %s10520_s4  ;;  %v1844_v15 = vld [vmem:[#allocation2 + $0x161] sm:$0xff]  ;;  %9675 = vmatpush1.bf16.msra.mxu1 %v10149_v42 }
 0x284   :  { %1723 = vst.msk [vmem:[#allocation2 + $0x1e0] sm:$0xff] %vm875_vm3, %v1654_v8  ;;  %1724 = vst.msk [vmem:[#allocation2 + $0x1e8] sm:$0xff] %vm875_vm3, %v1655_v35  ;;  %v1845_v10 = vld [vmem:[#allocation2 + $0x169] sm:$0xff]  ;;  %v1903_v16 = vld [vmem:[#allocation2 + $0x11a] sm:$0xff]  ;;  %v9942_v3 = vpack.i.bf16 %v1837_v38, %v1836_v1  ;;  %9664 = vmatprep.subr.bf16.mxu1 %v16280_v55  ;;  %2700 = vmatpush1.bf16.msra.mxu0 %v10149_v42 }
 0x285   :  { %1725 = vst.msk [vmem:[#allocation2 + $0x1f0] sm:$0xff] %vm875_vm3, %v1656_v60  ;;  %1726 = vst.msk [vmem:[#allocation2 + $0x1f8] sm:$0xff] %vm875_vm3, %v1657_v9  ;;  %9953 = vrot.lane.b32.xlu1 %v9952_v52, %s10520_s4  ;;  %v2311_v31 = vpack.c.bf16 %v1903_v16, %v1902_v39  ;;  %v9962_v46 = vpack.i.bf16 %v1845_v10, %v1844_v15  ;;  %v1842_v0 = vld [vmem:[#allocation2 + $0x151] sm:$0xff]  ;;  %v1843_v27 = vld [vmem:[#allocation2 + $0x159] sm:$0xff]  ;;  %2701 = vmatprep.subr.bf16.mxu0 %v16280_v55 }
 0x286   :  { %1727 = vst.msk [vmem:[#allocation2 + $0x200] sm:$0xff] %vm875_vm3, %v1658_v63  ;;  %1728 = vst.msk [vmem:[#allocation2 + $0x208] sm:$0xff] %vm875_vm3, %v1659_v18  ;;  %v1848_v53 = vld [vmem:[#allocation2 + $0x181] sm:$0xff]  ;;  %v1849_v12 = vld [vmem:[#allocation2 + $0x189] sm:$0xff]  ;;  %v9957_v34 = vpack.i.bf16 %v1843_v27, %v1842_v0 }
 0x287   :  { %1729 = vst.msk [vmem:[#allocation2 + $0x210] sm:$0xff] %vm875_vm3, %v1660_v24  ;;  %1730 = vst.msk [vmem:[#allocation2 + $0x218] sm:$0xff] %vm875_vm3, %v1661_v37  ;;  %9943 = vrot.lane.b32.xlu0 %v9942_v3, %s10520_s4  ;;  %v9972_v54 = vpack.i.bf16 %v1849_v12, %v1848_v53  ;;  %v1846_v36 = vld [vmem:[#allocation2 + $0x171] sm:$0xff]  ;;  %v1847_v51 = vld [vmem:[#allocation2 + $0x179] sm:$0xff]  ;;  %9676 = vmatpush1.bf16.msra.mxu1 %v10150_v7 }
 0x288   :  { %2347 = vst.msk [vmem:[#allocation3 + $0x18] sm:$0xff] %vm875_vm3, %v2279_v40  ;;  %2379 = vst.msk [vmem:[#allocation3 + $0x118] sm:$0xff] %vm875_vm3, %v2311_v31  ;;  %v1852_v47 = vld [vmem:[#allocation2 + $0x1a1] sm:$0xff]  ;;  %v1853_v17 = vld [vmem:[#allocation2 + $0x1a9] sm:$0xff]  ;;  %v9967_v32 = vpack.i.bf16 %v1847_v51, %v1846_v36  ;;  %9665 = vmatprep.subr.bf16.mxu1 %v16280_v55  ;;  %2702 = vmatpush1.bf16.msra.mxu0 %v10150_v7 }
 0x289   :  { %9963 = vrot.lane.b32.xlu1 %v9962_v46, %s10520_s4  ;;  %v9982_v59 = vpack.i.bf16 %v1853_v17, %v1852_v47  ;;  %v1850_v56 = vld [vmem:[#allocation2 + $0x191] sm:$0xff]  ;;  %v1851_v13 = vld [vmem:[#allocation2 + $0x199] sm:$0xff]  ;;  %v1856_v2 = vld [vmem:[#allocation2 + $0x1c1] sm:$0xff]  ;;  %2703 = vmatprep.subr.bf16.mxu0 %v16280_v55 }
 0x28a   :  { %v1857_v30 = vld [vmem:[#allocation2 + $0x1c9] sm:$0xff]  ;;  %v9977_v20 = vpack.i.bf16 %v1851_v13, %v1850_v56  ;;  %v1854_v33 = vld [vmem:[#allocation2 + $0x1b1] sm:$0xff]  ;;  %v1855_v23 = vld [vmem:[#allocation2 + $0x1b9] sm:$0xff] }
 0x28b   :  { %9958 = vrot.lane.b32.xlu0 %v9957_v34, %s10520_s4  ;;  %v9992_v44 = vpack.i.bf16 %v1857_v30, %v1856_v2  ;;  %v1860_v4 = vld [vmem:[#allocation2 + $0x1e1] sm:$0xff]  ;;  %9677 = vmatpush1.bf16.msra.mxu1 %v10151_v11  ;;  %v9987_v41 = vpack.i.bf16 %v1855_v23, %v1854_v33  ;;  %v1858_v29 = vld [vmem:[#allocation2 + $0x1d1] sm:$0xff]  ;;  %v1859_v14 = vld [vmem:[#allocation2 + $0x1d9] sm:$0xff] }
 0x28c   :  { %v1861_v22 = vld [vmem:[#allocation2 + $0x1e9] sm:$0xff]  ;;  %9666 = vmatprep.subr.bf16.mxu1 %v16280_v55  ;;  %2704 = vmatpush1.bf16.msra.mxu0 %v10151_v11  ;;  %v9997_v50 = vpack.i.bf16 %v1859_v14, %v1858_v29  ;;  %v1862_v6 = vld [vmem:[#allocation2 + $0x1f1] sm:$0xff]  ;;  %v1803_v24 = vld [vmem:[#allocation2 + $0x19] sm:$0xff] }
 0x28d   :  { %9973 = vrot.lane.b32.xlu1 %v9972_v54, %s10520_s4  ;;  %v10152_v49 = vld [vmem:[%s16216_s5 + $0x88] sm:$0xff]   ;;  %v10002_v43 = vpack.i.bf16 %v1861_v22, %v1860_v4  ;;  %2705 = vmatprep.subr.bf16.mxu0 %v16280_v55  ;;  %v10153_v35 = vld [vmem:[%s16216_s5 + $0x90] sm:$0xff]   ;;  %v1863_v63 = vld [vmem:[#allocation2 + $0x1f9] sm:$0xff] }
 0x28e   :  { %v1864_v8 = vld [vmem:[#allocation2 + $0x201] sm:$0xff]  ;;  %v1865_v57 = vld [vmem:[#allocation2 + $0x209] sm:$0xff]  ;;  %v1802_v18 = vld [vmem:[#allocation2 + $0x11] sm:$0xff]  ;;  %v10007_v45 = vpack.i.bf16 %v1863_v63, %v1862_v6 }
 0x28f   :  { %v2415_v26 = vld [vmem:[#allocation3 + $0x18] sm:$0xff]  ;;  %9968 = vrot.lane.b32.xlu0 %v9967_v32, %s10520_s4  ;;  %9678 = vmatpush1.bf16.msra.mxu1 %v10152_v49  ;;  %v1905_v25 = vld [vmem:[#allocation2 + $0x12a] sm:$0xff]  ;;  %v10012_v9 = vpack.i.bf16 %v1865_v57, %v1864_v8  ;;  %v10154_v37 = vld [vmem:[%s16216_s5 + $0x98] sm:$0xff]   ;;  %v10022_v28 = vpack.i.bf16 %v1803_v24, %v1802_v18 }
 0x290   :  { %8616 = vmatprep.mubr.msk.bf16.mxu0 %vm875_vm3, %v2415_v26  ;;  %v2447_v5 = vld [vmem:[#allocation3 + $0x118] sm:$0xff]  ;;  %9667 = vmatprep.subr.bf16.mxu1 %v16280_v55  ;;  %v1906_v40 = vld [vmem:[#allocation2 + $0x132] sm:$0xff]  ;;  %v1801_v19 = vld [vmem:[#allocation2 + $0x9] sm:$0xff] }
 0x291   :  { %8632 = vmatprep.mubr.msk.bf16.mxu1 %vm875_vm3, %v2447_v5  ;;  %9983 = vrot.lane.b32.xlu1 %v9982_v59, %s10520_s4  ;;  %v1904_v60 = vld [vmem:[#allocation2 + $0x122] sm:$0xff]  ;;  %v1907_v21 = vld [vmem:[#allocation2 + $0x13a] sm:$0xff]  ;;  %v1806_v39 = vld [vmem:[#allocation2 + $0x31] sm:$0xff] }
 0x292   :  { %2706 = vmatpush1.bf16.msra.mxu0 %v10152_v49  ;;  %v2313_v48 = vpack.c.bf16 %v1905_v25, %v1904_v60  ;;  %v1800_v61 = vld [vmem:[#allocation2 + $0x1] sm:$0xff]  ;;  %v2315_v58 = vpack.c.bf16 %v1907_v21, %v1906_v40  ;;  %v1807_v52 = vld [vmem:[#allocation2 + $0x39] sm:$0xff]  ;;  %v1909_v62 = vld [vmem:[#allocation2 + $0x14a] sm:$0xff] }
 0x293   :  { %9978 = vrot.lane.b32.xlu0 %v9977_v20, %s10520_s4  ;;  %2707 = vmatprep.subr.bf16.mxu0 %v16280_v55  ;;  %v10155_v1 = vld [vmem:[%s16216_s5 + $0xa0] sm:$0xff]   ;;  %v10017_v15 = vpack.i.bf16 %v1801_v19, %v1800_v61  ;;  %v10032_v16 = vpack.i.bf16 %v1807_v52, %v1806_v39  ;;  %v1805_v3 = vld [vmem:[#allocation2 + $0x29] sm:$0xff]  ;;  %v1810_v46 = vld [vmem:[#allocation2 + $0x51] sm:$0xff] }
 0x294   :  { %9679 = vmatpush1.bf16.msra.mxu1 %v10153_v35  ;;  %2381 = vst.msk [vmem:[#allocation3 + $0x128] sm:$0xff] %vm875_vm3, %v2313_v48  ;;  %2383 = vst.msk [vmem:[#allocation3 + $0x138] sm:$0xff] %vm875_vm3, %v2315_v58  ;;  %v1908_v38 = vld [vmem:[#allocation2 + $0x142] sm:$0xff]  ;;  %v1811_v0 = vld [vmem:[#allocation2 + $0x59] sm:$0xff] }
 0x295   :  { %9993 = vrot.lane.b32.xlu1 %v9992_v44, %s10520_s4  ;;  %9668 = vmatprep.subr.bf16.mxu1 %v16280_v55  ;;  %v2317_v10 = vpack.c.bf16 %v1909_v62, %v1908_v38  ;;  %v1804_v31 = vld [vmem:[#allocation2 + $0x21] sm:$0xff]  ;;  %v1910_v53 = vld [vmem:[#allocation2 + $0x152] sm:$0xff]  ;;  %v10042_v34 = vpack.i.bf16 %v1811_v0, %v1810_v46  ;;  %v1809_v36 = vld [vmem:[#allocation2 + $0x49] sm:$0xff] }
 0x296   :  { %2708 = vmatpush1.bf16.msra.mxu0 %v10153_v35  ;;  %v10156_v27 = vld [vmem:[%s16216_s5 + $0xa8] sm:$0xff]   ;;  %v1911_v12 = vld [vmem:[#allocation2 + $0x15a] sm:$0xff]  ;;  %v10027_v42 = vpack.i.bf16 %v1805_v3, %v1804_v31  ;;  %v1814_v51 = vld [vmem:[#allocation2 + $0x71] sm:$0xff] }
 0x297   :  { %9988 = vrot.lane.b32.xlu0 %v9987_v41, %s10520_s4  ;;  %2709 = vmatprep.subr.bf16.mxu0 %v16280_v55  ;;  %2385 = vst.msk [vmem:[#allocation3 + $0x148] sm:$0xff] %vm875_vm3, %v2317_v10  ;;  %v2319_v26 = vpack.c.bf16 %v1911_v12, %v1910_v53  ;;  %v1808_v54 = vld [vmem:[#allocation2 + $0x41] sm:$0xff]  ;;  %v1815_v47 = vld [vmem:[#allocation2 + $0x79] sm:$0xff]  ;;  %v10157_v17 = vld [vmem:[%s16216_s5 + $0xb0] sm:$0xff]  }
 0x298   :  { %9680 = vmatpush1.bf16.msra.mxu1 %v10154_v37  ;;  %v1872_v7 = vld [vmem:[#allocation2 + $0x22] sm:$0xff]  ;;  %v1873_v5 = vld [vmem:[#allocation2 + $0x2a] sm:$0xff]  ;;  %v10037_v56 = vpack.i.bf16 %v1809_v36, %v1808_v54  ;;  %v10052_v30 = vpack.i.bf16 %v1815_v47, %v1814_v51  ;;  %v1819_v33 = vld [vmem:[#allocation2 + $0x99] sm:$0xff] }
 0x299   :  { %10003 = vrot.lane.b32.xlu1 %v10002_v43, %s10520_s4  ;;  %9669 = vmatprep.subr.bf16.mxu1 %v16280_v55  ;;  %2387 = vst.msk [vmem:[#allocation3 + $0x158] sm:$0xff] %vm875_vm3, %v2319_v26  ;;  %v1912_v32 = vld [vmem:[#allocation2 + $0x162] sm:$0xff]  ;;  %v1913_v59 = vld [vmem:[#allocation2 + $0x16a] sm:$0xff]  ;;  %v2281_v13 = vpack.c.bf16 %v1873_v5, %v1872_v7  ;;  %v10158_v23 = vld [vmem:[%s16216_s5 + $0xb8] sm:$0xff]  }
 0x29a   :  { %2710 = vmatpush1.bf16.msra.mxu0 %v10154_v37  ;;  %v2321_v2 = vpack.c.bf16 %v1913_v59, %v1912_v32  ;;  %v1812_v11 = vld [vmem:[#allocation2 + $0x61] sm:$0xff]  ;;  %v1813_v20 = vld [vmem:[#allocation2 + $0x69] sm:$0xff]  ;;  %v1818_v44 = vld [vmem:[#allocation2 + $0x91] sm:$0xff] }
 0x29b   :  { %9998 = vrot.lane.b32.xlu0 %v9997_v50, %s10520_s4  ;;  %2711 = vmatprep.subr.bf16.mxu0 %v16280_v55  ;;  %2349 = vst.msk [vmem:[#allocation3 + $0x28] sm:$0xff] %vm875_vm3, %v2281_v13  ;;  %v1874_v4 = vld [vmem:[#allocation2 + $0x32] sm:$0xff]  ;;  %v1875_v22 = vld [vmem:[#allocation2 + $0x3a] sm:$0xff]  ;;  %v10047_v41 = vpack.i.bf16 %v1813_v20, %v1812_v11  ;;  %v10062_v14 = vpack.i.bf16 %v1819_v33, %v1818_v44  ;;  %v1817_v57 = vld [vmem:[#allocation2 + $0x89] sm:$0xff] }
 0x29c   :  { %9681 = vmatpush1.bf16.msra.mxu1 %v10155_v1  ;;  %2389 = vst.msk [vmem:[#allocation3 + $0x168] sm:$0xff] %vm875_vm3, %v2321_v2  ;;  %v1914_v49 = vld [vmem:[#allocation2 + $0x172] sm:$0xff]  ;;  %v2283_v43 = vpack.c.bf16 %v1875_v22, %v1874_v4  ;;  %v1915_v29 = vld [vmem:[#allocation2 + $0x17a] sm:$0xff]  ;;  %v1876_v25 = vld [vmem:[#allocation2 + $0x42] sm:$0xff] }
 0x29d   :  { %10013 = vrot.lane.b32.xlu1 %v10012_v9, %s10520_s4  ;;  %9670 = vmatprep.subr.bf16.mxu1 %v16280_v55  ;;  %v1816_v8 = vld [vmem:[#allocation2 + $0x81] sm:$0xff]  ;;  %v2323_v35 = vpack.c.bf16 %v1915_v29, %v1914_v49  ;;  %v1822_v50 = vld [vmem:[#allocation2 + $0xb1] sm:$0xff]  ;;  %v1823_v60 = vld [vmem:[#allocation2 + $0xb9] sm:$0xff] }
 0x29e   :  { %2712 = vmatpush1.bf16.msra.mxu0 %v10155_v1  ;;  %2351 = vst.msk [vmem:[#allocation3 + $0x38] sm:$0xff] %vm875_vm3, %v2283_v43  ;;  %v1877_v9 = vld [vmem:[#allocation2 + $0x4a] sm:$0xff]  ;;  %v10057_v6 = vpack.i.bf16 %v1817_v57, %v1816_v8  ;;  %v1916_v48 = vld [vmem:[#allocation2 + $0x182] sm:$0xff]  ;;  %v10072_v24 = vpack.i.bf16 %v1823_v60, %v1822_v50  ;;  %v1878_v58 = vld [vmem:[#allocation2 + $0x52] sm:$0xff] }
 0x29f   :  { %10008 = vrot.lane.b32.xlu0 %v10007_v45, %s10520_s4  ;;  %2713 = vmatprep.subr.bf16.mxu0 %v16280_v55  ;;  %2391 = vst.msk [vmem:[#allocation3 + $0x178] sm:$0xff] %vm875_vm3, %v2323_v35  ;;  %v2285_v63 = vpack.c.bf16 %v1877_v9, %v1876_v25  ;;  %v1917_v18 = vld [vmem:[#allocation2 + $0x18a] sm:$0xff]  ;;  %v1820_v37 = vld [vmem:[#allocation2 + $0xa1] sm:$0xff]  ;;  %v1918_v52 = vld [vmem:[#allocation2 + $0x192] sm:$0xff] }
 0x2a0   :  { %9682 = vmatpush1.bf16.msra.mxu1 %v10156_v27  ;;  %v1821_v40 = vld [vmem:[#allocation2 + $0xa9] sm:$0xff]  ;;  %v2325_v45 = vpack.c.bf16 %v1917_v18, %v1916_v48  ;;  %v1826_v21 = vld [vmem:[#allocation2 + $0xd1] sm:$0xff]  ;;  %v1824_v61 = vld [vmem:[#allocation2 + $0xc1] sm:$0xff] }
 0x2a1   :  { %10023 = vrot.lane.b32.xlu1 %v10022_v28, %s10520_s4  ;;  %9671 = vmatprep.subr.bf16.mxu1 %v16280_v55  ;;  %v1827_v28 = vld [vmem:[#allocation2 + $0xd9] sm:$0xff]  ;;  %2353 = vst.msk [vmem:[#allocation3 + $0x48] sm:$0xff] %vm875_vm3, %v2285_v63  ;;  %v1825_v19 = vld [vmem:[#allocation2 + $0xc9] sm:$0xff]  ;;  %v10067_v1 = vpack.i.bf16 %v1821_v40, %v1820_v37  ;;  %v1830_v31 = vld [vmem:[#allocation2 + $0xf1] sm:$0xff] }
 0x2a2   :  { %2714 = vmatpush1.bf16.msra.mxu0 %v10156_v27  ;;  %2393 = vst.msk [vmem:[#allocation3 + $0x188] sm:$0xff] %vm875_vm3, %v2325_v45  ;;  %v1879_v39 = vld [vmem:[#allocation2 + $0x5a] sm:$0xff]  ;;  %v1881_v10 = vld [vmem:[#allocation2 + $0x6a] sm:$0xff]  ;;  %v1920_v0 = vld [vmem:[#allocation2 + $0x1a2] sm:$0xff] }
 0x2a3   :  { %10018 = vrot.lane.b32.xlu0 %v10017_v15, %s10520_s4  ;;  %2715 = vmatprep.subr.bf16.mxu0 %v16280_v55  ;;  %v2287_v38 = vpack.c.bf16 %v1879_v39, %v1878_v58  ;;  %v1919_v62 = vld [vmem:[#allocation2 + $0x19a] sm:$0xff]  ;;  %v1880_v15 = vld [vmem:[#allocation2 + $0x62] sm:$0xff]  ;;  %v1921_v27 = vld [vmem:[#allocation2 + $0x1aa] sm:$0xff] }
 0x2a4   :  { %9683 = vmatpush1.bf16.msra.mxu1 %v10157_v17  ;;  %v2327_v3 = vpack.c.bf16 %v1919_v62, %v1918_v52  ;;  %v2289_v46 = vpack.c.bf16 %v1881_v10, %v1880_v15  ;;  %v1831_v53 = vld [vmem:[#allocation2 + $0xf9] sm:$0xff]  ;;  %v2329_v12 = vpack.c.bf16 %v1921_v27, %v1920_v0  ;;  %v1884_v47 = vld [vmem:[#allocation2 + $0x82] sm:$0xff]  ;;  %v1885_v5 = vld [vmem:[#allocation2 + $0x8a] sm:$0xff] }
 0x2a5   :  { %10033 = vrot.lane.b32.xlu1 %v10032_v16, %s10520_s4  ;;  %9672 = vmatprep.subr.bf16.mxu1 %v16280_v55  ;;  %v10082_v16 = vpack.i.bf16 %v1827_v28, %v1826_v21  ;;  %2355 = vst.msk [vmem:[#allocation3 + $0x58] sm:$0xff] %vm875_vm3, %v2287_v38  ;;  %v1883_v26 = vld [vmem:[#allocation2 + $0x7a] sm:$0xff]  ;;  %v1922_v36 = vld [vmem:[#allocation2 + $0x1b2] sm:$0xff]  ;;  %v1924_v32 = vld [vmem:[#allocation2 + $0x1c2] sm:$0xff]  ;;  %v2293_v2 = vpack.c.bf16 %v1885_v5, %v1884_v47 }
 0x2a6   :  { %2716 = vmatpush1.bf16.msra.mxu0 %v10157_v17  ;;  %2395 = vst.msk [vmem:[#allocation3 + $0x198] sm:$0xff] %vm875_vm3, %v2327_v3  ;;  %2357 = vst.msk [vmem:[#allocation3 + $0x68] sm:$0xff] %vm875_vm3, %v2289_v46  ;;  %v1923_v51 = vld [vmem:[#allocation2 + $0x1ba] sm:$0xff]  ;;  %v10077_v17 = vpack.i.bf16 %v1825_v19, %v1824_v61  ;;  %v1925_v59 = vld [vmem:[#allocation2 + $0x1ca] sm:$0xff] }
 0x2a7   :  { %10028 = vrot.lane.b32.xlu0 %v10027_v42, %s10520_s4  ;;  %2717 = vmatprep.subr.bf16.mxu0 %v16280_v55  ;;  %v1882_v42 = vld [vmem:[#allocation2 + $0x72] sm:$0xff]  ;;  %2397 = vst.msk [vmem:[#allocation3 + $0x1a8] sm:$0xff] %vm875_vm3, %v2329_v12  ;;  %v2331_v7 = vpack.c.bf16 %v1923_v51, %v1922_v36  ;;  %v1829_v13 = vld [vmem:[#allocation2 + $0xe9] sm:$0xff]  ;;  %v1887_v20 = vld [vmem:[#allocation2 + $0x9a] sm:$0xff] }
 0x2a8   :  { %9684 = vmatpush1.bf16.msra.mxu1 %v10158_v23  ;;  %v2291_v54 = vpack.c.bf16 %v1883_v26, %v1882_v42  ;;  %v1886_v11 = vld [vmem:[#allocation2 + $0x92] sm:$0xff]  ;;  %v1832_v4 = vld [vmem:[#allocation2 + $0x101] sm:$0xff]  ;;  %2361 = vst.msk [vmem:[#allocation3 + $0x88] sm:$0xff] %vm875_vm3, %v2293_v2  ;;  %v1929_v57 = vld [vmem:[#allocation2 + $0x1ea] sm:$0xff] }
 0x2a9   :  { %10043 = vrot.lane.b32.xlu1 %v10042_v34, %s10520_s4  ;;  %3059 = vmatprep.subr.bf16.mxu1 %v16280_v55  ;;  %v1828_v34 = vld [vmem:[#allocation2 + $0xe1] sm:$0xff]  ;;  %v1866_v44 = vld [vmem:[#allocation2 + $0x211] sm:$0xff]  ;;  %v1867_v33 = vld [vmem:[#allocation2 + $0x219] sm:$0xff]  ;;  %2399 = vst.msk [vmem:[#allocation3 + $0x1b8] sm:$0xff] %vm875_vm3, %v2331_v7 }
 0x2aa   :  { %2718 = vmatpush1.bf16.msra.mxu0 %v10158_v23  ;;  %2359 = vst.msk [vmem:[#allocation3 + $0x78] sm:$0xff] %vm875_vm3, %v2291_v54  ;;  %v2295_v23 = vpack.c.bf16 %v1887_v20, %v1886_v11  ;;  %v1926_v22 = vld [vmem:[#allocation2 + $0x1d2] sm:$0xff]  ;;  %v1927_v49 = vld [vmem:[#allocation2 + $0x1da] sm:$0xff]  ;;  %v10087_v43 = vpack.i.bf16 %v1829_v13, %v1828_v34  ;;  %v1928_v8 = vld [vmem:[#allocation2 + $0x1e2] sm:$0xff]  ;;  %v10102_v35 = vpack.i.bf16 %v1867_v33, %v1866_v44 }
 0x2ab   :  { %10038 = vrot.lane.b32.xlu0 %v10037_v56, %s10520_s4  ;;  %v10092_v56 = vpack.i.bf16 %v1831_v53, %v1830_v31  ;;  %v2335_v29 = vpack.c.bf16 %v1927_v49, %v1926_v22  ;;  %v1833_v50 = vld [vmem:[#allocation2 + $0x109] sm:$0xff]  ;;  %v2337_v25 = vpack.c.bf16 %v1929_v57, %v1928_v8  ;;  %v1890_v9 = vld [vmem:[#allocation2 + $0xb2] sm:$0xff]  ;;  %v1931_v18 = vld [vmem:[#allocation2 + $0x1fa] sm:$0xff] }
 0x2ac   :  { %2363 = vst.msk [vmem:[#allocation3 + $0x98] sm:$0xff] %vm875_vm3, %v2295_v23  ;;  %v1930_v48 = vld [vmem:[#allocation2 + $0x1f2] sm:$0xff]  ;;  %v10097_v37 = vpack.i.bf16 %v1833_v50, %v1832_v4  ;;  %v1893_v45 = vld [vmem:[#allocation2 + $0xca] sm:$0xff]  ;;  %v1932_v21 = vld [vmem:[#allocation2 + $0x202] sm:$0xff] }
 0x2ad   :  { %10053 = vrot.lane.b32.xlu1 %v10052_v30, %s10520_s4  ;;  %v2333_v30 = vpack.c.bf16 %v1925_v59, %v1924_v32  ;;  %2403 = vst.msk [vmem:[#allocation3 + $0x1d8] sm:$0xff] %vm875_vm3, %v2335_v29  ;;  %2405 = vst.msk [vmem:[#allocation3 + $0x1e8] sm:$0xff] %vm875_vm3, %v2337_v25  ;;  %v2339_v40 = vpack.c.bf16 %v1931_v18, %v1930_v48  ;;  %v1933_v61 = vld [vmem:[#allocation2 + $0x20a] sm:$0xff]  ;;  %v1894_v19 = vld [vmem:[#allocation2 + $0xd2] sm:$0xff] }
 0x2ae   :  { %v2341_v58 = vpack.c.bf16 %v1933_v61, %v1932_v21  ;;  %v1895_v39 = vld [vmem:[#allocation2 + $0xda] sm:$0xff]  ;;  %v1869_v38 = vld [vmem:[#allocation2 + $0xa] sm:$0xff]  ;;  %v1896_v62 = vld [vmem:[#allocation2 + $0xe2] sm:$0xff] }
 0x2af   :  { %10048 = vrot.lane.b32.xlu0 %v10047_v41, %s10520_s4  ;;  %2401 = vst.msk [vmem:[#allocation3 + $0x1c8] sm:$0xff] %vm875_vm3, %v2333_v30  ;;  %v1888_v41 = vld [vmem:[#allocation2 + $0xa2] sm:$0xff]  ;;  %2407 = vst.msk [vmem:[#allocation3 + $0x1f8] sm:$0xff] %vm875_vm3, %v2339_v40  ;;  %v2303_v52 = vpack.c.bf16 %v1895_v39, %v1894_v19  ;;  %v1897_v15 = vld [vmem:[#allocation2 + $0xea] sm:$0xff] }
 0x2b0   :  { %2409 = vst.msk [vmem:[#allocation3 + $0x208] sm:$0xff] %vm875_vm3, %v2341_v58  ;;  %v1898_v31 = vld [vmem:[#allocation2 + $0xf2] sm:$0xff]  ;;  %v1899_v3 = vld [vmem:[#allocation2 + $0xfa] sm:$0xff]  ;;  %v1900_v0 = vld [vmem:[#allocation2 + $0x102] sm:$0xff] }
 0x2b1   :  { %10063 = vrot.lane.b32.xlu1 %v10062_v14, %s10520_s4  ;;  %v1889_v14 = vld [vmem:[#allocation2 + $0xaa] sm:$0xff]  ;;  %2371 = vst.msk [vmem:[#allocation3 + $0xd8] sm:$0xff] %vm875_vm3, %v2303_v52  ;;  %v2307_v46 = vpack.c.bf16 %v1899_v3, %v1898_v31  ;;  %v1934_v12 = vld [vmem:[#allocation2 + $0x212] sm:$0xff]  ;;  %v1935_v42 = vld [vmem:[#allocation2 + $0x21a] sm:$0xff] }
 0x2b2   :  { %v2297_v60 = vpack.c.bf16 %v1889_v14, %v1888_v41  ;;  %v1901_v27 = vld [vmem:[#allocation2 + $0x10a] sm:$0xff]  ;;  %v2343_v26 = vpack.c.bf16 %v1935_v42, %v1934_v12  ;;  %v1771_v51 = vld [vmem:[#allocation2 + $0x138] sm:$0xff]  ;;  %v1772_v23 = vld [vmem:[#allocation2 + $0x140] sm:$0xff] }
 0x2b3   :  { %10058 = vrot.lane.b32.xlu0 %v10057_v6, %s10520_s4  ;;  %v1891_v6 = vld [vmem:[#allocation2 + $0xba] sm:$0xff]  ;;  %2375 = vst.msk [vmem:[#allocation3 + $0xf8] sm:$0xff] %vm875_vm3, %v2307_v46  ;;  %v2309_v53 = vpack.c.bf16 %v1901_v27, %v1900_v0  ;;  %v1770_v47 = vld [vmem:[#allocation2 + $0x130] sm:$0xff]  ;;  %v1773_v4 = vld [vmem:[#allocation2 + $0x148] sm:$0xff] }
 0x2b4   :  { %v2299_v63 = vpack.c.bf16 %v1891_v6, %v1890_v9  ;;  %2365 = vst.msk [vmem:[#allocation3 + $0xa8] sm:$0xff] %vm875_vm3, %v2297_v60  ;;  %2411 = vst.msk [vmem:[#allocation3 + $0x218] sm:$0xff] %vm875_vm3, %v2343_v26  ;;  %v1767_v2 = vld [vmem:[#allocation2 + $0x118] sm:$0xff]  ;;  %v1766_v30 = vld [vmem:[#allocation2 + $0x110] sm:$0xff] }
 0x2b5   :  { %10073 = vrot.lane.b32.xlu1 %v10072_v24, %s10520_s4  ;;  %v1892_v24 = vld [vmem:[#allocation2 + $0xc2] sm:$0xff]  ;;  %2377 = vst.msk [vmem:[#allocation3 + $0x108] sm:$0xff] %vm875_vm3, %v2309_v53  ;;  %v12905_v6 = vld [vmem:[#allocation3 + $0x128] sm:$0xff] }
 0x2b6   :  { %2367 = vst.msk [vmem:[#allocation3 + $0xb8] sm:$0xff] %vm875_vm3, %v2299_v63  ;;  %v2301_v28 = vpack.c.bf16 %v1893_v45, %v1892_v24  ;;  %v10159_v22 = vld [vmem:[%s16216_s5] sm:$0xff]   ;;  %v1769_v60 = vld [vmem:[#allocation2 + $0x128] sm:$0xff]  ;;  %v1774_v52 = vld [vmem:[#allocation2 + $0x150] sm:$0xff] }
 0x2b7   :  { %10068 = vrot.lane.b32.xlu0 %v10067_v1, %s10520_s4  ;;  %v1868_v1 = vld [vmem:[#allocation2 + $0x2] sm:$0xff]  ;;  %v10161_v3 = vld [vmem:[%s16216_s5 + $0x10] sm:$0xff]  }
 0x2b8   :  { %2369 = vst.msk [vmem:[#allocation3 + $0xc8] sm:$0xff] %vm875_vm3, %v2301_v28  ;;  %v2277_v10 = vpack.c.bf16 %v1869_v38, %v1868_v1  ;;  %v1768_v50 = vld [vmem:[#allocation2 + $0x120] sm:$0xff]  ;;  %v1777_v24 = vld [vmem:[#allocation2 + $0x168] sm:$0xff]  ;;  %v1775_v1 = vld [vmem:[#allocation2 + $0x158] sm:$0xff] }
 0x2b9   :  { %10083 = vrot.lane.b32.xlu1 %v10082_v16, %s10520_s4  ;;  %v2305_v16 = vpack.c.bf16 %v1897_v15, %v1896_v62  ;;  %v1776_v18 = vld [vmem:[#allocation2 + $0x160] sm:$0xff]  ;;  %v1781_v31 = vld [vmem:[#allocation2 + $0x188] sm:$0xff] }
 0x2ba   :  { %2345 = vst.msk [vmem:[#allocation3 + $0x8] sm:$0xff] %vm875_vm3, %v2277_v10 }
 0x2bb   :  { %10078 = vrot.lane.b32.xlu0 %v10077_v17, %s10520_s4  ;;  %2373 = vst.msk [vmem:[#allocation3 + $0xe8] sm:$0xff] %vm875_vm3, %v2305_v16  ;;  %v1780_v16 = vld [vmem:[#allocation2 + $0x180] sm:$0xff] }
 0x2bd   :  { %10093 = vrot.lane.b32.xlu1 %v10092_v56, %s10520_s4 }
 0x2bf   :  { %10088 = vrot.lane.b32.xlu0 %v10087_v43, %s10520_s4 }
 0x2c1   :  { %10103 = vrot.lane.b32.xlu1 %v10102_v35, %s10520_s4 }
 0x2c3   :  { %10098 = vrot.lane.b32.xlu0 %v10097_v37, %s10520_s4  ;;  %v10160_v37 = vld [vmem:[%s16216_s5 + $0x8] sm:$0xff]  }
 0x2e3   :  { %v9949_v34 = vpop.permute.xlu1 %9948 }
 0x2e4   :  { %v9951_v54 = vunpack.i.h.bf16 %v9949_v34  ;;  %v9950_v36 = vunpack.i.l.bf16 %v9949_v34 }
 0x2e6   :  { %v2247_v17 = vsel %vm875_vm3, %v1771_v51, %v9951_v54  ;;  %v2246_v7 = vsel %vm875_vm3, %v1770_v47, %v9950_v36  ;;  %v1778_v54 = vld [vmem:[#allocation2 + $0x170] sm:$0xff]  ;;  %v1779_v36 = vld [vmem:[#allocation2 + $0x178] sm:$0xff] }
 0x2e7   :  { %v12889_v5 = vpack.c.bf16 %v2247_v17, %v2246_v7  ;;  %v12938_v17 = vld [vmem:[#allocation3 + $0x138] sm:$0xff] }
 0x2e9   :  { %2382 = vst [vmem:[#allocation3 + $0x130] sm:$0xff] %v12889_v5 }
 0x2f5   :  { %v9939_v32 = vpop.permute.xlu0 %9938 }
 0x2f6   :  { %v9941_v59 = vunpack.i.h.bf16 %v9939_v32  ;;  %v9940_v56 = vunpack.i.l.bf16 %v9939_v32 }
 0x2f7   :  { %v9954_v13 = vpop.permute.xlu1 %9953 }
 0x2f8   :  { %v9956_v11 = vunpack.i.h.bf16 %v9954_v13  ;;  %v9955_v20 = vunpack.i.l.bf16 %v9954_v13  ;;  %v2243_v44 = vsel %vm875_vm3, %v1767_v2, %v9941_v59  ;;  %v2242_v33 = vsel %vm875_vm3, %v1766_v30, %v9940_v56  ;;  %v1784_v59 = vld [vmem:[#allocation2 + $0x1a0] sm:$0xff]  ;;  %v1785_v56 = vld [vmem:[#allocation2 + $0x1a8] sm:$0xff]  ;;  %v10162_v13 = vld [vmem:[%s16216_s5 + $0x18] sm:$0xff]  }
 0x2f9   :  { %v12897_v49 = vpack.c.bf16 %v2243_v44, %v2242_v33  ;;  %v9944_v29 = vpop.permute.xlu0 %9943 }
 0x2fa   :  { %v2249_v41 = vsel %vm875_vm3, %v1773_v4, %v9956_v11  ;;  %v2248_v43 = vsel %vm875_vm3, %v1772_v23, %v9955_v20  ;;  %v9946_v8 = vunpack.i.h.bf16 %v9944_v29  ;;  %v9945_v57 = vunpack.i.l.bf16 %v9944_v29 }
 0x2fb   :  { %v12901_v14 = vpack.c.bf16 %v2249_v41, %v2248_v43  ;;  %v9964_v35 = vpop.permute.xlu1 %9963  ;;  %2378 = vst [vmem:[#allocation3 + $0x110] sm:$0xff] %v12897_v49  ;;  %2856 = vmatmul.mubr.bf16.vlgmr.msra.gmra.mrb[0].mxu1 %v12897_v49  ;;  %v1783_v41 = vld [vmem:[#allocation2 + $0x198] sm:$0xff] }
 0x2fc   :  { %v9966_v25 = vunpack.i.h.bf16 %v9964_v35  ;;  %v9965_v9 = vunpack.i.l.bf16 %v9964_v35  ;;  %v2245_v63 = vsel %vm875_vm3, %v1769_v60, %v9946_v8  ;;  %v2244_v48 = vsel %vm875_vm3, %v1768_v50, %v9945_v57  ;;  %3060 = vmatpush1.bf16.msra.mxu1 %v10159_v22  ;;  %8633 = vmatprep.mubr.msk.bf16.mxu1 %vm875_vm3, %v12905_v6  ;;  %v1782_v22 = vld [vmem:[#allocation2 + $0x190] sm:$0xff]  ;;  %v1788_v35 = vld [vmem:[#allocation2 + $0x1c0] sm:$0xff]  ;;  %v1789_v50 = vld [vmem:[#allocation2 + $0x1c8] sm:$0xff] }
 0x2fd   :  { %2384 = vst [vmem:[#allocation3 + $0x140] sm:$0xff] %v12901_v14  ;;  %v12915_v40 = vpack.c.bf16 %v2245_v63, %v2244_v48  ;;  %v9959_v28 = vpop.permute.xlu0 %9958  ;;  %3061 = vmatprep.subr.bf16.mxu1 %v16280_v55  ;;  %v10163_v60 = vld [vmem:[%s16216_s5 + $0x20] sm:$0xff]  }
 0x2fe   :  { %v2253_v45 = vsel %vm875_vm3, %v1777_v24, %v9966_v25  ;;  %v2252_v21 = vsel %vm875_vm3, %v1776_v18, %v9965_v9  ;;  %v9961_v19 = vunpack.i.h.bf16 %v9959_v28  ;;  %v9960_v58 = vunpack.i.l.bf16 %v9959_v28  ;;  %v1787_v28 = vld [vmem:[#allocation2 + $0x1b8] sm:$0xff] }
 0x2ff   :  { %v12920_v61 = vpack.c.bf16 %v2253_v45, %v2252_v21  ;;  %v9974_v39 = vpop.permute.xlu1 %9973  ;;  %2380 = vst [vmem:[#allocation3 + $0x120] sm:$0xff] %v12915_v40  ;;  %v1786_v21 = vld [vmem:[#allocation2 + $0x1b0] sm:$0xff] }
 0x300   :  { %v9976_v38 = vunpack.i.h.bf16 %v9974_v39  ;;  %v9975_v62 = vunpack.i.l.bf16 %v9974_v39  ;;  %v2251_v15 = vsel %vm875_vm3, %v1775_v1, %v9961_v19  ;;  %v2250_v10 = vsel %vm875_vm3, %v1774_v52, %v9960_v58  ;;  %3062 = vmatpush1.bf16.msra.mxu1 %v10160_v37  ;;  %v12971_v39 = vld [vmem:[#allocation3 + $0x148] sm:$0xff] }
 0x301   :  { %2388 = vst [vmem:[#allocation3 + $0x160] sm:$0xff] %v12920_v61  ;;  %v12929_v46 = vpack.c.bf16 %v2251_v15, %v2250_v10  ;;  %v9969_v53 = vpop.permute.xlu0 %9968  ;;  %3063 = vmatprep.subr.bf16.mxu1 %v16280_v55  ;;  %v10164_v15 = vld [vmem:[%s16216_s5 + $0x28] sm:$0xff]  }
 0x302   :  { %v2257_v0 = vsel %vm875_vm3, %v1781_v31, %v9976_v38  ;;  %v2256_v27 = vsel %vm875_vm3, %v1780_v16, %v9975_v62  ;;  %v9971_v42 = vunpack.i.h.bf16 %v9969_v53  ;;  %v9970_v26 = vunpack.i.l.bf16 %v9969_v53  ;;  %v1792_v38 = vld [vmem:[#allocation2 + $0x1e0] sm:$0xff]  ;;  %v1793_v62 = vld [vmem:[#allocation2 + $0x1e8] sm:$0xff] }
 0x303   :  { %v12934_v12 = vpack.c.bf16 %v2257_v0, %v2256_v27  ;;  %v9984_v34 = vpop.permute.xlu1 %9983  ;;  %2386 = vst [vmem:[#allocation3 + $0x150] sm:$0xff] %v12929_v46  ;;  %2864 = vmatmul.mubr.bf16.gmra.mrb[4].mxu1 %v12915_v40 }
 0x304   :  { %v9986_v51 = vunpack.i.h.bf16 %v9984_v34  ;;  %v9985_v47 = vunpack.i.l.bf16 %v9984_v34  ;;  %v2255_v7 = vsel %vm875_vm3, %v1779_v36, %v9971_v42  ;;  %v2254_v32 = vsel %vm875_vm3, %v1778_v54, %v9970_v26  ;;  %8634 = vmatprep.mubr.msk.bf16.mxu1 %vm875_vm3, %v12938_v17  ;;  %3064 = vmatpush1.bf16.msra.mxu1 %v10161_v3  ;;  %v1790_v42 = vld [vmem:[#allocation2 + $0x1d0] sm:$0xff]  ;;  %v1791_v26 = vld [vmem:[#allocation2 + $0x1d8] sm:$0xff] }
 0x305   :  { %2392 = vst [vmem:[#allocation3 + $0x180] sm:$0xff] %v12934_v12  ;;  %v12948_v2 = vpack.c.bf16 %v2255_v7, %v2254_v32  ;;  %v9979_v20 = vpop.permute.xlu0 %9978  ;;  %3065 = vmatprep.subr.bf16.mxu1 %v16280_v55  ;;  %v1797_v7 = vld [vmem:[#allocation2 + $0x208] sm:$0xff]  ;;  %v10165_v32 = vld [vmem:[%s16216_s5 + $0x30] sm:$0xff]  }
 0x306   :  { %v2261_v30 = vsel %vm875_vm3, %v1785_v56, %v9986_v51  ;;  %v2260_v11 = vsel %vm875_vm3, %v1784_v59, %v9985_v47  ;;  %v9981_v33 = vunpack.i.h.bf16 %v9979_v20  ;;  %v9980_v23 = vunpack.i.l.bf16 %v9979_v20  ;;  %v1796_v47 = vld [vmem:[#allocation2 + $0x200] sm:$0xff] }
 0x307   :  { %v12953_v44 = vpack.c.bf16 %v2261_v30, %v2260_v11  ;;  %v9994_v4 = vpop.permute.xlu1 %9993  ;;  %2390 = vst [vmem:[#allocation3 + $0x170] sm:$0xff] %v12948_v2 }
 0x308   :  { %v9996_v43 = vunpack.i.h.bf16 %v9994_v4  ;;  %v9995_v29 = vunpack.i.l.bf16 %v9994_v4  ;;  %v2259_v8 = vsel %vm875_vm3, %v1783_v41, %v9981_v33  ;;  %v2258_v57 = vsel %vm875_vm3, %v1782_v22, %v9980_v23  ;;  %3066 = vmatpush1.bf16.msra.mxu1 %v10162_v13  ;;  %v1794_v4 = vld [vmem:[#allocation2 + $0x1f0] sm:$0xff]  ;;  %v1795_v22 = vld [vmem:[#allocation2 + $0x1f8] sm:$0xff] }
 0x309   :  { %2396 = vst [vmem:[#allocation3 + $0x1a0] sm:$0xff] %v12953_v44  ;;  %v12962_v25 = vpack.c.bf16 %v2259_v8, %v2258_v57  ;;  %v9989_v48 = vpop.permute.xlu0 %9988  ;;  %3067 = vmatprep.subr.bf16.mxu1 %v16280_v55  ;;  %v5703_v8 = vld [vmem:[#allocation2 + $0x10] sm:$0xff]  ;;  %v5704_v57 = vld [vmem:[#allocation2 + $0x18] sm:$0xff] }
 0x30a   :  { %v2265_v9 = vsel %vm875_vm3, %v1789_v50, %v9996_v43  ;;  %v2264_v63 = vsel %vm875_vm3, %v1788_v35, %v9995_v29  ;;  %v9991_v24 = vunpack.i.h.bf16 %v9989_v48  ;;  %v9990_v37 = vunpack.i.l.bf16 %v9989_v48  ;;  %v13004_v29 = vld [vmem:[#allocation3 + $0x158] sm:$0xff] }
 0x30b   :  { %v12967_v18 = vpack.c.bf16 %v2265_v9, %v2264_v63  ;;  %v10004_v45 = vpop.permute.xlu1 %10003  ;;  %2394 = vst [vmem:[#allocation3 + $0x190] sm:$0xff] %v12962_v25  ;;  %2872 = vmatmul.mubr.bf16.gmra.mrb[8].mxu1 %v12889_v5 }
 0x30c   :  { %v10006_v19 = vunpack.i.h.bf16 %v10004_v45  ;;  %v10005_v58 = vunpack.i.l.bf16 %v10004_v45  ;;  %v2263_v52 = vsel %vm875_vm3, %v1787_v28, %v9991_v24  ;;  %v2262_v1 = vsel %vm875_vm3, %v1786_v21, %v9990_v37  ;;  %8635 = vmatprep.mubr.msk.bf16.mxu1 %vm875_vm3, %v12971_v39  ;;  %3068 = vmatpush1.bf16.msra.mxu1 %v10163_v60  ;;  %v10166_v60 = vld [vmem:[%s16216_s5 + $0x38] sm:$0xff]  }
 0x30d   :  { %2400 = vst [vmem:[#allocation3 + $0x1c0] sm:$0xff] %v12967_v18  ;;  %v12981_v10 = vpack.c.bf16 %v2263_v52, %v2262_v1  ;;  %v9999_v31 = vpop.permute.xlu0 %9998  ;;  %3069 = vmatprep.subr.bf16.mxu1 %v16280_v55  ;;  %v1738_v52 = vld [vmem:[#allocation2 + $0x30] sm:$0xff] }
 0x30e   :  { %v2269_v5 = vsel %vm875_vm3, %v1793_v62, %v10006_v19  ;;  %v2268_v16 = vsel %vm875_vm3, %v1792_v38, %v10005_v58  ;;  %v10001_v0 = vunpack.i.h.bf16 %v9999_v31  ;;  %v10000_v27 = vunpack.i.l.bf16 %v9999_v31  ;;  %v1733_v19 = vld [vmem:[#allocation2 + $0x8] sm:$0xff]  ;;  %v1732_v58 = vld [vmem:[#allocation2] sm:$0xff] }
 0x30f   :  { %v12986_v3 = vpack.c.bf16 %v2269_v5, %v2268_v16  ;;  %v10014_v53 = vpop.permute.xlu1 %10013  ;;  %2398 = vst [vmem:[#allocation3 + $0x1b0] sm:$0xff] %v12981_v10  ;;  %v1739_v5 = vld [vmem:[#allocation2 + $0x38] sm:$0xff]  ;;  %v13029_v16 = vld [vmem:[#allocation3 + $0x28] sm:$0xff]  ;;  %v10167_v31 = vld [vmem:[%s16216_s5 + $0x40] sm:$0xff]  }
 0x310   :  { %v10016_v34 = vunpack.i.h.bf16 %v10014_v53  ;;  %v10015_v54 = vunpack.i.l.bf16 %v10014_v53  ;;  %v2267_v36 = vsel %vm875_vm3, %v1791_v26, %v10001_v0  ;;  %v2266_v51 = vsel %vm875_vm3, %v1790_v42, %v10000_v27  ;;  %3070 = vmatpush1.bf16.msra.mxu1 %v10164_v15 }
 0x311   :  { %2404 = vst [vmem:[#allocation3 + $0x1e0] sm:$0xff] %v12986_v3  ;;  %v12995_v59 = vpack.c.bf16 %v2267_v36, %v2266_v51  ;;  %v10009_v30 = vpop.permute.xlu0 %10008  ;;  %3071 = vmatprep.subr.bf16.mxu1 %v16280_v55  ;;  %v1736_v51 = vld [vmem:[#allocation2 + $0x20] sm:$0xff] }
 0x312   :  { %v2273_v56 = vsel %vm875_vm3, %v1797_v7, %v10016_v34  ;;  %v2272_v13 = vsel %vm875_vm3, %v1796_v47, %v10015_v54  ;;  %v10011_v20 = vunpack.i.h.bf16 %v10009_v30  ;;  %v10010_v33 = vunpack.i.l.bf16 %v10009_v30  ;;  %v1737_v47 = vld [vmem:[#allocation2 + $0x28] sm:$0xff] }
 0x313   :  { %v13000_v11 = vpack.c.bf16 %v2273_v56, %v2272_v13  ;;  %v10024_v23 = vpop.permute.xlu1 %10023  ;;  %2402 = vst [vmem:[#allocation3 + $0x1d0] sm:$0xff] %v12995_v59  ;;  %2880 = vmatmul.mubr.bf16.gmra.mrb[12].mxu1 %v12901_v14  ;;  %v13044_v56 = vld [vmem:[#allocation3 + $0x168] sm:$0xff] }
 0x314   :  { %v10026_v41 = vunpack.i.h.bf16 %v10024_v23  ;;  %v10025_v43 = vunpack.i.l.bf16 %v10024_v23  ;;  %v2271_v35 = vsel %vm875_vm3, %v1795_v22, %v10011_v20  ;;  %v2270_v50 = vsel %vm875_vm3, %v1794_v4, %v10010_v33  ;;  %8636 = vmatprep.mubr.msk.bf16.mxu1 %vm875_vm3, %v13004_v29  ;;  %3072 = vmatpush1.bf16.msra.mxu1 %v10165_v32  ;;  %v1742_v20 = vld [vmem:[#allocation2 + $0x50] sm:$0xff]  ;;  %v1743_v33 = vld [vmem:[#allocation2 + $0x58] sm:$0xff]  ;;  %v10168_v23 = vld [vmem:[%s16216_s5 + $0x48] sm:$0xff]  }
 0x315   :  { %2408 = vst [vmem:[#allocation3 + $0x200] sm:$0xff] %v13000_v11  ;;  %v13014_v9 = vpack.c.bf16 %v2271_v35, %v2270_v50  ;;  %v10019_v24 = vpop.permute.xlu0 %10018  ;;  %3073 = vmatprep.subr.bf16.mxu1 %v16280_v55 }
 0x316   :  { %v2211_v63 = vsel %vm875_vm3, %v5704_v57, %v10026_v41  ;;  %v2210_v48 = vsel %vm875_vm3, %v5703_v8, %v10025_v43  ;;  %v10021_v45 = vunpack.i.h.bf16 %v10019_v24  ;;  %v10020_v21 = vunpack.i.l.bf16 %v10019_v24 }
 0x317   :  { %16575 = vst [vmem:[#allocation15_spill] sm:$0xff] %v13014_v9  ;;  %v13019_v37 = vpack.c.bf16 %v2211_v63, %v2210_v48  ;;  %v10034_v28 = vpop.permute.xlu1 %10033  ;;  %2406 = vst [vmem:[#allocation3 + $0x1f0] sm:$0xff] %v13014_v9  ;;  %v1741_v63 = vld [vmem:[#allocation2 + $0x48] sm:$0xff]  ;;  %v1746_v48 = vld [vmem:[#allocation2 + $0x70] sm:$0xff] }
 0x318   :  { %v10036_v1 = vunpack.i.h.bf16 %v10034_v28  ;;  %v10035_v38 = vunpack.i.l.bf16 %v10034_v28  ;;  %v13023_v62 = vsel %vm875_vm3, %v1733_v19, %v10021_v45  ;;  %v13026_v15 = vsel %vm875_vm3, %v1732_v58, %v10020_v21  ;;  %3074 = vmatpush1.bf16.msra.mxu1 %v10166_v60  ;;  %v1740_v60 = vld [vmem:[#allocation2 + $0x40] sm:$0xff]  ;;  %v1747_v19 = vld [vmem:[#allocation2 + $0x78] sm:$0xff] }
 0x319   :  { %2728 = vmatmul.mubr.bf16.vlgmr.msra.gmra.mrb[140].mxu0 %v13019_v37  ;;  %v2276_v0 = vpack.c.bf16 %v13023_v62, %v13026_v15  ;;  %v10029_v42 = vpop.permute.xlu0 %10028  ;;  %3075 = vmatprep.subr.bf16.mxu1 %v16280_v55  ;;  %v13066_v58 = vld [vmem:[#allocation3 + $0x38] sm:$0xff]  ;;  %v10173_v62 = vld [vmem:[%s16216_s5 + $0xd0] sm:$0xff]   ;;  %v10174_v15 = vld [vmem:[%s16216_s5 + $0xd8] sm:$0xff]  }
 0x31a   :  { %v2215_v27 = vsel %vm875_vm3, %v1739_v5, %v10036_v1  ;;  %v2214_v53 = vsel %vm875_vm3, %v1738_v52, %v10035_v38  ;;  %8617 = vmatprep.mubr.msk.bf16.mxu0 %vm875_vm3, %v13029_v16  ;;  %v10031_v34 = vunpack.i.h.bf16 %v10029_v42  ;;  %v10030_v54 = vunpack.i.l.bf16 %v10029_v42  ;;  %v10169_v52 = vld [vmem:[%s16216_s5 + $0x50] sm:$0xff]  }
 0x31b   :  { %v13041_v26 = vpack.c.bf16 %v2215_v27, %v2214_v53  ;;  %v10044_v36 = vpop.permute.xlu1 %10043  ;;  %2888 = vmatmul.mubr.bf16.gmra.mrb[16].mxu1 %v12929_v46 }
 0x31c   :  { %v10046_v7 = vunpack.i.h.bf16 %v10044_v36  ;;  %v10045_v32 = vunpack.i.l.bf16 %v10044_v36  ;;  %v2213_v13 = vsel %vm875_vm3, %v1737_v47, %v10031_v34  ;;  %v2212_v30 = vsel %vm875_vm3, %v1736_v51, %v10030_v54  ;;  %8637 = vmatprep.mubr.msk.bf16.mxu1 %vm875_vm3, %v13044_v56  ;;  %3076 = vmatpush1.bf16.msra.mxu1 %v10167_v31  ;;  %v1744_v54 = vld [vmem:[#allocation2 + $0x60] sm:$0xff]  ;;  %v1745_v36 = vld [vmem:[#allocation2 + $0x68] sm:$0xff] }
 0x31d   :  { %2350 = vst [vmem:[#allocation3 + $0x30] sm:$0xff] %v13041_v26  ;;  %v13054_v4 = vpack.c.bf16 %v2213_v13, %v2212_v30  ;;  %v10039_v43 = vpop.permute.xlu0 %10038  ;;  %3077 = vmatprep.subr.bf16.mxu1 %v16280_v55  ;;  %v1750_v30 = vld [vmem:[#allocation2 + $0x90] sm:$0xff] }
 0x31e   :  { %v2219_v22 = vsel %vm875_vm3, %v1743_v33, %v10046_v7  ;;  %v2218_v41 = vsel %vm875_vm3, %v1742_v20, %v10045_v32  ;;  %v10041_v57 = vunpack.i.h.bf16 %v10039_v43  ;;  %v10040_v35 = vunpack.i.l.bf16 %v10039_v43  ;;  %v13082_v7 = vld [vmem:[#allocation3 + $0x178] sm:$0xff]  ;;  %v1751_v20 = vld [vmem:[#allocation2 + $0x98] sm:$0xff] }
 0x31f   :  { %v13059_v8 = vpack.c.bf16 %v2219_v22, %v2218_v41  ;;  %v10054_v50 = vpop.permute.xlu1 %10053  ;;  %2348 = vst [vmem:[#allocation3 + $0x20] sm:$0xff] %v13054_v4  ;;  %v10170_v33 = vld [vmem:[%s16216_s5 + $0x58] sm:$0xff]  }
 0x320   :  { %v10056_v24 = vunpack.i.h.bf16 %v10054_v50  ;;  %v10055_v45 = vunpack.i.l.bf16 %v10054_v50  ;;  %v2217_v21 = vsel %vm875_vm3, %v1741_v63, %v10041_v57  ;;  %v2216_v28 = vsel %vm875_vm3, %v1740_v60, %v10040_v35  ;;  %3078 = vmatpush1.bf16.msra.mxu1 %v10168_v23  ;;  %v1748_v63 = vld [vmem:[#allocation2 + $0x80] sm:$0xff] }
 0x321   :  { %2354 = vst [vmem:[#allocation3 + $0x50] sm:$0xff] %v13059_v8  ;;  %2736 = vmatmul.mubr.bf16.gmra.mrb[144].mxu0 %v13054_v4  ;;  %v13071_v1 = vpack.c.bf16 %v2217_v21, %v2216_v28  ;;  %v10049_v31 = vpop.permute.xlu0 %10048  ;;  %3079 = vmatprep.subr.bf16.mxu1 %v16280_v55 }
 0x322   :  { %v2223_v38 = vsel %vm875_vm3, %v1747_v19, %v10056_v24  ;;  %v2222_v5 = vsel %vm875_vm3, %v1746_v48, %v10055_v45  ;;  %8618 = vmatprep.mubr.msk.bf16.mxu0 %vm875_vm3, %v13066_v58  ;;  %v10051_v53 = vunpack.i.h.bf16 %v10049_v31  ;;  %v10050_v42 = vunpack.i.l.bf16 %v10049_v31  ;;  %v1749_v48 = vld [vmem:[#allocation2 + $0x88] sm:$0xff]  ;;  %v1754_v19 = vld [vmem:[#allocation2 + $0xb0] sm:$0xff] }
 0x323   :  { %v13078_v27 = vpack.c.bf16 %v2223_v38, %v2222_v5  ;;  %v10064_v34 = vpop.permute.xlu1 %10063  ;;  %2352 = vst [vmem:[#allocation3 + $0x40] sm:$0xff] %v13071_v1  ;;  %2896 = vmatmul.mubr.bf16.gmra.mrb[20].mxu1 %v12920_v61  ;;  %v13104_v38 = vld [vmem:[#allocation3 + $0x48] sm:$0xff] }
 0x324   :  { %v10066_v51 = vunpack.i.h.bf16 %v10064_v34  ;;  %v10065_v47 = vunpack.i.l.bf16 %v10064_v34  ;;  %v2221_v32 = vsel %vm875_vm3, %v1745_v36, %v10051_v53  ;;  %v2220_v13 = vsel %vm875_vm3, %v1744_v54, %v10050_v42  ;;  %8638 = vmatprep.mubr.msk.bf16.mxu1 %vm875_vm3, %v13082_v7  ;;  %3080 = vmatpush1.bf16.msra.mxu1 %v10169_v52  ;;  %v1755_v52 = vld [vmem:[#allocation2 + $0xb8] sm:$0xff] }
 0x325   :  { %2358 = vst [vmem:[#allocation3 + $0x70] sm:$0xff] %v13078_v27  ;;  %v13092_v23 = vpack.c.bf16 %v2221_v32, %v2220_v13  ;;  %v10059_v43 = vpop.permute.xlu0 %10058  ;;  %3081 = vmatprep.subr.bf16.mxu1 %v16280_v55  ;;  %v1753_v32 = vld [vmem:[#allocation2 + $0xa8] sm:$0xff] }
 0x326   :  { %v2227_v22 = vsel %vm875_vm3, %v1751_v20, %v10066_v51  ;;  %v2226_v41 = vsel %vm875_vm3, %v1750_v30, %v10065_v47  ;;  %v10061_v35 = vunpack.i.h.bf16 %v10059_v43  ;;  %v10060_v50 = vunpack.i.l.bf16 %v10059_v43  ;;  %v1752_v47 = vld [vmem:[#allocation2 + $0xa0] sm:$0xff]  ;;  %v13117_v20 = vld [vmem:[#allocation3 + $0x188] sm:$0xff]  ;;  %v1759_v43 = vld [vmem:[#allocation2 + $0xd8] sm:$0xff] }
 0x327   :  { %v13097_v57 = vpack.c.bf16 %v2227_v22, %v2226_v41  ;;  %v10074_v60 = vpop.permute.xlu1 %10073  ;;  %2356 = vst [vmem:[#allocation3 + $0x60] sm:$0xff] %v13092_v23  ;;  %v1758_v41 = vld [vmem:[#allocation2 + $0xd0] sm:$0xff] }
 0x328   :  { %v10076_v24 = vunpack.i.h.bf16 %v10074_v60  ;;  %v10075_v45 = vunpack.i.l.bf16 %v10074_v60  ;;  %v2225_v21 = vsel %vm875_vm3, %v1749_v48, %v10061_v35  ;;  %v2224_v28 = vsel %vm875_vm3, %v1748_v63, %v10060_v50  ;;  %3082 = vmatpush1.bf16.msra.mxu1 %v10170_v33 }
 0x329   :  { %2362 = vst [vmem:[#allocation3 + $0x90] sm:$0xff] %v13097_v57  ;;  %2744 = vmatmul.mubr.bf16.gmra.mrb[148].mxu0 %v13041_v26  ;;  %v13106_v5 = vpack.c.bf16 %v2225_v21, %v2224_v28  ;;  %v10069_v42 = vpop.permute.xlu0 %10068  ;;  %3605 = vmatprep.subr.bf16.mxu1 %v16280_v55  ;;  %v1756_v28 = vld [vmem:[#allocation2 + $0xc0] sm:$0xff]  ;;  %v13239_v55 = vld [vmem:[#allocation3 + $0xe8] sm:$0xff] }
 0x32a   :  { %v2231_v31 = vsel %vm875_vm3, %v1755_v52, %v10076_v24  ;;  %v2230_v53 = vsel %vm875_vm3, %v1754_v19, %v10075_v45  ;;  %8619 = vmatprep.mubr.msk.bf16.mxu0 %vm875_vm3, %v13104_v38  ;;  %v10071_v54 = vunpack.i.h.bf16 %v10069_v42  ;;  %v10070_v36 = vunpack.i.l.bf16 %v10069_v42  ;;  %v1757_v19 = vld [vmem:[#allocation2 + $0xc8] sm:$0xff] }
 0x32b   :  { %v13113_v34 = vpack.c.bf16 %v2231_v31, %v2230_v53  ;;  %v10084_v51 = vpop.permute.xlu1 %10083  ;;  %2360 = vst [vmem:[#allocation3 + $0x80] sm:$0xff] %v13106_v5  ;;  %2904 = vmatmul.mubr.bf16.gmra.mrb[24].mxu1 %v12948_v2 }
 0x32c   :  { %v10086_v13 = vunpack.i.h.bf16 %v10084_v51  ;;  %v10085_v30 = vunpack.i.l.bf16 %v10084_v51  ;;  %v2229_v33 = vsel %vm875_vm3, %v1753_v32, %v10071_v54  ;;  %v2228_v22 = vsel %vm875_vm3, %v1752_v47, %v10070_v36  ;;  %8639 = vmatprep.mubr.msk.bf16.mxu1 %vm875_vm3, %v13117_v20  ;;  %v1762_v54 = vld [vmem:[#allocation2 + $0xf0] sm:$0xff]  ;;  %v1763_v36 = vld [vmem:[#allocation2 + $0xf8] sm:$0xff]  ;;  %v13135_v51 = vld [vmem:[#allocation3 + $0x58] sm:$0xff] }
 0x32d   :  { %2366 = vst [vmem:[#allocation3 + $0xb0] sm:$0xff] %v13113_v34  ;;  %v13124_v35 = vpack.c.bf16 %v2229_v33, %v2228_v22  ;;  %v10079_v63 = vpop.permute.xlu0 %10078 }
 0x32e   :  { %v2235_v50 = vsel %vm875_vm3, %v1759_v43, %v10086_v13  ;;  %v2234_v60 = vsel %vm875_vm3, %v1758_v41, %v10085_v30  ;;  %v10081_v24 = vunpack.i.h.bf16 %v10079_v63  ;;  %v10080_v45 = vunpack.i.l.bf16 %v10079_v63 }
 0x32f   :  { %v13128_v48 = vpack.c.bf16 %v2235_v50, %v2234_v60  ;;  %v10094_v21 = vpop.permute.xlu1 %10093  ;;  %2364 = vst [vmem:[#allocation3 + $0xa0] sm:$0xff] %v13124_v35  ;;  %v1760_v50 = vld [vmem:[#allocation2 + $0xe0] sm:$0xff]  ;;  %v1761_v60 = vld [vmem:[#allocation2 + $0xe8] sm:$0xff] }
 0x330   :  { %v10096_v52 = vunpack.i.h.bf16 %v10094_v21  ;;  %v10095_v31 = vunpack.i.l.bf16 %v10094_v21  ;;  %v2233_v53 = vsel %vm875_vm3, %v1757_v19, %v10081_v24  ;;  %v2232_v42 = vsel %vm875_vm3, %v1756_v28, %v10080_v45  ;;  %v13146_v45 = vld [vmem:[#allocation3 + $0x198] sm:$0xff]  ;;  %v1798_v19 = vld [vmem:[#allocation2 + $0x210] sm:$0xff] }
 0x331   :  { %2370 = vst [vmem:[#allocation3 + $0xd0] sm:$0xff] %v13128_v48  ;;  %2752 = vmatmul.mubr.bf16.gmra.mrb[152].mxu0 %v13071_v1  ;;  %v13137_v47 = vpack.c.bf16 %v2233_v53, %v2232_v42  ;;  %v10089_v30 = vpop.permute.xlu0 %10088 }
 0x332   :  { %v2239_v32 = vsel %vm875_vm3, %v1763_v36, %v10096_v52  ;;  %v2238_v13 = vsel %vm875_vm3, %v1762_v54, %v10095_v31  ;;  %8620 = vmatprep.mubr.msk.bf16.mxu0 %vm875_vm3, %v13135_v51  ;;  %v10091_v22 = vunpack.i.h.bf16 %v10089_v30  ;;  %v10090_v41 = vunpack.i.l.bf16 %v10089_v30  ;;  %v1799_v52 = vld [vmem:[#allocation2 + $0x218] sm:$0xff]  ;;  %v1764_v30 = vld [vmem:[#allocation2 + $0x100] sm:$0xff] }
 0x333   :  { %v13143_v33 = vpack.c.bf16 %v2239_v32, %v2238_v13  ;;  %v10104_v43 = vpop.permute.xlu1 %10103  ;;  %2912 = vmatmul.mubr.bf16.gmra.mrb[28].mxu1 %v12934_v12 }
 0x334   :  { %v10106_v63 = vunpack.i.h.bf16 %v10104_v43  ;;  %v10105_v24 = vunpack.i.l.bf16 %v10104_v43  ;;  %v2237_v21 = vsel %vm875_vm3, %v1761_v60, %v10091_v22  ;;  %v2236_v28 = vsel %vm875_vm3, %v1760_v50, %v10090_v41  ;;  %8640 = vmatprep.mubr.msk.bf16.mxu1 %vm875_vm3, %v13146_v45  ;;  %v1765_v43 = vld [vmem:[#allocation2 + $0x108] sm:$0xff]  ;;  %v13160_v50 = vld [vmem:[#allocation3 + $0x68] sm:$0xff] }
 0x335   :  { %2374 = vst [vmem:[#allocation3 + $0xf0] sm:$0xff] %v13143_v33  ;;  %v13153_v31 = vpack.c.bf16 %v2237_v21, %v2236_v28  ;;  %v10099_v54 = vpop.permute.xlu0 %10098  ;;  %v13177_v21 = vld [vmem:[#allocation3 + $0x1b8] sm:$0xff]  ;;  %v13182_v28 = vld [vmem:[#allocation3 + $0x88] sm:$0xff] }
 0x336   :  { %v2275_v53 = vsel %vm875_vm3, %v1799_v52, %v10106_v63  ;;  %v2274_v42 = vsel %vm875_vm3, %v1798_v19, %v10105_v24  ;;  %v10101_v32 = vunpack.i.h.bf16 %v10099_v54  ;;  %v10100_v13 = vunpack.i.l.bf16 %v10099_v54  ;;  %v13167_v63 = vld [vmem:[#allocation3 + $0x1a8] sm:$0xff]  ;;  %v13172_v24 = vld [vmem:[#allocation3 + $0x78] sm:$0xff] }
 0x337   :  { %v2342_v36 = vpack.c.bf16 %v2275_v53, %v2274_v42  ;;  %v13187_v19 = vld [vmem:[#allocation3 + $0x1c8] sm:$0xff]  ;;  %v13192_v52 = vld [vmem:[#allocation3 + $0x98] sm:$0xff] }
 0x338   :  { %v2241_v22 = vsel %vm875_vm3, %v1765_v43, %v10101_v32  ;;  %v2240_v41 = vsel %vm875_vm3, %v1764_v30, %v10100_v13  ;;  %v13197_v53 = vld [vmem:[#allocation3 + $0x1d8] sm:$0xff]  ;;  %v13202_v42 = vld [vmem:[#allocation3 + $0xa8] sm:$0xff] }
 0x339   :  { %2410 = vst [vmem:[#allocation3 + $0x210] sm:$0xff] %v2342_v36  ;;  %2760 = vmatmul.mubr.bf16.gmra.mrb[156].mxu0 %v13059_v8  ;;  %v13162_v60 = vpack.c.bf16 %v2241_v22, %v2240_v41  ;;  %v13207_v54 = vld [vmem:[#allocation3 + $0x1e8] sm:$0xff]  ;;  %v13212_v36 = vld [vmem:[#allocation3 + $0xb8] sm:$0xff] }
 0x33a   :  { %8621 = vmatprep.mubr.msk.bf16.mxu0 %vm875_vm3, %v13160_v50  ;;  %v13217_v32 = vld [vmem:[#allocation3 + $0x1f8] sm:$0xff]  ;;  %v13222_v13 = vld [vmem:[#allocation3 + $0xc8] sm:$0xff] }
 0x33b   :  { %2920 = vmatmul.mubr.bf16.gmra.mrb[32].mxu1 %v12962_v25  ;;  %v2501_v30 = vld [vmem:[#allocation3 + $0x208] sm:$0xff]  ;;  %v13229_v43 = vld [vmem:[#allocation3 + $0xd8] sm:$0xff] }
 0x33c   :  { %8641 = vmatprep.mubr.msk.bf16.mxu1 %vm875_vm3, %v13167_v63  ;;  %v2413_v22 = vld [vmem:[#allocation3 + $0x8] sm:$0xff]  ;;  %v10171_v41 = vld [vmem:[%s16216_s5 + $0xc0] sm:$0xff]  }
 0x341   :  { %2768 = vmatmul.mubr.bf16.gmra.mrb[160].mxu0 %v13092_v23 }
 0x342   :  { %8622 = vmatprep.mubr.msk.bf16.mxu0 %vm875_vm3, %v13172_v24 }
 0x343   :  { %2928 = vmatmul.mubr.bf16.gmra.mrb[36].mxu1 %v12953_v44 }
 0x344   :  { %8642 = vmatprep.mubr.msk.bf16.mxu1 %vm875_vm3, %v13177_v21 }
 0x349   :  { %2776 = vmatmul.mubr.bf16.gmra.mrb[164].mxu0 %v13078_v27 }
 0x34a   :  { %8623 = vmatprep.mubr.msk.bf16.mxu0 %vm875_vm3, %v13182_v28 }
 0x34b   :  { %2936 = vmatmul.mubr.bf16.gmra.mrb[40].mxu1 %v12981_v10 }
 0x34c   :  { %8643 = vmatprep.mubr.msk.bf16.mxu1 %vm875_vm3, %v13187_v19 }
 0x351   :  { %2784 = vmatmul.mubr.bf16.gmra.mrb[168].mxu0 %v13106_v5 }
 0x352   :  { %8624 = vmatprep.mubr.msk.bf16.mxu0 %vm875_vm3, %v13192_v52 }
 0x353   :  { %2944 = vmatmul.mubr.bf16.gmra.mrb[44].mxu1 %v12967_v18 }
 0x354   :  { %8644 = vmatprep.mubr.msk.bf16.mxu1 %vm875_vm3, %v13197_v53 }
 0x359   :  { %2792 = vmatmul.mubr.bf16.gmra.mrb[172].mxu0 %v13097_v57 }
 0x35a   :  { %8625 = vmatprep.mubr.msk.bf16.mxu0 %vm875_vm3, %v13202_v42 }
 0x35b   :  { %2952 = vmatmul.mubr.bf16.gmra.mrb[48].mxu1 %v12995_v59 }
 0x35c   :  { %8645 = vmatprep.mubr.msk.bf16.mxu1 %vm875_vm3, %v13207_v54 }
 0x361   :  { %2800 = vmatmul.mubr.bf16.gmra.mrb[176].mxu0 %v13124_v35 }
 0x362   :  { %8626 = vmatprep.mubr.msk.bf16.mxu0 %vm875_vm3, %v13212_v36 }
 0x363   :  { %2960 = vmatmul.mubr.bf16.gmra.mrb[52].mxu1 %v12986_v3 }
 0x364   :  { %8646 = vmatprep.mubr.msk.bf16.mxu1 %vm875_vm3, %v13217_v32 }
 0x369   :  { %2808 = vmatmul.mubr.bf16.gmra.mrb[180].mxu0 %v13113_v34 }
 0x36a   :  { %8627 = vmatprep.mubr.msk.bf16.mxu0 %vm875_vm3, %v13222_v13 }
 0x36b   :  { %2968 = vmatmul.mubr.bf16.gmra.mrb[56].mxu1 %v13014_v9  ;;  %v13252_v9 = vld [vmem:[#allocation3 + $0xf8] sm:$0xff] }
 0x36c   :  { %8647 = vmatprep.mubr.msk.bf16.mxu1 %vm875_vm3, %v2501_v30  ;;  %v10172_v30 = vld [vmem:[%s16216_s5 + $0xc8] sm:$0xff]  }
 0x371   :  { %2816 = vmatmul.mubr.bf16.gmra.mrb[184].mxu0 %v13137_v47 }
 0x372   :  { %8628 = vmatprep.mubr.msk.bf16.mxu0 %vm875_vm3, %v13229_v43 }
 0x373   :  { %2976 = vmatmul.mubr.bf16.gmra.mrb[60].mxu1 %v13000_v11  ;;  %v10193_v11 = vld [vmem:[#allocation3 + $0x18] sm:$0xff] }
 0x374   :  { %8660 = vmatprep.mubr.msk.bf16.mxu1 %vm875_vm3, %v2413_v22  ;;  %v16576_v22 = vmov 0  }
 0x379   :  { %2824 = vmatmul.mubr.bf16.gmra.mrb[188].mxu0 %v13128_v48 }
 0x37a   :  { %8629 = vmatprep.mubr.msk.bf16.mxu0 %vm875_vm3, %v13239_v55 }
 0x37b   :  { %3092 = vmatmul.mubr.bf16.vlgmr.msra.gmra.mrb[64].mxu1 %v2276_v0  ;;  %v13268_v0 = vld [vmem:[#allocation3 + $0x108] sm:$0xff] }
 0x37c   :  { %3606 = vmatpush1.bf16.msra.mxu1 %v10171_v41  ;;  %8661 = vmatprep.mubr.msk.bf16.mxu1 %vm875_vm3, %v10193_v11  ;;  %v10175_v41 = vld [vmem:[%s16216_s5 + $0xe0] sm:$0xff]  }
 0x37d   :  { %3607 = vmatprep.subr.bf16.mxu1 %v16576_v22 }
 0x380   :  { %3608 = vmatpush1.bf16.msra.mxu1 %v10172_v30 }
 0x381   :  { %2832 = vmatmul.mubr.bf16.gmra.mrb[192].mxu0 %v13153_v31  ;;  %3609 = vmatprep.subr.bf16.mxu1 %v16576_v22 }
 0x382   :  { %8630 = vmatprep.mubr.msk.bf16.mxu0 %vm875_vm3, %v13252_v9 }
 0x383   :  { %3100 = vmatmul.mubr.bf16.gmra.mrb[68].mxu1 %v13019_v37  ;;  %v10176_v37 = vld [vmem:[%s16216_s5 + $0xe8] sm:$0xff]  }
 0x384   :  { %8662 = vmatprep.mubr.msk.bf16.mxu1 %vm875_vm3, %v13029_v16  ;;  %3610 = vmatpush1.bf16.msra.mxu1 %v10173_v62  ;;  %v10177_v16 = vld [vmem:[%s16216_s5 + $0xf0] sm:$0xff]   ;;  %v10194_v62 = vld [vmem:[#allocation3 + $0x118] sm:$0xff] }
 0x385   :  { %3611 = vmatprep.subr.bf16.mxu1 %v16576_v22 }
 0x388   :  { %3612 = vmatpush1.bf16.msra.mxu1 %v10174_v15 }
 0x389   :  { %2840 = vmatmul.mubr.bf16.gmra.mrb[196].mxu0 %v13143_v33  ;;  %3613 = vmatprep.subr.bf16.mxu1 %v16576_v22 }
 0x38a   :  { %8631 = vmatprep.mubr.msk.bf16.mxu0 %vm875_vm3, %v13268_v0 }
 0x38b   :  { %3108 = vmatmul.mubr.bf16.gmra.mrb[72].mxu1 %v13054_v4  ;;  %v10178_v4 = vld [vmem:[%s16216_s5 + $0xf8] sm:$0xff]  }
 0x38c   :  { %8663 = vmatprep.mubr.msk.bf16.mxu1 %vm875_vm3, %v13066_v58  ;;  %3614 = vmatpush1.bf16.msra.mxu1 %v10175_v41 }
 0x38d   :  { %3615 = vmatprep.subr.bf16.mxu1 %v16576_v22 }
 0x390   :  { %3616 = vmatpush1.bf16.msra.mxu1 %v10176_v37 }
 0x391   :  { %2848 = vmatmul.mubr.bf16.gmra.mrb[200].mxu0 %v13162_v60  ;;  %3617 = vmatprep.subr.bf16.mxu1 %v16576_v22 }
 0x393   :  { %3116 = vmatmul.mubr.bf16.gmra.mrb[76].mxu1 %v13041_v26  ;;  %v10179_v26 = vld [vmem:[%s16216_s5 + $0x100] sm:$0xff]  }
 0x394   :  { %8664 = vmatprep.mubr.msk.bf16.mxu1 %vm875_vm3, %v13104_v38  ;;  %3618 = vmatpush1.bf16.msra.mxu1 %v10177_v16 }
 0x395   :  { %3619 = vmatprep.subr.bf16.mxu1 %v16576_v22 }
 0x398   :  { %3620 = vmatpush1.bf16.msra.mxu1 %v10178_v4 }
 0x399   :  { %3621 = vmatprep.subr.bf16.mxu1 %v16576_v22 }
 0x39b   :  { %3124 = vmatmul.mubr.bf16.gmra.mrb[80].mxu1 %v13071_v1  ;;  %v10181_v1 = vld [vmem:[%s16216_s5 + $0x110] sm:$0xff]  }
 0x39c   :  { %8665 = vmatprep.mubr.msk.bf16.mxu1 %vm875_vm3, %v13135_v51  ;;  %3622 = vmatpush1.bf16.msra.mxu1 %v10179_v26 }
 0x39d   :  { %3623 = vmatprep.subr.bf16.mxu1 %v16576_v22 }
 0x3a3   :  { %3132 = vmatmul.mubr.bf16.gmra.mrb[84].mxu1 %v13059_v8  ;;  %v10180_v8 = vld [vmem:[%s16216_s5 + $0x108] sm:$0xff]  }
 0x3a4   :  { %8666 = vmatprep.mubr.msk.bf16.mxu1 %vm875_vm3, %v13160_v50  ;;  %3624 = vmatpush1.bf16.msra.mxu1 %v10180_v8 }
 0x3a5   :  { %3625 = vmatprep.subr.bf16.mxu1 %v16576_v22 }
 0x3a8   :  { %3626 = vmatpush1.bf16.msra.mxu1 %v10181_v1 }
 0x3a9   :  { %3627 = vmatprep.subr.bf16.mxu1 %v16576_v22 }
 0x3ab   :  { %3140 = vmatmul.mubr.bf16.gmra.mrb[88].mxu1 %v13092_v23 }
 0x3ac   :  { %8667 = vmatprep.mubr.msk.bf16.mxu1 %vm875_vm3, %v13172_v24 }
 0x3b3   :  { %3148 = vmatmul.mubr.bf16.gmra.mrb[92].mxu1 %v13078_v27  ;;  %v10182_v27 = vld [vmem:[%s16216_s5 + $0x118] sm:$0xff]  }
 0x3b4   :  { %8668 = vmatprep.mubr.msk.bf16.mxu1 %vm875_vm3, %v13182_v28  ;;  %3628 = vmatpush1.bf16.msra.mxu1 %v10182_v27 }
 0x3bb   :  { %3156 = vmatmul.mubr.bf16.gmra.mrb[96].mxu1 %v13106_v5 }
 0x3bc   :  { %8669 = vmatprep.mubr.msk.bf16.mxu1 %vm875_vm3, %v13192_v52 }
 0x3c3   :  { %3164 = vmatmul.mubr.bf16.gmra.mrb[100].mxu1 %v13097_v57 }
 0x3c4   :  { %8670 = vmatprep.mubr.msk.bf16.mxu1 %vm875_vm3, %v13202_v42 }
 0x3cb   :  { %3172 = vmatmul.mubr.bf16.gmra.mrb[104].mxu1 %v13124_v35 }
 0x3cc   :  { %8671 = vmatprep.mubr.msk.bf16.mxu1 %vm875_vm3, %v13212_v36 }
 0x3d3   :  { %3180 = vmatmul.mubr.bf16.gmra.mrb[108].mxu1 %v13113_v34 }
 0x3d4   :  { %8672 = vmatprep.mubr.msk.bf16.mxu1 %vm875_vm3, %v13222_v13 }
 0x3db   :  { %3188 = vmatmul.mubr.bf16.gmra.mrb[112].mxu1 %v13137_v47 }
 0x3dc   :  { %8673 = vmatprep.mubr.msk.bf16.mxu1 %vm875_vm3, %v13229_v43 }
 0x3e3   :  { %3196 = vmatmul.mubr.bf16.gmra.mrb[116].mxu1 %v13128_v48 }
 0x3e4   :  { %8674 = vmatprep.mubr.msk.bf16.mxu1 %vm875_vm3, %v13239_v55 }
 0x3eb   :  { %3204 = vmatmul.mubr.bf16.gmra.mrb[120].mxu1 %v13153_v31 }
 0x3ec   :  { %v13342_v23 = vpop.f32.mrb[140].mxu0  ;;  %8675 = vmatprep.mubr.msk.bf16.mxu1 %vm875_vm3, %v13252_v9 }
 0x3ed   :  { %v2731_v57 = vpop.f32.mrb[141].mxu0 }
 0x3ee   :  { %v13346_v5 = vpop.f32.mrb[142].mxu0  ;;  %v10195_v57 = vld [vmem:[#allocation3 + $0x130] sm:$0xff] }
 0x3ef   :  { %v2734_v34 = vpop.f32.mrb[143].mxu0 }
 0x3f3   :  { %3212 = vmatmul.mubr.bf16.gmra.mrb[124].mxu1 %v13143_v33 }
 0x3f4   :  { %v13349_v35 = vpop.f32.mrb[144].mxu0  ;;  %8676 = vmatprep.mubr.msk.bf16.mxu1 %vm875_vm3, %v13268_v0 }
 0x3f5   :  { %v2739_v48 = vpop.f32.mrb[145].mxu0 }
 0x3f6   :  { %v13353_v11 = vpop.f32.mrb[146].mxu0 }
 0x3f7   :  { %v2742_v30 = vpop.f32.mrb[147].mxu0 }
 0x3fb   :  { %3220 = vmatmul.mubr.bf16.gmra.mrb[0].mxu1 %v13162_v60 }
 0x3fc   :  { %v13356_v22 = vpop.f32.mrb[148].mxu0  ;;  %8677 = vmatprep.mubr.msk.bf16.mxu1 %vm875_vm3, %v10194_v62 }
 0x3fd   :  { %v2747_v15 = vpop.f32.mrb[149].mxu0 }
 0x3fe   :  { %v13359_v41 = vpop.f32.mrb[150].mxu0 }
 0x3ff   :  { %v2750_v33 = vpop.f32.mrb[151].mxu0 }
 0x403   :  { %3228 = vmatmul.mubr.bf16.gmra.mrb[4].mxu1 %v12897_v49 }
 0x404   :  { %v13362_v37 = vpop.f32.mrb[152].mxu0  ;;  %8678 = vmatprep.mubr.msk.bf16.mxu1 %vm875_vm3, %v12905_v6 }
 0x405   :  { %v2755_v16 = vpop.f32.mrb[153].mxu0 }
 0x406   :  { %v13366_v4 = vpop.f32.mrb[154].mxu0 }
 0x407   :  { %v2758_v26 = vpop.f32.mrb[155].mxu0 }
 0x40b   :  { %3236 = vmatmul.mubr.bf16.gmra.mrb[8].mxu1 %v12915_v40 }
 0x40c   :  { %v13369_v8 = vpop.f32.mrb[156].mxu0  ;;  %8679 = vmatprep.mubr.msk.bf16.mxu1 %vm875_vm3, %v12938_v17 }
 0x40d   :  { %v2763_v1 = vpop.f32.mrb[157].mxu0 }
 0x40e   :  { %v13373_v27 = vpop.f32.mrb[158].mxu0 }
 0x40f   :  { %v2766_v49 = vpop.f32.mrb[159].mxu0 }
 0x413   :  { %3244 = vmatmul.mubr.bf16.gmra.mrb[12].mxu1 %v10195_v57 }
 0x414   :  { %v13375_v34 = vpop.f32.mrb[160].mxu0  ;;  %8680 = vmatprep.mubr.msk.bf16.mxu1 %vm875_vm3, %v12971_v39 }
 0x415   :  { %v2771_v6 = vpop.f32.mrb[161].mxu0 }
 0x416   :  { %v13379_v48 = vpop.f32.mrb[162].mxu0 }
 0x417   :  { %v2774_v40 = vpop.f32.mrb[163].mxu0 }
 0x41b   :  { %3252 = vmatmul.mubr.bf16.gmra.mrb[16].mxu1 %v12901_v14 }
 0x41c   :  { %v13382_v30 = vpop.f32.mrb[164].mxu0  ;;  %8681 = vmatprep.mubr.msk.bf16.mxu1 %vm875_vm3, %v13004_v29 }
 0x41d   :  { %v2779_v17 = vpop.f32.mrb[165].mxu0 }
 0x41e   :  { %v13386_v62 = vpop.f32.mrb[166].mxu0 }
 0x41f   :  { %v2782_v15 = vpop.f32.mrb[167].mxu0 }
 0x423   :  { %3260 = vmatmul.mubr.bf16.gmra.mrb[20].mxu1 %v12929_v46 }
 0x424   :  { %v13389_v33 = vpop.f32.mrb[168].mxu0  ;;  %8682 = vmatprep.mubr.msk.bf16.mxu1 %vm875_vm3, %v13044_v56 }
 0x425   :  { %v2787_v39 = vpop.f32.mrb[169].mxu0 }
 0x426   :  { %v13393_v16 = vpop.f32.mrb[170].mxu0 }
 0x427   :  { %v2790_v14 = vpop.f32.mrb[171].mxu0 }
 0x42b   :  { %3268 = vmatmul.mubr.bf16.gmra.mrb[24].mxu1 %v12920_v61 }
 0x42c   :  { %v13396_v26 = vpop.f32.mrb[172].mxu0  ;;  %8683 = vmatprep.mubr.msk.bf16.mxu1 %vm875_vm3, %v13082_v7 }
 0x42d   :  { %v2795_v29 = vpop.f32.mrb[173].mxu0 }
 0x42e   :  { %v13400_v1 = vpop.f32.mrb[174].mxu0 }
 0x42f   :  { %v2798_v46 = vpop.f32.mrb[175].mxu0 }
 0x433   :  { %3276 = vmatmul.mubr.bf16.gmra.mrb[28].mxu1 %v12948_v2 }
 0x434   :  { %v13403_v49 = vpop.f32.mrb[176].mxu0  ;;  %8684 = vmatprep.mubr.msk.bf16.mxu1 %vm875_vm3, %v13117_v20 }
 0x435   :  { %v2803_v56 = vpop.f32.mrb[177].mxu0 }
 0x436   :  { %v13407_v57 = vpop.f32.mrb[178].mxu0  ;;  %v3961_v56 = vld [vmem:[%s16217_s6 + $0x18] sm:$0xff] }
 0x437   :  { %v2806_v61 = vpop.f32.mrb[179].mxu0 }
 0x438   :  { %v3962_v61 = vld [vmem:[%s16217_s6 + $0x20] sm:$0xff] }
 0x43b   :  { %3284 = vmatmul.mubr.bf16.gmra.mrb[32].mxu1 %v12934_v12 }
 0x43c   :  { %v13410_v6 = vpop.f32.mrb[180].mxu0  ;;  %8685 = vmatprep.mubr.msk.bf16.mxu1 %vm875_vm3, %v13146_v45 }
 0x43d   :  { %v2811_v7 = vpop.f32.mrb[181].mxu0 }
 0x43e   :  { %v13414_v40 = vpop.f32.mrb[182].mxu0 }
 0x43f   :  { %v2814_v2 = vpop.f32.mrb[183].mxu0 }
 0x443   :  { %3292 = vmatmul.mubr.bf16.gmra.mrb[36].mxu1 %v12962_v25  ;;  %v3959_v25 = vld [vmem:[%s16217_s6 + $0x8] sm:$0xff] }
 0x444   :  { %v13417_v17 = vpop.f32.mrb[184].mxu0  ;;  %8686 = vmatprep.mubr.msk.bf16.mxu1 %vm875_vm3, %v13167_v63  ;;  %v3958_v63 = vld [vmem:[%s16217_s6] sm:$0xff]  ;;  %4031 = vperm.xlu1 %10108, %v3959_v25  }
 0x445   :  { %v2819_v20 = vpop.f32.mrb[185].mxu0  ;;  %4026 = vperm.xlu0 %10107, %v3958_v63   ;;  %v3966_v25 = vld [vmem:[%s16217_s6 + $0x40] sm:$0xff] }
 0x446   :  { %v13421_v15 = vpop.f32.mrb[186].mxu0 }
 0x447   :  { %v2822_v12 = vpop.f32.mrb[187].mxu0 }
 0x449   :  { %4041 = vperm.xlu0 %10107, %v3961_v56   ;;  %v3969_v56 = vld [vmem:[%s16217_s6 + $0x58] sm:$0xff] }
 0x44b   :  { %3300 = vmatmul.mubr.bf16.gmra.mrb[40].mxu1 %v12953_v44  ;;  %v3960_v44 = vld [vmem:[%s16217_s6 + $0x10] sm:$0xff] }
 0x44c   :  { %v13424_v39 = vpop.f32.mrb[188].mxu0  ;;  %8687 = vmatprep.mubr.msk.bf16.mxu1 %vm875_vm3, %v13177_v21  ;;  %4036 = vperm.xlu1 %10108, %v3960_v44  }
 0x44d   :  { %v2827_v45 = vpop.f32.mrb[189].mxu0 }
 0x44e   :  { %v13428_v14 = vpop.f32.mrb[190].mxu0  ;;  %v3965_v45 = vld [vmem:[%s16217_s6 + $0x38] sm:$0xff] }
 0x44f   :  { %v2830_v29 = vpop.f32.mrb[191].mxu0 }
 0x450   :  { %4046 = vperm.xlu1 %10108, %v3962_v61   ;;  %v3970_v61 = vld [vmem:[%s16217_s6 + $0x60] sm:$0xff] }
 0x453   :  { %3308 = vmatmul.mubr.bf16.gmra.mrb[44].mxu1 %v12981_v10  ;;  %v3963_v10 = vld [vmem:[%s16217_s6 + $0x28] sm:$0xff] }
 0x454   :  { %v13440_v21 = vpop.f32.mrb[192].mxu0  ;;  %8688 = vmatprep.mubr.msk.bf16.mxu1 %vm875_vm3, %v13187_v19  ;;  %v3964_v19 = vld [vmem:[%s16217_s6 + $0x30] sm:$0xff]  ;;  %4051 = vperm.xlu0 %10107, %v3963_v10  }
 0x455   :  { %v2835_v46 = vpop.f32.mrb[193].mxu0  ;;  %4056 = vperm.xlu1 %10108, %v3964_v19   ;;  %v3973_v19 = vld [vmem:[%s16217_s6 + $0x78] sm:$0xff] }
 0x456   :  { %v13450_v7 = vpop.f32.mrb[194].mxu0 }
 0x457   :  { %v2838_v2 = vpop.f32.mrb[195].mxu0 }
 0x458   :  { %4061 = vperm.xlu0 %10107, %v3965_v45   ;;  %v3975_v45 = vld [vmem:[%s16217_s6 + $0x88] sm:$0xff] }
 0x459   :  { %4066 = vperm.xlu1 %10108, %v3966_v25   ;;  %v3349_v25 = vld [vmem:[#allocation3 + $0x28] sm:$0xff] }
 0x45b   :  { %3316 = vmatmul.mubr.bf16.gmra.mrb[48].mxu1 %v12967_v18  ;;  %v3967_v18 = vld [vmem:[%s16217_s6 + $0x48] sm:$0xff] }
 0x45c   :  { %v13459_v20 = vpop.f32.mrb[196].mxu0  ;;  %8689 = vmatprep.mubr.msk.bf16.mxu1 %vm875_vm3, %v13197_v53  ;;  %v3968_v53 = vld [vmem:[%s16217_s6 + $0x50] sm:$0xff]  ;;  %4071 = vperm.xlu0 %10107, %v3967_v18   ;;  %v3978_v18 = vld [vmem:[%s16217_s6 + $0xa0] sm:$0xff] }
 0x45d   :  { %v2843_v12 = vpop.f32.mrb[197].mxu0  ;;  %4076 = vperm.xlu1 %10108, %v3968_v53   ;;  %v3979_v53 = vld [vmem:[%s16217_s6 + $0xa8] sm:$0xff] }
 0x45e   :  { %v13469_v63 = vpop.f32.mrb[198].mxu0  ;;  %v3974_v12 = vld [vmem:[%s16217_s6 + $0x80] sm:$0xff] }
 0x45f   :  { %v2846_v29 = vpop.f32.mrb[199].mxu0 }
 0x460   :  { %4081 = vperm.xlu0 %10107, %v3969_v56   ;;  %v3977_v29 = vld [vmem:[%s16217_s6 + $0x98] sm:$0xff]  ;;  %v3348_v56 = vld [vmem:[#allocation3 + $0x20] sm:$0xff] }
 0x461   :  { %4086 = vperm.xlu1 %10108, %v3970_v61   ;;  %v3981_v61 = vld [vmem:[%s16217_s6 + $0xb8] sm:$0xff] }
 0x463   :  { %3324 = vmatmul.mubr.bf16.gmra.mrb[52].mxu1 %v12995_v59  ;;  %v3971_v59 = vld [vmem:[%s16217_s6 + $0x68] sm:$0xff] }
 0x464   :  { %v13478_v44 = vpop.f32.mrb[200].mxu0  ;;  %8690 = vmatprep.mubr.msk.bf16.mxu1 %vm875_vm3, %v13207_v54  ;;  %v3972_v54 = vld [vmem:[%s16217_s6 + $0x70] sm:$0xff]  ;;  %4091 = vperm.xlu0 %10107, %v3971_v59   ;;  %v3983_v59 = vld [vmem:[%s16217_s6 + $0xc8] sm:$0xff] }
 0x465   :  { %v2851_v46 = vpop.f32.mrb[201].mxu0  ;;  %4096 = vperm.xlu1 %10108, %v3972_v54   ;;  %v3984_v54 = vld [vmem:[%s16217_s6 + $0xd0] sm:$0xff] }
 0x466   :  { %v13488_v2 = vpop.f32.mrb[202].mxu0  ;;  %v3980_v46 = vld [vmem:[%s16217_s6 + $0xb0] sm:$0xff] }
 0x467   :  { %v2854_v10 = vpop.f32.mrb[203].mxu0 }
 0x468   :  { %4101 = vperm.xlu0 %10107, %v3973_v19   ;;  %v3982_v10 = vld [vmem:[%s16217_s6 + $0xc0] sm:$0xff]  ;;  %v3985_v19 = vld [vmem:[%s16217_s6 + $0xd8] sm:$0xff] }
 0x469   :  { %4106 = vperm.xlu1 %10108, %v3974_v12   ;;  %v3986_v12 = vld [vmem:[%s16217_s6 + $0xe0] sm:$0xff] }
 0x46b   :  { %3332 = vmatmul.mubr.bf16.gmra.mrb[56].mxu1 %v12986_v3  ;;  %v3976_v3 = vld [vmem:[%s16217_s6 + $0x90] sm:$0xff] }
 0x46c   :  { %8691 = vmatprep.mubr.msk.bf16.mxu1 %vm875_vm3, %v13217_v32  ;;  %4111 = vperm.xlu0 %10107, %v3975_v45   ;;  %v16577_v32 = vld [vmem:[#allocation15_spill] sm:$0xff]  ;;  %v3987_v45 = vld [vmem:[%s16217_s6 + $0xe8] sm:$0xff] }
 0x46d   :  { %4116 = vperm.xlu1 %10108, %v3976_v3   ;;  %v3988_v3 = vld [vmem:[%s16217_s6 + $0xf0] sm:$0xff] }
 0x470   :  { %4121 = vperm.xlu0 %10107, %v3977_v29   ;;  %v3991_v29 = vld [vmem:[%s16217_s6 + $0x108] sm:$0xff] }
 0x471   :  { %4126 = vperm.xlu1 %10108, %v3978_v18   ;;  %v3992_v18 = vld [vmem:[%s16217_s6 + $0x110] sm:$0xff] }
 0x473   :  { %3340 = vmatmul.mubr.bf16.gmra.mrb[60].mxu1 %v16577_v32  ;;  %v3989_v32 = vld [vmem:[%s16217_s6 + $0xf8] sm:$0xff] }
 0x474   :  { %8728 = vmatprep.mubr.msk.bf16.mxu1 %vm875_vm3, %v3349_v25  ;;  %4131 = vperm.xlu0 %10107, %v3979_v53   ;;  %v3990_v25 = vld [vmem:[%s16217_s6 + $0x100] sm:$0xff]  ;;  %v3993_v53 = vld [vmem:[%s16217_s6 + $0x118] sm:$0xff] }
 0x475   :  { %4136 = vperm.xlu1 %10108, %v3980_v46   ;;  %v3994_v46 = vld [vmem:[%s16217_s6 + $0x120] sm:$0xff] }
 0x478   :  { %4141 = vperm.xlu0 %10107, %v3981_v61   ;;  %v3996_v61 = vld [vmem:[%s16217_s6 + $0x130] sm:$0xff] }
 0x479   :  { %4146 = vperm.xlu1 %10108, %v3982_v10   ;;  %v3997_v10 = vld [vmem:[%s16217_s6 + $0x138] sm:$0xff] }
 0x47b   :  { %3638 = vmatmul.mubr.bf16.vlgmr.msra.gmra.mrb[64].mxu1 %v3348_v56  ;;  %v3995_v56 = vld [vmem:[%s16217_s6 + $0x128] sm:$0xff] }
 0x47c   :  { %8729 = vmatprep.mubr.msk.bf16.mxu1 %vm875_vm3, %v13066_v58  ;;  %4151 = vperm.xlu0 %10107, %v3983_v59   ;;  %v3350_v58 = vld [vmem:[#allocation3 + $0x30] sm:$0xff]  ;;  %v3998_v59 = vld [vmem:[%s16217_s6 + $0x140] sm:$0xff] }
 0x47d   :  { %4156 = vperm.xlu1 %10108, %v3984_v54   ;;  %v3999_v54 = vld [vmem:[%s16217_s6 + $0x148] sm:$0xff] }
 0x480   :  { %4161 = vperm.xlu0 %10107, %v3985_v19   ;;  %v4001_v19 = vld [vmem:[%s16217_s6 + $0x158] sm:$0xff] }
 0x481   :  { %4166 = vperm.xlu1 %10108, %v3986_v12   ;;  %v4002_v12 = vld [vmem:[%s16217_s6 + $0x160] sm:$0xff] }
 0x483   :  { %3646 = vmatmul.mubr.bf16.gmra.mrb[68].mxu1 %v3350_v58  ;;  %v4000_v58 = vld [vmem:[%s16217_s6 + $0x150] sm:$0xff] }
 0x484   :  { %8730 = vmatprep.mubr.msk.bf16.mxu1 %vm875_vm3, %v13104_v38  ;;  %4171 = vperm.xlu0 %10107, %v3987_v45   ;;  %v3352_v38 = vld [vmem:[#allocation3 + $0x40] sm:$0xff] }
 0x485   :  { %4176 = vperm.xlu1 %10108, %v3988_v3   ;;  %v4003_v45 = vld [vmem:[%s16217_s6 + $0x168] sm:$0xff]  ;;  %v4004_v3 = vld [vmem:[%s16217_s6 + $0x170] sm:$0xff] }
 0x488   :  { %4181 = vperm.xlu0 %10107, %v3989_v32   ;;  %v4006_v32 = vld [vmem:[%s16217_s6 + $0x180] sm:$0xff] }
 0x489   :  { %4186 = vperm.xlu1 %10108, %v3990_v25   ;;  %v4007_v25 = vld [vmem:[%s16217_s6 + $0x188] sm:$0xff] }
 0x48b   :  { %3654 = vmatmul.mubr.bf16.gmra.mrb[72].mxu1 %v3352_v38  ;;  %v4005_v38 = vld [vmem:[%s16217_s6 + $0x178] sm:$0xff] }
 0x48c   :  { %8731 = vmatprep.mubr.msk.bf16.mxu1 %vm875_vm3, %v13135_v51  ;;  %4191 = vperm.xlu0 %10107, %v3991_v29   ;;  %v3354_v51 = vld [vmem:[#allocation3 + $0x50] sm:$0xff]  ;;  %v4008_v29 = vld [vmem:[%s16217_s6 + $0x190] sm:$0xff] }
 0x48d   :  { %4196 = vperm.xlu1 %10108, %v3992_v18   ;;  %v4009_v18 = vld [vmem:[%s16217_s6 + $0x198] sm:$0xff] }
 0x490   :  { %4201 = vperm.xlu0 %10107, %v3993_v53   ;;  %v4011_v53 = vld [vmem:[%s16217_s6 + $0x1a8] sm:$0xff] }
 0x491   :  { %4206 = vperm.xlu1 %10108, %v3994_v46   ;;  %v4012_v46 = vld [vmem:[%s16217_s6 + $0x1b0] sm:$0xff] }
 0x493   :  { %3662 = vmatmul.mubr.bf16.gmra.mrb[76].mxu1 %v3354_v51  ;;  %v4010_v51 = vld [vmem:[%s16217_s6 + $0x1a0] sm:$0xff] }
 0x494   :  { %8732 = vmatprep.mubr.msk.bf16.mxu1 %vm875_vm3, %v13160_v50  ;;  %4211 = vperm.xlu0 %10107, %v3995_v56   ;;  %v3356_v50 = vld [vmem:[#allocation3 + $0x60] sm:$0xff]  ;;  %v4013_v56 = vld [vmem:[%s16217_s6 + $0x1b8] sm:$0xff] }
 0x495   :  { %4216 = vperm.xlu1 %10108, %v3996_v61   ;;  %v4014_v61 = vld [vmem:[%s16217_s6 + $0x1c0] sm:$0xff] }
 0x498   :  { %4221 = vperm.xlu0 %10107, %v3997_v10   ;;  %v4016_v10 = vld [vmem:[%s16217_s6 + $0x1d0] sm:$0xff] }
 0x499   :  { %4226 = vperm.xlu1 %10108, %v3998_v59   ;;  %v4017_v59 = vld [vmem:[%s16217_s6 + $0x1d8] sm:$0xff] }
 0x49b   :  { %3670 = vmatmul.mubr.bf16.gmra.mrb[80].mxu1 %v3356_v50  ;;  %v4015_v50 = vld [vmem:[%s16217_s6 + $0x1c8] sm:$0xff] }
 0x49c   :  { %8733 = vmatprep.mubr.msk.bf16.mxu1 %vm875_vm3, %v13172_v24  ;;  %4231 = vperm.xlu0 %10107, %v3999_v54   ;;  %v3358_v24 = vld [vmem:[#allocation3 + $0x70] sm:$0xff]  ;;  %v4018_v54 = vld [vmem:[%s16217_s6 + $0x1e0] sm:$0xff] }
 0x49d   :  { %4236 = vperm.xlu1 %10108, %v4000_v58   ;;  %v4019_v58 = vld [vmem:[%s16217_s6 + $0x1e8] sm:$0xff] }
 0x4a0   :  { %4241 = vperm.xlu0 %10107, %v4001_v19   ;;  %v3370_v19 = vld [vmem:[#allocation3 + $0xd0] sm:$0xff] }
 0x4a1   :  { %4246 = vperm.xlu1 %10108, %v4002_v12   ;;  %v3374_v12 = vld [vmem:[#allocation3 + $0xf0] sm:$0xff] }
 0x4a3   :  { %3678 = vmatmul.mubr.bf16.gmra.mrb[84].mxu1 %v3358_v24  ;;  %v4020_v24 = vld [vmem:[%s16217_s6 + $0x1f0] sm:$0xff] }
 0x4a4   :  { %8734 = vmatprep.mubr.msk.bf16.mxu1 %vm875_vm3, %v13182_v28  ;;  %4251 = vperm.xlu0 %10107, %v4003_v45   ;;  %v3360_v28 = vld [vmem:[#allocation3 + $0x80] sm:$0xff]  ;;  %v3381_v45 = vld [vmem:[#allocation3 + $0x128] sm:$0xff] }
 0x4a5   :  { %4256 = vperm.xlu1 %10108, %v4004_v3   ;;  %v3385_v3 = vld [vmem:[#allocation3 + $0x148] sm:$0xff] }
 0x4a8   :  { %4261 = vperm.xlu0 %10107, %v4005_v38   ;;  %v3389_v38 = vld [vmem:[#allocation3 + $0x168] sm:$0xff] }
 0x4a9   :  { %4266 = vperm.xlu1 %10108, %v4006_v32   ;;  %v3388_v32 = vld [vmem:[#allocation3 + $0x160] sm:$0xff] }
 0x4ab   :  { %3686 = vmatmul.mubr.bf16.gmra.mrb[88].mxu1 %v3360_v28  ;;  %v3386_v28 = vld [vmem:[#allocation3 + $0x150] sm:$0xff] }
 0x4ac   :  { %8735 = vmatprep.mubr.msk.bf16.mxu1 %vm875_vm3, %v13192_v52  ;;  %4271 = vperm.xlu0 %10107, %v4007_v25   ;;  %v3362_v52 = vld [vmem:[#allocation3 + $0x90] sm:$0xff]  ;;  %v3391_v25 = vld [vmem:[#allocation3 + $0x178] sm:$0xff] }
 0x4ad   :  { %4276 = vperm.xlu1 %10108, %v4008_v29   ;;  %v3390_v29 = vld [vmem:[#allocation3 + $0x170] sm:$0xff] }
 0x4b0   :  { %4281 = vperm.xlu0 %10107, %v4009_v18   ;;  %v3392_v18 = vld [vmem:[#allocation3 + $0x180] sm:$0xff] }
 0x4b1   :  { %4286 = vperm.xlu1 %10108, %v4010_v51   ;;  %v3395_v51 = vld [vmem:[#allocation3 + $0x198] sm:$0xff] }
 0x4b3   :  { %3694 = vmatmul.mubr.bf16.gmra.mrb[92].mxu1 %v3362_v52  ;;  %v3393_v52 = vld [vmem:[#allocation3 + $0x188] sm:$0xff] }
 0x4b4   :  { %8736 = vmatprep.mubr.msk.bf16.mxu1 %vm875_vm3, %v13202_v42  ;;  %4291 = vperm.xlu0 %10107, %v4011_v53   ;;  %v3364_v42 = vld [vmem:[#allocation3 + $0xa0] sm:$0xff]  ;;  %v3394_v53 = vld [vmem:[#allocation3 + $0x190] sm:$0xff] }
 0x4b5   :  { %4296 = vperm.xlu1 %10108, %v4012_v46   ;;  %v3397_v46 = vld [vmem:[#allocation3 + $0x1a8] sm:$0xff] }
 0x4b8   :  { %4301 = vperm.xlu0 %10107, %v4013_v56   ;;  %v3399_v56 = vld [vmem:[#allocation3 + $0x1b8] sm:$0xff] }
 0x4b9   :  { %4306 = vperm.xlu1 %10108, %v4014_v61   ;;  %v3398_v61 = vld [vmem:[#allocation3 + $0x1b0] sm:$0xff] }
 0x4bb   :  { %3702 = vmatmul.mubr.bf16.gmra.mrb[96].mxu1 %v3364_v42  ;;  %v3396_v42 = vld [vmem:[#allocation3 + $0x1a0] sm:$0xff] }
 0x4bc   :  { %8737 = vmatprep.mubr.msk.bf16.mxu1 %vm875_vm3, %v13212_v36  ;;  %4311 = vperm.xlu0 %10107, %v4015_v50   ;;  %v3366_v36 = vld [vmem:[#allocation3 + $0xb0] sm:$0xff]  ;;  %v3401_v50 = vld [vmem:[#allocation3 + $0x1c8] sm:$0xff] }
 0x4bd   :  { %4316 = vperm.xlu1 %10108, %v4016_v10   ;;  %v3400_v10 = vld [vmem:[#allocation3 + $0x1c0] sm:$0xff] }
 0x4c0   :  { %4321 = vperm.xlu0 %10107, %v4017_v59  }
 0x4c1   :  { %4326 = vperm.xlu1 %10108, %v4018_v54  }
 0x4c3   :  { %3710 = vmatmul.mubr.bf16.gmra.mrb[100].mxu1 %v3366_v36  ;;  %v3403_v36 = vld [vmem:[#allocation3 + $0x1d8] sm:$0xff] }
 0x4c4   :  { %8738 = vmatprep.mubr.msk.bf16.mxu1 %vm875_vm3, %v13222_v13  ;;  %4331 = vperm.xlu0 %10107, %v4019_v58   ;;  %v4021_v13 = vld [vmem:[%s16217_s6 + $0x1f8] sm:$0xff] }
 0x4c5   :  { %4336 = vperm.xlu1 %10108, %v4020_v24  }
 0x4c8   :  { %4341 = vperm.xlu0 %10107, %v4021_v13  }
 0x4cb   :  { %3718 = vmatmul.mubr.bf16.gmra.mrb[104].mxu1 %v13137_v47  ;;  %v3379_v47 = vld [vmem:[#allocation3 + $0x118] sm:$0xff] }
 0x4cc   :  { %8739 = vmatprep.mubr.msk.bf16.mxu1 %vm875_vm3, %v13229_v43  ;;  %v3378_v43 = vld [vmem:[#allocation3 + $0x110] sm:$0xff] }
 0x4d3   :  { %3726 = vmatmul.mubr.bf16.gmra.mrb[108].mxu1 %v3370_v19 }
 0x4d4   :  { %8740 = vmatprep.mubr.msk.bf16.mxu1 %vm875_vm3, %v13239_v55  ;;  %v3380_v55 = vld [vmem:[#allocation3 + $0x120] sm:$0xff] }
 0x4db   :  { %3734 = vmatmul.mubr.bf16.gmra.mrb[112].mxu1 %v13153_v31  ;;  %v3383_v31 = vld [vmem:[#allocation3 + $0x138] sm:$0xff] }
 0x4dc   :  { %8741 = vmatprep.mubr.msk.bf16.mxu1 %vm875_vm3, %v13252_v9  ;;  %v3382_v9 = vld [vmem:[#allocation3 + $0x130] sm:$0xff] }
 0x4e3   :  { %3742 = vmatmul.mubr.bf16.gmra.mrb[116].mxu1 %v3374_v12  ;;  %v3402_v12 = vld [vmem:[#allocation3 + $0x1d0] sm:$0xff] }
 0x4e4   :  { %8742 = vmatprep.mubr.msk.bf16.mxu1 %vm875_vm3, %v13268_v0  ;;  %v3384_v0 = vld [vmem:[#allocation3 + $0x140] sm:$0xff] }
 0x4eb   :  { %3750 = vmatmul.mubr.bf16.gmra.mrb[120].mxu1 %v13162_v60  ;;  %v3387_v60 = vld [vmem:[#allocation3 + $0x158] sm:$0xff] }
 0x4ec   :  { %8743 = vmatprep.mubr.msk.bf16.mxu1 %vm875_vm3, %v3379_v47  ;;  %v3405_v47 = vld [vmem:[#allocation3 + $0x1e8] sm:$0xff] }
 0x4f3   :  { %3758 = vmatmul.mubr.bf16.gmra.mrb[124].mxu1 %v3378_v43 }
 0x4f4   :  { %8744 = vmatprep.mubr.msk.bf16.mxu1 %vm875_vm3, %v3381_v45 }
 0x4fb   :  { %3766 = vmatmul.mubr.bf16.gmra.mrb[0].mxu1 %v3380_v55 }
 0x4fc   :  { %8745 = vmatprep.mubr.msk.bf16.mxu1 %vm875_vm3, %v3383_v31 }
 0x503   :  { %3774 = vmatmul.mubr.bf16.gmra.mrb[4].mxu1 %v3382_v9 }
 0x504   :  { %8746 = vmatprep.mubr.msk.bf16.mxu1 %vm875_vm3, %v3385_v3  ;;  %v3404_v3 = vld [vmem:[#allocation3 + $0x1e0] sm:$0xff] }
 0x50b   :  { %3782 = vmatmul.mubr.bf16.gmra.mrb[8].mxu1 %v3384_v0 }
 0x50c   :  { %8747 = vmatprep.mubr.msk.bf16.mxu1 %vm875_vm3, %v3387_v60 }
 0x513   :  { %3790 = vmatmul.mubr.bf16.gmra.mrb[12].mxu1 %v3386_v28 }
 0x514   :  { %8748 = vmatprep.mubr.msk.bf16.mxu1 %vm875_vm3, %v3389_v38 }
 0x51b   :  { %3798 = vmatmul.mubr.bf16.gmra.mrb[16].mxu1 %v3388_v32 }
 0x51c   :  { %8749 = vmatprep.mubr.msk.bf16.mxu1 %vm875_vm3, %v3391_v25  ;;  %v3406_v25 = vld [vmem:[#allocation3 + $0x1f0] sm:$0xff] }
 0x523   :  { %3806 = vmatmul.mubr.bf16.gmra.mrb[20].mxu1 %v3390_v29 }
 0x524   :  { %8750 = vmatprep.mubr.msk.bf16.mxu1 %vm875_vm3, %v3393_v52 }
 0x52b   :  { %3814 = vmatmul.mubr.bf16.gmra.mrb[24].mxu1 %v3392_v18 }
 0x52c   :  { %8751 = vmatprep.mubr.msk.bf16.mxu1 %vm875_vm3, %v3395_v51 }
 0x533   :  { %3822 = vmatmul.mubr.bf16.gmra.mrb[28].mxu1 %v3394_v53 }
 0x534   :  { %8752 = vmatprep.mubr.msk.bf16.mxu1 %vm875_vm3, %v3397_v46  ;;  %v4032_v46 = vpop.permute.xlu1 %4031 }
 0x53b   :  { %3830 = vmatmul.mubr.bf16.gmra.mrb[32].mxu1 %v3396_v42  ;;  %v3408_v42 = vld [vmem:[#allocation3 + $0x200] sm:$0xff] }
 0x53c   :  { %8753 = vmatprep.mubr.msk.bf16.mxu1 %vm875_vm3, %v3399_v56  ;;  %v4027_v56 = vpop.permute.xlu0 %4026 }
 0x543   :  { %3838 = vmatmul.mubr.bf16.gmra.mrb[36].mxu1 %v3398_v61 }
 0x544   :  { %8754 = vmatprep.mubr.msk.bf16.mxu1 %vm875_vm3, %v3401_v50 }
 0x54b   :  { %3846 = vmatmul.mubr.bf16.gmra.mrb[40].mxu1 %v3400_v10 }
 0x54c   :  { %8755 = vmatprep.mubr.msk.bf16.mxu1 %vm875_vm3, %v3403_v36 }
 0x54e   :  { %v3639_v59 = vpop.f32.mrb[64].mxu1 }
 0x54f   :  { %v13693_v54 = vadd.f32 %v3639_v59, %v13342_v23  ;;  %v3641_v58 = vpop.f32.mrb[65].mxu1 }
 0x550   :  { %v3642_v24 = vpop.f32.mrb[66].mxu1 }
 0x551   :  { %v13696_v13 = vadd.f32 %v3642_v24, %v13346_v5  ;;  %v3644_v19 = vpop.f32.mrb[67].mxu1  ;;  %v3407_v5 = vld [vmem:[#allocation3 + $0x1f8] sm:$0xff]  ;;  %v4344_v58 = vmul.f32 %v13693_v54, %v4027_v56  ;;  %v4037_v24 = vpop.permute.xlu1 %4036 }
 0x553   :  { %3854 = vmatmul.mubr.bf16.gmra.mrb[44].mxu1 %v3402_v12  ;;  %v4543_v61 = vmul.f32 %v13696_v13, %v13696_v13  ;;  %v4345_v10 = vmul.f32 %v13696_v13, %v4032_v46 }
 0x554   :  { %8756 = vmatprep.mubr.msk.bf16.mxu1 %vm875_vm3, %v3405_v47 }
 0x555   :  { %v4607_v12 = vmul.f32 %v4543_v61, %v4032_v46 }
 0x556   :  { %v3647_v43 = vpop.f32.mrb[68].mxu1 }
 0x557   :  { %v13700_v45 = vadd.f32 %v3647_v43, %v13349_v35  ;;  %v3649_v55 = vpop.f32.mrb[69].mxu1 }
 0x558   :  { %v3650_v31 = vpop.f32.mrb[70].mxu1 }
 0x559   :  { %v13703_v23 = vadd.f32 %v3650_v31, %v13353_v11  ;;  %v3652_v9 = vpop.f32.mrb[71].mxu1  ;;  %v3409_v11 = vld [vmem:[#allocation3 + $0x208] sm:$0xff]  ;;  %v4346_v47 = vmul.f32 %v13700_v45, %v4037_v24 }
 0x55a   :  { %v3410_v9 = vld [vmem:[#allocation3 + $0x210] sm:$0xff] }
 0x55b   :  { %3862 = vmatmul.mubr.bf16.gmra.mrb[48].mxu1 %v3404_v3  ;;  %v4410_v3 = vsel %vm4408_vm5, %v4345_v10, 0.0 }
 0x55c   :  { %8757 = vmatprep.mubr.msk.bf16.mxu1 %vm875_vm3, %v3407_v5 }
 0x55e   :  { %v3655_v0 = vpop.f32.mrb[72].mxu1 }
 0x55f   :  { %v13707_v60 = vadd.f32 %v3655_v0, %v13356_v22  ;;  %v3657_v28 = vpop.f32.mrb[73].mxu1  ;;  %v4409_v0 = vsel %vm4408_vm5, %v4344_v58, 0.0 }
 0x560   :  { %v3658_v38 = vpop.f32.mrb[74].mxu1  ;;  %v4042_v28 = vpop.permute.xlu0 %4041 }
 0x561   :  { %v13710_v35 = vadd.f32 %v3658_v38, %v13359_v41  ;;  %v3660_v32 = vpop.f32.mrb[75].mxu1  ;;  %v3411_v41 = vld [vmem:[#allocation3 + $0x218] sm:$0xff]  ;;  %v4671_v38 = vsel %vm4408_vm5, %v4607_v12, 0.0 }
 0x562   :  { %v4412_v32 = vsel %vm4408_vm5, %v4346_v47, 0.0 }
 0x563   :  { %3870 = vmatmul.mubr.bf16.gmra.mrb[52].mxu1 %v3406_v25  ;;  %v4546_v25 = vmul.f32 %v13707_v60, %v13707_v60 }
 0x564   :  { %8758 = vmatprep.mubr.msk.bf16.mxu1 %vm875_vm3, %v3409_v11  ;;  %v4052_v12 = vpop.permute.xlu0 %4051 }
 0x566   :  { %v3663_v29 = vpop.f32.mrb[76].mxu1 }
 0x567   :  { %v13714_v52 = vadd.f32 %v3663_v29, %v13362_v37  ;;  %v3665_v18 = vpop.f32.mrb[77].mxu1  ;;  %v4542_v37 = vmul.f32 %v13693_v54, %v13693_v54  ;;  %v4411_v29 = vadd.f32 %v4410_v3, %v4409_v0 }
 0x568   :  { %v3666_v51 = vpop.f32.mrb[78].mxu1  ;;  %v4047_v18 = vpop.permute.xlu1 %4046 }
 0x569   :  { %v13717_v22 = vadd.f32 %v3666_v51, %v13366_v4  ;;  %v3668_v53 = vpop.f32.mrb[79].mxu1  ;;  %v4544_v4 = vmul.f32 %v13700_v45, %v13700_v45  ;;  %v4606_v31 = vmul.f32 %v4542_v37, %v4027_v56  ;;  %v4413_v37 = vadd.f32 %v4412_v32, %v4411_v29 }
 0x56b   :  { %3878 = vmatmul.mubr.bf16.gmra.mrb[56].mxu1 %v3408_v42  ;;  %v4608_v5 = vmul.f32 %v4544_v4, %v4037_v24  ;;  %v4670_v11 = vsel %vm4408_vm5, %v4606_v31, 0.0  ;;  %v4348_v42 = vmul.f32 %v13707_v60, %v4047_v18  ;;  %v4548_v31 = vmul.f32 %v13714_v52, %v13714_v52 }
 0x56c   :  { %8759 = vmatprep.mubr.msk.bf16.mxu1 %vm875_vm3, %v3411_v41  ;;  %v4672_v61 = vadd.f32 %v4671_v38, %v4670_v11  ;;  %v4057_v3 = vpop.permute.xlu1 %4056  ;;  %v4549_v38 = vmul.f32 %v13717_v22, %v13717_v22 }
 0x56d   :  { %v4673_v53 = vsel %vm4408_vm5, %v4608_v5, 0.0  ;;  %v4612_v11 = vmul.f32 %v4548_v31, %v4057_v3 }
 0x56e   :  { %v3671_v50 = vpop.f32.mrb[80].mxu1 }
 0x56f   :  { %v13728_v36 = vadd.f32 %v3671_v50, %v13369_v8  ;;  %v3673_v59 = vpop.f32.mrb[81].mxu1  ;;  %v4545_v8 = vmul.f32 %v13703_v23, %v13703_v23  ;;  %v4547_v50 = vmul.f32 %v13710_v35, %v13710_v35 }
 0x570   :  { %v3674_v19 = vpop.f32.mrb[82].mxu1  ;;  %v4610_v59 = vmul.f32 %v4546_v25, %v4047_v18 }
 0x571   :  { %v13733_v43 = vadd.f32 %v3674_v19, %v13373_v27  ;;  %v3676_v55 = vpop.f32.mrb[83].mxu1  ;;  %v4347_v27 = vmul.f32 %v13703_v23, %v4042_v28  ;;  %v4609_v46 = vmul.f32 %v4545_v8, %v4042_v28  ;;  %v4674_v19 = vadd.f32 %v4673_v53, %v4672_v61 }
 0x572   :  { %v4349_v55 = vmul.f32 %v13710_v35, %v4052_v12  ;;  %v4611_v5 = vmul.f32 %v4547_v50, %v4052_v12  ;;  %v4677_v8 = vsel %vm4408_vm5, %v4610_v59, 0.0 }
 0x573   :  { %3886 = vmatmul.mubr.bf16.gmra.mrb[60].mxu1 %v3410_v9  ;;  %v4414_v4 = vsel %vm4408_vm5, %v4347_v27, 0.0  ;;  %v4675_v47 = vsel %vm4408_vm5, %v4609_v46, 0.0  ;;  %v10183_v27 = vld [vmem:[%s16218_s9] sm:$0xff]   ;;  %v4551_v31 = vmul.f32 %v13733_v43, %v13733_v43 }
 0x574   :  { %v4415_v9 = vadd.f32 %v4414_v4, %v4413_v37  ;;  %v4676_v0 = vadd.f32 %v4675_v47, %v4674_v19  ;;  %v4418_v25 = vsel %vm4408_vm5, %v4349_v55, 0.0  ;;  %v4679_v46 = vsel %vm4408_vm5, %v4611_v5, 0.0  ;;  %9377 = vmatprep.subr.bf16.mxu0 %v10183_v27 }
 0x575   :  { %v4550_v37 = vmul.f32 %v13728_v36, %v13728_v36  ;;  %9378 = vmatpush3.bf16.msra.mxu0 %v10183_v27 }
 0x576   :  { %v3679_v51 = vpop.f32.mrb[84].mxu1  ;;  %v4678_v53 = vadd.f32 %v4677_v8, %v4676_v0 }
 0x577   :  { %v13748_v41 = vadd.f32 %v3679_v51, %v13375_v34  ;;  %v3681_v56 = vpop.f32.mrb[85].mxu1  ;;  %v4416_v34 = vsel %vm4408_vm5, %v4348_v42, 0.0  ;;  %v4062_v51 = vpop.permute.xlu0 %4061 }
 0x578   :  { %v3682_v10 = vpop.f32.mrb[86].mxu1  ;;  %v4417_v28 = vadd.f32 %v4416_v34, %v4415_v9  ;;  %v4351_v61 = vmul.f32 %v13717_v22, %v4062_v51  ;;  %v4613_v59 = vmul.f32 %v4549_v38, %v4062_v51  ;;  %v4680_v12 = vadd.f32 %v4679_v46, %v4678_v53 }
 0x579   :  { %v13754_v58 = vadd.f32 %v3682_v10, %v13379_v48  ;;  %v3684_v24 = vpop.f32.mrb[87].mxu1  ;;  %v4350_v48 = vmul.f32 %v13714_v52, %v4057_v3  ;;  %v4552_v0 = vmul.f32 %v13748_v41, %v13748_v41 }
 0x57a   :  { %v4419_v4 = vadd.f32 %v4418_v25, %v4417_v28  ;;  %v4681_v24 = vsel %vm4408_vm5, %v4612_v11, 0.0  ;;  %v4422_v34 = vsel %vm4408_vm5, %v4351_v61, 0.0  ;;  %v4683_v3 = vsel %vm4408_vm5, %v4613_v59, 0.0 }
 0x57b   :  { %v4420_v56 = vsel %vm4408_vm5, %v4350_v48, 0.0  ;;  %v4072_v9 = vpop.permute.xlu0 %4071 }
 0x57c   :  { %v4421_v47 = vadd.f32 %v4420_v56, %v4419_v4  ;;  %v4353_v48 = vmul.f32 %v13733_v43, %v4072_v9 }
 0x57e   :  { %v3687_v32 = vpop.f32.mrb[88].mxu1  ;;  %v4423_v27 = vadd.f32 %v4422_v34, %v4421_v47  ;;  %v4426_v61 = vsel %vm4408_vm5, %v4353_v48, 0.0 }
 0x57f   :  { %v13770_v29 = vadd.f32 %v3687_v32, %v13382_v30  ;;  %v3689_v18 = vpop.f32.mrb[89].mxu1  ;;  %v4067_v30 = vpop.permute.xlu1 %4066 }
 0x580   :  { %v3690_v42 = vpop.f32.mrb[90].mxu1  ;;  %v4352_v19 = vmul.f32 %v13728_v36, %v4067_v30  ;;  %v4614_v55 = vmul.f32 %v4550_v37, %v4067_v30  ;;  %v4615_v18 = vmul.f32 %v4551_v31, %v4072_v9 }
 0x581   :  { %v13778_v50 = vadd.f32 %v3690_v42, %v13386_v62  ;;  %v3692_v10 = vpop.f32.mrb[91].mxu1  ;;  %v4682_v62 = vadd.f32 %v4681_v24, %v4680_v12 }
 0x582   :  { %v4424_v8 = vsel %vm4408_vm5, %v4352_v19, 0.0  ;;  %v4685_v11 = vsel %vm4408_vm5, %v4614_v55, 0.0  ;;  %v4082_v10 = vpop.permute.xlu0 %4081  ;;  %v4687_v4 = vsel %vm4408_vm5, %v4615_v18, 0.0 }
 0x583   :  { %v4077_v32 = vpop.permute.xlu1 %4076  ;;  %v4684_v42 = vadd.f32 %v4683_v3, %v4682_v62  ;;  %v4425_v56 = vadd.f32 %v4424_v8, %v4423_v27  ;;  %v4355_v24 = vmul.f32 %v13754_v58, %v4082_v10  ;;  %v4555_v8 = vmul.f32 %v13778_v50, %v13778_v50 }
 0x584   :  { %v4354_v51 = vmul.f32 %v13748_v41, %v4077_v32  ;;  %v4616_v37 = vmul.f32 %v4552_v0, %v4077_v32 }
 0x585   :  { %v4686_v30 = vadd.f32 %v4685_v11, %v4684_v42  ;;  %v4427_v12 = vadd.f32 %v4426_v61, %v4425_v56  ;;  %v4430_v0 = vsel %vm4408_vm5, %v4355_v24, 0.0 }
 0x586   :  { %v3695_v5 = vpop.f32.mrb[92].mxu1  ;;  %v4428_v59 = vsel %vm4408_vm5, %v4354_v51, 0.0  ;;  %v4689_v34 = vsel %vm4408_vm5, %v4616_v37, 0.0 }
 0x587   :  { %v13791_v28 = vadd.f32 %v3695_v5, %v13389_v33  ;;  %v3697_v38 = vpop.f32.mrb[93].mxu1  ;;  %v4553_v33 = vmul.f32 %v13754_v58, %v13754_v58  ;;  %v4087_v19 = vpop.permute.xlu1 %4086  ;;  %v4688_v3 = vadd.f32 %v4687_v4, %v4686_v30  ;;  %v4429_v5 = vadd.f32 %v4428_v59, %v4427_v12 }
 0x588   :  { %v3698_v25 = vpop.f32.mrb[94].mxu1  ;;  %v4356_v31 = vmul.f32 %v13770_v29, %v4087_v19 }
 0x589   :  { %v13796_v53 = vadd.f32 %v3698_v25, %v13393_v16  ;;  %v3700_v46 = vpop.f32.mrb[95].mxu1  ;;  %v4554_v16 = vmul.f32 %v13770_v29, %v13770_v29  ;;  %v4617_v55 = vmul.f32 %v4553_v33, %v4082_v10  ;;  %v4092_v25 = vpop.permute.xlu0 %4091  ;;  %v4690_v11 = vadd.f32 %v4689_v34, %v4688_v3 }
 0x58a   :  { %v4357_v51 = vmul.f32 %v13778_v50, %v4092_v25  ;;  %v4556_v46 = vmul.f32 %v13791_v28, %v13791_v28  ;;  %v4431_v56 = vadd.f32 %v4430_v0, %v4429_v5  ;;  %v4619_v61 = vmul.f32 %v4555_v8, %v4092_v25 }
 0x58b   :  { %v4618_v38 = vmul.f32 %v4554_v16, %v4087_v19  ;;  %v4691_v18 = vsel %vm4408_vm5, %v4617_v55, 0.0  ;;  %v4097_v42 = vpop.permute.xlu1 %4096  ;;  %v4557_v30 = vmul.f32 %v13796_v53, %v13796_v53 }
 0x58c   :  { %v4692_v33 = vadd.f32 %v4691_v18, %v4690_v11  ;;  %v4434_v59 = vsel %vm4408_vm5, %v4357_v51, 0.0  ;;  %v4620_v24 = vmul.f32 %v4556_v46, %v4097_v42  ;;  %v4695_v34 = vsel %vm4408_vm5, %v4619_v61, 0.0 }
 0x58d   :  { %v4693_v37 = vsel %vm4408_vm5, %v4618_v38, 0.0  ;;  %v4102_v12 = vpop.permute.xlu0 %4101 }
 0x58e   :  { %v3703_v47 = vpop.f32.mrb[96].mxu1  ;;  %v4621_v0 = vmul.f32 %v4557_v30, %v4102_v12  ;;  %v4697_v38 = vsel %vm4408_vm5, %v4620_v24, 0.0 }
 0x58f   :  { %v13809_v9 = vadd.f32 %v3703_v47, %v13396_v26  ;;  %v3705_v62 = vpop.f32.mrb[97].mxu1  ;;  %v4432_v26 = vsel %vm4408_vm5, %v4356_v31, 0.0  ;;  %v4694_v47 = vadd.f32 %v4693_v37, %v4692_v33 }
 0x590   :  { %v3706_v48 = vpop.f32.mrb[98].mxu1  ;;  %v4433_v10 = vadd.f32 %v4432_v26, %v4431_v56  ;;  %v4359_v62 = vmul.f32 %v13796_v53, %v4102_v12 }
 0x591   :  { %v13815_v32 = vadd.f32 %v3706_v48, %v13400_v1  ;;  %v3708_v27 = vpop.f32.mrb[99].mxu1  ;;  %v4358_v1 = vmul.f32 %v13791_v28, %v4097_v42  ;;  %v4558_v3 = vmul.f32 %v13809_v9, %v13809_v9  ;;  %v4107_v48 = vpop.permute.xlu1 %4106  ;;  %v4696_v25 = vadd.f32 %v4695_v34, %v4694_v47 }
 0x592   :  { %v4360_v27 = vmul.f32 %v13809_v9, %v4107_v48  ;;  %v4438_v18 = vsel %vm4408_vm5, %v4359_v62, 0.0  ;;  %v4112_v46 = vpop.permute.xlu0 %4111 }
 0x593   :  { %v4436_v31 = vsel %vm4408_vm5, %v4358_v1, 0.0  ;;  %v4622_v26 = vmul.f32 %v4558_v3, %v4107_v48  ;;  %v4559_v51 = vmul.f32 %v13815_v32, %v13815_v32  ;;  %v4698_v42 = vadd.f32 %v4697_v38, %v4696_v25 }
 0x594   :  { %v4440_v61 = vsel %vm4408_vm5, %v4360_v27, 0.0  ;;  %v4361_v37 = vmul.f32 %v13815_v32, %v4112_v46 }
 0x595   :  { %v4117_v30 = vpop.permute.xlu1 %4116  ;;  %v4701_v24 = vsel %vm4408_vm5, %v4622_v26, 0.0 }
 0x596   :  { %v3711_v4 = vpop.f32.mrb[100].mxu1  ;;  %v4442_v62 = vsel %vm4408_vm5, %v4361_v37, 0.0 }
 0x597   :  { %v13828_v16 = vadd.f32 %v3711_v4, %v13403_v49  ;;  %v3713_v19 = vpop.f32.mrb[101].mxu1  ;;  %v4435_v49 = vadd.f32 %v4434_v59, %v4433_v10 }
 0x598   :  { %v3714_v55 = vpop.f32.mrb[102].mxu1  ;;  %v4623_v19 = vmul.f32 %v4559_v51, %v4112_v46 }
 0x599   :  { %v13836_v5 = vadd.f32 %v3714_v55, %v13407_v57  ;;  %v3716_v8 = vpop.f32.mrb[103].mxu1  ;;  %v4437_v11 = vadd.f32 %v4436_v31, %v4435_v49  ;;  %v4699_v57 = vsel %vm4408_vm5, %v4621_v0, 0.0  ;;  %v4560_v1 = vmul.f32 %v13828_v16, %v13828_v16  ;;  %v4127_v27 = vpop.permute.xlu1 %4126 }
 0x59a   :  { %v4362_v12 = vmul.f32 %v13828_v16, %v4117_v30  ;;  %v4700_v55 = vadd.f32 %v4699_v57, %v4698_v42  ;;  %v4122_v8 = vpop.permute.xlu0 %4121  ;;  %v4703_v49 = vsel %vm4408_vm5, %v4623_v19, 0.0 }
 0x59b   :  { %v4439_v4 = vadd.f32 %v4438_v18, %v4437_v11  ;;  %v4624_v3 = vmul.f32 %v4560_v1, %v4117_v30  ;;  %v4363_v38 = vmul.f32 %v13836_v5, %v4122_v8 }
 0x59c   :  { %v4702_v48 = vadd.f32 %v4701_v24, %v4700_v55  ;;  %v4444_v0 = vsel %vm4408_vm5, %v4362_v12, 0.0 }
 0x59d   :  { %v4441_v31 = vadd.f32 %v4440_v61, %v4439_v4  ;;  %v4705_v18 = vsel %vm4408_vm5, %v4624_v3, 0.0  ;;  %v4446_v1 = vsel %vm4408_vm5, %v4363_v38, 0.0  ;;  %v4137_v55 = vpop.permute.xlu1 %4136 }
 0x59e   :  { %v3719_v56 = vpop.f32.mrb[104].mxu1  ;;  %v4704_v57 = vadd.f32 %v4703_v49, %v4702_v48 }
 0x59f   :  { %v13849_v33 = vadd.f32 %v3719_v56, %v13410_v6  ;;  %v3721_v10 = vpop.f32.mrb[105].mxu1  ;;  %v4561_v6 = vmul.f32 %v13836_v5, %v13836_v5  ;;  %v4443_v25 = vadd.f32 %v4442_v62, %v4441_v31 }
 0x5a0   :  { %v3722_v59 = vpop.f32.mrb[106].mxu1  ;;  %v4706_v24 = vadd.f32 %v4705_v18, %v4704_v57 }
 0x5a1   :  { %v13854_v47 = vadd.f32 %v3722_v59, %v13414_v40  ;;  %v3724_v34 = vpop.f32.mrb[107].mxu1  ;;  %v4562_v40 = vmul.f32 %v13849_v33, %v13849_v33  ;;  %v4625_v26 = vmul.f32 %v4561_v6, %v4122_v8  ;;  %v4364_v51 = vmul.f32 %v13849_v33, %v4127_v27  ;;  %v4132_v59 = vpop.permute.xlu0 %4131 }
 0x5a2   :  { %v4445_v56 = vadd.f32 %v4444_v0, %v4443_v25 }
 0x5a3   :  { %v4563_v61 = vmul.f32 %v13854_v47, %v13854_v47  ;;  %v4626_v10 = vmul.f32 %v4562_v40, %v4127_v27  ;;  %v4707_v19 = vsel %vm4408_vm5, %v4625_v26, 0.0  ;;  %v4365_v12 = vmul.f32 %v13854_v47, %v4132_v59 }
 0x5a4   :  { %v4447_v31 = vadd.f32 %v4446_v1, %v4445_v56  ;;  %v4708_v6 = vadd.f32 %v4707_v19, %v4706_v24 }
 0x5a5   :  { %v4627_v62 = vmul.f32 %v4563_v61, %v4132_v59  ;;  %v4709_v3 = vsel %vm4408_vm5, %v4626_v10, 0.0  ;;  %v4450_v49 = vsel %vm4408_vm5, %v4365_v12, 0.0  ;;  %v4142_v25 = vpop.permute.xlu0 %4141 }
 0x5a6   :  { %v3727_v11 = vpop.f32.mrb[108].mxu1 }
 0x5a7   :  { %v13867_v46 = vadd.f32 %v3727_v11, %v13417_v17  ;;  %v3729_v42 = vpop.f32.mrb[109].mxu1  ;;  %v4448_v17 = vsel %vm4408_vm5, %v4364_v51, 0.0  ;;  %v4710_v11 = vadd.f32 %v4709_v3, %v4708_v6  ;;  %v4711_v18 = vsel %vm4408_vm5, %v4627_v62, 0.0 }
 0x5a8   :  { %v3730_v37 = vpop.f32.mrb[110].mxu1  ;;  %v4449_v8 = vadd.f32 %v4448_v17, %v4447_v31 }
 0x5a9   :  { %v13873_v30 = vadd.f32 %v3730_v37, %v13421_v15  ;;  %v3732_v4 = vpop.f32.mrb[111].mxu1  ;;  %v4564_v34 = vmul.f32 %v13867_v46, %v13867_v46  ;;  %v4366_v15 = vmul.f32 %v13867_v46, %v4137_v55  ;;  %v4147_v37 = vpop.permute.xlu1 %4146  ;;  %v4712_v59 = vadd.f32 %v4711_v18, %v4710_v11 }
 0x5ab   :  { %v4628_v0 = vmul.f32 %v4564_v34, %v4137_v55  ;;  %v4565_v38 = vmul.f32 %v13873_v30, %v13873_v30  ;;  %v4452_v51 = vsel %vm4408_vm5, %v4366_v15, 0.0  ;;  %v4367_v42 = vmul.f32 %v13873_v30, %v4142_v25  ;;  %v4152_v34 = vpop.permute.xlu0 %4151 }
 0x5ad   :  { %v4713_v1 = vsel %vm4408_vm5, %v4628_v0, 0.0  ;;  %v4629_v10 = vmul.f32 %v4565_v38, %v4142_v25  ;;  %v4454_v17 = vsel %vm4408_vm5, %v4367_v42, 0.0 }
 0x5ae   :  { %v3735_v48 = vpop.f32.mrb[112].mxu1  ;;  %v4714_v55 = vadd.f32 %v4713_v1, %v4712_v59 }
 0x5af   :  { %v13886_v40 = vadd.f32 %v3735_v48, %v13424_v39  ;;  %v3737_v27 = vpop.f32.mrb[113].mxu1  ;;  %v4451_v39 = vadd.f32 %v4450_v49, %v4449_v8  ;;  %v4715_v31 = vsel %vm4408_vm5, %v4629_v10, 0.0  ;;  %v4157_v8 = vpop.permute.xlu1 %4156 }
 0x5b0   :  { %v3738_v26 = vpop.f32.mrb[114].mxu1 }
 0x5b1   :  { %v4566_v57 = vmul.f32 %v13886_v40, %v13886_v40  ;;  %v13894_v56 = vadd.f32 %v3738_v26, %v13428_v14  ;;  %v3740_v61 = vpop.f32.mrb[115].mxu1  ;;  %v4368_v4 = vmul.f32 %v13886_v40, %v4147_v37  ;;  %v4453_v24 = vadd.f32 %v4452_v51, %v4451_v39  ;;  %v10184_v39 = vld [vmem:[%s16218_s9 + $0x8] sm:$0xff]  }
 0x5b2   :  { %v4716_v26 = vadd.f32 %v4715_v31, %v4714_v55  ;;  %v4162_v61 = vpop.permute.xlu0 %4161  ;;  %9379 = vmatprep.subr.bf16.mxu0 %v10184_v39 }
 0x5b3   :  { %v4630_v19 = vmul.f32 %v4566_v57, %v4147_v37  ;;  %v4567_v12 = vmul.f32 %v13894_v56, %v13894_v56  ;;  %v4456_v62 = vsel %vm4408_vm5, %v4368_v4, 0.0  ;;  %v4369_v3 = vmul.f32 %v13894_v56, %v4152_v34  ;;  %9380 = vmatpush3.bf16.msra.mxu0 %v10184_v39 }
 0x5b4   :  { %v4455_v48 = vadd.f32 %v4454_v17, %v4453_v24 }
 0x5b5   :  { %v4717_v49 = vsel %vm4408_vm5, %v4630_v19, 0.0  ;;  %v4631_v38 = vmul.f32 %v4567_v12, %v4152_v34  ;;  %v4167_v34 = vpop.permute.xlu1 %4166 }
 0x5b6   :  { %v3743_v14 = vpop.f32.mrb[116].mxu1  ;;  %v4457_v51 = vadd.f32 %v4456_v62, %v4455_v48  ;;  %v4718_v37 = vadd.f32 %v4717_v49, %v4716_v26  ;;  %v4172_v49 = vpop.permute.xlu0 %4171 }
 0x5b7   :  { %v13905_v15 = vadd.f32 %v3743_v14, %v13440_v21  ;;  %v3745_v6 = vpop.f32.mrb[117].mxu1  ;;  %v4458_v21 = vsel %vm4408_vm5, %v4369_v3, 0.0  ;;  %v4719_v1 = vsel %vm4408_vm5, %v4631_v38, 0.0 }
 0x5b8   :  { %v3746_v0 = vpop.f32.mrb[118].mxu1  ;;  %v4459_v4 = vadd.f32 %v4458_v21, %v4457_v51  ;;  %v4720_v55 = vadd.f32 %v4719_v1, %v4718_v37 }
 0x5b9   :  { %16578 = vst [vmem:[#allocation6_spill] sm:$0xff] %v13905_v15  ;;  %v4370_v27 = vmul.f32 %v13905_v15, %v4157_v8  ;;  %v4568_v25 = vmul.f32 %v13905_v15, %v13905_v15  ;;  %v13912_v11 = vadd.f32 %v3746_v0, %v13450_v7  ;;  %v3748_v18 = vpop.f32.mrb[119].mxu1  ;;  %v4177_v1 = vpop.permute.xlu1 %4176 }
 0x5bb   :  { %16579 = vst [vmem:[#allocation16_spill] sm:$0xff] %v13912_v11  ;;  %v4632_v42 = vmul.f32 %v4568_v25, %v4157_v8  ;;  %v4569_v57 = vmul.f32 %v13912_v11, %v13912_v11  ;;  %v4460_v7 = vsel %vm4408_vm5, %v4370_v27, 0.0  ;;  %v4371_v10 = vmul.f32 %v13912_v11, %v4162_v61 }
 0x5bc   :  { %v4461_v14 = vadd.f32 %v4460_v7, %v4459_v4 }
 0x5bd   :  { %v4633_v59 = vmul.f32 %v4569_v57, %v4162_v61  ;;  %v4721_v19 = vsel %vm4408_vm5, %v4632_v42, 0.0  ;;  %v4462_v62 = vsel %vm4408_vm5, %v4371_v10, 0.0 }
 0x5be   :  { %v3751_v24 = vpop.f32.mrb[120].mxu1  ;;  %v4463_v26 = vadd.f32 %v4462_v62, %v4461_v14 }
 0x5bf   :  { %v13925_v17 = vadd.f32 %v3751_v24, %v13459_v20  ;;  %v3753_v12 = vpop.f32.mrb[121].mxu1  ;;  %v4722_v20 = vadd.f32 %v4721_v19, %v4720_v55  ;;  %v4723_v0 = vsel %vm4408_vm5, %v4633_v59, 0.0 }
 0x5c0   :  { %v3754_v31 = vpop.f32.mrb[122].mxu1 }
 0x5c1   :  { %16580 = vst [vmem:[#allocation17_spill] sm:$0xff] %v13925_v17  ;;  %v4372_v3 = vmul.f32 %v13925_v17, %v4167_v34  ;;  %v4570_v6 = vmul.f32 %v13925_v17, %v13925_v17  ;;  %v13932_v8 = vadd.f32 %v3754_v31, %v13469_v63  ;;  %v3756_v48 = vpop.f32.mrb[123].mxu1  ;;  %v4724_v42 = vadd.f32 %v4723_v0, %v4722_v20 }
 0x5c3   :  { %16581 = vst [vmem:[#allocation18_spill] sm:$0xff] %v13932_v8  ;;  %v4464_v38 = vsel %vm4408_vm5, %v4372_v3, 0.0  ;;  %v4634_v27 = vmul.f32 %v4570_v6, %v4167_v34  ;;  %v4373_v25 = vmul.f32 %v13932_v8, %v4172_v49  ;;  %v4571_v18 = vmul.f32 %v13932_v8, %v13932_v8  ;;  %v4182_v34 = vpop.permute.xlu0 %4181 }
 0x5c4   :  { %v4465_v63 = vadd.f32 %v4464_v38, %v4463_v26 }
 0x5c5   :  { %v4725_v51 = vsel %vm4408_vm5, %v4634_v27, 0.0  ;;  %v4635_v21 = vmul.f32 %v4571_v18, %v4172_v49  ;;  %v4466_v61 = vsel %vm4408_vm5, %v4373_v25, 0.0 }
 0x5c6   :  { %v3759_v57 = vpop.f32.mrb[124].mxu1  ;;  %v4726_v7 = vadd.f32 %v4725_v51, %v4724_v42  ;;  %v4467_v55 = vadd.f32 %v4466_v61, %v4465_v63 }
 0x5c7   :  { %v13942_v37 = vadd.f32 %v3759_v57, %v13478_v44  ;;  %v3761_v39 = vpop.f32.mrb[125].mxu1  ;;  %v4727_v4 = vsel %vm4408_vm5, %v4635_v21, 0.0  ;;  %v4192_v51 = vpop.permute.xlu0 %4191 }
 0x5c8   :  { %v3762_v10 = vpop.f32.mrb[126].mxu1  ;;  %v4728_v3 = vadd.f32 %v4727_v4, %v4726_v7 }
 0x5c9   :  { %16582 = vst [vmem:[#allocation19_spill] sm:$0xff] %v13942_v37  ;;  %v4374_v59 = vmul.f32 %v13942_v37, %v4177_v1  ;;  %v4572_v24 = vmul.f32 %v13942_v37, %v13942_v37  ;;  %v13949_v19 = vadd.f32 %v3762_v10, %v13488_v2  ;;  %v3764_v12 = vpop.f32.mrb[127].mxu1  ;;  %v4187_v2 = vpop.permute.xlu1 %4186 }
 0x5cb   :  { %16583 = vst [vmem:[#allocation20_spill] sm:$0xff] %v13949_v19  ;;  %v4468_v44 = vsel %vm4408_vm5, %v4374_v59, 0.0  ;;  %v4636_v14 = vmul.f32 %v4572_v24, %v4177_v1  ;;  %v4375_v31 = vmul.f32 %v13949_v19, %v4182_v34  ;;  %v4573_v62 = vmul.f32 %v13949_v19, %v13949_v19 }
 0x5cc   :  { %v4469_v6 = vadd.f32 %v4468_v44, %v4467_v55 }
 0x5cd   :  { %v4729_v48 = vsel %vm4408_vm5, %v4636_v14, 0.0  ;;  %v4470_v49 = vsel %vm4408_vm5, %v4375_v31, 0.0  ;;  %v4637_v20 = vmul.f32 %v4573_v62, %v4182_v34  ;;  %v4197_v44 = vpop.permute.xlu1 %4196 }
 0x5ce   :  { %v4730_v0 = vadd.f32 %v4729_v48, %v4728_v3  ;;  %v13957_v38 = vpop.f32.mrb[0].mxu1  ;;  %v4471_v21 = vadd.f32 %v4470_v49, %v4469_v6  ;;  %v4202_v48 = vpop.permute.xlu0 %4201 }
 0x5cf   :  { %v4731_v27 = vsel %vm4408_vm5, %v4637_v20, 0.0  ;;  %v4376_v25 = vmul.f32 %v4187_v2, %v13957_v38  ;;  %v4574_v18 = vmul.f32 %v13957_v38, %v13957_v38  ;;  %v3769_v26 = vpop.f32.mrb[1].mxu1 }
 0x5d0   :  { %v13963_v42 = vpop.f32.mrb[2].mxu1  ;;  %v4732_v7 = vadd.f32 %v4731_v27, %v4730_v0 }
 0x5d1   :  { %v4472_v63 = vsel %vm4408_vm5, %v4376_v25, 0.0  ;;  %v4638_v57 = vmul.f32 %v4574_v18, %v4187_v2  ;;  %v4377_v61 = vmul.f32 %v4192_v51, %v13963_v42  ;;  %v4575_v39 = vmul.f32 %v13963_v42, %v13963_v42  ;;  %v3772_v1 = vpop.f32.mrb[3].mxu1 }
 0x5d2   :  { %v4473_v10 = vadd.f32 %v4472_v63, %v4471_v21 }
 0x5d3   :  { %v4733_v4 = vsel %vm4408_vm5, %v4638_v57, 0.0  ;;  %v4474_v59 = vsel %vm4408_vm5, %v4377_v61, 0.0  ;;  %v4639_v24 = vmul.f32 %v4575_v39, %v4192_v51  ;;  %v4207_v39 = vpop.permute.xlu1 %4206 }
 0x5d4   :  { %v4734_v12 = vadd.f32 %v4733_v4, %v4732_v7  ;;  %v4475_v34 = vadd.f32 %v4474_v59, %v4473_v10 }
 0x5d5   :  { %v4735_v55 = vsel %vm4408_vm5, %v4639_v24, 0.0  ;;  %v4212_v24 = vpop.permute.xlu0 %4211 }
 0x5d6   :  { %v4736_v14 = vadd.f32 %v4735_v55, %v4734_v12  ;;  %v13972_v31 = vpop.f32.mrb[4].mxu1 }
 0x5d7   :  { %v4378_v62 = vmul.f32 %v4197_v44, %v13972_v31  ;;  %v4576_v3 = vmul.f32 %v13972_v31, %v13972_v31  ;;  %v3777_v6 = vpop.f32.mrb[5].mxu1 }
 0x5d8   :  { %v13977_v49 = vpop.f32.mrb[6].mxu1 }
 0x5d9   :  { %v4476_v20 = vsel %vm4408_vm5, %v4378_v62, 0.0  ;;  %v4640_v2 = vmul.f32 %v4576_v3, %v4197_v44  ;;  %v4379_v0 = vmul.f32 %v4202_v48, %v13977_v49  ;;  %v4577_v27 = vmul.f32 %v13977_v49, %v13977_v49  ;;  %v3780_v25 = vpop.f32.mrb[7].mxu1 }
 0x5da   :  { %v4477_v18 = vadd.f32 %v4476_v20, %v4475_v34  ;;  %v4217_v25 = vpop.permute.xlu1 %4216 }
 0x5db   :  { %v4737_v26 = vsel %vm4408_vm5, %v4640_v2, 0.0  ;;  %v4478_v51 = vsel %vm4408_vm5, %v4379_v0, 0.0  ;;  %v4641_v21 = vmul.f32 %v4577_v27, %v4202_v48 }
 0x5dc   :  { %v4738_v63 = vadd.f32 %v4737_v26, %v4736_v14  ;;  %v4479_v57 = vadd.f32 %v4478_v51, %v4477_v18 }
 0x5dd   :  { %v4739_v61 = vsel %vm4408_vm5, %v4641_v21, 0.0 }
 0x5de   :  { %v4740_v1 = vadd.f32 %v4739_v61, %v4738_v63  ;;  %v13986_v7 = vpop.f32.mrb[8].mxu1 }
 0x5df   :  { %v4380_v10 = vmul.f32 %v4207_v39, %v13986_v7  ;;  %v4578_v4 = vmul.f32 %v13986_v7, %v13986_v7  ;;  %v3785_v59 = vpop.f32.mrb[9].mxu1 }
 0x5e0   :  { %v13991_v12 = vpop.f32.mrb[10].mxu1 }
 0x5e1   :  { %v4480_v34 = vsel %vm4408_vm5, %v4380_v10, 0.0  ;;  %v4642_v55 = vmul.f32 %v4578_v4, %v4207_v39  ;;  %v4381_v44 = vmul.f32 %v4212_v24, %v13991_v12  ;;  %v4579_v14 = vmul.f32 %v13991_v12, %v13991_v12  ;;  %v3788_v62 = vpop.f32.mrb[11].mxu1 }
 0x5e2   :  { %v4481_v3 = vadd.f32 %v4480_v34, %v4479_v57  ;;  %v4222_v57 = vpop.permute.xlu0 %4221 }
 0x5e3   :  { %v4741_v6 = vsel %vm4408_vm5, %v4642_v55, 0.0  ;;  %v4482_v48 = vsel %vm4408_vm5, %v4381_v44, 0.0  ;;  %v4643_v20 = vmul.f32 %v4579_v14, %v4212_v24 }
 0x5e4   :  { %v4742_v2 = vadd.f32 %v4741_v6, %v4740_v1  ;;  %v4483_v0 = vadd.f32 %v4482_v48, %v4481_v3  ;;  %v4227_v6 = vpop.permute.xlu1 %4226 }
 0x5e5   :  { %v4743_v27 = vsel %vm4408_vm5, %v4643_v20, 0.0 }
 0x5e6   :  { %v4744_v18 = vadd.f32 %v4743_v27, %v4742_v2  ;;  %v14000_v26 = vpop.f32.mrb[12].mxu1 }
 0x5e7   :  { %v4382_v51 = vmul.f32 %v4217_v25, %v14000_v26  ;;  %v4580_v21 = vmul.f32 %v14000_v26, %v14000_v26  ;;  %v3793_v63 = vpop.f32.mrb[13].mxu1 }
 0x5e8   :  { %v14005_v61 = vpop.f32.mrb[14].mxu1 }
 0x5e9   :  { %v4484_v39 = vsel %vm4408_vm5, %v4382_v51, 0.0  ;;  %v4644_v10 = vmul.f32 %v4580_v21, %v4217_v25  ;;  %v4383_v1 = vmul.f32 %v4222_v57, %v14005_v61  ;;  %v4581_v4 = vmul.f32 %v14005_v61, %v14005_v61  ;;  %v3796_v59 = vpop.f32.mrb[15].mxu1 }
 0x5ea   :  { %v4485_v24 = vadd.f32 %v4484_v39, %v4483_v0  ;;  %v4232_v0 = vpop.permute.xlu0 %4231 }
 0x5eb   :  { %v4745_v34 = vsel %vm4408_vm5, %v4644_v10, 0.0  ;;  %v4486_v55 = vsel %vm4408_vm5, %v4383_v1, 0.0  ;;  %v4645_v44 = vmul.f32 %v4581_v4, %v4222_v57 }
 0x5ec   :  { %v4746_v14 = vadd.f32 %v4745_v34, %v4744_v18  ;;  %v4487_v62 = vadd.f32 %v4486_v55, %v4485_v24 }
 0x5ed   :  { %v4747_v3 = vsel %vm4408_vm5, %v4645_v44, 0.0  ;;  %v4237_v44 = vpop.permute.xlu1 %4236 }
 0x5ee   :  { %v4748_v48 = vadd.f32 %v4747_v3, %v4746_v14  ;;  %v14014_v20 = vpop.f32.mrb[16].mxu1 }
 0x5ef   :  { %v4384_v2 = vmul.f32 %v4227_v6, %v14014_v20  ;;  %v4582_v27 = vmul.f32 %v14014_v20, %v14014_v20  ;;  %v3801_v25 = vpop.f32.mrb[17].mxu1 }
 0x5f0   :  { %v14019_v51 = vpop.f32.mrb[18].mxu1 }
 0x5f1   :  { %v4488_v21 = vsel %vm4408_vm5, %v4384_v2, 0.0  ;;  %v4646_v63 = vmul.f32 %v4582_v27, %v4227_v6  ;;  %v4385_v18 = vmul.f32 %v4232_v0, %v14019_v51  ;;  %v4583_v57 = vmul.f32 %v14019_v51, %v14019_v51  ;;  %v3804_v39 = vpop.f32.mrb[19].mxu1 }
 0x5f2   :  { %v4489_v10 = vadd.f32 %v4488_v21, %v4487_v62  ;;  %v4242_v62 = vpop.permute.xlu0 %4241 }
 0x5f3   :  { %v4749_v1 = vsel %vm4408_vm5, %v4646_v63, 0.0  ;;  %v4490_v4 = vsel %vm4408_vm5, %v4385_v18, 0.0  ;;  %v4647_v59 = vmul.f32 %v4583_v57, %v4232_v0 }
 0x5f4   :  { %v4750_v24 = vadd.f32 %v4749_v1, %v4748_v48  ;;  %v4491_v34 = vadd.f32 %v4490_v4, %v4489_v10 }
 0x5f5   :  { %v4751_v55 = vsel %vm4408_vm5, %v4647_v59, 0.0 }
 0x5f6   :  { %v4752_v14 = vadd.f32 %v4751_v55, %v4750_v24  ;;  %v14028_v3 = vpop.f32.mrb[20].mxu1  ;;  %v4247_v55 = vpop.permute.xlu1 %4246 }
 0x5f7   :  { %v4386_v6 = vmul.f32 %v4237_v44, %v14028_v3  ;;  %v4584_v2 = vmul.f32 %v14028_v3, %v14028_v3  ;;  %v3809_v27 = vpop.f32.mrb[21].mxu1 }
 0x5f8   :  { %v14033_v25 = vpop.f32.mrb[22].mxu1 }
 0x5f9   :  { %v4492_v21 = vsel %vm4408_vm5, %v4386_v6, 0.0  ;;  %v4648_v0 = vmul.f32 %v4584_v2, %v4237_v44  ;;  %v4387_v48 = vmul.f32 %v4242_v62, %v14033_v25  ;;  %v4585_v63 = vmul.f32 %v14033_v25, %v14033_v25  ;;  %v3812_v18 = vpop.f32.mrb[23].mxu1 }
 0x5fa   :  { %v4493_v57 = vadd.f32 %v4492_v21, %v4491_v34  ;;  %v4252_v34 = vpop.permute.xlu0 %4251  ;;  %v4257_v19 = vpop.permute.xlu1 %4256 }
 0x5fb   :  { %v4753_v39 = vsel %vm4408_vm5, %v4648_v0, 0.0  ;;  %v4494_v10 = vsel %vm4408_vm5, %v4387_v48, 0.0  ;;  %v4649_v1 = vmul.f32 %v4585_v63, %v4242_v62 }
 0x5fc   :  { %v4754_v4 = vadd.f32 %v4753_v39, %v4752_v14  ;;  %v4495_v59 = vadd.f32 %v4494_v10, %v4493_v57 }
 0x5fd   :  { %v4755_v24 = vsel %vm4408_vm5, %v4649_v1, 0.0 }
 0x5fe   :  { %v4756_v27 = vadd.f32 %v4755_v24, %v4754_v4  ;;  %v14042_v6 = vpop.f32.mrb[24].mxu1  ;;  %v4267_v8 = vpop.permute.xlu1 %4266 }
 0x5ff   :  { %16584 = vst [vmem:[#allocation21_spill] sm:$0xff] %v14042_v6  ;;  %v4388_v44 = vmul.f32 %v4247_v55, %v14042_v6  ;;  %v4586_v2 = vmul.f32 %v14042_v6, %v14042_v6  ;;  %v3817_v18 = vpop.f32.mrb[25].mxu1 }
 0x600   :  { %v14047_v21 = vpop.f32.mrb[26].mxu1 }
 0x601   :  { %16585 = vst [vmem:[#allocation22_spill] sm:$0xff] %v14047_v21  ;;  %v4496_v0 = vsel %vm4408_vm5, %v4388_v44, 0.0  ;;  %v4650_v62 = vmul.f32 %v4586_v2, %v4247_v55  ;;  %v4389_v14 = vmul.f32 %v4252_v34, %v14047_v21  ;;  %v4587_v48 = vmul.f32 %v14047_v21, %v14047_v21  ;;  %v3820_v63 = vpop.f32.mrb[27].mxu1 }
 0x602   :  { %v4497_v57 = vadd.f32 %v4496_v0, %v4495_v59  ;;  %v4262_v59 = vpop.permute.xlu0 %4261  ;;  %v4277_v11 = vpop.permute.xlu1 %4276 }
 0x603   :  { %v4757_v39 = vsel %vm4408_vm5, %v4650_v62, 0.0  ;;  %v4498_v10 = vsel %vm4408_vm5, %v4389_v14, 0.0  ;;  %v4651_v1 = vmul.f32 %v4587_v48, %v4252_v34 }
 0x604   :  { %v4758_v4 = vadd.f32 %v4757_v39, %v4756_v27  ;;  %v4499_v24 = vadd.f32 %v4498_v10, %v4497_v57 }
 0x605   :  { %v4759_v18 = vsel %vm4408_vm5, %v4651_v1, 0.0 }
 0x606   :  { %v4760_v37 = vadd.f32 %v4759_v18, %v4758_v4  ;;  %v14056_v44 = vpop.f32.mrb[28].mxu1 }
 0x607   :  { %16586 = vst [vmem:[#allocation23_spill] sm:$0xff] %v14056_v44  ;;  %v4390_v55 = vmul.f32 %v4257_v19, %v14056_v44  ;;  %v4588_v2 = vmul.f32 %v14056_v44, %v14056_v44  ;;  %v3825_v63 = vpop.f32.mrb[29].mxu1 }
 0x608   :  { %v14061_v0 = vpop.f32.mrb[30].mxu1 }
 0x609   :  { %16587 = vst [vmem:[#allocation27_spill] sm:$0xff] %v14061_v0  ;;  %v4500_v62 = vsel %vm4408_vm5, %v4390_v55, 0.0  ;;  %v4652_v34 = vmul.f32 %v4588_v2, %v4257_v19  ;;  %v4391_v27 = vmul.f32 %v4262_v59, %v14061_v0  ;;  %v4589_v14 = vmul.f32 %v14061_v0, %v14061_v0  ;;  %v3828_v48 = vpop.f32.mrb[31].mxu1 }
 0x60a   :  { %v4501_v57 = vadd.f32 %v4500_v62, %v4499_v24  ;;  %v4272_v24 = vpop.permute.xlu0 %4271 }
 0x60b   :  { %v4761_v39 = vsel %vm4408_vm5, %v4652_v34, 0.0  ;;  %v4502_v10 = vsel %vm4408_vm5, %v4391_v27, 0.0  ;;  %v4653_v1 = vmul.f32 %v4589_v14, %v4262_v59 }
 0x60c   :  { %v4762_v4 = vadd.f32 %v4761_v39, %v4760_v37  ;;  %v4503_v18 = vadd.f32 %v4502_v10, %v4501_v57 }
 0x60d   :  { %v4763_v63 = vsel %vm4408_vm5, %v4653_v1, 0.0 }
 0x60e   :  { %v4764_v17 = vadd.f32 %v4763_v63, %v4762_v4  ;;  %v14070_v55 = vpop.f32.mrb[32].mxu1 }
 0x60f   :  { %16588 = vst [vmem:[#allocation28_spill] sm:$0xff] %v14070_v55  ;;  %v4392_v19 = vmul.f32 %v4267_v8, %v14070_v55  ;;  %v4590_v2 = vmul.f32 %v14070_v55, %v14070_v55  ;;  %v3833_v48 = vpop.f32.mrb[33].mxu1 }
 0x610   :  { %v14075_v62 = vpop.f32.mrb[34].mxu1 }
 0x611   :  { %16589 = vst [vmem:[#allocation29_spill] sm:$0xff] %v14075_v62  ;;  %v4504_v34 = vsel %vm4408_vm5, %v4392_v19, 0.0  ;;  %v4654_v59 = vmul.f32 %v4590_v2, %v4267_v8  ;;  %v4393_v37 = vmul.f32 %v4272_v24, %v14075_v62  ;;  %v4591_v27 = vmul.f32 %v14075_v62, %v14075_v62  ;;  %v3836_v14 = vpop.f32.mrb[35].mxu1 }
 0x612   :  { %v4505_v57 = vadd.f32 %v4504_v34, %v4503_v18  ;;  %v4282_v18 = vpop.permute.xlu0 %4281 }
 0x613   :  { %v4765_v39 = vsel %vm4408_vm5, %v4654_v59, 0.0  ;;  %v4506_v10 = vsel %vm4408_vm5, %v4393_v37, 0.0  ;;  %v4655_v1 = vmul.f32 %v4591_v27, %v4272_v24 }
 0x614   :  { %v4766_v4 = vadd.f32 %v4765_v39, %v4764_v17  ;;  %v4507_v63 = vadd.f32 %v4506_v10, %v4505_v57 }
 0x615   :  { %v4767_v48 = vsel %vm4408_vm5, %v4655_v1, 0.0 }
 0x616   :  { %v4768_v15 = vadd.f32 %v4767_v48, %v4766_v4  ;;  %v14084_v19 = vpop.f32.mrb[36].mxu1 }
 0x617   :  { %16590 = vst [vmem:[#allocation30_spill] sm:$0xff] %v14084_v19  ;;  %v4394_v8 = vmul.f32 %v4277_v11, %v14084_v19  ;;  %v4592_v2 = vmul.f32 %v14084_v19, %v14084_v19  ;;  %v3841_v14 = vpop.f32.mrb[37].mxu1 }
 0x618   :  { %v14089_v34 = vpop.f32.mrb[38].mxu1  ;;  %v14100_v14 = vld [vmem:[%s16219_s10] sm:$0xff]  }
 0x619   :  { %16591 = vst [vmem:[#allocation31_spill] sm:$0xff] %v14089_v34  ;;  %v4508_v59 = vsel %vm4408_vm5, %v4394_v8, 0.0  ;;  %v4656_v24 = vmul.f32 %v4592_v2, %v4277_v11  ;;  %v4395_v17 = vmul.f32 %v4282_v18, %v14089_v34  ;;  %v4593_v37 = vmul.f32 %v14089_v34, %v14089_v34  ;;  %v3844_v27 = vpop.f32.mrb[39].mxu1  ;;  %16592 = vst [vmem:[#allocation7_spill] sm:$0xff] %v14100_v14  ;;  %v4287_v8 = vpop.permute.xlu1 %4286 }
 0x61a   :  { %v4509_v57 = vadd.f32 %v4508_v59, %v4507_v63  ;;  %9445 = vmatprep.subr.bf16.mxu0 %v14100_v14  ;;  %v4292_v59 = vpop.permute.xlu0 %4291 }
 0x61b   :  { %v4769_v39 = vsel %vm4408_vm5, %v4656_v24, 0.0  ;;  %v4510_v10 = vsel %vm4408_vm5, %v4395_v17, 0.0  ;;  %v4657_v1 = vmul.f32 %v4593_v37, %v4282_v18 }
 0x61c   :  { %v4770_v4 = vadd.f32 %v4769_v39, %v4768_v15  ;;  %v4511_v48 = vadd.f32 %v4510_v10, %v4509_v57 }
 0x61d   :  { %v4771_v11 = vsel %vm4408_vm5, %v4657_v1, 0.0  ;;  %v4297_v34 = vpop.permute.xlu1 %4296 }
 0x61e   :  { %v4772_v2 = vadd.f32 %v4771_v11, %v4770_v4  ;;  %v14103_v19 = vpop.f32.mrb[40].mxu1 }
 0x61f   :  { %16593 = vst [vmem:[#allocation8_spill] sm:$0xff] %v14103_v19  ;;  %v4396_v63 = vmul.f32 %v4287_v8, %v14103_v19  ;;  %v4594_v18 = vmul.f32 %v14103_v19, %v14103_v19  ;;  %v3849_v15 = vpop.f32.mrb[41].mxu1 }
 0x620   :  { %v14109_v24 = vpop.f32.mrb[42].mxu1 }
 0x621   :  { %16594 = vst [vmem:[#allocation9_spill] sm:$0xff] %v14109_v24  ;;  %v4512_v17 = vsel %vm4408_vm5, %v4396_v63, 0.0  ;;  %v4658_v37 = vmul.f32 %v4594_v18, %v4287_v8  ;;  %v4397_v27 = vmul.f32 %v4292_v59, %v14109_v24  ;;  %v4595_v57 = vmul.f32 %v14109_v24, %v14109_v24  ;;  %v3852_v39 = vpop.f32.mrb[43].mxu1 }
 0x622   :  { %v4513_v10 = vadd.f32 %v4512_v17, %v4511_v48  ;;  %v4302_v48 = vpop.permute.xlu0 %4301 }
 0x623   :  { %v4773_v1 = vsel %vm4408_vm5, %v4658_v37, 0.0  ;;  %v4514_v4 = vsel %vm4408_vm5, %v4397_v27, 0.0  ;;  %v4659_v11 = vmul.f32 %v4595_v57, %v4292_v59 }
 0x624   :  { %v4774_v14 = vadd.f32 %v4773_v1, %v4772_v2  ;;  %v4515_v15 = vadd.f32 %v4514_v4, %v4513_v10 }
 0x625   :  { %v4775_v19 = vsel %vm4408_vm5, %v4659_v11, 0.0 }
 0x626   :  { %v4776_v62 = vadd.f32 %v4775_v19, %v4774_v14  ;;  %v14118_v63 = vpop.f32.mrb[44].mxu1 }
 0x627   :  { %16595 = vst [vmem:[#allocation10_spill] sm:$0xff] %v14118_v63  ;;  %v4398_v8 = vmul.f32 %v4297_v34, %v14118_v63  ;;  %v4596_v18 = vmul.f32 %v14118_v63, %v14118_v63  ;;  %v3857_v39 = vpop.f32.mrb[45].mxu1  ;;  %v4307_v63 = vpop.permute.xlu1 %4306 }
 0x628   :  { %v14123_v17 = vpop.f32.mrb[46].mxu1 }
 0x629   :  { %16596 = vst [vmem:[#allocation11_spill] sm:$0xff] %v14123_v17  ;;  %v4516_v37 = vsel %vm4408_vm5, %v4398_v8, 0.0  ;;  %v4660_v59 = vmul.f32 %v4596_v18, %v4297_v34  ;;  %v4399_v2 = vmul.f32 %v4302_v48, %v14123_v17  ;;  %v4597_v27 = vmul.f32 %v14123_v17, %v14123_v17  ;;  %v3860_v19 = vpop.f32.mrb[47].mxu1 }
 0x62a   :  { %v4517_v14 = vadd.f32 %v4516_v37, %v4515_v15  ;;  %v4312_v15 = vpop.permute.xlu0 %4311 }
 0x62b   :  { %v4777_v57 = vsel %vm4408_vm5, %v4660_v59, 0.0  ;;  %v4518_v10 = vsel %vm4408_vm5, %v4399_v2, 0.0  ;;  %v4661_v1 = vmul.f32 %v4597_v27, %v4302_v48 }
 0x62c   :  { %v4778_v4 = vadd.f32 %v4777_v57, %v4776_v62  ;;  %v4519_v11 = vadd.f32 %v4518_v10, %v4517_v14 }
 0x62d   :  { %v4779_v39 = vsel %vm4408_vm5, %v4661_v1, 0.0 }
 0x62e   :  { %v4780_v24 = vadd.f32 %v4779_v39, %v4778_v4  ;;  %v14132_v8 = vpop.f32.mrb[48].mxu1 }
 0x62f   :  { %16597 = vst [vmem:[#allocation12_spill] sm:$0xff] %v14132_v8  ;;  %v4400_v34 = vmul.f32 %v4307_v63, %v14132_v8  ;;  %v4598_v18 = vmul.f32 %v14132_v8, %v14132_v8  ;;  %v3865_v19 = vpop.f32.mrb[49].mxu1  ;;  %v4317_v8 = vpop.permute.xlu1 %4316 }
 0x630   :  { %v14137_v37 = vpop.f32.mrb[50].mxu1 }
 0x631   :  { %16598 = vst [vmem:[#allocation24_spill] sm:$0xff] %v14137_v37  ;;  %v4520_v59 = vsel %vm4408_vm5, %v4400_v34, 0.0  ;;  %v4662_v48 = vmul.f32 %v4598_v18, %v4307_v63  ;;  %v4401_v62 = vmul.f32 %v4312_v15, %v14137_v37  ;;  %v4599_v2 = vmul.f32 %v14137_v37, %v14137_v37  ;;  %v3868_v27 = vpop.f32.mrb[51].mxu1 }
 0x632   :  { %v4521_v14 = vadd.f32 %v4520_v59, %v4519_v11  ;;  %v4322_v11 = vpop.permute.xlu0 %4321 }
 0x633   :  { %v4781_v57 = vsel %vm4408_vm5, %v4662_v48, 0.0  ;;  %v4522_v10 = vsel %vm4408_vm5, %v4401_v62, 0.0  ;;  %v4663_v1 = vmul.f32 %v4599_v2, %v4312_v15 }
 0x634   :  { %v4782_v4 = vadd.f32 %v4781_v57, %v4780_v24  ;;  %v4523_v39 = vadd.f32 %v4522_v10, %v4521_v14 }
 0x635   :  { %v4783_v19 = vsel %vm4408_vm5, %v4663_v1, 0.0 }
 0x636   :  { %v4784_v17 = vadd.f32 %v4783_v19, %v4782_v4  ;;  %v14146_v34 = vpop.f32.mrb[52].mxu1 }
 0x637   :  { %16599 = vst [vmem:[#allocation25_spill] sm:$0xff] %v14146_v34  ;;  %v4402_v63 = vmul.f32 %v4317_v8, %v14146_v34  ;;  %v4600_v18 = vmul.f32 %v14146_v34, %v14146_v34  ;;  %v3873_v27 = vpop.f32.mrb[53].mxu1  ;;  %v4327_v34 = vpop.permute.xlu1 %4326 }
 0x638   :  { %v14151_v59 = vpop.f32.mrb[54].mxu1 }
 0x639   :  { %16600 = vst [vmem:[#allocation26_spill] sm:$0xff] %v14151_v59  ;;  %v4524_v48 = vsel %vm4408_vm5, %v4402_v63, 0.0  ;;  %v4664_v15 = vmul.f32 %v4600_v18, %v4317_v8  ;;  %v4403_v24 = vmul.f32 %v4322_v11, %v14151_v59  ;;  %v4601_v62 = vmul.f32 %v14151_v59, %v14151_v59  ;;  %v3876_v2 = vpop.f32.mrb[55].mxu1 }
 0x63a   :  { %v4525_v14 = vadd.f32 %v4524_v48, %v4523_v39  ;;  %v4332_v39 = vpop.permute.xlu0 %4331 }
 0x63b   :  { %v4785_v57 = vsel %vm4408_vm5, %v4664_v15, 0.0  ;;  %v4526_v10 = vsel %vm4408_vm5, %v4403_v24, 0.0  ;;  %v4665_v1 = vmul.f32 %v4601_v62, %v4322_v11 }
 0x63c   :  { %v4786_v4 = vadd.f32 %v4785_v57, %v4784_v17  ;;  %v4527_v19 = vadd.f32 %v4526_v10, %v4525_v14 }
 0x63d   :  { %v4787_v27 = vsel %vm4408_vm5, %v4665_v1, 0.0 }
 0x63e   :  { %v4788_v37 = vadd.f32 %v4787_v27, %v4786_v4  ;;  %v14160_v63 = vpop.f32.mrb[56].mxu1 }
 0x63f   :  { %16601 = vst [vmem:[#allocation32_spill] sm:$0xff] %v14160_v63  ;;  %v4404_v8 = vmul.f32 %v4327_v34, %v14160_v63  ;;  %v4602_v18 = vmul.f32 %v14160_v63, %v14160_v63  ;;  %v3881_v2 = vpop.f32.mrb[57].mxu1  ;;  %v4337_v63 = vpop.permute.xlu1 %4336 }
 0x640   :  { %v14165_v48 = vpop.f32.mrb[58].mxu1 }
 0x641   :  { %16602 = vst [vmem:[#allocation33_spill] sm:$0xff] %v14165_v48  ;;  %v4528_v15 = vsel %vm4408_vm5, %v4404_v8, 0.0  ;;  %v4666_v11 = vmul.f32 %v4602_v18, %v4327_v34  ;;  %v4405_v17 = vmul.f32 %v4332_v39, %v14165_v48  ;;  %v4603_v24 = vmul.f32 %v14165_v48, %v14165_v48  ;;  %v3884_v62 = vpop.f32.mrb[59].mxu1 }
 0x642   :  { %v4529_v14 = vadd.f32 %v4528_v15, %v4527_v19  ;;  %v4342_v19 = vpop.permute.xlu0 %4341 }
 0x643   :  { %v4789_v57 = vsel %vm4408_vm5, %v4666_v11, 0.0  ;;  %v4530_v10 = vsel %vm4408_vm5, %v4405_v17, 0.0  ;;  %v4667_v1 = vmul.f32 %v4603_v24, %v4332_v39 }
 0x644   :  { %v4790_v4 = vadd.f32 %v4789_v57, %v4788_v37  ;;  %v4531_v27 = vadd.f32 %v4530_v10, %v4529_v14 }
 0x645   :  { %v4791_v2 = vsel %vm4408_vm5, %v4667_v1, 0.0 }
 0x646   :  { %v4792_v59 = vadd.f32 %v4791_v2, %v4790_v4  ;;  %v14174_v8 = vpop.f32.mrb[60].mxu1 }
 0x647   :  { %v4406_v34 = vmul.f32 %v4337_v63, %v14174_v8  ;;  %v4604_v18 = vmul.f32 %v14174_v8, %v14174_v8  ;;  %v3889_v62 = vpop.f32.mrb[61].mxu1 }
 0x648   :  { %v14179_v15 = vpop.f32.mrb[62].mxu1 }
 0x649   :  { %v4532_v11 = vsel %vm4408_vm5, %v4406_v34, 0.0  ;;  %v4668_v39 = vmul.f32 %v4604_v18, %v4337_v63  ;;  %v4407_v37 = vmul.f32 %v4342_v19, %v14179_v15  ;;  %v4605_v17 = vmul.f32 %v14179_v15, %v14179_v15  ;;  %v3892_v24 = vpop.f32.mrb[63].mxu1 }
 0x64a   :  { %v4533_v14 = vadd.f32 %v4532_v11, %v4531_v27 }
 0x64b   :  { %v4793_v57 = vsel %vm4408_vm5, %v4668_v39, 0.0  ;;  %v4534_v10 = vsel %vm4408_vm5, %v4407_v37, 0.0  ;;  %v4669_v1 = vmul.f32 %v4605_v17, %v4342_v19  ;;  %v16623_v19 = vld [vmem:[#allocation17_spill] sm:$0xff] }
 0x64c   :  { %v4794_v4 = vadd.f32 %v4793_v57, %v4792_v59  ;;  %v4535_v2 = vadd.f32 %v4534_v10, %v4533_v14 }
 0x64d   :  { %v4795_v62 = vsel %vm4408_vm5, %v4669_v1, 0.0 }
 0x64e   :  { %v4536_v48 = vrot.slane %v4535_v2, 4  ;;  %v4796_v55 = vadd.f32 %v4795_v62, %v4794_v4  ;;  %v16626_v4 = vld [vmem:[#allocation20_spill] sm:$0xff] }
 0x650   :  { %v4537_v34 = vadd.f32 %v4536_v48, %v4535_v2  ;;  %v4797_v63 = vrot.slane %v4796_v55, 4  ;;  %v14317_v48 = vld [vmem:[%s16220_s7] ss:$0 sm:$0xff] }
 0x652   :  { %v4538_v18 = vrot.slane %v4537_v34, 2  ;;  %v4798_v0 = vadd.f32 %v4797_v63, %v4796_v55 }
 0x654   :  { %v4539_v44 = vadd.f32 %v4538_v18, %v4537_v34  ;;  %v4799_v21 = vrot.slane %v4798_v0, 2  ;;  %v16606_v18 = vld [vmem:[#allocation27_spill] sm:$0xff] }
 0x656   :  { %v4540_v6 = vrot.slane %v4539_v44, 1  ;;  %v4800_v24 = vadd.f32 %v4799_v21, %v4798_v0  ;;  %v16619_v0 = vld [vmem:[#allocation6_spill] sm:$0xff] }
 0x658   :  { %v14188_v27 = vadd.f32 %v4540_v6, %v4539_v44  ;;  %v4801_v11 = vrot.slane %v4800_v24, 1  ;;  %v16620_v44 = vld [vmem:[#allocation16_spill] sm:$0xff] }
 0x65a   :  { %v4802_v39 = vadd.f32 %v4801_v11, %v4800_v24  ;;  %v4803_v59 = vmul.f32 %v14188_v27, %v14188_v27  ;;  %v16607_v24 = vld [vmem:[#allocation28_spill] sm:$0xff]  ;;  %v16608_v11 = vld [vmem:[#allocation29_spill] sm:$0xff]  ;;  %v4832_v62 = vsub.f32 %v16619_v0, %v14188_v27  ;;  %v4833_v2 = vsub.f32 %v16620_v44, %v14188_v27  ;;  %v16624_v0 = vld [vmem:[#allocation18_spill] sm:$0xff] }
 0x65b   :  { %v4834_v55 = vsub.f32 %v16623_v19, %v14188_v27  ;;  %v4835_v14 = vsub.f32 %v16624_v0, %v14188_v27  ;;  %v16625_v44 = vld [vmem:[#allocation19_spill] sm:$0xff]  ;;  %v4837_v6 = vsub.f32 %v16626_v4, %v14188_v27  ;;  %v16627_v1 = vsub.f32 %v14174_v8, %v14188_v27  ;;  %v14350_v8 = vld [vmem:[%s16221_s8] ss:$0 sm:$0xff] }
 0x65c   :  { %v4804_v37 = vsub.f32 %v4802_v39, %v4803_v59  ;;  %v16603_v59 = vld [vmem:[#allocation21_spill] sm:$0xff]  ;;  %v16609_v39 = vld [vmem:[#allocation30_spill] sm:$0xff]  ;;  %v4836_v57 = vsub.f32 %v16625_v44, %v14188_v27  ;;  %v16628_v10 = vsub.f32 %v14179_v15, %v14188_v27  ;;  %v16629_v19 = vsub.f32 %v13693_v54, %v14188_v27  ;;  %16631 = vst [vmem:[#allocation13_spill] sm:$0xff] %v14350_v8 }
 0x65d   :  { %v16630_v44 = vsub.f32 %v13696_v13, %v14188_v27  ;;  %v16632_v15 = vsub.f32 %v13700_v45, %v14188_v27  ;;  %v16634_v54 = vsub.f32 %v13703_v23, %v14188_v27  ;;  %v16635_v13 = vsub.f32 %v13707_v60, %v14188_v27 }
 0x65e   :  { %v4805_v17 = vmax.f32 %v4804_v37, 0.0  ;;  %v16637_v23 = vsub.f32 %v13714_v52, %v14188_v27  ;;  %v16638_v60 = vsub.f32 %v13717_v22, %v14188_v27 }
 0x660   :  { %v4870_v34 = vadd.f32 1e-05, %v4805_v17  ;;  %v16605_v17 = vld [vmem:[#allocation23_spill] sm:$0xff] }
 0x662   :  { %10191 = vrsqrt.f32 %v4870_v34  ;;  %v16604_v34 = vld [vmem:[#allocation22_spill] sm:$0xff] }
 0x66c   :  { %v14312_v63 = vpop.eup %10191 }
 0x66d   :  { %v4934_v21 = vmul.f32 %v14312_v63, %v16627_v1  ;;  %v4935_v37 = vmul.f32 %v14312_v63, %v16628_v10  ;;  %v14339_v0 = vmul.f32 %v14312_v63, %v16629_v19  ;;  %v14345_v4 = vmul.f32 %v14312_v63, %v16630_v44 }
 0x66e   :  { %v14356_v10 = vmul.f32 %v14312_v63, %v16632_v15  ;;  %v14362_v1 = vmul.f32 %v14312_v63, %v16634_v54  ;;  %v14368_v19 = vmul.f32 %v14312_v63, %v16635_v13  ;;  %v16636_v44 = vsub.f32 %v13710_v35, %v14188_v27 }
 0x66f   :  { %v5004_v15 = vmul.f32 %v14317_v48, %v4934_v21  ;;  %v14382_v54 = vmul.f32 %v14312_v63, %v16637_v23  ;;  %v14388_v13 = vmul.f32 %v14312_v63, %v16638_v60  ;;  %v16639_v35 = vsub.f32 %v13728_v36, %v14188_v27 }
 0x670   :  { %16633 = vst [vmem:[#allocation14_spill] sm:$0xff] %v14356_v10  ;;  %v14374_v45 = vmul.f32 %v14312_v63, %v16636_v44  ;;  %v5005_v10 = vmul.f32 %v14317_v48, %v4935_v37  ;;  %v16640_v21 = vsub.f32 %v13733_v43, %v14188_v27  ;;  %v16641_v37 = vsub.f32 %v13748_v41, %v14188_v27 }
 0x671   :  { %v14394_v44 = vmul.f32 %v14312_v63, %v16639_v35  ;;  %v16642_v23 = vsub.f32 %v13754_v58, %v14188_v27  ;;  %v5074_v60 = vadd.f32 %v14350_v8, %v5004_v15  ;;  %v16643_v43 = vsub.f32 %v13770_v29, %v14188_v27 }
 0x672   :  { %v14400_v52 = vmul.f32 %v14312_v63, %v16640_v21  ;;  %v14406_v22 = vmul.f32 %v14312_v63, %v16641_v37  ;;  %v5075_v35 = vadd.f32 %v14350_v8, %v5005_v10  ;;  %v16644_v41 = vsub.f32 %v13778_v50, %v14188_v27 }
 0x673   :  { %v14412_v36 = vmul.f32 %v14312_v63, %v16642_v23  ;;  %v14420_v21 = vmul.f32 %v14312_v63, %v16643_v43  ;;  %v16645_v58 = vsub.f32 %v13791_v28, %v14188_v27  ;;  %v16646_v10 = vsub.f32 %v13796_v53, %v14188_v27 }
 0x674   :  { %v14426_v37 = vmul.f32 %v14312_v63, %v16644_v41  ;;  %v16648_v15 = vsub.f32 %v13809_v9, %v14188_v27  ;;  %v16650_v43 = vsub.f32 %v13815_v32, %v14188_v27  ;;  %v5138_v41 = vmax.f32 %v5074_v60, 0.0 }
 0x675   :  { %v14432_v23 = vmul.f32 %v14312_v63, %v16645_v58  ;;  %v14438_v29 = vmul.f32 %v14312_v63, %v16646_v10  ;;  %v5139_v58 = vmax.f32 %v5075_v35, 0.0  ;;  %v16652_v53 = vsub.f32 %v13828_v16, %v14188_v27 }
 0x676   :  { %v14444_v50 = vmul.f32 %v14312_v63, %v16648_v15  ;;  %v14450_v28 = vmul.f32 %v14312_v63, %v16650_v43  ;;  %v16654_v9 = vsub.f32 %v13836_v5, %v14188_v27  ;;  %v16656_v32 = vsub.f32 %v13849_v33, %v14188_v27 }
 0x677   :  { %16647 = vst [vmem:[#allocation15_spill] sm:$0xff] %v14438_v29  ;;  %v14456_v10 = vmul.f32 %v14312_v63, %v16652_v53  ;;  %v16658_v60 = vsub.f32 %v13854_v47, %v14188_v27  ;;  %v16660_v35 = vsub.f32 %v13867_v46, %v14188_v27  ;;  %v16662_v53 = vsub.f32 %v13873_v30, %v14188_v27  ;;  %v16708_v29 = vld [vmem:[#allocation14_spill] sm:$0xff] }
 0x678   :  { %16649 = vst [vmem:[#allocation21_spill] sm:$0xff] %v14444_v50  ;;  %16651 = vst [vmem:[#allocation22_spill] sm:$0xff] %v14450_v28  ;;  %v14462_v15 = vmul.f32 %v14312_v63, %v16654_v9  ;;  %v14468_v43 = vmul.f32 %v14312_v63, %v16656_v32  ;;  %v14488_v9 = vpack.c.bf16 %v5139_v58, %v5138_v41  ;;  %v16704_v28 = vld [vmem:[#allocation32_spill] sm:$0xff]  ;;  %v16706_v50 = vld [vmem:[#allocation33_spill] sm:$0xff] }
 0x679   :  { %16653 = vst [vmem:[#allocation23_spill] sm:$0xff] %v14456_v10  ;;  %v14474_v16 = vmul.f32 %v14312_v63, %v16658_v60  ;;  %v14480_v5 = vmul.f32 %v14312_v63, %v16660_v35  ;;  %v14486_v33 = vmul.f32 %v14312_v63, %v16662_v53  ;;  %v16665_v47 = vsub.f32 %v13886_v40, %v14188_v27  ;;  %v16702_v10 = vld [vmem:[#allocation26_spill] sm:$0xff] }
 0x67a   :  { %16655 = vst [vmem:[#allocation27_spill] sm:$0xff] %v14462_v15  ;;  %16657 = vst [vmem:[#allocation28_spill] sm:$0xff] %v14468_v43  ;;  %v16666_v60 = vsub.f32 %v13894_v56, %v14188_v27  ;;  %v4898_v35 = vmul.f32 %v14312_v63, %v4832_v62  ;;  %v4899_v8 = vmul.f32 %v14312_v63, %v4833_v2  ;;  %v16698_v43 = vld [vmem:[#allocation24_spill] sm:$0xff]  ;;  %v16700_v15 = vld [vmem:[#allocation25_spill] sm:$0xff] }
 0x67b   :  { %16659 = vst [vmem:[#allocation29_spill] sm:$0xff] %v14474_v16  ;;  %16661 = vst [vmem:[#allocation30_spill] sm:$0xff] %v14480_v5  ;;  %v4896_v32 = vmul.f32 %v14312_v63, %v16665_v47  ;;  %v4900_v30 = vmul.f32 %v14312_v63, %v4834_v55  ;;  %v4901_v53 = vmul.f32 %v14312_v63, %v4835_v14  ;;  %v16694_v5 = vld [vmem:[#allocation11_spill] sm:$0xff]  ;;  %v16696_v16 = vld [vmem:[#allocation12_spill] sm:$0xff] }
 0x67c   :  { %16663 = vst [vmem:[#allocation6_spill] sm:$0xff] %v14486_v33  ;;  %16664 = vst [vmem:[#allocation16_spill] sm:$0xff] %v14488_v9  ;;  %v4897_v46 = vmul.f32 %v14312_v63, %v16666_v60  ;;  %v4902_v41 = vmul.f32 %v14312_v63, %v4836_v57  ;;  %v4903_v58 = vmul.f32 %v14312_v63, %v4837_v6  ;;  %v16690_v9 = vld [vmem:[#allocation9_spill] sm:$0xff]  ;;  %v16692_v33 = vld [vmem:[#allocation10_spill] sm:$0xff] }
 0x67d   :  { %v16667_v40 = vsub.f32 %v13957_v38, %v14188_v27  ;;  %v16668_v56 = vsub.f32 %v13963_v42, %v14188_v27  ;;  %v16669_v2 = vsub.f32 %v13972_v31, %v14188_v27  ;;  %v16670_v14 = vsub.f32 %v13977_v49, %v14188_v27 }
 0x67e   :  { %v16671_v38 = vsub.f32 %v13986_v7, %v14188_v27  ;;  %v16672_v42 = vsub.f32 %v13991_v12, %v14188_v27  ;;  %v16673_v31 = vsub.f32 %v14000_v26, %v14188_v27  ;;  %v16674_v49 = vsub.f32 %v14005_v61, %v14188_v27 }
 0x67f   :  { %v4904_v47 = vmul.f32 %v14312_v63, %v16667_v40  ;;  %v4905_v62 = vmul.f32 %v14312_v63, %v16668_v56  ;;  %v4906_v55 = vmul.f32 %v14312_v63, %v16669_v2  ;;  %v4907_v6 = vmul.f32 %v14312_v63, %v16670_v14 }
 0x680   :  { %v4908_v57 = vmul.f32 %v14312_v63, %v16671_v38  ;;  %v4909_v60 = vmul.f32 %v14312_v63, %v16672_v42  ;;  %v4910_v40 = vmul.f32 %v14312_v63, %v16673_v31  ;;  %v4911_v56 = vmul.f32 %v14312_v63, %v16674_v49 }
 0x681   :  { %v16675_v7 = vsub.f32 %v14014_v20, %v14188_v27  ;;  %v16676_v12 = vsub.f32 %v14019_v51, %v14188_v27  ;;  %v16677_v26 = vsub.f32 %v14028_v3, %v14188_v27  ;;  %v16678_v61 = vsub.f32 %v14033_v25, %v14188_v27 }
 0x682   :  { %v16679_v20 = vsub.f32 %v16603_v59, %v14188_v27  ;;  %v16680_v51 = vsub.f32 %v16604_v34, %v14188_v27  ;;  %v16681_v3 = vsub.f32 %v16605_v17, %v14188_v27  ;;  %v16682_v25 = vsub.f32 %v16606_v18, %v14188_v27 }
 0x683   :  { %v4912_v2 = vmul.f32 %v14312_v63, %v16675_v7  ;;  %v4913_v14 = vmul.f32 %v14312_v63, %v16676_v12  ;;  %v4914_v38 = vmul.f32 %v14312_v63, %v16677_v26  ;;  %v4915_v42 = vmul.f32 %v14312_v63, %v16678_v61 }
 0x684   :  { %v4916_v31 = vmul.f32 %v14312_v63, %v16679_v20  ;;  %v4917_v49 = vmul.f32 %v14312_v63, %v16680_v51  ;;  %v4918_v7 = vmul.f32 %v14312_v63, %v16681_v3  ;;  %v4919_v12 = vmul.f32 %v14312_v63, %v16682_v25  ;;  %v16686_v51 = vld [vmem:[#allocation31_spill] sm:$0xff]  ;;  %v16688_v25 = vld [vmem:[#allocation8_spill] sm:$0xff] }
 0x685   :  { %v16683_v59 = vsub.f32 %v16607_v24, %v14188_v27  ;;  %v16684_v34 = vsub.f32 %v16608_v11, %v14188_v27  ;;  %v16685_v17 = vsub.f32 %v16609_v39, %v14188_v27  ;;  %v16687_v18 = vsub.f32 %v16686_v51, %v14188_v27 }
 0x686   :  { %v16689_v24 = vsub.f32 %v16688_v25, %v14188_v27  ;;  %v16691_v11 = vsub.f32 %v16690_v9, %v14188_v27  ;;  %v16693_v39 = vsub.f32 %v16692_v33, %v14188_v27  ;;  %v16695_v51 = vsub.f32 %v16694_v5, %v14188_v27 }
 0x687   :  { %v4920_v26 = vmul.f32 %v14312_v63, %v16683_v59  ;;  %v4921_v61 = vmul.f32 %v14312_v63, %v16684_v34  ;;  %v4922_v20 = vmul.f32 %v14312_v63, %v16685_v17  ;;  %v4923_v3 = vmul.f32 %v14312_v63, %v16687_v18 }
 0x688   :  { %v4924_v59 = vmul.f32 %v14312_v63, %v16689_v24  ;;  %v4925_v34 = vmul.f32 %v14312_v63, %v16691_v11  ;;  %v4926_v17 = vmul.f32 %v14312_v63, %v16693_v39  ;;  %v4927_v18 = vmul.f32 %v14312_v63, %v16695_v51 }
 0x689   :  { %v16697_v25 = vsub.f32 %v16696_v16, %v14188_v27  ;;  %v16699_v9 = vsub.f32 %v16698_v43, %v14188_v27  ;;  %v16701_v33 = vsub.f32 %v16700_v15, %v14188_v27  ;;  %v16703_v5 = vsub.f32 %v16702_v10, %v14188_v27 }
 0x68a   :  { %v16705_v16 = vsub.f32 %v16704_v28, %v14188_v27  ;;  %v16707_v43 = vsub.f32 %v16706_v50, %v14188_v27  ;;  %v4942_v15 = vmul.f32 %v14317_v48, %v14339_v0  ;;  %v4944_v10 = vmul.f32 %v14317_v48, %v16708_v29  ;;  %v16712_v29 = vld [vmem:[#allocation21_spill] sm:$0xff]  ;;  %v16714_v50 = vld [vmem:[#allocation22_spill] sm:$0xff] }
 0x68b   :  { %v4928_v24 = vmul.f32 %v14312_v63, %v16697_v25  ;;  %v4929_v11 = vmul.f32 %v14312_v63, %v16699_v9  ;;  %v4930_v39 = vmul.f32 %v14312_v63, %v16701_v33  ;;  %v4931_v51 = vmul.f32 %v14312_v63, %v16703_v5 }
 0x68c   :  { %v4932_v25 = vmul.f32 %v14312_v63, %v16705_v16  ;;  %v4933_v9 = vmul.f32 %v14312_v63, %v16707_v43  ;;  %v4943_v33 = vmul.f32 %v14317_v48, %v14345_v4  ;;  %v4945_v5 = vmul.f32 %v14317_v48, %v14362_v1  ;;  %v16716_v16 = vld [vmem:[#allocation23_spill] sm:$0xff] }
 0x68d   :  { %v14634_v28 = vmul.f32 %v14317_v48, %v14368_v19  ;;  %v14638_v27 = vmul.f32 %v14317_v48, %v14374_v45  ;;  %v14642_v63 = vmul.f32 %v14317_v48, %v14382_v54  ;;  %v14646_v0 = vmul.f32 %v14317_v48, %v14388_v13  ;;  %v16718_v43 = vld [vmem:[#allocation27_spill] sm:$0xff] }
 0x68e   :  { %v14650_v4 = vmul.f32 %v14317_v48, %v14394_v44  ;;  %v14654_v1 = vmul.f32 %v14317_v48, %v14400_v52  ;;  %v14658_v19 = vmul.f32 %v14317_v48, %v14406_v22  ;;  %v14662_v45 = vmul.f32 %v14317_v48, %v14412_v36  ;;  %v16710_v52 = vld [vmem:[#allocation15_spill] sm:$0xff] }
 0x68f   :  { %v14666_v54 = vmul.f32 %v14317_v48, %v14420_v21  ;;  %v14670_v13 = vmul.f32 %v14317_v48, %v14426_v37  ;;  %v14674_v44 = vmul.f32 %v14317_v48, %v14432_v23  ;;  %v14678_v22 = vmul.f32 %v14317_v48, %v16710_v52 }
 0x690   :  { %v14682_v36 = vmul.f32 %v14317_v48, %v16712_v29  ;;  %v14686_v21 = vmul.f32 %v14317_v48, %v16714_v50  ;;  %v14690_v37 = vmul.f32 %v14317_v48, %v16716_v16  ;;  %v14694_v23 = vmul.f32 %v14317_v48, %v16718_v43 }
 0x691   :  { %16709 = vst [vmem:[#allocation17_spill] sm:$0xff] %v14674_v44  ;;  %16711 = vst [vmem:[#allocation18_spill] sm:$0xff] %v14678_v22  ;;  %v16719_v44 = vld [vmem:[#allocation28_spill] sm:$0xff]  ;;  %v16720_v22 = vld [vmem:[#allocation29_spill] sm:$0xff]  ;;  %v14716_v43 = vmul.f32 %v14317_v48, %v4897_v46  ;;  %v4974_v46 = vmul.f32 %v14317_v48, %v4904_v47  ;;  %v4984_v47 = vmul.f32 %v14317_v48, %v4914_v38 }
 0x692   :  { %16713 = vst [vmem:[#allocation19_spill] sm:$0xff] %v14682_v36  ;;  %16715 = vst [vmem:[#allocation20_spill] sm:$0xff] %v14686_v21  ;;  %v14698_v52 = vmul.f32 %v14317_v48, %v16719_v44  ;;  %v14702_v29 = vmul.f32 %v14317_v48, %v16720_v22  ;;  %v16722_v36 = vld [vmem:[#allocation30_spill] sm:$0xff]  ;;  %v14719_v44 = vmul.f32 %v14317_v48, %v4898_v35 }
 0x693   :  { %16717 = vst [vmem:[#allocation31_spill] sm:$0xff] %v14690_v37  ;;  %v14706_v50 = vmul.f32 %v14317_v48, %v16722_v36  ;;  %v16723_v21 = vld [vmem:[#allocation6_spill] sm:$0xff]  ;;  %v14713_v37 = vmul.f32 %v14317_v48, %v4896_v32  ;;  %v14722_v22 = vmul.f32 %v14317_v48, %v4899_v8  ;;  %v14728_v36 = vmul.f32 %v14317_v48, %v4901_v53 }
 0x694   :  { %16721 = vst [vmem:[#allocation8_spill] sm:$0xff] %v14702_v29  ;;  %v14710_v16 = vmul.f32 %v14317_v48, %v16723_v21  ;;  %16724 = vst [vmem:[#allocation9_spill] sm:$0xff] %v14719_v44  ;;  %v14725_v29 = vmul.f32 %v14317_v48, %v4900_v30  ;;  %v14731_v21 = vmul.f32 %v14317_v48, %v4902_v41 }
 0x695   :  { %v14734_v32 = vmul.f32 %v14317_v48, %v4903_v58  ;;  %v4975_v35 = vmul.f32 %v14317_v48, %v4905_v62  ;;  %v4976_v44 = vmul.f32 %v14317_v48, %v4906_v55  ;;  %v4977_v8 = vmul.f32 %v14317_v48, %v4907_v6 }
 0x696   :  { %16725 = vst [vmem:[#allocation10_spill] sm:$0xff] %v14725_v29  ;;  %16726 = vst [vmem:[#allocation11_spill] sm:$0xff] %v14731_v21  ;;  %v4978_v30 = vmul.f32 %v14317_v48, %v4908_v57  ;;  %v4979_v29 = vmul.f32 %v14317_v48, %v4909_v60  ;;  %v4980_v53 = vmul.f32 %v14317_v48, %v4910_v40 }
 0x697   :  { %16727 = vst [vmem:[#allocation12_spill] sm:$0xff] %v14734_v32  ;;  %v4981_v41 = vmul.f32 %v14317_v48, %v4911_v56  ;;  %v4982_v21 = vmul.f32 %v14317_v48, %v4912_v2  ;;  %v4983_v58 = vmul.f32 %v14317_v48, %v4913_v14  ;;  %v4985_v62 = vmul.f32 %v14317_v48, %v4915_v42  ;;  %v16728_v32 = vld [vmem:[#allocation13_spill] sm:$0xff] }
 0x698   :  { %v4986_v55 = vmul.f32 %v14317_v48, %v4916_v31  ;;  %v4987_v6 = vmul.f32 %v14317_v48, %v4917_v49  ;;  %v4988_v57 = vmul.f32 %v14317_v48, %v4918_v7  ;;  %v4989_v60 = vmul.f32 %v14317_v48, %v4919_v12 }
 0x699   :  { %v4990_v40 = vmul.f32 %v14317_v48, %v4920_v26  ;;  %v4991_v56 = vmul.f32 %v14317_v48, %v4921_v61  ;;  %v4992_v2 = vmul.f32 %v14317_v48, %v4922_v20  ;;  %v4993_v14 = vmul.f32 %v14317_v48, %v4923_v3 }
 0x69a   :  { %v4994_v38 = vmul.f32 %v14317_v48, %v4924_v59  ;;  %v4995_v42 = vmul.f32 %v14317_v48, %v4925_v34  ;;  %v4996_v31 = vmul.f32 %v14317_v48, %v4926_v17  ;;  %v4997_v49 = vmul.f32 %v14317_v48, %v4927_v18 }
 0x69b   :  { %v4998_v7 = vmul.f32 %v14317_v48, %v4928_v24  ;;  %v4999_v12 = vmul.f32 %v14317_v48, %v4929_v11  ;;  %v5000_v26 = vmul.f32 %v14317_v48, %v4930_v39  ;;  %v5001_v61 = vmul.f32 %v14317_v48, %v4931_v51 }
 0x69c   :  { %v5002_v20 = vmul.f32 %v14317_v48, %v4932_v25  ;;  %v5003_v3 = vmul.f32 %v14317_v48, %v4933_v9  ;;  %v5012_v59 = vadd.f32 %v16728_v32, %v4942_v15  ;;  %v5013_v34 = vadd.f32 %v16728_v32, %v4943_v33 }
 0x69d   :  { %v5014_v17 = vadd.f32 %v16728_v32, %v4944_v10  ;;  %v5015_v18 = vadd.f32 %v16728_v32, %v4945_v5  ;;  %v14771_v24 = vadd.f32 %v16728_v32, %v4974_v46  ;;  %v14774_v11 = vadd.f32 %v16728_v32, %v4975_v35 }
 0x69e   :  { %v14777_v39 = vadd.f32 %v16728_v32, %v4976_v44  ;;  %v14780_v51 = vadd.f32 %v16728_v32, %v4977_v8  ;;  %v14783_v48 = vadd.f32 %v16728_v32, %v4978_v30  ;;  %v14786_v25 = vadd.f32 %v16728_v32, %v4979_v29 }
 0x69f   :  { %v14789_v9 = vadd.f32 %v16728_v32, %v4980_v53  ;;  %v14792_v15 = vadd.f32 %v16728_v32, %v4981_v41  ;;  %v14795_v33 = vadd.f32 %v16728_v32, %v4982_v21  ;;  %v14798_v10 = vadd.f32 %v16728_v32, %v4983_v58 }
 0x6a0   :  { %v14801_v5 = vadd.f32 %v16728_v32, %v4984_v47  ;;  %v14804_v44 = vadd.f32 %v16728_v32, %v4985_v62  ;;  %v14807_v29 = vadd.f32 %v16728_v32, %v4986_v55  ;;  %v14810_v46 = vadd.f32 %v16728_v32, %v4987_v6 }
 0x6a1   :  { %v14813_v35 = vadd.f32 %v16728_v32, %v4988_v57  ;;  %v14816_v21 = vadd.f32 %v16728_v32, %v4989_v60  ;;  %v14819_v8 = vadd.f32 %v16728_v32, %v4990_v40  ;;  %v14822_v30 = vadd.f32 %v16728_v32, %v4991_v56 }
 0x6a2   :  { %v14825_v53 = vadd.f32 %v16728_v32, %v4992_v2  ;;  %v14828_v41 = vadd.f32 %v16728_v32, %v4993_v14  ;;  %v14831_v58 = vadd.f32 %v16728_v32, %v4994_v38  ;;  %v14834_v47 = vadd.f32 %v16728_v32, %v4995_v42 }
 0x6a3   :  { %v5066_v62 = vadd.f32 %v16728_v32, %v4996_v31  ;;  %v5067_v55 = vadd.f32 %v16728_v32, %v4997_v49  ;;  %v14839_v6 = vadd.f32 %v16728_v32, %v4998_v7  ;;  %v14842_v57 = vadd.f32 %v16728_v32, %v4999_v12 }
 0x6a4   :  { %16729 = vst [vmem:[#allocation24_spill] sm:$0xff] %v14834_v47  ;;  %v5070_v60 = vadd.f32 %v16728_v32, %v5000_v26  ;;  %v5071_v40 = vadd.f32 %v16728_v32, %v5001_v61  ;;  %v14847_v56 = vadd.f32 %v16728_v32, %v5002_v20  ;;  %v14850_v2 = vadd.f32 %v16728_v32, %v5003_v3 }
 0x6a5   :  { %16730 = vst [vmem:[#allocation25_spill] sm:$0xff] %v14839_v6  ;;  %16731 = vst [vmem:[#allocation26_spill] sm:$0xff] %v14842_v57  ;;  %v5076_v14 = vmax.f32 %v5012_v59, 0.0  ;;  %v5077_v38 = vmax.f32 %v5013_v34, 0.0  ;;  %v5078_v42 = vmax.f32 %v5014_v17, 0.0  ;;  %v5079_v31 = vmax.f32 %v5015_v18, 0.0 }
 0x6a6   :  { %v5130_v49 = vmax.f32 %v5066_v62, 0.0  ;;  %v5131_v7 = vmax.f32 %v5067_v55, 0.0  ;;  %v5134_v6 = vmax.f32 %v5070_v60, 0.0  ;;  %v5135_v47 = vmax.f32 %v5071_v40, 0.0  ;;  %v16732_v60 = vld [vmem:[#allocation7_spill] sm:$0xff] }
 0x6a7   :  { %v5016_v12 = vadd.f32 %v16728_v32, %v14634_v28  ;;  %v5140_v26 = vpack.c.bf16 %v5077_v38, %v5076_v14  ;;  %v5141_v57 = vpack.c.bf16 %v5079_v31, %v5078_v42  ;;  %v5017_v61 = vadd.f32 %v16728_v32, %v14638_v27  ;;  %v10186_v28 = vld [vmem:[%s16219_s10 + $0x8] sm:$0xff]  }
 0x6a8   :  { %v5018_v20 = vadd.f32 %v16728_v32, %v14642_v63  ;;  %v14858_v3 = vpack.c.bf16 %v5131_v7, %v5130_v49  ;;  %v14860_v59 = vpack.c.bf16 %v5135_v47, %v5134_v6  ;;  %v5019_v17 = vadd.f32 %v16728_v32, %v14646_v0  ;;  %v16733_v49 = vld [vmem:[#allocation17_spill] sm:$0xff] }
 0x6a9   :  { %v5080_v34 = vmax.f32 %v5016_v12, 0.0  ;;  %9381 = vmatprep.mubr.msk.bf16.mxu0 %vm4408_vm5, %v5140_v26  ;;  %v5081_v18 = vmax.f32 %v5017_v61, 0.0  ;;  %v5020_v27 = vadd.f32 %v16728_v32, %v14650_v4  ;;  %v5021_v63 = vadd.f32 %v16728_v32, %v14654_v1  ;;  %v16734_v12 = vld [vmem:[#allocation18_spill] sm:$0xff]  ;;  %v16735_v61 = vld [vmem:[#allocation19_spill] sm:$0xff] }
 0x6aa   :  { %v5082_v62 = vmax.f32 %v5018_v20, 0.0  ;;  %9382 = vmatmul.mubr.msk.bf16.vlgmr.msra.gmra.mrb[204].mxu0 %vm4408_vm5, %v5141_v57  ;;  %v5083_v47 = vmax.f32 %v5019_v17, 0.0  ;;  %v5022_v0 = vadd.f32 %v16728_v32, %v14658_v19  ;;  %v5023_v55 = vadd.f32 %v16728_v32, %v14662_v45  ;;  %v10187_v19 = vld [vmem:[%s16219_s10 + $0x10] sm:$0xff]  }
 0x6ab   :  { %v5024_v6 = vadd.f32 %v16728_v32, %v14666_v54  ;;  %9446 = vmatpush3.bf16.msra.mxu0 %v16732_v60  ;;  %v5142_v40 = vpack.c.bf16 %v5081_v18, %v5080_v34  ;;  %v5084_v14 = vmax.f32 %v5020_v27, 0.0  ;;  %v5085_v4 = vmax.f32 %v5021_v63, 0.0  ;;  %v16736_v34 = vld [vmem:[#allocation20_spill] sm:$0xff]  ;;  %v16737_v18 = vld [vmem:[#allocation31_spill] sm:$0xff] }
 0x6ac   :  { %v5025_v1 = vadd.f32 %v16728_v32, %v14670_v13  ;;  %v5143_v38 = vpack.c.bf16 %v5083_v47, %v5082_v62  ;;  %v5086_v57 = vmax.f32 %v5022_v0, 0.0  ;;  %v5087_v42 = vmax.f32 %v5023_v55, 0.0  ;;  %9447 = vmatprep.subr.bf16.mxu0 %v10186_v28 }
 0x6ad   :  { %v5088_v31 = vmax.f32 %v5024_v6, 0.0  ;;  %9385 = vmatprep.mubr.msk.bf16.mxu0 %vm4408_vm5, %v5142_v40  ;;  %v5144_v45 = vpack.c.bf16 %v5085_v4, %v5084_v14  ;;  %v5026_v7 = vadd.f32 %v16728_v32, %v16733_v49  ;;  %v5027_v26 = vadd.f32 %v16728_v32, %v16734_v12  ;;  %v10188_v14 = vld [vmem:[%s16219_s10 + $0x18] sm:$0xff]   ;;  %s15120_s10 = smov 0  }
 0x6ae   :  { %v5089_v54 = vmax.f32 %v5025_v1, 0.0  ;;  %v5145_v13 = vpack.c.bf16 %v5087_v42, %v5086_v57  ;;  %v5028_v20 = vadd.f32 %v16728_v32, %v16735_v61  ;;  %v5029_v17 = vadd.f32 %v16728_v32, %v16736_v34  ;;  %v16738_v57 = vld [vmem:[#allocation8_spill] sm:$0xff]  ;;  %v16739_v61 = vld [vmem:[#allocation9_spill] sm:$0xff] }
 0x6af   :  { %v5030_v62 = vadd.f32 %v16728_v32, %v16737_v18  ;;  %v5090_v63 = vmax.f32 %v5026_v7, 0.0  ;;  %v5091_v47 = vmax.f32 %v5027_v26, 0.0  ;;  %v5031_v0 = vadd.f32 %v16728_v32, %v14694_v23  ;;  %9448 = vmatpush3.bf16.msra.mxu0 %v10186_v28 }
 0x6b0   :  { %v5146_v27 = vpack.c.bf16 %v5089_v54, %v5088_v31  ;;  %v5092_v55 = vmax.f32 %v5028_v20, 0.0  ;;  %v5093_v6 = vmax.f32 %v5029_v17, 0.0  ;;  %v5032_v40 = vadd.f32 %v16728_v32, %v14698_v52  ;;  %9449 = vmatprep.subr.bf16.mxu0 %v10187_v19 }
 0x6b1   :  { %v5094_v60 = vmax.f32 %v5030_v62, 0.0  ;;  %v14903_v4 = vpack.c.bf16 %v5091_v47, %v5090_v63  ;;  %v5095_v1 = vmax.f32 %v5031_v0, 0.0  ;;  %v5033_v42 = vadd.f32 %v16728_v32, %v16738_v57  ;;  %v16741_v63 = vld [vmem:[#allocation11_spill] sm:$0xff] }
 0x6b2   :  { %v5034_v23 = vadd.f32 %v16728_v32, %v14706_v50  ;;  %9386 = vmatmul.mubr.msk.bf16.gmra.mrb[208].mxu0 %vm4408_vm5, %v5143_v38  ;;  %v14910_v28 = vpack.c.bf16 %v5093_v6, %v5092_v55  ;;  %v5096_v31 = vmax.f32 %v5032_v40, 0.0  ;;  %v5035_v52 = vadd.f32 %v16728_v32, %v14710_v16 }
 0x6b3   :  { %v5036_v54 = vadd.f32 %v16728_v32, %v14713_v37  ;;  %9389 = vmatprep.mubr.msk.bf16.mxu0 %vm4408_vm5, %v5144_v45  ;;  %v14917_v49 = vpack.c.bf16 %v5095_v1, %v5094_v60  ;;  %v5097_v7 = vmax.f32 %v5033_v42, 0.0  ;;  %v5037_v50 = vadd.f32 %v16728_v32, %v14716_v43  ;;  %9450 = vmatpush3.bf16.msra.mxu0 %v10187_v19  ;;  %v16740_v45 = vld [vmem:[#allocation10_spill] sm:$0xff]  ;;  %v16742_v60 = vld [vmem:[#allocation12_spill] sm:$0xff] }
 0x6b4   :  { %v5098_v12 = vmax.f32 %v5034_v23, 0.0  ;;  %v5099_v38 = vmax.f32 %v5035_v52, 0.0  ;;  %v5038_v20 = vadd.f32 %v16728_v32, %v16739_v61  ;;  %v5039_v16 = vadd.f32 %v16728_v32, %v14722_v22  ;;  %9451 = vmatprep.subr.bf16.mxu0 %v10188_v14 }
 0x6b5   :  { %v5100_v26 = vmax.f32 %v5036_v54, 0.0  ;;  %v5150_v37 = vpack.c.bf16 %v5097_v7, %v5096_v31  ;;  %v5101_v34 = vmax.f32 %v5037_v50, 0.0  ;;  %v5040_v17 = vadd.f32 %v16728_v32, %v16740_v45  ;;  %v16744_v45 = vld [vmem:[#allocation25_spill] sm:$0xff] }
 0x6b6   :  { %v5041_v18 = vadd.f32 %v16728_v32, %v14728_v36  ;;  %v5151_v62 = vpack.c.bf16 %v5099_v38, %v5098_v12  ;;  %v5102_v43 = vmax.f32 %v5038_v20, 0.0  ;;  %v5103_v19 = vmax.f32 %v5039_v16, 0.0 }
 0x6b7   :  { %v5042_v47 = vadd.f32 %v16728_v32, %v16741_v63  ;;  %v5152_v0 = vpack.c.bf16 %v5101_v34, %v5100_v26  ;;  %v5104_v55 = vmax.f32 %v5040_v17, 0.0  ;;  %v5043_v22 = vadd.f32 %v16728_v32, %v16742_v60  ;;  %9452 = vmatpush3.bf16.msra.mxu0 %v10188_v14  ;;  %v16743_v34 = vld [vmem:[#allocation24_spill] sm:$0xff] }
 0x6b8   :  { %v5105_v6 = vmax.f32 %v5041_v18, 0.0  ;;  %v5153_v40 = vpack.c.bf16 %v5103_v19, %v5102_v43  ;;  %v5108_v57 = vmax.f32 %v14771_v24, 0.0  ;;  %v5109_v42 = vmax.f32 %v14774_v11, 0.0  ;;  %v16745_v43 = vld [vmem:[#allocation26_spill] sm:$0xff]  ;;  %v10197_v19 = vld [vmem:[#allocation2 + $0x18] sm:$0xff] }
 0x6b9   :  { %v5106_v1 = vmax.f32 %v5042_v47, 0.0  ;;  %v5107_v23 = vmax.f32 %v5043_v22, 0.0  ;;  %v5110_v31 = vmax.f32 %v14777_v39, 0.0  ;;  %v5111_v52 = vmax.f32 %v14780_v51, 0.0  ;;  %v5708_v47 = vld [vmem:[#allocation2 + $0x38] sm:$0xff]  ;;  %v5711_v22 = vld [vmem:[#allocation2 + $0x50] sm:$0xff] }
 0x6ba   :  { %v5154_v36 = vpack.c.bf16 %v5105_v6, %v5104_v55  ;;  %9390 = vmatmul.mubr.msk.bf16.gmra.mrb[212].mxu0 %vm4408_vm5, %v5145_v13  ;;  %v5156_v54 = vpack.c.bf16 %v5109_v42, %v5108_v57  ;;  %v5112_v7 = vmax.f32 %v14783_v48, 0.0  ;;  %v5113_v32 = vmax.f32 %v14786_v25, 0.0  ;;  %v5710_v55 = vld [vmem:[#allocation2 + $0x48] sm:$0xff] }
 0x6bb   :  { %v5114_v14 = vmax.f32 %v14789_v9, 0.0  ;;  %9393 = vmatprep.mubr.msk.bf16.mxu0 %vm4408_vm5, %v5146_v27  ;;  %v5155_v24 = vpack.c.bf16 %v5107_v23, %v5106_v1  ;;  %v5157_v12 = vpack.c.bf16 %v5111_v52, %v5110_v31  ;;  %v5115_v11 = vmax.f32 %v14792_v15, 0.0  ;;  %v5713_v1 = vld [vmem:[#allocation2 + $0x60] sm:$0xff]  ;;  %v5714_v57 = vld [vmem:[#allocation2 + $0x68] sm:$0xff]  ;;  %v5715_v23 = vld [vmem:[#allocation2 + $0x70] sm:$0xff] }
 0x6bc   :  { %v5116_v50 = vmax.f32 %v14795_v33, 0.0  ;;  %v5158_v39 = vpack.c.bf16 %v5113_v32, %v5112_v7  ;;  %v5117_v51 = vmax.f32 %v14798_v10, 0.0  ;;  %v5118_v13 = vmax.f32 %v14801_v5, 0.0  ;;  %v5716_v31 = vld [vmem:[#allocation2 + $0x78] sm:$0xff]  ;;  %v5717_v52 = vld [vmem:[#allocation2 + $0x80] sm:$0xff] }
 0x6bd   :  { %v5119_v38 = vmax.f32 %v14804_v44, 0.0  ;;  %v5159_v48 = vpack.c.bf16 %v5115_v11, %v5114_v14  ;;  %v5120_v25 = vmax.f32 %v14807_v29, 0.0  ;;  %v5121_v9 = vmax.f32 %v14810_v46, 0.0  ;;  %v5719_v14 = vld [vmem:[#allocation2 + $0x90] sm:$0xff]  ;;  %v5722_v11 = vld [vmem:[#allocation2 + $0xa8] sm:$0xff] }
 0x6be   :  { %v5122_v27 = vmax.f32 %v14813_v35, 0.0  ;;  %v5160_v26 = vpack.c.bf16 %v5117_v51, %v5116_v50  ;;  %v5123_v15 = vmax.f32 %v14816_v21, 0.0  ;;  %v5124_v33 = vmax.f32 %v14819_v8, 0.0  ;;  %v5723_v51 = vld [vmem:[#allocation2 + $0xb0] sm:$0xff] }
 0x6bf   :  { %v5161_v61 = vpack.c.bf16 %v5119_v38, %v5118_v13  ;;  %v5162_v20 = vpack.c.bf16 %v5121_v9, %v5120_v25  ;;  %v5125_v10 = vmax.f32 %v14822_v30, 0.0  ;;  %v5126_v5 = vmax.f32 %v14825_v53, 0.0  ;;  %v5724_v13 = vld [vmem:[#allocation2 + $0xb8] sm:$0xff]  ;;  %v5725_v38 = vld [vmem:[#allocation2 + $0xc0] sm:$0xff] }
 0x6c0   :  { %v5127_v44 = vmax.f32 %v14828_v41, 0.0  ;;  %v5163_v16 = vpack.c.bf16 %v5123_v15, %v5122_v27  ;;  %v5128_v29 = vmax.f32 %v14831_v58, 0.0  ;;  %v5129_v46 = vmax.f32 %v16743_v34, 0.0  ;;  %v5727_v27 = vld [vmem:[#allocation2 + $0xd0] sm:$0xff]  ;;  %v5730_v15 = vld [vmem:[#allocation2 + $0xe8] sm:$0xff] }
 0x6c1   :  { %v5132_v35 = vmax.f32 %v16744_v45, 0.0  ;;  %v5164_v17 = vpack.c.bf16 %v5125_v10, %v5124_v33  ;;  %v5133_v21 = vmax.f32 %v16745_v43, 0.0  ;;  %v5136_v8 = vmax.f32 %v14847_v56, 0.0  ;;  %v5701_v56 = vld [vmem:[#allocation2] sm:$0xff]  ;;  %v5731_v10 = vld [vmem:[#allocation2 + $0xf0] sm:$0xff]  ;;  %v5736_v45 = vld [vmem:[#allocation2 + $0x118] sm:$0xff] }
 0x6c2   :  { %v5165_v18 = vpack.c.bf16 %v5127_v44, %v5126_v5  ;;  %9394 = vmatmul.mubr.msk.bf16.gmra.mrb[216].mxu0 %vm4408_vm5, %v14903_v4  ;;  %v5166_v30 = vpack.c.bf16 %v5129_v46, %v5128_v29  ;;  %v5137_v53 = vmax.f32 %v14850_v2, 0.0  ;;  %v5702_v2 = vld [vmem:[#allocation2 + $0x8] sm:$0xff]  ;;  %v5772_v7 = vpack.c.bf16 %v5716_v31, %v5715_v23  ;;  %v5732_v5 = vld [vmem:[#allocation2 + $0xf8] sm:$0xff]  ;;  %v5733_v44 = vld [vmem:[#allocation2 + $0x100] sm:$0xff] }
 0x6c3   :  { %9397 = vmatprep.mubr.msk.bf16.mxu0 %vm4408_vm5, %v14910_v28  ;;  %v5168_v41 = vpack.c.bf16 %v5133_v21, %v5132_v35  ;;  %v5765_v4 = vpack.c.bf16 %v5702_v2, %v5701_v56  ;;  %v16746_v28 = vld [vmem:[#allocation16_spill] sm:$0xff]  ;;  %v5776_v25 = vpack.c.bf16 %v5724_v13, %v5723_v51  ;;  %v5780_v29 = vpack.c.bf16 %v5732_v5, %v5731_v10  ;;  %v5735_v46 = vld [vmem:[#allocation2 + $0x110] sm:$0xff]  ;;  %v5737_v35 = vld [vmem:[#allocation2 + $0x120] sm:$0xff] }
 0x6c4   :  { %v5170_v58 = vpack.c.bf16 %v5137_v53, %v5136_v8  ;;  %v5739_v21 = vld [vmem:[#allocation2 + $0x130] sm:$0xff]  ;;  %v5740_v8 = vld [vmem:[#allocation2 + $0x138] sm:$0xff]  ;;  %v5742_v53 = vld [vmem:[#allocation2 + $0x148] sm:$0xff] }
 0x6c5   :  { %v5743_v56 = vld [vmem:[#allocation2 + $0x150] sm:$0xff]  ;;  %v5744_v2 = vld [vmem:[#allocation2 + $0x158] sm:$0xff] }
 0x6c6   :  { %v5751_v31 = vld [vmem:[#allocation2 + $0x190] sm:$0xff] }
 0x6ca   :  { %9398 = vmatmul.mubr.msk.bf16.gmra.mrb[220].mxu0 %vm4408_vm5, %v14917_v49  ;;  %v5705_v49 = vld [vmem:[#allocation2 + $0x20] sm:$0xff] }
 0x6cb   :  { %9401 = vmatprep.mubr.msk.bf16.mxu0 %vm4408_vm5, %v5150_v37  ;;  %v5706_v37 = vld [vmem:[#allocation2 + $0x28] sm:$0xff] }
 0x6cc   :  { %v5767_v63 = vpack.c.bf16 %v5706_v37, %v5705_v49  ;;  %v5786_v49 = vpack.c.bf16 %v5744_v2, %v5743_v56 }
 0x6d2   :  { %9402 = vmatmul.mubr.msk.bf16.gmra.mrb[224].mxu0 %vm4408_vm5, %v5151_v62  ;;  %v10196_v62 = vld [vmem:[#allocation2 + $0x10] sm:$0xff] }
 0x6d3   :  { %9405 = vmatprep.mubr.msk.bf16.mxu0 %vm4408_vm5, %v5152_v0  ;;  %v5709_v0 = vld [vmem:[#allocation2 + $0x40] sm:$0xff] }
 0x6d4   :  { %v5769_v60 = vpack.c.bf16 %v5710_v55, %v5709_v0 }
 0x6da   :  { %9406 = vmatmul.mubr.msk.bf16.gmra.mrb[228].mxu0 %vm4408_vm5, %v5153_v40  ;;  %v5712_v40 = vld [vmem:[#allocation2 + $0x58] sm:$0xff] }
 0x6db   :  { %9409 = vmatprep.mubr.msk.bf16.mxu0 %vm4408_vm5, %v5154_v36  ;;  %v5770_v42 = vpack.c.bf16 %v5712_v40, %v5711_v22  ;;  %v5771_v36 = vpack.c.bf16 %v5714_v57, %v5713_v1 }
 0x6e2   :  { %9410 = vmatmul.mubr.msk.bf16.gmra.mrb[232].mxu0 %vm4408_vm5, %v5155_v24  ;;  %v5720_v24 = vld [vmem:[#allocation2 + $0x98] sm:$0xff] }
 0x6e3   :  { %9413 = vmatprep.mubr.msk.bf16.mxu0 %vm4408_vm5, %v5156_v54  ;;  %v5718_v54 = vld [vmem:[#allocation2 + $0x88] sm:$0xff]  ;;  %v5774_v50 = vpack.c.bf16 %v5720_v24, %v5719_v14 }
 0x6e4   :  { %v5773_v32 = vpack.c.bf16 %v5718_v54, %v5717_v52  ;;  %v5752_v52 = vld [vmem:[#allocation2 + $0x198] sm:$0xff] }
 0x6ea   :  { %9414 = vmatmul.mubr.msk.bf16.gmra.mrb[236].mxu0 %vm4408_vm5, %v5157_v12  ;;  %v5721_v12 = vld [vmem:[#allocation2 + $0xa0] sm:$0xff] }
 0x6eb   :  { %9417 = vmatprep.mubr.msk.bf16.mxu0 %vm4408_vm5, %v5158_v39  ;;  %v5775_v39 = vpack.c.bf16 %v5722_v11, %v5721_v12 }
 0x6f2   :  { %9418 = vmatmul.mubr.msk.bf16.gmra.mrb[240].mxu0 %vm4408_vm5, %v5159_v48  ;;  %v5726_v48 = vld [vmem:[#allocation2 + $0xc8] sm:$0xff] }
 0x6f3   :  { %9421 = vmatprep.mubr.msk.bf16.mxu0 %vm4408_vm5, %v5160_v26  ;;  %v5777_v9 = vpack.c.bf16 %v5726_v48, %v5725_v38  ;;  %v5728_v26 = vld [vmem:[#allocation2 + $0xd8] sm:$0xff] }
 0x6f4   :  { %v5778_v33 = vpack.c.bf16 %v5728_v26, %v5727_v27  ;;  %v5756_v27 = vld [vmem:[#allocation2 + $0x1b8] sm:$0xff] }
 0x6fa   :  { %9422 = vmatmul.mubr.msk.bf16.gmra.mrb[244].mxu0 %vm4408_vm5, %v5161_v61  ;;  %v5729_v61 = vld [vmem:[#allocation2 + $0xe0] sm:$0xff] }
 0x6fb   :  { %9425 = vmatprep.mubr.msk.bf16.mxu0 %vm4408_vm5, %v5162_v20  ;;  %v5779_v20 = vpack.c.bf16 %v5730_v15, %v5729_v61  ;;  %v5757_v61 = vld [vmem:[#allocation2 + $0x1c0] sm:$0xff]  ;;  %v5758_v15 = vld [vmem:[#allocation2 + $0x1c8] sm:$0xff] }
 0x702   :  { %9426 = vmatmul.mubr.msk.bf16.gmra.mrb[248].mxu0 %vm4408_vm5, %v5163_v16  ;;  %v5734_v16 = vld [vmem:[#allocation2 + $0x108] sm:$0xff] }
 0x703   :  { %9429 = vmatprep.mubr.msk.bf16.mxu0 %vm4408_vm5, %v5164_v17  ;;  %v5781_v34 = vpack.c.bf16 %v5734_v16, %v5733_v44  ;;  %v5738_v17 = vld [vmem:[#allocation2 + $0x128] sm:$0xff] }
 0x704   :  { %v5783_v43 = vpack.c.bf16 %v5738_v17, %v5737_v35  ;;  %v5759_v17 = vld [vmem:[#allocation2 + $0x1d0] sm:$0xff] }
 0x70a   :  { %9430 = vmatmul.mubr.msk.bf16.gmra.mrb[252].mxu0 %vm4408_vm5, %v5165_v18  ;;  %v5782_v18 = vpack.c.bf16 %v5736_v45, %v5735_v46 }
 0x70b   :  { %9433 = vmatprep.mubr.msk.bf16.mxu0 %vm4408_vm5, %v5166_v30  ;;  %v5741_v30 = vld [vmem:[#allocation2 + $0x140] sm:$0xff] }
 0x712   :  { %9434 = vmatmul.mubr.msk.bf16.gmra.mrb[0].mxu0 %vm4408_vm5, %v14858_v3  ;;  %v5766_v3 = vpack.c.bf16 %v10197_v19, %v10196_v62  ;;  %v5747_v19 = vld [vmem:[#allocation2 + $0x170] sm:$0xff] }
 0x713   :  { %9437 = vmatprep.mubr.msk.bf16.mxu0 %vm4408_vm5, %v5168_v41  ;;  %v5784_v41 = vpack.c.bf16 %v5740_v8, %v5739_v21  ;;  %v5761_v21 = vld [vmem:[#allocation2 + $0x1e0] sm:$0xff]  ;;  %v5762_v8 = vld [vmem:[#allocation2 + $0x1e8] sm:$0xff] }
 0x71a   :  { %9438 = vmatmul.mubr.msk.bf16.gmra.mrb[4].mxu0 %vm4408_vm5, %v14860_v59  ;;  %v5707_v59 = vld [vmem:[#allocation2 + $0x30] sm:$0xff] }
 0x71b   :  { %9441 = vmatprep.mubr.msk.bf16.mxu0 %vm4408_vm5, %v5170_v58  ;;  %v5768_v6 = vpack.c.bf16 %v5708_v47, %v5707_v59  ;;  %v5785_v58 = vpack.c.bf16 %v5742_v53, %v5741_v30  ;;  %v5749_v59 = vld [vmem:[#allocation2 + $0x180] sm:$0xff]  ;;  %v5750_v47 = vld [vmem:[#allocation2 + $0x188] sm:$0xff] }
 0x71c   :  { %v5789_v57 = vpack.c.bf16 %v5750_v47, %v5749_v59 }
 0x722   :  { %9442 = vmatmul.mubr.msk.bf16.gmra.mrb[8].mxu0 %vm4408_vm5, %v16746_v28  ;;  %v5746_v28 = vld [vmem:[#allocation2 + $0x168] sm:$0xff] }
 0x723   :  { %9453 = vmatprep.mubr.msk.bf16.mxu0 %vm875_vm3, %v5765_v4  ;;  %v5745_v4 = vld [vmem:[#allocation2 + $0x160] sm:$0xff] }
 0x724   :  { %v5787_v37 = vpack.c.bf16 %v5746_v28, %v5745_v4  ;;  %v5795_v28 = vpack.c.bf16 %v5762_v8, %v5761_v21 }
 0x72a   :  { %9454 = vmatmul.mubr.msk.bf16.vlgmr.msra.gmra.mrb[12].mxu0 %vm875_vm3, %v5766_v3  ;;  %v5748_v3 = vld [vmem:[#allocation2 + $0x178] sm:$0xff] }
 0x72b   :  { %9457 = vmatprep.mubr.msk.bf16.mxu0 %vm875_vm3, %v5767_v63  ;;  %v5788_v22 = vpack.c.bf16 %v5748_v3, %v5747_v19  ;;  %v5763_v19 = vld [vmem:[#allocation2 + $0x1f0] sm:$0xff]  ;;  %v5764_v3 = vld [vmem:[#allocation2 + $0x1f8] sm:$0xff] }
 0x732   :  { %9458 = vmatmul.mubr.msk.bf16.gmra.mrb[16].mxu0 %vm875_vm3, %v5768_v6 }
 0x733   :  { %9461 = vmatprep.mubr.msk.bf16.mxu0 %vm875_vm3, %v5769_v60 }
 0x73a   :  { %9462 = vmatmul.mubr.msk.bf16.gmra.mrb[20].mxu0 %vm875_vm3, %v5770_v42 }
 0x73b   :  { %9465 = vmatprep.mubr.msk.bf16.mxu0 %vm875_vm3, %v5771_v36 }
 0x742   :  { %9466 = vmatmul.mubr.msk.bf16.gmra.mrb[24].mxu0 %vm875_vm3, %v5772_v7  ;;  %v5753_v7 = vld [vmem:[#allocation2 + $0x1a0] sm:$0xff] }
 0x743   :  { %9469 = vmatprep.mubr.msk.bf16.mxu0 %vm875_vm3, %v5773_v32  ;;  %v5754_v32 = vld [vmem:[#allocation2 + $0x1a8] sm:$0xff] }
 0x744   :  { %v5791_v13 = vpack.c.bf16 %v5754_v32, %v5753_v7 }
 0x74a   :  { %9470 = vmatmul.mubr.msk.bf16.gmra.mrb[28].mxu0 %vm875_vm3, %v5774_v50  ;;  %v5790_v50 = vpack.c.bf16 %v5752_v52, %v5751_v31 }
 0x74b   :  { %9473 = vmatprep.mubr.msk.bf16.mxu0 %vm875_vm3, %v5775_v39 }
 0x752   :  { %9474 = vmatmul.mubr.msk.bf16.gmra.mrb[32].mxu0 %vm875_vm3, %v5776_v25 }
 0x753   :  { %9477 = vmatprep.mubr.msk.bf16.mxu0 %vm875_vm3, %v5777_v9  ;;  %v5755_v9 = vld [vmem:[#allocation2 + $0x1b0] sm:$0xff] }
 0x754   :  { %v5792_v44 = vpack.c.bf16 %v5756_v27, %v5755_v9 }
 0x75a   :  { %9478 = vmatmul.mubr.msk.bf16.gmra.mrb[36].mxu0 %vm875_vm3, %v5778_v33 }
 0x75b   :  { %9481 = vmatprep.mubr.msk.bf16.mxu0 %vm875_vm3, %v5779_v20 }
 0x762   :  { %9482 = vmatmul.mubr.msk.bf16.gmra.mrb[40].mxu0 %vm875_vm3, %v5780_v29 }
 0x763   :  { %9485 = vmatprep.mubr.msk.bf16.mxu0 %vm875_vm3, %v5781_v34  ;;  %v5793_v34 = vpack.c.bf16 %v5758_v15, %v5757_v61 }
 0x76a   :  { %9486 = vmatmul.mubr.msk.bf16.gmra.mrb[44].mxu0 %vm875_vm3, %v5782_v18  ;;  %v5760_v18 = vld [vmem:[#allocation2 + $0x1d8] sm:$0xff] }
 0x76b   :  { %9489 = vmatprep.mubr.msk.bf16.mxu0 %vm875_vm3, %v5783_v43  ;;  %v5794_v56 = vpack.c.bf16 %v5760_v18, %v5759_v17 }
 0x772   :  { %9490 = vmatmul.mubr.msk.bf16.gmra.mrb[48].mxu0 %vm875_vm3, %v5784_v41 }
 0x773   :  { %9493 = vmatprep.mubr.msk.bf16.mxu0 %vm875_vm3, %v5785_v58 }
 0x77a   :  { %9494 = vmatmul.mubr.msk.bf16.gmra.mrb[52].mxu0 %vm875_vm3, %v5786_v49 }
 0x77b   :  { %9497 = vmatprep.mubr.msk.bf16.mxu0 %vm875_vm3, %v5787_v37 }
 0x77d   :  { %v9383_v62 = vpop.f32.mrb[204].mxu0 }
 0x77e   :  { %v5318_v63 = vpop.f32.mrb[205].mxu0  ;;  %v5575_v55 = vmax.f32 %v9383_v62, 0.0 }
 0x77f   :  { %v9384_v0 = vpop.f32.mrb[206].mxu0  ;;  %v5573_v40 = vmax.f32 %v5318_v63, 0.0 }
 0x780   :  { %v5576_v6 = vmax.f32 %v9384_v0, 0.0  ;;  %v5321_v60 = vpop.f32.mrb[207].mxu0 }
 0x781   :  { %v5574_v1 = vmax.f32 %v5321_v60, 0.0 }
 0x782   :  { %v5638_v42 = vpack.c.bf16 %v5576_v6, %v5575_v55  ;;  %9498 = vmatmul.mubr.msk.bf16.gmra.mrb[56].mxu0 %vm875_vm3, %v5788_v22  ;;  %v5796_v6 = vpack.c.bf16 %v5764_v3, %v5763_v19 }
 0x783   :  { %v5637_v36 = vpack.c.bf16 %v5574_v1, %v5573_v40  ;;  %9501 = vmatprep.mubr.msk.bf16.mxu0 %vm875_vm3, %v5789_v57 }
 0x784   :  { %5670 = vst.msk [vmem:[#allocation4 + $0x8] sm:$0xff] %vm875_vm3, %v5638_v42 }
 0x785   :  { %5669 = vst.msk [vmem:[#allocation4] sm:$0xff] %vm875_vm3, %v5637_v36  ;;  %v9387_v23 = vpop.f32.mrb[208].mxu0 }
 0x786   :  { %v5334_v54 = vpop.f32.mrb[209].mxu0  ;;  %v5579_v24 = vmax.f32 %v9387_v23, 0.0 }
 0x787   :  { %v9388_v14 = vpop.f32.mrb[210].mxu0  ;;  %v5577_v39 = vmax.f32 %v5334_v54, 0.0 }
 0x788   :  { %v5580_v12 = vmax.f32 %v9388_v14, 0.0  ;;  %v5337_v11 = vpop.f32.mrb[211].mxu0 }
 0x789   :  { %v5578_v51 = vmax.f32 %v5337_v11, 0.0 }
 0x78a   :  { %v5640_v38 = vpack.c.bf16 %v5580_v12, %v5579_v24  ;;  %9502 = vmatmul.mubr.msk.bf16.gmra.mrb[60].mxu0 %vm875_vm3, %v5790_v50 }
 0x78b   :  { %v5639_v48 = vpack.c.bf16 %v5578_v51, %v5577_v39  ;;  %9505 = vmatprep.mubr.msk.bf16.mxu0 %vm875_vm3, %v5791_v13 }
 0x78c   :  { %5672 = vst.msk [vmem:[#allocation4 + $0x18] sm:$0xff] %vm875_vm3, %v5640_v38 }
 0x78d   :  { %5671 = vst.msk [vmem:[#allocation4 + $0x10] sm:$0xff] %vm875_vm3, %v5639_v48  ;;  %v9391_v25 = vpop.f32.mrb[212].mxu0 }
 0x78e   :  { %v5350_v26 = vpop.f32.mrb[213].mxu0  ;;  %v5583_v20 = vmax.f32 %v9391_v25, 0.0 }
 0x78f   :  { %v9392_v33 = vpop.f32.mrb[214].mxu0  ;;  %v5581_v16 = vmax.f32 %v5350_v26, 0.0 }
 0x790   :  { %v5584_v10 = vmax.f32 %v9392_v33, 0.0  ;;  %v5353_v5 = vpop.f32.mrb[215].mxu0 }
 0x791   :  { %v5582_v29 = vmax.f32 %v5353_v5, 0.0 }
 0x792   :  { %v5642_v46 = vpack.c.bf16 %v5584_v10, %v5583_v20  ;;  %9506 = vmatmul.mubr.msk.bf16.gmra.mrb[64].mxu0 %vm875_vm3, %v5792_v44 }
 0x793   :  { %v5641_v45 = vpack.c.bf16 %v5582_v29, %v5581_v16  ;;  %9509 = vmatprep.mubr.msk.bf16.mxu0 %vm875_vm3, %v5793_v34 }
 0x794   :  { %5674 = vst.msk [vmem:[#allocation4 + $0x28] sm:$0xff] %vm875_vm3, %v5642_v46 }
 0x795   :  { %5673 = vst.msk [vmem:[#allocation4 + $0x20] sm:$0xff] %vm875_vm3, %v5641_v45  ;;  %v9395_v35 = vpop.f32.mrb[216].mxu0 }
 0x796   :  { %v5366_v43 = vpop.f32.mrb[217].mxu0  ;;  %v5587_v53 = vmax.f32 %v9395_v35, 0.0 }
 0x797   :  { %v9396_v30 = vpop.f32.mrb[218].mxu0  ;;  %v5585_v2 = vmax.f32 %v5366_v43, 0.0 }
 0x798   :  { %v5588_v41 = vmax.f32 %v9396_v30, 0.0  ;;  %v5369_v58 = vpop.f32.mrb[219].mxu0 }
 0x799   :  { %v5586_v4 = vmax.f32 %v5369_v58, 0.0 }
 0x79a   :  { %v5644_v49 = vpack.c.bf16 %v5588_v41, %v5587_v53  ;;  %9510 = vmatmul.mubr.msk.bf16.gmra.mrb[68].mxu0 %vm875_vm3, %v5794_v56 }
 0x79b   :  { %v5643_v37 = vpack.c.bf16 %v5586_v4, %v5585_v2  ;;  %9513 = vmatprep.mubr.msk.bf16.mxu0 %vm875_vm3, %v5795_v28 }
 0x79c   :  { %5676 = vst.msk [vmem:[#allocation4 + $0x38] sm:$0xff] %vm875_vm3, %v5644_v49 }
 0x79d   :  { %5675 = vst.msk [vmem:[#allocation4 + $0x30] sm:$0xff] %vm875_vm3, %v5643_v37  ;;  %v9399_v62 = vpop.f32.mrb[220].mxu0 }
 0x79e   :  { %v5382_v63 = vpop.f32.mrb[221].mxu0  ;;  %v5591_v47 = vmax.f32 %v9399_v62, 0.0 }
 0x79f   :  { %v9400_v59 = vpop.f32.mrb[222].mxu0  ;;  %v5589_v60 = vmax.f32 %v5382_v63, 0.0 }
 0x7a0   :  { %v5592_v0 = vmax.f32 %v9400_v59, 0.0  ;;  %v5385_v55 = vpop.f32.mrb[223].mxu0 }
 0x7a1   :  { %v5590_v22 = vmax.f32 %v5385_v55, 0.0 }
 0x7a2   :  { %v5646_v40 = vpack.c.bf16 %v5592_v0, %v5591_v47  ;;  %9514 = vmatmul.mubr.msk.bf16.gmra.mrb[72].mxu0 %vm875_vm3, %v5796_v6 }
 0x7a3   :  { %v5645_v1 = vpack.c.bf16 %v5590_v22, %v5589_v60 }
 0x7a4   :  { %5678 = vst.msk [vmem:[#allocation4 + $0x48] sm:$0xff] %vm875_vm3, %v5646_v40 }
 0x7a5   :  { %5677 = vst.msk [vmem:[#allocation4 + $0x40] sm:$0xff] %vm875_vm3, %v5645_v1  ;;  %v9403_v57 = vpop.f32.mrb[224].mxu0 }
 0x7a6   :  { %v5398_v42 = vpop.f32.mrb[225].mxu0  ;;  %v5595_v23 = vmax.f32 %v9403_v57, 0.0 }
 0x7a7   :  { %v9404_v36 = vpop.f32.mrb[226].mxu0  ;;  %v5593_v54 = vmax.f32 %v5398_v42, 0.0 }
 0x7a8   :  { %v5596_v31 = vmax.f32 %v9404_v36, 0.0  ;;  %v5401_v52 = vpop.f32.mrb[227].mxu0 }
 0x7a9   :  { %v5594_v7 = vmax.f32 %v5401_v52, 0.0 }
 0x7aa   :  { %v5648_v32 = vpack.c.bf16 %v5596_v31, %v5595_v23 }
 0x7ab   :  { %v5647_v14 = vpack.c.bf16 %v5594_v7, %v5593_v54 }
 0x7ac   :  { %5680 = vst.msk [vmem:[#allocation4 + $0x58] sm:$0xff] %vm875_vm3, %v5648_v32 }
 0x7ad   :  { %5679 = vst.msk [vmem:[#allocation4 + $0x50] sm:$0xff] %vm875_vm3, %v5647_v14  ;;  %v9407_v24 = vpop.f32.mrb[228].mxu0 }
 0x7ae   :  { %v5414_v12 = vpop.f32.mrb[229].mxu0  ;;  %v5599_v50 = vmax.f32 %v9407_v24, 0.0 }
 0x7af   :  { %v9408_v11 = vpop.f32.mrb[230].mxu0  ;;  %v5597_v13 = vmax.f32 %v5414_v12, 0.0 }
 0x7b0   :  { %v5600_v39 = vmax.f32 %v9408_v11, 0.0  ;;  %v5417_v51 = vpop.f32.mrb[231].mxu0 }
 0x7b1   :  { %v5598_v38 = vmax.f32 %v5417_v51, 0.0 }
 0x7b2   :  { %v5650_v48 = vpack.c.bf16 %v5600_v39, %v5599_v50 }
 0x7b3   :  { %v5649_v25 = vpack.c.bf16 %v5598_v38, %v5597_v13 }
 0x7b4   :  { %5682 = vst.msk [vmem:[#allocation4 + $0x68] sm:$0xff] %vm875_vm3, %v5650_v48 }
 0x7b5   :  { %5681 = vst.msk [vmem:[#allocation4 + $0x60] sm:$0xff] %vm875_vm3, %v5649_v25  ;;  %v9411_v9 = vpop.f32.mrb[232].mxu0 }
 0x7b6   :  { %v5430_v27 = vpop.f32.mrb[233].mxu0  ;;  %v5603_v61 = vmax.f32 %v9411_v9, 0.0 }
 0x7b7   :  { %v9412_v26 = vpop.f32.mrb[234].mxu0  ;;  %v5601_v20 = vmax.f32 %v5430_v27, 0.0 }
 0x7b8   :  { %v5604_v15 = vmax.f32 %v9412_v26, 0.0  ;;  %v5433_v33 = vpop.f32.mrb[235].mxu0 }
 0x7b9   :  { %v5602_v10 = vmax.f32 %v5433_v33, 0.0 }
 0x7ba   :  { %v5652_v5 = vpack.c.bf16 %v5604_v15, %v5603_v61 }
 0x7bb   :  { %v5651_v44 = vpack.c.bf16 %v5602_v10, %v5601_v20 }
 0x7bc   :  { %5684 = vst.msk [vmem:[#allocation4 + $0x78] sm:$0xff] %vm875_vm3, %v5652_v5 }
 0x7bd   :  { %5683 = vst.msk [vmem:[#allocation4 + $0x70] sm:$0xff] %vm875_vm3, %v5651_v44  ;;  %v9415_v16 = vpop.f32.mrb[236].mxu0 }
 0x7be   :  { %v5446_v29 = vpop.f32.mrb[237].mxu0  ;;  %v5607_v46 = vmax.f32 %v9415_v16, 0.0 }
 0x7bf   :  { %v9416_v34 = vpop.f32.mrb[238].mxu0  ;;  %v5605_v17 = vmax.f32 %v5446_v29, 0.0 }
 0x7c0   :  { %v5608_v45 = vmax.f32 %v9416_v34, 0.0  ;;  %v5449_v35 = vpop.f32.mrb[239].mxu0 }
 0x7c1   :  { %v5606_v18 = vmax.f32 %v5449_v35, 0.0 }
 0x7c2   :  { %v5654_v43 = vpack.c.bf16 %v5608_v45, %v5607_v46 }
 0x7c3   :  { %v5653_v21 = vpack.c.bf16 %v5606_v18, %v5605_v17 }
 0x7c4   :  { %5686 = vst.msk [vmem:[#allocation4 + $0x88] sm:$0xff] %vm875_vm3, %v5654_v43 }
 0x7c5   :  { %5685 = vst.msk [vmem:[#allocation4 + $0x80] sm:$0xff] %vm875_vm3, %v5653_v21  ;;  %v9419_v8 = vpop.f32.mrb[240].mxu0 }
 0x7c6   :  { %v5462_v30 = vpop.f32.mrb[241].mxu0  ;;  %v5611_v41 = vmax.f32 %v9419_v8, 0.0 }
 0x7c7   :  { %v9420_v53 = vpop.f32.mrb[242].mxu0  ;;  %v5609_v2 = vmax.f32 %v5462_v30, 0.0 }
 0x7c8   :  { %v5612_v58 = vmax.f32 %v9420_v53, 0.0  ;;  %v5465_v56 = vpop.f32.mrb[243].mxu0 }
 0x7c9   :  { %v5610_v4 = vmax.f32 %v5465_v56, 0.0 }
 0x7ca   :  { %v5656_v28 = vpack.c.bf16 %v5612_v58, %v5611_v41 }
 0x7cb   :  { %v5655_v49 = vpack.c.bf16 %v5610_v4, %v5609_v2 }
 0x7cc   :  { %5688 = vst.msk [vmem:[#allocation4 + $0x98] sm:$0xff] %vm875_vm3, %v5656_v28 }
 0x7cd   :  { %5687 = vst.msk [vmem:[#allocation4 + $0x90] sm:$0xff] %vm875_vm3, %v5655_v49  ;;  %v9423_v37 = vpop.f32.mrb[244].mxu0 }
 0x7ce   :  { %v5478_v62 = vpop.f32.mrb[245].mxu0  ;;  %v5615_v3 = vmax.f32 %v9423_v37, 0.0 }
 0x7cf   :  { %v9424_v19 = vpop.f32.mrb[246].mxu0  ;;  %v5613_v47 = vmax.f32 %v5478_v62, 0.0 }
 0x7d0   :  { %v5616_v63 = vmax.f32 %v9424_v19, 0.0  ;;  %v5481_v59 = vpop.f32.mrb[247].mxu0 }
 0x7d1   :  { %v5614_v0 = vmax.f32 %v5481_v59, 0.0 }
 0x7d2   :  { %v5658_v55 = vpack.c.bf16 %v5616_v63, %v5615_v3 }
 0x7d3   :  { %v5657_v6 = vpack.c.bf16 %v5614_v0, %v5613_v47 }
 0x7d4   :  { %5690 = vst.msk [vmem:[#allocation4 + $0xa8] sm:$0xff] %vm875_vm3, %v5658_v55 }
 0x7d5   :  { %5689 = vst.msk [vmem:[#allocation4 + $0xa0] sm:$0xff] %vm875_vm3, %v5657_v6  ;;  %v9427_v60 = vpop.f32.mrb[248].mxu0 }
 0x7d6   :  { %v5494_v22 = vpop.f32.mrb[249].mxu0  ;;  %v5619_v1 = vmax.f32 %v9427_v60, 0.0 }
 0x7d7   :  { %v9428_v40 = vpop.f32.mrb[250].mxu0  ;;  %v5617_v36 = vmax.f32 %v5494_v22, 0.0 }
 0x7d8   :  { %v5620_v57 = vmax.f32 %v9428_v40, 0.0  ;;  %v5497_v42 = vpop.f32.mrb[251].mxu0 }
 0x7d9   :  { %v5618_v23 = vmax.f32 %v5497_v42, 0.0 }
 0x7da   :  { %v5660_v31 = vpack.c.bf16 %v5620_v57, %v5619_v1 }
 0x7db   :  { %v5659_v52 = vpack.c.bf16 %v5618_v23, %v5617_v36 }
 0x7dc   :  { %5692 = vst.msk [vmem:[#allocation4 + $0xb8] sm:$0xff] %vm875_vm3, %v5660_v31 }
 0x7dd   :  { %5691 = vst.msk [vmem:[#allocation4 + $0xb0] sm:$0xff] %vm875_vm3, %v5659_v52  ;;  %v9431_v54 = vpop.f32.mrb[252].mxu0 }
 0x7de   :  { %v5510_v7 = vpop.f32.mrb[253].mxu0  ;;  %v5623_v14 = vmax.f32 %v9431_v54, 0.0 }
 0x7df   :  { %v9432_v32 = vpop.f32.mrb[254].mxu0  ;;  %v5621_v11 = vmax.f32 %v5510_v7, 0.0 }
 0x7e0   :  { %v5624_v24 = vmax.f32 %v9432_v32, 0.0  ;;  %v5513_v12 = vpop.f32.mrb[255].mxu0 }
 0x7e1   :  { %v5622_v50 = vmax.f32 %v5513_v12, 0.0 }
 0x7e2   :  { %v5662_v39 = vpack.c.bf16 %v5624_v24, %v5623_v14 }
 0x7e3   :  { %v5661_v51 = vpack.c.bf16 %v5622_v50, %v5621_v11 }
 0x7e4   :  { %5694 = vst.msk [vmem:[#allocation4 + $0xc8] sm:$0xff] %vm875_vm3, %v5662_v39 }
 0x7e5   :  { %5693 = vst.msk [vmem:[#allocation4 + $0xc0] sm:$0xff] %vm875_vm3, %v5661_v51  ;;  %v9435_v13 = vpop.f32.mrb[0].mxu0 }
 0x7e6   :  { %v5526_v38 = vpop.f32.mrb[1].mxu0  ;;  %v5627_v25 = vmax.f32 %v9435_v13, 0.0 }
 0x7e7   :  { %v9436_v48 = vpop.f32.mrb[2].mxu0  ;;  %v5625_v26 = vmax.f32 %v5526_v38, 0.0 }
 0x7e8   :  { %v5628_v9 = vmax.f32 %v9436_v48, 0.0  ;;  %v5529_v27 = vpop.f32.mrb[3].mxu0 }
 0x7e9   :  { %v5626_v61 = vmax.f32 %v5529_v27, 0.0 }
 0x7ea   :  { %v5664_v15 = vpack.c.bf16 %v5628_v9, %v5627_v25 }
 0x7eb   :  { %v5663_v33 = vpack.c.bf16 %v5626_v61, %v5625_v26 }
 0x7ec   :  { %5696 = vst.msk [vmem:[#allocation4 + $0xd8] sm:$0xff] %vm875_vm3, %v5664_v15 }
 0x7ed   :  { %5695 = vst.msk [vmem:[#allocation4 + $0xd0] sm:$0xff] %vm875_vm3, %v5663_v33  ;;  %v9439_v20 = vpop.f32.mrb[4].mxu0 }
 0x7ee   :  { %v5542_v10 = vpop.f32.mrb[5].mxu0  ;;  %v5631_v44 = vmax.f32 %v9439_v20, 0.0 }
 0x7ef   :  { %v9440_v5 = vpop.f32.mrb[6].mxu0  ;;  %v5629_v34 = vmax.f32 %v5542_v10, 0.0 }
 0x7f0   :  { %v5632_v16 = vmax.f32 %v9440_v5, 0.0  ;;  %v5545_v29 = vpop.f32.mrb[7].mxu0 }
 0x7f1   :  { %v5630_v46 = vmax.f32 %v5545_v29, 0.0 }
 0x7f2   :  { %v5666_v45 = vpack.c.bf16 %v5632_v16, %v5631_v44 }
 0x7f3   :  { %v5665_v35 = vpack.c.bf16 %v5630_v46, %v5629_v34 }
 0x7f4   :  { %5698 = vst.msk [vmem:[#allocation4 + $0xe8] sm:$0xff] %vm875_vm3, %v5666_v45 }
 0x7f5   :  { %5697 = vst.msk [vmem:[#allocation4 + $0xe0] sm:$0xff] %vm875_vm3, %v5665_v35  ;;  %v9443_v17 = vpop.f32.mrb[8].mxu0 }
 0x7f6   :  { %v5558_v18 = vpop.f32.mrb[9].mxu0  ;;  %v5635_v21 = vmax.f32 %v9443_v17, 0.0 }
 0x7f7   :  { %v9444_v43 = vpop.f32.mrb[10].mxu0  ;;  %v5633_v53 = vmax.f32 %v5558_v18, 0.0 }
 0x7f8   :  { %v5636_v8 = vmax.f32 %v9444_v43, 0.0  ;;  %v5561_v30 = vpop.f32.mrb[11].mxu0 }
 0x7f9   :  { %v5634_v41 = vmax.f32 %v5561_v30, 0.0 }
 0x7fa   :  { %v5668_v58 = vpack.c.bf16 %v5636_v8, %v5635_v21 }
 0x7fb   :  { %v5667_v56 = vpack.c.bf16 %v5634_v41, %v5633_v53 }
 0x7fc   :  { %5700 = vst.msk [vmem:[#allocation4 + $0xf8] sm:$0xff] %vm875_vm3, %v5668_v58 }
 0x7fd   :  { %5699 = vst.msk [vmem:[#allocation4 + $0xf0] sm:$0xff] %vm875_vm3, %v5667_v56  ;;  %v9455_v2 = vpop.f32.mrb[12].mxu0 }
 0x7fe   :  { %v6216_v4 = vmax.f32 %v9455_v2, 0.0  ;;  %v5959_v28 = vpop.f32.mrb[13].mxu0 }
 0x7ff   :  { %v6214_v49 = vmax.f32 %v5959_v28, 0.0  ;;  %v9456_v37 = vpop.f32.mrb[14].mxu0 }
 0x800   :  { %6280 = vst.msk [vmem:[#allocation5 + $0x10] sm:$0xff] %vm875_vm3, %v6216_v4  ;;  %v6217_v62 = vmax.f32 %v9456_v37, 0.0  ;;  %v5962_v19 = vpop.f32.mrb[15].mxu0 }
 0x801   :  { %6278 = vst.msk [vmem:[#allocation5] sm:$0xff] %vm875_vm3, %v6214_v49  ;;  %v6215_v3 = vmax.f32 %v5962_v19, 0.0 }
 0x802   :  { %6281 = vst.msk [vmem:[#allocation5 + $0x18] sm:$0xff] %vm875_vm3, %v6217_v62 }
 0x803   :  { %6279 = vst.msk [vmem:[#allocation5 + $0x8] sm:$0xff] %vm875_vm3, %v6215_v3 }
 0x805   :  { %v9459_v63 = vpop.f32.mrb[16].mxu0 }
 0x806   :  { %v6220_v59 = vmax.f32 %v9459_v63, 0.0  ;;  %v5975_v47 = vpop.f32.mrb[17].mxu0 }
 0x807   :  { %v6218_v0 = vmax.f32 %v5975_v47, 0.0  ;;  %v9460_v55 = vpop.f32.mrb[18].mxu0 }
 0x808   :  { %6284 = vst.msk [vmem:[#allocation5 + $0x30] sm:$0xff] %vm875_vm3, %v6220_v59  ;;  %v6221_v6 = vmax.f32 %v9460_v55, 0.0  ;;  %v5978_v60 = vpop.f32.mrb[19].mxu0 }
 0x809   :  { %6282 = vst.msk [vmem:[#allocation5 + $0x20] sm:$0xff] %vm875_vm3, %v6218_v0  ;;  %v6219_v22 = vmax.f32 %v5978_v60, 0.0 }
 0x80a   :  { %6285 = vst.msk [vmem:[#allocation5 + $0x38] sm:$0xff] %vm875_vm3, %v6221_v6 }
 0x80b   :  { %6283 = vst.msk [vmem:[#allocation5 + $0x28] sm:$0xff] %vm875_vm3, %v6219_v22 }
 0x80d   :  { %v9463_v40 = vpop.f32.mrb[20].mxu0 }
 0x80e   :  { %v6224_v1 = vmax.f32 %v9463_v40, 0.0  ;;  %v5991_v57 = vpop.f32.mrb[21].mxu0 }
 0x80f   :  { %v6222_v42 = vmax.f32 %v5991_v57, 0.0  ;;  %v9464_v36 = vpop.f32.mrb[22].mxu0 }
 0x810   :  { %6288 = vst.msk [vmem:[#allocation5 + $0x50] sm:$0xff] %vm875_vm3, %v6224_v1  ;;  %v6225_v23 = vmax.f32 %v9464_v36, 0.0  ;;  %v5994_v31 = vpop.f32.mrb[23].mxu0 }
 0x811   :  { %6286 = vst.msk [vmem:[#allocation5 + $0x40] sm:$0xff] %vm875_vm3, %v6222_v42  ;;  %v6223_v52 = vmax.f32 %v5994_v31, 0.0 }
 0x812   :  { %6289 = vst.msk [vmem:[#allocation5 + $0x58] sm:$0xff] %vm875_vm3, %v6225_v23 }
 0x813   :  { %6287 = vst.msk [vmem:[#allocation5 + $0x48] sm:$0xff] %vm875_vm3, %v6223_v52 }
 0x815   :  { %v9467_v54 = vpop.f32.mrb[24].mxu0 }
 0x816   :  { %v6228_v7 = vmax.f32 %v9467_v54, 0.0  ;;  %v6007_v32 = vpop.f32.mrb[25].mxu0 }
 0x817   :  { %v6226_v14 = vmax.f32 %v6007_v32, 0.0  ;;  %v9468_v24 = vpop.f32.mrb[26].mxu0 }
 0x818   :  { %6292 = vst.msk [vmem:[#allocation5 + $0x70] sm:$0xff] %vm875_vm3, %v6228_v7  ;;  %v6229_v12 = vmax.f32 %v9468_v24, 0.0  ;;  %v6010_v11 = vpop.f32.mrb[27].mxu0 }
 0x819   :  { %6290 = vst.msk [vmem:[#allocation5 + $0x60] sm:$0xff] %vm875_vm3, %v6226_v14  ;;  %v6227_v50 = vmax.f32 %v6010_v11, 0.0 }
 0x81a   :  { %6293 = vst.msk [vmem:[#allocation5 + $0x78] sm:$0xff] %vm875_vm3, %v6229_v12 }
 0x81b   :  { %6291 = vst.msk [vmem:[#allocation5 + $0x68] sm:$0xff] %vm875_vm3, %v6227_v50 }
 0x81d   :  { %v9471_v39 = vpop.f32.mrb[28].mxu0 }
 0x81e   :  { %v6232_v51 = vmax.f32 %v9471_v39, 0.0  ;;  %v6023_v13 = vpop.f32.mrb[29].mxu0 }
 0x81f   :  { %v6230_v38 = vmax.f32 %v6023_v13, 0.0  ;;  %v9472_v48 = vpop.f32.mrb[30].mxu0 }
 0x820   :  { %6296 = vst.msk [vmem:[#allocation5 + $0x90] sm:$0xff] %vm875_vm3, %v6232_v51  ;;  %v6233_v25 = vmax.f32 %v9472_v48, 0.0  ;;  %v6026_v9 = vpop.f32.mrb[31].mxu0 }
 0x821   :  { %6294 = vst.msk [vmem:[#allocation5 + $0x80] sm:$0xff] %vm875_vm3, %v6230_v38  ;;  %v6231_v27 = vmax.f32 %v6026_v9, 0.0 }
 0x822   :  { %6297 = vst.msk [vmem:[#allocation5 + $0x98] sm:$0xff] %vm875_vm3, %v6233_v25 }
 0x823   :  { %6295 = vst.msk [vmem:[#allocation5 + $0x88] sm:$0xff] %vm875_vm3, %v6231_v27 }
 0x825   :  { %v9475_v26 = vpop.f32.mrb[32].mxu0 }
 0x826   :  { %v6236_v61 = vmax.f32 %v9475_v26, 0.0  ;;  %v6039_v15 = vpop.f32.mrb[33].mxu0 }
 0x827   :  { %v6234_v33 = vmax.f32 %v6039_v15, 0.0  ;;  %v9476_v20 = vpop.f32.mrb[34].mxu0 }
 0x828   :  { %6300 = vst.msk [vmem:[#allocation5 + $0xb0] sm:$0xff] %vm875_vm3, %v6236_v61  ;;  %v6237_v10 = vmax.f32 %v9476_v20, 0.0  ;;  %v6042_v5 = vpop.f32.mrb[35].mxu0 }
 0x829   :  { %6298 = vst.msk [vmem:[#allocation5 + $0xa0] sm:$0xff] %vm875_vm3, %v6234_v33  ;;  %v6235_v44 = vmax.f32 %v6042_v5, 0.0 }
 0x82a   :  { %6301 = vst.msk [vmem:[#allocation5 + $0xb8] sm:$0xff] %vm875_vm3, %v6237_v10 }
 0x82b   :  { %6299 = vst.msk [vmem:[#allocation5 + $0xa8] sm:$0xff] %vm875_vm3, %v6235_v44 }
 0x82d   :  { %v9479_v16 = vpop.f32.mrb[36].mxu0 }
 0x82e   :  { %v6240_v29 = vmax.f32 %v9479_v16, 0.0  ;;  %v6055_v34 = vpop.f32.mrb[37].mxu0 }
 0x82f   :  { %v6238_v46 = vmax.f32 %v6055_v34, 0.0  ;;  %v9480_v45 = vpop.f32.mrb[38].mxu0 }
 0x830   :  { %6304 = vst.msk [vmem:[#allocation5 + $0xd0] sm:$0xff] %vm875_vm3, %v6240_v29  ;;  %v6241_v35 = vmax.f32 %v9480_v45, 0.0  ;;  %v6058_v17 = vpop.f32.mrb[39].mxu0 }
 0x831   :  { %6302 = vst.msk [vmem:[#allocation5 + $0xc0] sm:$0xff] %vm875_vm3, %v6238_v46  ;;  %v6239_v18 = vmax.f32 %v6058_v17, 0.0 }
 0x832   :  { %6305 = vst.msk [vmem:[#allocation5 + $0xd8] sm:$0xff] %vm875_vm3, %v6241_v35 }
 0x833   :  { %6303 = vst.msk [vmem:[#allocation5 + $0xc8] sm:$0xff] %vm875_vm3, %v6239_v18 }
 0x835   :  { %v9483_v43 = vpop.f32.mrb[40].mxu0 }
 0x836   :  { %v6244_v21 = vmax.f32 %v9483_v43, 0.0  ;;  %v6071_v8 = vpop.f32.mrb[41].mxu0 }
 0x837   :  { %v6242_v30 = vmax.f32 %v6071_v8, 0.0  ;;  %v9484_v53 = vpop.f32.mrb[42].mxu0 }
 0x838   :  { %6308 = vst.msk [vmem:[#allocation5 + $0xf0] sm:$0xff] %vm875_vm3, %v6244_v21  ;;  %v6245_v41 = vmax.f32 %v9484_v53, 0.0  ;;  %v6074_v58 = vpop.f32.mrb[43].mxu0 }
 0x839   :  { %6306 = vst.msk [vmem:[#allocation5 + $0xe0] sm:$0xff] %vm875_vm3, %v6242_v30  ;;  %v6243_v56 = vmax.f32 %v6074_v58, 0.0 }
 0x83a   :  { %6309 = vst.msk [vmem:[#allocation5 + $0xf8] sm:$0xff] %vm875_vm3, %v6245_v41 }
 0x83b   :  { %6307 = vst.msk [vmem:[#allocation5 + $0xe8] sm:$0xff] %vm875_vm3, %v6243_v56 }
 0x83d   :  { %v9487_v2 = vpop.f32.mrb[44].mxu0 }
 0x83e   :  { %v6248_v4 = vmax.f32 %v9487_v2, 0.0  ;;  %v6087_v28 = vpop.f32.mrb[45].mxu0 }
 0x83f   :  { %v6246_v49 = vmax.f32 %v6087_v28, 0.0  ;;  %v9488_v37 = vpop.f32.mrb[46].mxu0 }
 0x840   :  { %6312 = vst.msk [vmem:[#allocation5 + $0x110] sm:$0xff] %vm875_vm3, %v6248_v4  ;;  %v6249_v62 = vmax.f32 %v9488_v37, 0.0  ;;  %v6090_v19 = vpop.f32.mrb[47].mxu0 }
 0x841   :  { %6310 = vst.msk [vmem:[#allocation5 + $0x100] sm:$0xff] %vm875_vm3, %v6246_v49  ;;  %v6247_v3 = vmax.f32 %v6090_v19, 0.0 }
 0x842   :  { %6313 = vst.msk [vmem:[#allocation5 + $0x118] sm:$0xff] %vm875_vm3, %v6249_v62 }
 0x843   :  { %6311 = vst.msk [vmem:[#allocation5 + $0x108] sm:$0xff] %vm875_vm3, %v6247_v3 }
 0x845   :  { %v9491_v63 = vpop.f32.mrb[48].mxu0 }
 0x846   :  { %v6252_v59 = vmax.f32 %v9491_v63, 0.0  ;;  %v6103_v47 = vpop.f32.mrb[49].mxu0 }
 0x847   :  { %v6250_v0 = vmax.f32 %v6103_v47, 0.0  ;;  %v9492_v55 = vpop.f32.mrb[50].mxu0 }
 0x848   :  { %6316 = vst.msk [vmem:[#allocation5 + $0x130] sm:$0xff] %vm875_vm3, %v6252_v59  ;;  %v6253_v6 = vmax.f32 %v9492_v55, 0.0  ;;  %v6106_v60 = vpop.f32.mrb[51].mxu0 }
 0x849   :  { %6314 = vst.msk [vmem:[#allocation5 + $0x120] sm:$0xff] %vm875_vm3, %v6250_v0  ;;  %v6251_v22 = vmax.f32 %v6106_v60, 0.0 }
 0x84a   :  { %6317 = vst.msk [vmem:[#allocation5 + $0x138] sm:$0xff] %vm875_vm3, %v6253_v6 }
 0x84b   :  { %6315 = vst.msk [vmem:[#allocation5 + $0x128] sm:$0xff] %vm875_vm3, %v6251_v22 }
 0x84d   :  { %v9495_v40 = vpop.f32.mrb[52].mxu0 }
 0x84e   :  { %v6256_v1 = vmax.f32 %v9495_v40, 0.0  ;;  %v6119_v57 = vpop.f32.mrb[53].mxu0 }
 0x84f   :  { %v6254_v42 = vmax.f32 %v6119_v57, 0.0  ;;  %v9496_v36 = vpop.f32.mrb[54].mxu0 }
 0x850   :  { %6320 = vst.msk [vmem:[#allocation5 + $0x150] sm:$0xff] %vm875_vm3, %v6256_v1  ;;  %v6257_v23 = vmax.f32 %v9496_v36, 0.0  ;;  %v6122_v31 = vpop.f32.mrb[55].mxu0 }
 0x851   :  { %6318 = vst.msk [vmem:[#allocation5 + $0x140] sm:$0xff] %vm875_vm3, %v6254_v42  ;;  %v6255_v52 = vmax.f32 %v6122_v31, 0.0 }
 0x852   :  { %6321 = vst.msk [vmem:[#allocation5 + $0x158] sm:$0xff] %vm875_vm3, %v6257_v23 }
 0x853   :  { %6319 = vst.msk [vmem:[#allocation5 + $0x148] sm:$0xff] %vm875_vm3, %v6255_v52 }
 0x855   :  { %v9499_v54 = vpop.f32.mrb[56].mxu0 }
 0x856   :  { %v6260_v7 = vmax.f32 %v9499_v54, 0.0  ;;  %v6135_v32 = vpop.f32.mrb[57].mxu0 }
 0x857   :  { %v6258_v14 = vmax.f32 %v6135_v32, 0.0  ;;  %v9500_v24 = vpop.f32.mrb[58].mxu0 }
 0x858   :  { %6324 = vst.msk [vmem:[#allocation5 + $0x170] sm:$0xff] %vm875_vm3, %v6260_v7  ;;  %v6261_v12 = vmax.f32 %v9500_v24, 0.0  ;;  %v6138_v11 = vpop.f32.mrb[59].mxu0 }
 0x859   :  { %6322 = vst.msk [vmem:[#allocation5 + $0x160] sm:$0xff] %vm875_vm3, %v6258_v14  ;;  %v6259_v50 = vmax.f32 %v6138_v11, 0.0 }
 0x85a   :  { %6325 = vst.msk [vmem:[#allocation5 + $0x178] sm:$0xff] %vm875_vm3, %v6261_v12 }
 0x85b   :  { %6323 = vst.msk [vmem:[#allocation5 + $0x168] sm:$0xff] %vm875_vm3, %v6259_v50 }
 0x85d   :  { %v9503_v39 = vpop.f32.mrb[60].mxu0 }
 0x85e   :  { %v6264_v51 = vmax.f32 %v9503_v39, 0.0  ;;  %v6151_v13 = vpop.f32.mrb[61].mxu0 }
 0x85f   :  { %v6262_v38 = vmax.f32 %v6151_v13, 0.0  ;;  %v9504_v48 = vpop.f32.mrb[62].mxu0 }
 0x860   :  { %6328 = vst.msk [vmem:[#allocation5 + $0x190] sm:$0xff] %vm875_vm3, %v6264_v51  ;;  %v6265_v25 = vmax.f32 %v9504_v48, 0.0  ;;  %v6154_v9 = vpop.f32.mrb[63].mxu0 }
 0x861   :  { %6326 = vst.msk [vmem:[#allocation5 + $0x180] sm:$0xff] %vm875_vm3, %v6262_v38  ;;  %v6263_v27 = vmax.f32 %v6154_v9, 0.0 }
 0x862   :  { %6329 = vst.msk [vmem:[#allocation5 + $0x198] sm:$0xff] %vm875_vm3, %v6265_v25 }
 0x863   :  { %6327 = vst.msk [vmem:[#allocation5 + $0x188] sm:$0xff] %vm875_vm3, %v6263_v27 }
 0x865   :  { %v9507_v26 = vpop.f32.mrb[64].mxu0 }
 0x866   :  { %v6268_v61 = vmax.f32 %v9507_v26, 0.0  ;;  %v6167_v15 = vpop.f32.mrb[65].mxu0 }
 0x867   :  { %v6266_v33 = vmax.f32 %v6167_v15, 0.0  ;;  %v9508_v20 = vpop.f32.mrb[66].mxu0 }
 0x868   :  { %6332 = vst.msk [vmem:[#allocation5 + $0x1b0] sm:$0xff] %vm875_vm3, %v6268_v61  ;;  %v6269_v10 = vmax.f32 %v9508_v20, 0.0  ;;  %v6170_v5 = vpop.f32.mrb[67].mxu0 }
 0x869   :  { %6330 = vst.msk [vmem:[#allocation5 + $0x1a0] sm:$0xff] %vm875_vm3, %v6266_v33  ;;  %v6267_v44 = vmax.f32 %v6170_v5, 0.0 }
 0x86a   :  { %6333 = vst.msk [vmem:[#allocation5 + $0x1b8] sm:$0xff] %vm875_vm3, %v6269_v10 }
 0x86b   :  { %6331 = vst.msk [vmem:[#allocation5 + $0x1a8] sm:$0xff] %vm875_vm3, %v6267_v44 }
 0x86d   :  { %v9511_v16 = vpop.f32.mrb[68].mxu0 }
 0x86e   :  { %v6272_v29 = vmax.f32 %v9511_v16, 0.0  ;;  %v6183_v34 = vpop.f32.mrb[69].mxu0 }
 0x86f   :  { %v6270_v46 = vmax.f32 %v6183_v34, 0.0  ;;  %v9512_v45 = vpop.f32.mrb[70].mxu0 }
 0x870   :  { %6336 = vst.msk [vmem:[#allocation5 + $0x1d0] sm:$0xff] %vm875_vm3, %v6272_v29  ;;  %v6273_v35 = vmax.f32 %v9512_v45, 0.0  ;;  %v6186_v17 = vpop.f32.mrb[71].mxu0 }
 0x871   :  { %6334 = vst.msk [vmem:[#allocation5 + $0x1c0] sm:$0xff] %vm875_vm3, %v6270_v46  ;;  %v6271_v18 = vmax.f32 %v6186_v17, 0.0 }
 0x872   :  { %6337 = vst.msk [vmem:[#allocation5 + $0x1d8] sm:$0xff] %vm875_vm3, %v6273_v35 }
 0x873   :  { %6335 = vst.msk [vmem:[#allocation5 + $0x1c8] sm:$0xff] %vm875_vm3, %v6271_v18 }
 0x875   :  { %v9515_v43 = vpop.f32.mrb[72].mxu0 }
 0x876   :  { %v6276_v21 = vmax.f32 %v9515_v43, 0.0  ;;  %v6199_v8 = vpop.f32.mrb[73].mxu0 }
 0x877   :  { %v6274_v30 = vmax.f32 %v6199_v8, 0.0  ;;  %v9516_v53 = vpop.f32.mrb[74].mxu0 }
 0x878   :  { %6340 = vst.msk [vmem:[#allocation5 + $0x1f0] sm:$0xff] %vm875_vm3, %v6276_v21  ;;  %v6277_v41 = vmax.f32 %v9516_v53, 0.0  ;;  %v6202_v58 = vpop.f32.mrb[75].mxu0 }
 0x879   :  { %6338 = vst.msk [vmem:[#allocation5 + $0x1e0] sm:$0xff] %vm875_vm3, %v6274_v30  ;;  %v6275_v56 = vmax.f32 %v6202_v58, 0.0 }
 0x87a   :  { %6341 = vst.msk [vmem:[#allocation5 + $0x1f8] sm:$0xff] %vm875_vm3, %v6277_v41 }
 0x87b   :  { %6339 = vst.msk [vmem:[#allocation5 + $0x1e8] sm:$0xff] %vm875_vm3, %v6275_v56 }
 0x87c LB: > { %v10200_v2 = vld [vmem:[%s16206_s11 + $0x4] ss:$8 sps:$4 sm:$0xff]   ;;  %s8832_s26 = sshll.u32 %s10516_s10, 8  ;;  %v10198_v57 = vld [vmem:[%s16206_s11] ss:$8 sps:$4 sm:$0xff]   ;;  %s6347_s10 = sadd.s32 1, %s10516_s10   ;;  %s10516_s10 = sphi %s15120_s10, %s6347_s10  }
 0x87d   : > { %v10203_v4 = vld [vmem:[%s16206_s11 + $0x84] ss:$8 sps:$4 sm:$0xff]   ;;  %s6381_s28 = sshra.s32 %s8832_s26, 4  ;;  %6593 = vmatprep.mubr.bf16.mxu0 %v10200_v2  ;;  %v10201_v42 = vld [vmem:[%s16206_s11 + $0x80] ss:$8 sps:$4 sm:$0xff]   ;;  %s15244_s20 = scalar_lea.vmem [#allocation5], %s8832_s26 }
 0x87e   : > { %s8833_s0 = sshll.u32 %s6381_s28, 3  ;;  %6657 = vmatprep.mubr.bf16.mxu1 %v10203_v4  ;;  %v10204_v36 = vld [vmem:[%s16206_s11 + $0x14] ss:$8 sps:$4 sm:$0xff]   ;;  %v10208_v31 = vld [vmem:[%s16206_s11 + $0x10] ss:$8 sps:$4 sm:$0xff]   ;;  %p6344_p0 = scmp.ge.s32.totalorder %s6347_s10, 2  }
 0x87f   : > { %s15134_s5 = scalar_lea.vmem [#allocation4], %s8833_s0  ;;  %v10206_v23 = vld [vmem:[%s16206_s11 + $0x94] ss:$8 sps:$4 sm:$0xff]   ;;  %v10209_v52 = vld [vmem:[%s16206_s11 + $0x90] ss:$8 sps:$4 sm:$0xff]  }
 0x880   : > { %v6393_v28 = vld [vmem:[%s15134_s5 + $0x40] sm:$0xff]  ;;  %v6394_v37 = vld [vmem:[%s15134_s5 + $0x48] sm:$0xff]  ;;  %v6395_v19 = vld [vmem:[%s15134_s5 + $0x50] sm:$0xff] }
 0x881   : > { %v6385_v49 = vld [vmem:[%s15134_s5] sm:$0xff]  ;;  %9047 = vmatprep.subr.bf16.mxu0 %v6393_v28  ;;  %9909 = vmatprep.subr.bf16.mxu1 %v6393_v28  ;;  %v6386_v62 = vld [vmem:[%s15134_s5 + $0x8] sm:$0xff]  ;;  %v6387_v3 = vld [vmem:[%s15134_s5 + $0x10] sm:$0xff] }
 0x882   : > { %9048 = vmatpush3.bf16.msra.mxu0 %v6385_v49  ;;  %9917 = vmatpush3.bf16.msra.mxu1 %v6385_v49  ;;  %v6396_v63 = vld [vmem:[%s15134_s5 + $0x58] sm:$0xff]  ;;  %v6397_v47 = vld [vmem:[%s15134_s5 + $0x60] sm:$0xff]  ;;  %v6398_v55 = vld [vmem:[%s15134_s5 + $0x68] sm:$0xff] }
 0x883   : > { %9049 = vmatprep.subr.bf16.mxu0 %v6394_v37  ;;  %9910 = vmatprep.subr.bf16.mxu1 %v6394_v37  ;;  %v6388_v59 = vld [vmem:[%s15134_s5 + $0x18] sm:$0xff]  ;;  %v6389_v0 = vld [vmem:[%s15134_s5 + $0x20] sm:$0xff]  ;;  %v6390_v6 = vld [vmem:[%s15134_s5 + $0x28] sm:$0xff] }
 0x884   : > { %v6399_v60 = vld [vmem:[%s15134_s5 + $0x70] sm:$0xff]  ;;  %v6400_v40 = vld [vmem:[%s15134_s5 + $0x78] sm:$0xff]  ;;  %v10210_v54 = vld [vmem:[%s16206_s11 + $0x24] ss:$8 sps:$4 sm:$0xff]  }
 0x885   : > { %v6391_v22 = vld [vmem:[%s15134_s5 + $0x30] sm:$0xff]  ;;  %v6392_v1 = vld [vmem:[%s15134_s5 + $0x38] sm:$0xff]  ;;  %v10212_v7 = vld [vmem:[%s16206_s11 + $0xa4] ss:$8 sps:$4 sm:$0xff]  }
 0x886   : > { %9050 = vmatpush3.bf16.msra.mxu0 %v6386_v62  ;;  %9918 = vmatpush3.bf16.msra.mxu1 %v6386_v62  ;;  %v10214_v32 = vld [vmem:[%s16206_s11 + $0x20] ss:$8 sps:$4 sm:$0xff]   ;;  %v10216_v24 = vld [vmem:[%s16206_s11 + $0x34] ss:$8 sps:$4 sm:$0xff]   ;;  %v10220_v11 = vld [vmem:[%s16206_s11 + $0x30] ss:$8 sps:$4 sm:$0xff]  }
 0x887   : > { %9051 = vmatprep.subr.bf16.mxu0 %v6395_v19  ;;  %9911 = vmatprep.subr.bf16.mxu1 %v6395_v19  ;;  %v10215_v14 = vld [vmem:[%s16206_s11 + $0xa0] ss:$8 sps:$4 sm:$0xff]   ;;  %v10218_v12 = vld [vmem:[%s16206_s11 + $0xb4] ss:$8 sps:$4 sm:$0xff]   ;;  %v10221_v50 = vld [vmem:[%s16206_s11 + $0xb0] ss:$8 sps:$4 sm:$0xff]  }
 0x888   : > { %v10222_v39 = vld [vmem:[%s16206_s11 + $0x44] ss:$8 sps:$4 sm:$0xff]   ;;  %v10226_v13 = vld [vmem:[%s16206_s11 + $0x40] ss:$8 sps:$4 sm:$0xff]   ;;  %v10228_v48 = vld [vmem:[%s16206_s11 + $0x54] ss:$8 sps:$4 sm:$0xff]  }
 0x889   : > { %v10224_v51 = vld [vmem:[%s16206_s11 + $0xc4] ss:$8 sps:$4 sm:$0xff]   ;;  %v10227_v38 = vld [vmem:[%s16206_s11 + $0xc0] ss:$8 sps:$4 sm:$0xff]   ;;  %v10230_v25 = vld [vmem:[%s16206_s11 + $0xd4] ss:$8 sps:$4 sm:$0xff]  }
 0x88a   : > { %9052 = vmatpush3.bf16.msra.mxu0 %v6387_v3  ;;  %9919 = vmatpush3.bf16.msra.mxu1 %v6387_v3  ;;  %v10232_v9 = vld [vmem:[%s16206_s11 + $0x50] ss:$8 sps:$4 sm:$0xff]   ;;  %v10234_v26 = vld [vmem:[%s16206_s11 + $0x64] ss:$8 sps:$4 sm:$0xff]   ;;  %v10238_v15 = vld [vmem:[%s16206_s11 + $0x60] ss:$8 sps:$4 sm:$0xff]  }
 0x88b   : > { %9053 = vmatprep.subr.bf16.mxu0 %v6396_v63  ;;  %9912 = vmatprep.subr.bf16.mxu1 %v6396_v63  ;;  %v10233_v27 = vld [vmem:[%s16206_s11 + $0xd0] ss:$8 sps:$4 sm:$0xff]   ;;  %v10236_v61 = vld [vmem:[%s16206_s11 + $0xe4] ss:$8 sps:$4 sm:$0xff]   ;;  %v10239_v33 = vld [vmem:[%s16206_s11 + $0xe0] ss:$8 sps:$4 sm:$0xff]  }
 0x88c   : > { %v10240_v20 = vld [vmem:[%s16206_s11 + $0x74] ss:$8 sps:$4 sm:$0xff]   ;;  %v10244_v5 = vld [vmem:[%s16206_s11 + $0x70] ss:$8 sps:$4 sm:$0xff]   ;;  %v6723_v46 = vld [vmem:[%s15244_s20] sm:$0xff] }
 0x88d   : > { %v10242_v10 = vld [vmem:[%s16206_s11 + $0xf4] ss:$8 sps:$4 sm:$0xff]   ;;  %v10245_v44 = vld [vmem:[%s16206_s11 + $0xf0] ss:$8 sps:$4 sm:$0xff]   ;;  %v6739_v35 = vld [vmem:[%s15244_s20 + $0x80] sm:$0xff] }
 0x88e   : > { %9054 = vmatpush3.bf16.msra.mxu0 %v6388_v59  ;;  %9920 = vmatpush3.bf16.msra.mxu1 %v6388_v59  ;;  %v6724_v30 = vld [vmem:[%s15244_s20 + $0x8] sm:$0xff]  ;;  %v6725_v3 = vld [vmem:[%s15244_s20 + $0x10] sm:$0xff] }
 0x88f   : > { %9055 = vmatprep.subr.bf16.mxu0 %v6397_v47  ;;  %9913 = vmatprep.subr.bf16.mxu1 %v6397_v47  ;;  %v6740_v41 = vld [vmem:[%s15244_s20 + $0x88] sm:$0xff]  ;;  %v6741_v59 = vld [vmem:[%s15244_s20 + $0x90] sm:$0xff] }
 0x892   : > { %9056 = vmatpush3.bf16.msra.mxu0 %v6389_v0  ;;  %9921 = vmatpush3.bf16.msra.mxu1 %v6389_v0 }
 0x893   : > { %9057 = vmatprep.subr.bf16.mxu0 %v6398_v55  ;;  %9914 = vmatprep.subr.bf16.mxu1 %v6398_v55 }
 0x896   : > { %9058 = vmatpush3.bf16.msra.mxu0 %v6390_v6  ;;  %9922 = vmatpush3.bf16.msra.mxu1 %v6390_v6 }
 0x897   : > { %9059 = vmatprep.subr.bf16.mxu0 %v6399_v60  ;;  %9915 = vmatprep.subr.bf16.mxu1 %v6399_v60 }
 0x89a   : > { %9060 = vmatpush3.bf16.msra.mxu0 %v6391_v22  ;;  %9923 = vmatpush3.bf16.msra.mxu1 %v6391_v22  ;;  %v6726_v22 = vld [vmem:[%s15244_s20 + $0x18] sm:$0xff] }
 0x89b   : > { %9061 = vmatprep.subr.bf16.mxu0 %v6400_v40  ;;  %9916 = vmatprep.subr.bf16.mxu1 %v6400_v40 }
 0x89e   : > { %9062 = vmatpush3.bf16.msra.mxu0 %v6392_v1  ;;  %9924 = vmatpush3.bf16.msra.mxu1 %v6392_v1  ;;  %v6742_v1 = vld [vmem:[%s15244_s20 + $0x98] sm:$0xff] }
 0x8a1   : > { %6594 = vmatmul.mubr.bf16.vlgmr.msra.gmra.mrb[0].mxu0 %v10198_v57  ;;  %6658 = vmatmul.mubr.bf16.vlgmr.msra.gmra.mrb[0].mxu1 %v10201_v42 }
 0x8a2   : > { %6601 = vmatprep.mubr.bf16.mxu0 %v10204_v36  ;;  %6665 = vmatprep.mubr.bf16.mxu1 %v10206_v23 }
 0x8a9   : > { %6602 = vmatmul.mubr.bf16.gmra.mrb[4].mxu0 %v10208_v31  ;;  %6666 = vmatmul.mubr.bf16.gmra.mrb[4].mxu1 %v10209_v52 }
 0x8aa   : > { %6609 = vmatprep.mubr.bf16.mxu0 %v10210_v54  ;;  %6673 = vmatprep.mubr.bf16.mxu1 %v10212_v7 }
 0x8b1   : > { %6610 = vmatmul.mubr.bf16.gmra.mrb[8].mxu0 %v10214_v32  ;;  %6674 = vmatmul.mubr.bf16.gmra.mrb[8].mxu1 %v10215_v14  ;;  %v6727_v14 = vld [vmem:[%s15244_s20 + $0x20] sm:$0xff] }
 0x8b2   : > { %6617 = vmatprep.mubr.bf16.mxu0 %v10216_v24  ;;  %6681 = vmatprep.mubr.bf16.mxu1 %v10218_v12  ;;  %v6743_v12 = vld [vmem:[%s15244_s20 + $0xa0] sm:$0xff] }
 0x8b9   : > { %6618 = vmatmul.mubr.bf16.gmra.mrb[12].mxu0 %v10220_v11  ;;  %6682 = vmatmul.mubr.bf16.gmra.mrb[12].mxu1 %v10221_v50 }
 0x8ba   : > { %6625 = vmatprep.mubr.bf16.mxu0 %v10222_v39  ;;  %6689 = vmatprep.mubr.bf16.mxu1 %v10224_v51 }
 0x8c1   : > { %6626 = vmatmul.mubr.bf16.gmra.mrb[16].mxu0 %v10226_v13  ;;  %6690 = vmatmul.mubr.bf16.gmra.mrb[16].mxu1 %v10227_v38  ;;  %v6728_v38 = vld [vmem:[%s15244_s20 + $0x28] sm:$0xff] }
 0x8c2   : > { %6633 = vmatprep.mubr.bf16.mxu0 %v10228_v48  ;;  %6697 = vmatprep.mubr.bf16.mxu1 %v10230_v25  ;;  %v6744_v25 = vld [vmem:[%s15244_s20 + $0xa8] sm:$0xff] }
 0x8c9   : > { %6634 = vmatmul.mubr.bf16.gmra.mrb[20].mxu0 %v10232_v9  ;;  %6698 = vmatmul.mubr.bf16.gmra.mrb[20].mxu1 %v10233_v27 }
 0x8ca   : > { %6641 = vmatprep.mubr.bf16.mxu0 %v10234_v26  ;;  %6705 = vmatprep.mubr.bf16.mxu1 %v10236_v61 }
 0x8d1   : > { %6642 = vmatmul.mubr.bf16.gmra.mrb[24].mxu0 %v10238_v15  ;;  %6706 = vmatmul.mubr.bf16.gmra.mrb[24].mxu1 %v10239_v33 }
 0x8d2   : > { %6649 = vmatprep.mubr.bf16.mxu0 %v10240_v20  ;;  %6713 = vmatprep.mubr.bf16.mxu1 %v10242_v10 }
 0x8d9   : > { %6650 = vmatmul.mubr.bf16.gmra.mrb[28].mxu0 %v10244_v5  ;;  %6714 = vmatmul.mubr.bf16.gmra.mrb[28].mxu1 %v10245_v44  ;;  %v6729_v44 = vld [vmem:[%s15244_s20 + $0x30] sm:$0xff] }
 0x974   : > { %v9063_v16 = vpop.f32.mrb[0].mxu0  ;;  %v9111_v29 = vpop.f32.mrb[0].mxu1 }
 0x975   : > { %v9064_v34 = vpop.f32.mrb[1].mxu0  ;;  %v9112_v45 = vpop.f32.mrb[1].mxu1 }
 0x976   : > { %v9065_v17 = vadd.f32 %v9064_v34, %v9063_v16  ;;  %v9113_v18 = vadd.f32 %v9112_v45, %v9111_v29  ;;  %v9066_v43 = vpop.f32.mrb[2].mxu0  ;;  %v9114_v21 = vpop.f32.mrb[2].mxu1  ;;  %v6745_v29 = vld [vmem:[%s15244_s20 + $0xb0] sm:$0xff] }
 0x977   : > { %v9067_v8 = vpop.f32.mrb[3].mxu0  ;;  %v9115_v53 = vpop.f32.mrb[3].mxu1 }
 0x978   : > { %v6755_v58 = vadd.f32 %v9065_v17, %v6723_v46  ;;  %v6771_v56 = vadd.f32 %v9113_v18, %v6739_v35  ;;  %v9068_v2 = vadd.f32 %v9067_v8, %v9066_v43  ;;  %v9116_v4 = vadd.f32 %v9115_v53, %v9114_v21  ;;  %v6730_v18 = vld [vmem:[%s15244_s20 + $0x38] sm:$0xff] }
 0x979   : > { %v6746_v21 = vld [vmem:[%s15244_s20 + $0xb8] sm:$0xff] }
 0x97a   : > { %6787 = vst.msk [vmem:[%s15244_s20] sm:$0xff] %vm875_vm3, %v6755_v58  ;;  %6803 = vst.msk [vmem:[%s15244_s20 + $0x80] sm:$0xff] %vm875_vm3, %v6771_v56  ;;  %v6756_v28 = vadd.f32 %v9068_v2, %v6724_v30  ;;  %v6772_v49 = vadd.f32 %v9116_v4, %v6740_v41 }
 0x97c   : > { %6788 = vst.msk [vmem:[%s15244_s20 + $0x8] sm:$0xff] %vm875_vm3, %v6756_v28  ;;  %6804 = vst.msk [vmem:[%s15244_s20 + $0x88] sm:$0xff] %vm875_vm3, %v6772_v49  ;;  %v9069_v37 = vpop.f32.mrb[4].mxu0  ;;  %v9117_v62 = vpop.f32.mrb[4].mxu1  ;;  %v6731_v49 = vld [vmem:[%s15244_s20 + $0x40] sm:$0xff] }
 0x97d   : > { %v9070_v19 = vpop.f32.mrb[5].mxu0  ;;  %v9118_v63 = vpop.f32.mrb[5].mxu1 }
 0x97e   : > { %v9071_v47 = vadd.f32 %v9070_v19, %v9069_v37  ;;  %v9119_v0 = vadd.f32 %v9118_v63, %v9117_v62  ;;  %v9072_v55 = vpop.f32.mrb[6].mxu0  ;;  %v9120_v6 = vpop.f32.mrb[6].mxu1  ;;  %v6747_v62 = vld [vmem:[%s15244_s20 + $0xc0] sm:$0xff] }
 0x97f   : > { %v9073_v60 = vpop.f32.mrb[7].mxu0  ;;  %v9121_v40 = vpop.f32.mrb[7].mxu1 }
 0x980   : > { %v6757_v57 = vadd.f32 %v9071_v47, %v6725_v3  ;;  %v6773_v42 = vadd.f32 %v9119_v0, %v6741_v59  ;;  %v9074_v36 = vadd.f32 %v9073_v60, %v9072_v55  ;;  %v9122_v23 = vadd.f32 %v9121_v40, %v9120_v6  ;;  %v6732_v0 = vld [vmem:[%s15244_s20 + $0x48] sm:$0xff] }
 0x981   : > { %v6748_v6 = vld [vmem:[%s15244_s20 + $0xc8] sm:$0xff] }
 0x982   : > { %6789 = vst.msk [vmem:[%s15244_s20 + $0x10] sm:$0xff] %vm875_vm3, %v6757_v57  ;;  %6805 = vst.msk [vmem:[%s15244_s20 + $0x90] sm:$0xff] %vm875_vm3, %v6773_v42  ;;  %v6758_v31 = vadd.f32 %v9074_v36, %v6726_v22  ;;  %v6774_v52 = vadd.f32 %v9122_v23, %v6742_v1 }
 0x984   : > { %6790 = vst.msk [vmem:[%s15244_s20 + $0x18] sm:$0xff] %vm875_vm3, %v6758_v31  ;;  %6806 = vst.msk [vmem:[%s15244_s20 + $0x98] sm:$0xff] %vm875_vm3, %v6774_v52  ;;  %v9075_v54 = vpop.f32.mrb[8].mxu0  ;;  %v9123_v7 = vpop.f32.mrb[8].mxu1  ;;  %v6733_v52 = vld [vmem:[%s15244_s20 + $0x50] sm:$0xff] }
 0x985   : > { %v9076_v32 = vpop.f32.mrb[9].mxu0  ;;  %v9124_v24 = vpop.f32.mrb[9].mxu1 }
 0x986   : > { %v9077_v11 = vadd.f32 %v9076_v32, %v9075_v54  ;;  %v9125_v50 = vadd.f32 %v9124_v24, %v9123_v7  ;;  %v9078_v39 = vpop.f32.mrb[10].mxu0  ;;  %v9126_v51 = vpop.f32.mrb[10].mxu1  ;;  %v6749_v7 = vld [vmem:[%s15244_s20 + $0xd0] sm:$0xff] }
 0x987   : > { %v9079_v13 = vpop.f32.mrb[11].mxu0  ;;  %v9127_v48 = vpop.f32.mrb[11].mxu1 }
 0x988   : > { %v6759_v9 = vadd.f32 %v9077_v11, %v6727_v14  ;;  %v6775_v27 = vadd.f32 %v9125_v50, %v6743_v12  ;;  %v9080_v26 = vadd.f32 %v9079_v13, %v9078_v39  ;;  %v9128_v61 = vadd.f32 %v9127_v48, %v9126_v51  ;;  %v6734_v50 = vld [vmem:[%s15244_s20 + $0x58] sm:$0xff] }
 0x989   : > { %v6750_v51 = vld [vmem:[%s15244_s20 + $0xd8] sm:$0xff] }
 0x98a   : > { %6791 = vst.msk [vmem:[%s15244_s20 + $0x20] sm:$0xff] %vm875_vm3, %v6759_v9  ;;  %6807 = vst.msk [vmem:[%s15244_s20 + $0xa0] sm:$0xff] %vm875_vm3, %v6775_v27  ;;  %v6760_v15 = vadd.f32 %v9080_v26, %v6728_v38  ;;  %v6776_v33 = vadd.f32 %v9128_v61, %v6744_v25 }
 0x98c   : > { %6792 = vst.msk [vmem:[%s15244_s20 + $0x28] sm:$0xff] %vm875_vm3, %v6760_v15  ;;  %6808 = vst.msk [vmem:[%s15244_s20 + $0xa8] sm:$0xff] %vm875_vm3, %v6776_v33  ;;  %v9081_v20 = vpop.f32.mrb[12].mxu0  ;;  %v9129_v10 = vpop.f32.mrb[12].mxu1  ;;  %v6735_v33 = vld [vmem:[%s15244_s20 + $0x60] sm:$0xff] }
 0x98d   : > { %v9082_v5 = vpop.f32.mrb[13].mxu0  ;;  %v9130_v16 = vpop.f32.mrb[13].mxu1 }
 0x98e   : > { %v9083_v34 = vadd.f32 %v9082_v5, %v9081_v20  ;;  %v9131_v46 = vadd.f32 %v9130_v16, %v9129_v10  ;;  %v9084_v45 = vpop.f32.mrb[14].mxu0  ;;  %v9132_v35 = vpop.f32.mrb[14].mxu1  ;;  %v6751_v10 = vld [vmem:[%s15244_s20 + $0xe0] sm:$0xff] }
 0x98f   : > { %v9085_v17 = vpop.f32.mrb[15].mxu0  ;;  %v9133_v43 = vpop.f32.mrb[15].mxu1 }
 0x990   : > { %v6761_v8 = vadd.f32 %v9083_v34, %v6729_v44  ;;  %v6777_v30 = vadd.f32 %v9131_v46, %v6745_v29  ;;  %v9086_v53 = vadd.f32 %v9085_v17, %v9084_v45  ;;  %v9134_v41 = vadd.f32 %v9133_v43, %v9132_v35  ;;  %v6736_v46 = vld [vmem:[%s15244_s20 + $0x68] sm:$0xff] }
 0x991   : > { %v6752_v35 = vld [vmem:[%s15244_s20 + $0xe8] sm:$0xff] }
 0x992   : > { %6793 = vst.msk [vmem:[%s15244_s20 + $0x30] sm:$0xff] %vm875_vm3, %v6761_v8  ;;  %6809 = vst.msk [vmem:[%s15244_s20 + $0xb0] sm:$0xff] %vm875_vm3, %v6777_v30  ;;  %v6762_v58 = vadd.f32 %v9086_v53, %v6730_v18  ;;  %v6778_v56 = vadd.f32 %v9134_v41, %v6746_v21 }
 0x994   : > { %6794 = vst.msk [vmem:[%s15244_s20 + $0x38] sm:$0xff] %vm875_vm3, %v6762_v58  ;;  %6810 = vst.msk [vmem:[%s15244_s20 + $0xb8] sm:$0xff] %vm875_vm3, %v6778_v56  ;;  %v9087_v2 = vpop.f32.mrb[16].mxu0  ;;  %v9135_v4 = vpop.f32.mrb[16].mxu1  ;;  %v6737_v56 = vld [vmem:[%s15244_s20 + $0x70] sm:$0xff] }
 0x995   : > { %v9088_v28 = vpop.f32.mrb[17].mxu0  ;;  %v9136_v37 = vpop.f32.mrb[17].mxu1 }
 0x996   : > { %v9089_v19 = vadd.f32 %v9088_v28, %v9087_v2  ;;  %v9137_v3 = vadd.f32 %v9136_v37, %v9135_v4  ;;  %v9090_v63 = vpop.f32.mrb[18].mxu0  ;;  %v9138_v59 = vpop.f32.mrb[18].mxu1  ;;  %v6753_v4 = vld [vmem:[%s15244_s20 + $0xf0] sm:$0xff] }
 0x997   : > { %v9091_v47 = vpop.f32.mrb[19].mxu0  ;;  %v9139_v55 = vpop.f32.mrb[19].mxu1 }
 0x998   : > { %v6763_v60 = vadd.f32 %v9089_v19, %v6731_v49  ;;  %v6779_v22 = vadd.f32 %v9137_v3, %v6747_v62  ;;  %v9092_v40 = vadd.f32 %v9091_v47, %v9090_v63  ;;  %v9140_v1 = vadd.f32 %v9139_v55, %v9138_v59  ;;  %v6738_v3 = vld [vmem:[%s15244_s20 + $0x78] sm:$0xff] }
 0x999   : > { %v6754_v59 = vld [vmem:[%s15244_s20 + $0xf8] sm:$0xff] }
 0x99a   : > { %6795 = vst.msk [vmem:[%s15244_s20 + $0x40] sm:$0xff] %vm875_vm3, %v6763_v60  ;;  %6811 = vst.msk [vmem:[%s15244_s20 + $0xc0] sm:$0xff] %vm875_vm3, %v6779_v22  ;;  %v6764_v57 = vadd.f32 %v9092_v40, %v6732_v0  ;;  %v6780_v42 = vadd.f32 %v9140_v1, %v6748_v6  ;;  %v10246_v40 = vld [vmem:[%s16207_s12] sm:$0xff] (%p6344_p0)   ;;  %v10247_v1 = vld [vmem:[%s16207_s12 + $0x8] sm:$0xff] (%p6344_p0)  }
 0x99b   :  { %9517 = vmatprep.subr.bf16.mxu0 (%p6344_p0), %v10246_v40 }
 0x99c   : > { %6796 = vst.msk [vmem:[%s15244_s20 + $0x48] sm:$0xff] %vm875_vm3, %v6764_v57  ;;  %6812 = vst.msk [vmem:[%s15244_s20 + $0xc8] sm:$0xff] %vm875_vm3, %v6780_v42  ;;  %v9093_v36 = vpop.f32.mrb[20].mxu0  ;;  %v9141_v23 = vpop.f32.mrb[20].mxu1  ;;  %9518 = vmatpush3.bf16.msra.mxu0 (%p6344_p0), %v10246_v40  ;;  %v10248_v57 = vld [vmem:[%s16207_s12 + $0x10] sm:$0xff] (%p6344_p0)  }
 0x99d   : > { %v9094_v31 = vpop.f32.mrb[21].mxu0  ;;  %v9142_v54 = vpop.f32.mrb[21].mxu1  ;;  %9519 = vmatprep.subr.bf16.mxu0 (%p6344_p0), %v10247_v1 }
 0x99e   : > { %v9095_v32 = vadd.f32 %v9094_v31, %v9093_v36  ;;  %v9143_v14 = vadd.f32 %v9142_v54, %v9141_v23  ;;  %v9096_v24 = vpop.f32.mrb[22].mxu0  ;;  %v9144_v12 = vpop.f32.mrb[22].mxu1  ;;  %v10249_v31 = vld [vmem:[%s16207_s12 + $0x18] sm:$0xff] (%p6344_p0)  }
 0x99f   : > { %v9097_v11 = vpop.f32.mrb[23].mxu0  ;;  %v9145_v39 = vpop.f32.mrb[23].mxu1 }
 0x9a0   : > { %v6765_v13 = vadd.f32 %v9095_v32, %v6733_v52  ;;  %v6781_v38 = vadd.f32 %v9143_v14, %v6749_v7  ;;  %v9098_v48 = vadd.f32 %v9097_v11, %v9096_v24  ;;  %v9146_v25 = vadd.f32 %v9145_v39, %v9144_v12  ;;  %9520 = vmatpush3.bf16.msra.mxu0 (%p6344_p0), %v10247_v1 }
 0x9a1   :  { %9521 = vmatprep.subr.bf16.mxu0 (%p6344_p0), %v10248_v57 }
 0x9a2   : > { %6797 = vst.msk [vmem:[%s15244_s20 + $0x50] sm:$0xff] %vm875_vm3, %v6765_v13  ;;  %6813 = vst.msk [vmem:[%s15244_s20 + $0xd0] sm:$0xff] %vm875_vm3, %v6781_v38  ;;  %v6766_v9 = vadd.f32 %v9098_v48, %v6734_v50  ;;  %v6782_v27 = vadd.f32 %v9146_v25, %v6750_v51 }
 0x9a4   : > { %6798 = vst.msk [vmem:[%s15244_s20 + $0x58] sm:$0xff] %vm875_vm3, %v6766_v9  ;;  %6814 = vst.msk [vmem:[%s15244_s20 + $0xd8] sm:$0xff] %vm875_vm3, %v6782_v27  ;;  %v9099_v26 = vpop.f32.mrb[24].mxu0  ;;  %v9147_v61 = vpop.f32.mrb[24].mxu1  ;;  %9522 = vmatpush3.bf16.msra.mxu0 (%p6344_p0), %v10248_v57  ;;  %v10250_v9 = vld [vmem:[%s16208_s13] sm:$0xff] (%p6344_p0)   ;;  %v10251_v27 = vld [vmem:[%s16208_s13 + $0x8] sm:$0xff] (%p6344_p0)  }
 0x9a5   : > { %v9100_v15 = vpop.f32.mrb[25].mxu0  ;;  %v9148_v20 = vpop.f32.mrb[25].mxu1  ;;  %9523 = vmatprep.subr.bf16.mxu0 (%p6344_p0), %v10249_v31  ;;  %9589 = vmatprep.subr.bf16.mxu1 (%p6344_p0), %v10250_v9 }
 0x9a6   : > { %v9101_v5 = vadd.f32 %v9100_v15, %v9099_v26  ;;  %v9149_v44 = vadd.f32 %v9148_v20, %v9147_v61  ;;  %v9102_v16 = vpop.f32.mrb[26].mxu0  ;;  %v9150_v29 = vpop.f32.mrb[26].mxu1  ;;  %9590 = vmatpush3.bf16.msra.mxu1 (%p6344_p0), %v10250_v9 }
 0x9a7   : > { %v9103_v34 = vpop.f32.mrb[27].mxu0  ;;  %v9151_v45 = vpop.f32.mrb[27].mxu1  ;;  %9591 = vmatprep.subr.bf16.mxu1 (%p6344_p0), %v10251_v27 }
 0x9a8   : > { %v6767_v17 = vadd.f32 %v9101_v5, %v6735_v33  ;;  %v6783_v18 = vadd.f32 %v9149_v44, %v6751_v10  ;;  %v9104_v43 = vadd.f32 %v9103_v34, %v9102_v16  ;;  %v9152_v21 = vadd.f32 %v9151_v45, %v9150_v29  ;;  %9524 = vmatpush3.bf16.msra.mxu0 (%p6344_p0), %v10249_v31 }
 0x9aa   : > { %6799 = vst.msk [vmem:[%s15244_s20 + $0x60] sm:$0xff] %vm875_vm3, %v6767_v17  ;;  %6815 = vst.msk [vmem:[%s15244_s20 + $0xe0] sm:$0xff] %vm875_vm3, %v6783_v18  ;;  %v6768_v8 = vadd.f32 %v9104_v43, %v6736_v46  ;;  %v6784_v30 = vadd.f32 %v9152_v21, %v6752_v35  ;;  %9592 = vmatpush3.bf16.msra.mxu1 (%p6344_p0), %v10251_v27 }
 0x9ac   : > { %6800 = vst.msk [vmem:[%s15244_s20 + $0x68] sm:$0xff] %vm875_vm3, %v6768_v8  ;;  %6816 = vst.msk [vmem:[%s15244_s20 + $0xe8] sm:$0xff] %vm875_vm3, %v6784_v30  ;;  %v9105_v53 = vpop.f32.mrb[28].mxu0  ;;  %v9153_v41 = vpop.f32.mrb[28].mxu1 }
 0x9ad   : > { %v9106_v58 = vpop.f32.mrb[29].mxu0  ;;  %v9154_v2 = vpop.f32.mrb[29].mxu1 }
 0x9ae   : > { %v9107_v28 = vadd.f32 %v9106_v58, %v9105_v53  ;;  %v9155_v49 = vadd.f32 %v9154_v2, %v9153_v41  ;;  %v9108_v37 = vpop.f32.mrb[30].mxu0  ;;  %v9156_v62 = vpop.f32.mrb[30].mxu1  ;;  %6346 = sbr.rel (!%p6344_p0) target bundleno = 2172 (0x87c), region = 91 }
 0x9af   : > { %v9109_v19 = vpop.f32.mrb[31].mxu0  ;;  %v9157_v63 = vpop.f32.mrb[31].mxu1 }
 0x9b0   : > { %v6769_v47 = vadd.f32 %v9107_v28, %v6737_v56  ;;  %v6785_v0 = vadd.f32 %v9155_v49, %v6753_v4  ;;  %v9110_v55 = vadd.f32 %v9109_v19, %v9108_v37  ;;  %v9158_v6 = vadd.f32 %v9157_v63, %v9156_v62 }
 0x9b2   : > { %6801 = vst.msk [vmem:[%s15244_s20 + $0x70] sm:$0xff] %vm875_vm3, %v6769_v47  ;;  %6817 = vst.msk [vmem:[%s15244_s20 + $0xf0] sm:$0xff] %vm875_vm3, %v6785_v0  ;;  %v6770_v60 = vadd.f32 %v9110_v55, %v6738_v3  ;;  %v6786_v22 = vadd.f32 %v9158_v6, %v6754_v59 }
 0x9b4   : > { %6802 = vst.msk [vmem:[%s15244_s20 + $0x78] sm:$0xff] %vm875_vm3, %v6770_v60  ;;  %6818 = vst.msk [vmem:[%s15244_s20 + $0xf8] sm:$0xff] %vm875_vm3, %v6786_v22 }
 0x9bb   :  { %v6819_v42 = vld [vmem:[#allocation5] sm:$0xff]  ;;  %v6820_v36 = vld [vmem:[#allocation5 + $0x8] sm:$0xff]  ;;  %v6821_v52 = vld [vmem:[#allocation5 + $0x10] sm:$0xff] }
 0x9bc   :  { %v6883_v23 = vpack.c.bf16 %v6820_v36, %v6819_v42  ;;  %v6822_v54 = vld [vmem:[#allocation5 + $0x18] sm:$0xff]  ;;  %v6823_v7 = vld [vmem:[#allocation5 + $0x20] sm:$0xff]  ;;  %v6824_v32 = vld [vmem:[#allocation5 + $0x28] sm:$0xff] }
 0x9bd   :  { %v6884_v14 = vpack.c.bf16 %v6822_v54, %v6821_v52  ;;  %v6885_v24 = vpack.c.bf16 %v6824_v32, %v6823_v7  ;;  %v6825_v12 = vld [vmem:[#allocation5 + $0x30] sm:$0xff]  ;;  %v6826_v11 = vld [vmem:[#allocation5 + $0x38] sm:$0xff]  ;;  %v6827_v50 = vld [vmem:[#allocation5 + $0x40] sm:$0xff] }
 0x9be   :  { %9525 = vmatprep.mubr.msk.bf16.mxu0 %vm875_vm3, %v6883_v23  ;;  %v6828_v39 = vld [vmem:[#allocation5 + $0x48] sm:$0xff]  ;;  %v6886_v51 = vpack.c.bf16 %v6826_v11, %v6825_v12  ;;  %v6829_v38 = vld [vmem:[#allocation5 + $0x50] sm:$0xff]  ;;  %v6830_v48 = vld [vmem:[#allocation5 + $0x58] sm:$0xff] }
 0x9bf   :  { %9526 = vmatmul.mubr.msk.bf16.vlgmr.msra.gmra.mrb[0].mxu0 %vm875_vm3, %v6884_v14  ;;  %v6887_v13 = vpack.c.bf16 %v6828_v39, %v6827_v50  ;;  %v6831_v25 = vld [vmem:[#allocation5 + $0x60] sm:$0xff]  ;;  %v6832_v26 = vld [vmem:[#allocation5 + $0x68] sm:$0xff]  ;;  %v6888_v61 = vpack.c.bf16 %v6830_v48, %v6829_v38  ;;  %v6833_v33 = vld [vmem:[#allocation5 + $0x70] sm:$0xff] }
 0x9c0   :  { %9529 = vmatprep.mubr.msk.bf16.mxu0 %vm875_vm3, %v6885_v24  ;;  %v6889_v15 = vpack.c.bf16 %v6832_v26, %v6831_v25  ;;  %v6834_v20 = vld [vmem:[#allocation5 + $0x78] sm:$0xff]  ;;  %v6835_v10 = vld [vmem:[#allocation5 + $0x80] sm:$0xff]  ;;  %v6836_v5 = vld [vmem:[#allocation5 + $0x88] sm:$0xff] }
 0x9c1   :  { %v6890_v44 = vpack.c.bf16 %v6834_v20, %v6833_v33  ;;  %v6891_v16 = vpack.c.bf16 %v6836_v5, %v6835_v10  ;;  %v6837_v29 = vld [vmem:[#allocation5 + $0x90] sm:$0xff]  ;;  %v6838_v34 = vld [vmem:[#allocation5 + $0x98] sm:$0xff]  ;;  %v6839_v46 = vld [vmem:[#allocation5 + $0xa0] sm:$0xff] }
 0x9c2   :  { %v6840_v45 = vld [vmem:[#allocation5 + $0xa8] sm:$0xff]  ;;  %v6892_v35 = vpack.c.bf16 %v6838_v34, %v6837_v29  ;;  %v6841_v18 = vld [vmem:[#allocation5 + $0xb0] sm:$0xff]  ;;  %v6842_v43 = vld [vmem:[#allocation5 + $0xb8] sm:$0xff] }
 0x9c3   :  { %v6893_v17 = vpack.c.bf16 %v6840_v45, %v6839_v46  ;;  %v6843_v21 = vld [vmem:[#allocation5 + $0xc0] sm:$0xff]  ;;  %v6844_v8 = vld [vmem:[#allocation5 + $0xc8] sm:$0xff]  ;;  %v6894_v30 = vpack.c.bf16 %v6842_v43, %v6841_v18  ;;  %v6845_v41 = vld [vmem:[#allocation5 + $0xd0] sm:$0xff] }
 0x9c4   :  { %v6895_v53 = vpack.c.bf16 %v6844_v8, %v6843_v21  ;;  %v6846_v58 = vld [vmem:[#allocation5 + $0xd8] sm:$0xff]  ;;  %v6847_v56 = vld [vmem:[#allocation5 + $0xe0] sm:$0xff]  ;;  %v6848_v2 = vld [vmem:[#allocation5 + $0xe8] sm:$0xff] }
 0x9c5   :  { %v6896_v4 = vpack.c.bf16 %v6846_v58, %v6845_v41  ;;  %v6897_v28 = vpack.c.bf16 %v6848_v2, %v6847_v56  ;;  %v6849_v49 = vld [vmem:[#allocation5 + $0xf0] sm:$0xff]  ;;  %v6850_v37 = vld [vmem:[#allocation5 + $0xf8] sm:$0xff]  ;;  %v6851_v62 = vld [vmem:[#allocation5 + $0x100] sm:$0xff] }
 0x9c6   :  { %v6852_v19 = vld [vmem:[#allocation5 + $0x108] sm:$0xff]  ;;  %v6898_v3 = vpack.c.bf16 %v6850_v37, %v6849_v49  ;;  %v6853_v59 = vld [vmem:[#allocation5 + $0x110] sm:$0xff]  ;;  %v6854_v47 = vld [vmem:[#allocation5 + $0x118] sm:$0xff] }
 0x9c7   :  { %9530 = vmatmul.mubr.msk.bf16.gmra.mrb[4].mxu0 %vm875_vm3, %v6886_v51  ;;  %v6899_v63 = vpack.c.bf16 %v6852_v19, %v6851_v62  ;;  %v6855_v0 = vld [vmem:[#allocation5 + $0x120] sm:$0xff]  ;;  %v6856_v55 = vld [vmem:[#allocation5 + $0x128] sm:$0xff]  ;;  %v6900_v6 = vpack.c.bf16 %v6854_v47, %v6853_v59  ;;  %v6857_v22 = vld [vmem:[#allocation5 + $0x130] sm:$0xff] }
 0x9c8   :  { %9533 = vmatprep.mubr.msk.bf16.mxu0 %vm875_vm3, %v6887_v13  ;;  %v6901_v60 = vpack.c.bf16 %v6856_v55, %v6855_v0  ;;  %v6858_v40 = vld [vmem:[#allocation5 + $0x138] sm:$0xff]  ;;  %v6859_v1 = vld [vmem:[#allocation5 + $0x140] sm:$0xff]  ;;  %v6860_v57 = vld [vmem:[#allocation5 + $0x148] sm:$0xff] }
 0x9c9   :  { %v6902_v42 = vpack.c.bf16 %v6858_v40, %v6857_v22  ;;  %v6903_v36 = vpack.c.bf16 %v6860_v57, %v6859_v1  ;;  %v6861_v23 = vld [vmem:[#allocation5 + $0x150] sm:$0xff]  ;;  %v6862_v31 = vld [vmem:[#allocation5 + $0x158] sm:$0xff]  ;;  %v6863_v52 = vld [vmem:[#allocation5 + $0x160] sm:$0xff] }
 0x9ca   :  { %v6864_v54 = vld [vmem:[#allocation5 + $0x168] sm:$0xff]  ;;  %v6904_v7 = vpack.c.bf16 %v6862_v31, %v6861_v23  ;;  %v6865_v14 = vld [vmem:[#allocation5 + $0x170] sm:$0xff]  ;;  %v6866_v24 = vld [vmem:[#allocation5 + $0x178] sm:$0xff] }
 0x9cb   :  { %v6905_v32 = vpack.c.bf16 %v6864_v54, %v6863_v52  ;;  %v6867_v12 = vld [vmem:[#allocation5 + $0x180] sm:$0xff]  ;;  %v6868_v11 = vld [vmem:[#allocation5 + $0x188] sm:$0xff]  ;;  %v6906_v39 = vpack.c.bf16 %v6866_v24, %v6865_v14  ;;  %v10253_v13 = vld [vmem:[%s16208_s13 + $0x18] sm:$0xff]  }
 0x9cc   :  { %v10252_v50 = vld [vmem:[%s16208_s13 + $0x10] sm:$0xff]   ;;  %v6907_v51 = vpack.c.bf16 %v6868_v11, %v6867_v12  ;;  %v6869_v38 = vld [vmem:[#allocation5 + $0x190] sm:$0xff]  ;;  %v6870_v48 = vld [vmem:[#allocation5 + $0x198] sm:$0xff] }
 0x9cd   :  { %9593 = vmatprep.subr.bf16.mxu1 %v10252_v50  ;;  %v6871_v25 = vld [vmem:[#allocation5 + $0x1a0] sm:$0xff]  ;;  %v6872_v9 = vld [vmem:[#allocation5 + $0x1a8] sm:$0xff]  ;;  %v6908_v27 = vpack.c.bf16 %v6870_v48, %v6869_v38 }
 0x9ce   :  { %9594 = vmatpush3.bf16.msra.mxu1 %v10252_v50  ;;  %v6909_v26 = vpack.c.bf16 %v6872_v9, %v6871_v25  ;;  %v6875_v33 = vld [vmem:[#allocation5 + $0x1c0] sm:$0xff]  ;;  %v6876_v20 = vld [vmem:[#allocation5 + $0x1c8] sm:$0xff] }
 0x9cf   :  { %9534 = vmatmul.mubr.msk.bf16.gmra.mrb[8].mxu0 %vm875_vm3, %v6888_v61  ;;  %9595 = vmatprep.subr.bf16.mxu1 %v10253_v13  ;;  %v6873_v61 = vld [vmem:[#allocation5 + $0x1b0] sm:$0xff]  ;;  %v6911_v5 = vpack.c.bf16 %v6876_v20, %v6875_v33  ;;  %v6879_v29 = vld [vmem:[#allocation5 + $0x1e0] sm:$0xff]  ;;  %v6880_v34 = vld [vmem:[#allocation5 + $0x1e8] sm:$0xff] }
 0x9d0   :  { %9537 = vmatprep.mubr.msk.bf16.mxu0 %vm875_vm3, %v6889_v15  ;;  %v6874_v15 = vld [vmem:[#allocation5 + $0x1b8] sm:$0xff]  ;;  %v6913_v45 = vpack.c.bf16 %v6880_v34, %v6879_v29 }
 0x9d1   :  { %v6910_v10 = vpack.c.bf16 %v6874_v15, %v6873_v61 }
 0x9d2   :  { %9596 = vmatpush3.bf16.msra.mxu1 %v10253_v13 }
 0x9d7   :  { %9538 = vmatmul.mubr.msk.bf16.gmra.mrb[12].mxu0 %vm875_vm3, %v6890_v44  ;;  %v6877_v44 = vld [vmem:[#allocation5 + $0x1d0] sm:$0xff] }
 0x9d8   :  { %9541 = vmatprep.mubr.msk.bf16.mxu0 %vm875_vm3, %v6891_v16  ;;  %v6878_v16 = vld [vmem:[#allocation5 + $0x1d8] sm:$0xff] }
 0x9d9   :  { %v6912_v46 = vpack.c.bf16 %v6878_v16, %v6877_v44 }
 0x9df   :  { %9542 = vmatmul.mubr.msk.bf16.gmra.mrb[16].mxu0 %vm875_vm3, %v6892_v35  ;;  %v6881_v35 = vld [vmem:[#allocation5 + $0x1f0] sm:$0xff] }
 0x9e0   :  { %9545 = vmatprep.mubr.msk.bf16.mxu0 %vm875_vm3, %v6893_v17  ;;  %v6882_v17 = vld [vmem:[#allocation5 + $0x1f8] sm:$0xff] }
 0x9e1   :  { %v6914_v18 = vpack.c.bf16 %v6882_v17, %v6881_v35 }
 0x9e7   :  { %9546 = vmatmul.mubr.msk.bf16.gmra.mrb[20].mxu0 %vm875_vm3, %v6894_v30 }
 0x9e8   :  { %9549 = vmatprep.mubr.msk.bf16.mxu0 %vm875_vm3, %v6895_v53 }
 0x9ef   :  { %9550 = vmatmul.mubr.msk.bf16.gmra.mrb[24].mxu0 %vm875_vm3, %v6896_v4 }
 0x9f0   :  { %9553 = vmatprep.mubr.msk.bf16.mxu0 %vm875_vm3, %v6897_v28 }
 0x9f7   :  { %9554 = vmatmul.mubr.msk.bf16.gmra.mrb[28].mxu0 %vm875_vm3, %v6898_v3 }
 0x9f8   :  { %9557 = vmatprep.mubr.msk.bf16.mxu0 %vm875_vm3, %v6899_v63 }
 0x9ff   :  { %9558 = vmatmul.mubr.msk.bf16.gmra.mrb[32].mxu0 %vm875_vm3, %v6900_v6 }
 0xa00   :  { %9561 = vmatprep.mubr.msk.bf16.mxu0 %vm875_vm3, %v6901_v60 }
 0xa07   :  { %9562 = vmatmul.mubr.msk.bf16.gmra.mrb[36].mxu0 %vm875_vm3, %v6902_v42 }
 0xa08   :  { %9565 = vmatprep.mubr.msk.bf16.mxu0 %vm875_vm3, %v6903_v36 }
 0xa0f   :  { %9566 = vmatmul.mubr.msk.bf16.gmra.mrb[40].mxu0 %vm875_vm3, %v6904_v7 }
 0xa10   :  { %9569 = vmatprep.mubr.msk.bf16.mxu0 %vm875_vm3, %v6905_v32 }
 0xa17   :  { %9570 = vmatmul.mubr.msk.bf16.gmra.mrb[44].mxu0 %vm875_vm3, %v6906_v39 }
 0xa18   :  { %9573 = vmatprep.mubr.msk.bf16.mxu0 %vm875_vm3, %v6907_v51 }
 0xa1f   :  { %9574 = vmatmul.mubr.msk.bf16.gmra.mrb[48].mxu0 %vm875_vm3, %v6908_v27 }
 0xa20   :  { %9577 = vmatprep.mubr.msk.bf16.mxu0 %vm875_vm3, %v6909_v26 }
 0xa27   :  { %9578 = vmatmul.mubr.msk.bf16.gmra.mrb[52].mxu0 %vm875_vm3, %v6910_v10 }
 0xa28   :  { %9581 = vmatprep.mubr.msk.bf16.mxu0 %vm875_vm3, %v6911_v5 }
 0xa2f   :  { %9582 = vmatmul.mubr.msk.bf16.gmra.mrb[56].mxu0 %vm875_vm3, %v6912_v46 }
 0xa30   :  { %9585 = vmatprep.mubr.msk.bf16.mxu0 %vm875_vm3, %v6913_v45 }
 0xa37   :  { %9586 = vmatmul.mubr.msk.bf16.gmra.mrb[60].mxu0 %vm875_vm3, %v6914_v18 }
 0xa92   :  { %v9527_v43 = vpop.f32.mrb[0].mxu0 }
 0xa93   :  { %v7077_v21 = vpop.f32.mrb[1].mxu0  ;;  %v7334_v30 = vmax.f32 %v9527_v43, 0.0 }
 0xa94   :  { %v9528_v8 = vpop.f32.mrb[2].mxu0  ;;  %v7332_v58 = vmax.f32 %v7077_v21, 0.0 }
 0xa95   :  { %v7335_v53 = vmax.f32 %v9528_v8, 0.0  ;;  %v7080_v41 = vpop.f32.mrb[3].mxu0 }
 0xa96   :  { %v7333_v56 = vmax.f32 %v7080_v41, 0.0 }
 0xa97   :  { %v7397_v2 = vpack.c.bf16 %v7335_v53, %v7334_v30 }
 0xa98   :  { %v7396_v4 = vpack.c.bf16 %v7333_v56, %v7332_v58 }
 0xa9a   :  { %v9531_v28 = vpop.f32.mrb[4].mxu0  ;;  %9597 = vmatprep.mubr.msk.bf16.mxu1 %vm875_vm3, %v7396_v4 }
 0xa9b   :  { %v7093_v49 = vpop.f32.mrb[5].mxu0  ;;  %9598 = vmatmul.mubr.msk.bf16.vlgmr.msra.gmra.mrb[0].mxu1 %vm875_vm3, %v7397_v2  ;;  %v7338_v62 = vmax.f32 %v9531_v28, 0.0 }
 0xa9c   :  { %v9532_v37 = vpop.f32.mrb[6].mxu0  ;;  %v7336_v63 = vmax.f32 %v7093_v49, 0.0 }
 0xa9d   :  { %v7339_v19 = vmax.f32 %v9532_v37, 0.0  ;;  %v7096_v3 = vpop.f32.mrb[7].mxu0 }
 0xa9e   :  { %v7337_v59 = vmax.f32 %v7096_v3, 0.0 }
 0xa9f   :  { %v7399_v47 = vpack.c.bf16 %v7339_v19, %v7338_v62 }
 0xaa0   :  { %v7398_v0 = vpack.c.bf16 %v7337_v59, %v7336_v63 }
 0xaa2   :  { %v9535_v55 = vpop.f32.mrb[8].mxu0  ;;  %9601 = vmatprep.mubr.msk.bf16.mxu1 %vm875_vm3, %v7398_v0 }
 0xaa3   :  { %v7109_v6 = vpop.f32.mrb[9].mxu0  ;;  %9602 = vmatmul.mubr.msk.bf16.gmra.mrb[4].mxu1 %vm875_vm3, %v7399_v47  ;;  %v7342_v22 = vmax.f32 %v9535_v55, 0.0 }
 0xaa4   :  { %v9536_v60 = vpop.f32.mrb[10].mxu0  ;;  %v7340_v57 = vmax.f32 %v7109_v6, 0.0 }
 0xaa5   :  { %v7343_v40 = vmax.f32 %v9536_v60, 0.0  ;;  %v7112_v1 = vpop.f32.mrb[11].mxu0 }
 0xaa6   :  { %v7341_v42 = vmax.f32 %v7112_v1, 0.0 }
 0xaa7   :  { %v7401_v36 = vpack.c.bf16 %v7343_v40, %v7342_v22 }
 0xaa8   :  { %v7400_v23 = vpack.c.bf16 %v7341_v42, %v7340_v57 }
 0xaaa   :  { %v9539_v31 = vpop.f32.mrb[12].mxu0  ;;  %9605 = vmatprep.mubr.msk.bf16.mxu1 %vm875_vm3, %v7400_v23 }
 0xaab   :  { %v7125_v52 = vpop.f32.mrb[13].mxu0  ;;  %9606 = vmatmul.mubr.msk.bf16.gmra.mrb[8].mxu1 %vm875_vm3, %v7401_v36  ;;  %v7346_v7 = vmax.f32 %v9539_v31, 0.0 }
 0xaac   :  { %v9540_v54 = vpop.f32.mrb[14].mxu0  ;;  %v7344_v24 = vmax.f32 %v7125_v52, 0.0 }
 0xaad   :  { %v7347_v32 = vmax.f32 %v9540_v54, 0.0  ;;  %v7128_v14 = vpop.f32.mrb[15].mxu0 }
 0xaae   :  { %v7345_v12 = vmax.f32 %v7128_v14, 0.0 }
 0xaaf   :  { %v7403_v11 = vpack.c.bf16 %v7347_v32, %v7346_v7 }
 0xab0   :  { %v7402_v50 = vpack.c.bf16 %v7345_v12, %v7344_v24 }
 0xab2   :  { %v9543_v39 = vpop.f32.mrb[16].mxu0  ;;  %9609 = vmatprep.mubr.msk.bf16.mxu1 %vm875_vm3, %v7402_v50 }
 0xab3   :  { %v7141_v51 = vpop.f32.mrb[17].mxu0  ;;  %9610 = vmatmul.mubr.msk.bf16.gmra.mrb[12].mxu1 %vm875_vm3, %v7403_v11  ;;  %v7350_v38 = vmax.f32 %v9543_v39, 0.0 }
 0xab4   :  { %v9544_v13 = vpop.f32.mrb[18].mxu0  ;;  %v7348_v9 = vmax.f32 %v7141_v51, 0.0 }
 0xab5   :  { %v7351_v48 = vmax.f32 %v9544_v13, 0.0  ;;  %v7144_v25 = vpop.f32.mrb[19].mxu0 }
 0xab6   :  { %v7349_v27 = vmax.f32 %v7144_v25, 0.0 }
 0xab7   :  { %v7405_v26 = vpack.c.bf16 %v7351_v48, %v7350_v38 }
 0xab8   :  { %v7404_v61 = vpack.c.bf16 %v7349_v27, %v7348_v9 }
 0xaba   :  { %v9547_v15 = vpop.f32.mrb[20].mxu0  ;;  %9613 = vmatprep.mubr.msk.bf16.mxu1 %vm875_vm3, %v7404_v61 }
 0xabb   :  { %v7157_v33 = vpop.f32.mrb[21].mxu0  ;;  %9614 = vmatmul.mubr.msk.bf16.gmra.mrb[16].mxu1 %vm875_vm3, %v7405_v26  ;;  %v7354_v10 = vmax.f32 %v9547_v15, 0.0 }
 0xabc   :  { %v9548_v20 = vpop.f32.mrb[22].mxu0  ;;  %v7352_v16 = vmax.f32 %v7157_v33, 0.0 }
 0xabd   :  { %v7355_v5 = vmax.f32 %v9548_v20, 0.0  ;;  %v7160_v44 = vpop.f32.mrb[23].mxu0 }
 0xabe   :  { %v7353_v29 = vmax.f32 %v7160_v44, 0.0 }
 0xabf   :  { %v7407_v34 = vpack.c.bf16 %v7355_v5, %v7354_v10 }
 0xac0   :  { %v7406_v46 = vpack.c.bf16 %v7353_v29, %v7352_v16 }
 0xac2   :  { %v9551_v45 = vpop.f32.mrb[24].mxu0  ;;  %9617 = vmatprep.mubr.msk.bf16.mxu1 %vm875_vm3, %v7406_v46 }
 0xac3   :  { %v7173_v35 = vpop.f32.mrb[25].mxu0  ;;  %9618 = vmatmul.mubr.msk.bf16.gmra.mrb[20].mxu1 %vm875_vm3, %v7407_v34  ;;  %v7358_v18 = vmax.f32 %v9551_v45, 0.0 }
 0xac4   :  { %v9552_v17 = vpop.f32.mrb[26].mxu0  ;;  %v7356_v8 = vmax.f32 %v7173_v35, 0.0 }
 0xac5   :  { %v7359_v43 = vmax.f32 %v9552_v17, 0.0  ;;  %v7176_v21 = vpop.f32.mrb[27].mxu0 }
 0xac6   :  { %v7357_v30 = vmax.f32 %v7176_v21, 0.0 }
 0xac7   :  { %v7409_v53 = vpack.c.bf16 %v7359_v43, %v7358_v18 }
 0xac8   :  { %v7408_v41 = vpack.c.bf16 %v7357_v30, %v7356_v8 }
 0xaca   :  { %v9555_v58 = vpop.f32.mrb[28].mxu0  ;;  %9621 = vmatprep.mubr.msk.bf16.mxu1 %vm875_vm3, %v7408_v41 }
 0xacb   :  { %v7189_v56 = vpop.f32.mrb[29].mxu0  ;;  %9622 = vmatmul.mubr.msk.bf16.gmra.mrb[24].mxu1 %vm875_vm3, %v7409_v53  ;;  %v7362_v4 = vmax.f32 %v9555_v58, 0.0 }
 0xacc   :  { %v9556_v2 = vpop.f32.mrb[30].mxu0  ;;  %v7360_v37 = vmax.f32 %v7189_v56, 0.0 }
 0xacd   :  { %v7363_v28 = vmax.f32 %v9556_v2, 0.0  ;;  %v7192_v49 = vpop.f32.mrb[31].mxu0 }
 0xace   :  { %v7361_v62 = vmax.f32 %v7192_v49, 0.0 }
 0xacf   :  { %v7411_v19 = vpack.c.bf16 %v7363_v28, %v7362_v4 }
 0xad0   :  { %v7410_v3 = vpack.c.bf16 %v7361_v62, %v7360_v37 }
 0xad2   :  { %v9559_v63 = vpop.f32.mrb[32].mxu0  ;;  %9625 = vmatprep.mubr.msk.bf16.mxu1 %vm875_vm3, %v7410_v3 }
 0xad3   :  { %v7205_v59 = vpop.f32.mrb[33].mxu0  ;;  %9626 = vmatmul.mubr.msk.bf16.gmra.mrb[28].mxu1 %vm875_vm3, %v7411_v19  ;;  %v7366_v0 = vmax.f32 %v9559_v63, 0.0 }
 0xad4   :  { %v9560_v47 = vpop.f32.mrb[34].mxu0  ;;  %v7364_v60 = vmax.f32 %v7205_v59, 0.0 }
 0xad5   :  { %v7367_v55 = vmax.f32 %v9560_v47, 0.0  ;;  %v7208_v6 = vpop.f32.mrb[35].mxu0 }
 0xad6   :  { %v7365_v22 = vmax.f32 %v7208_v6, 0.0 }
 0xad7   :  { %v7413_v40 = vpack.c.bf16 %v7367_v55, %v7366_v0 }
 0xad8   :  { %v7412_v1 = vpack.c.bf16 %v7365_v22, %v7364_v60 }
 0xada   :  { %v9563_v57 = vpop.f32.mrb[36].mxu0  ;;  %9629 = vmatprep.mubr.msk.bf16.mxu1 %vm875_vm3, %v7412_v1 }
 0xadb   :  { %v7221_v42 = vpop.f32.mrb[37].mxu0  ;;  %9630 = vmatmul.mubr.msk.bf16.gmra.mrb[32].mxu1 %vm875_vm3, %v7413_v40  ;;  %v7370_v23 = vmax.f32 %v9563_v57, 0.0 }
 0xadc   :  { %v9564_v36 = vpop.f32.mrb[38].mxu0  ;;  %v7368_v54 = vmax.f32 %v7221_v42, 0.0 }
 0xadd   :  { %v7371_v31 = vmax.f32 %v9564_v36, 0.0  ;;  %v7224_v52 = vpop.f32.mrb[39].mxu0 }
 0xade   :  { %v7369_v7 = vmax.f32 %v7224_v52, 0.0 }
 0xadf   :  { %v7415_v32 = vpack.c.bf16 %v7371_v31, %v7370_v23 }
 0xae0   :  { %v7414_v14 = vpack.c.bf16 %v7369_v7, %v7368_v54  ;;  %v15436_v54 = vld [vmem:[%s16209_s14] ss:$0 sm:$0xff] }
 0xae2   :  { %v9567_v24 = vpop.f32.mrb[40].mxu0  ;;  %9633 = vmatprep.mubr.msk.bf16.mxu1 %vm875_vm3, %v7414_v14 }
 0xae3   :  { %v7237_v12 = vpop.f32.mrb[41].mxu0  ;;  %9634 = vmatmul.mubr.msk.bf16.gmra.mrb[36].mxu1 %vm875_vm3, %v7415_v32  ;;  %v7374_v50 = vmax.f32 %v9567_v24, 0.0 }
 0xae4   :  { %v9568_v11 = vpop.f32.mrb[42].mxu0  ;;  %v7372_v13 = vmax.f32 %v7237_v12, 0.0 }
 0xae5   :  { %v7375_v39 = vmax.f32 %v9568_v11, 0.0  ;;  %v7240_v51 = vpop.f32.mrb[43].mxu0 }
 0xae6   :  { %v7373_v38 = vmax.f32 %v7240_v51, 0.0 }
 0xae7   :  { %v7417_v48 = vpack.c.bf16 %v7375_v39, %v7374_v50 }
 0xae8   :  { %v7416_v25 = vpack.c.bf16 %v7373_v38, %v7372_v13 }
 0xaea   :  { %v9571_v9 = vpop.f32.mrb[44].mxu0  ;;  %9637 = vmatprep.mubr.msk.bf16.mxu1 %vm875_vm3, %v7416_v25 }
 0xaeb   :  { %v7253_v27 = vpop.f32.mrb[45].mxu0  ;;  %9638 = vmatmul.mubr.msk.bf16.gmra.mrb[40].mxu1 %vm875_vm3, %v7417_v48  ;;  %v7378_v61 = vmax.f32 %v9571_v9, 0.0 }
 0xaec   :  { %v9572_v26 = vpop.f32.mrb[46].mxu0  ;;  %v7376_v20 = vmax.f32 %v7253_v27, 0.0 }
 0xaed   :  { %v7379_v15 = vmax.f32 %v9572_v26, 0.0  ;;  %v7256_v33 = vpop.f32.mrb[47].mxu0 }
 0xaee   :  { %v7377_v10 = vmax.f32 %v7256_v33, 0.0 }
 0xaef   :  { %v7419_v5 = vpack.c.bf16 %v7379_v15, %v7378_v61 }
 0xaf0   :  { %v7418_v44 = vpack.c.bf16 %v7377_v10, %v7376_v20 }
 0xaf2   :  { %v9575_v16 = vpop.f32.mrb[48].mxu0  ;;  %9641 = vmatprep.mubr.msk.bf16.mxu1 %vm875_vm3, %v7418_v44 }
 0xaf3   :  { %v7269_v29 = vpop.f32.mrb[49].mxu0  ;;  %9642 = vmatmul.mubr.msk.bf16.gmra.mrb[44].mxu1 %vm875_vm3, %v7419_v5  ;;  %v7382_v46 = vmax.f32 %v9575_v16, 0.0 }
 0xaf4   :  { %v9576_v34 = vpop.f32.mrb[50].mxu0  ;;  %v7380_v17 = vmax.f32 %v7269_v29, 0.0 }
 0xaf5   :  { %v7383_v45 = vmax.f32 %v9576_v34, 0.0  ;;  %v7272_v35 = vpop.f32.mrb[51].mxu0 }
 0xaf6   :  { %v7381_v18 = vmax.f32 %v7272_v35, 0.0 }
 0xaf7   :  { %v7421_v43 = vpack.c.bf16 %v7383_v45, %v7382_v46 }
 0xaf8   :  { %v7420_v21 = vpack.c.bf16 %v7381_v18, %v7380_v17 }
 0xafa   :  { %v9579_v8 = vpop.f32.mrb[52].mxu0  ;;  %9645 = vmatprep.mubr.msk.bf16.mxu1 %vm875_vm3, %v7420_v21 }
 0xafb   :  { %v7285_v30 = vpop.f32.mrb[53].mxu0  ;;  %9646 = vmatmul.mubr.msk.bf16.gmra.mrb[48].mxu1 %vm875_vm3, %v7421_v43  ;;  %v7386_v41 = vmax.f32 %v9579_v8, 0.0 }
 0xafc   :  { %v9580_v53 = vpop.f32.mrb[54].mxu0  ;;  %v7384_v2 = vmax.f32 %v7285_v30, 0.0 }
 0xafd   :  { %v7387_v58 = vmax.f32 %v9580_v53, 0.0  ;;  %v7288_v56 = vpop.f32.mrb[55].mxu0 }
 0xafe   :  { %v7385_v4 = vmax.f32 %v7288_v56, 0.0 }
 0xaff   :  { %v7423_v28 = vpack.c.bf16 %v7387_v58, %v7386_v41 }
 0xb00   :  { %v7422_v49 = vpack.c.bf16 %v7385_v4, %v7384_v2 }
 0xb02   :  { %v9583_v37 = vpop.f32.mrb[56].mxu0  ;;  %9649 = vmatprep.mubr.msk.bf16.mxu1 %vm875_vm3, %v7422_v49 }
 0xb03   :  { %v7301_v62 = vpop.f32.mrb[57].mxu0  ;;  %9650 = vmatmul.mubr.msk.bf16.gmra.mrb[52].mxu1 %vm875_vm3, %v7423_v28  ;;  %v7390_v3 = vmax.f32 %v9583_v37, 0.0 }
 0xb04   :  { %v9584_v19 = vpop.f32.mrb[58].mxu0  ;;  %v7388_v47 = vmax.f32 %v7301_v62, 0.0 }
 0xb05   :  { %v7391_v63 = vmax.f32 %v9584_v19, 0.0  ;;  %v7304_v59 = vpop.f32.mrb[59].mxu0 }
 0xb06   :  { %v7389_v0 = vmax.f32 %v7304_v59, 0.0 }
 0xb07   :  { %v7425_v55 = vpack.c.bf16 %v7391_v63, %v7390_v3 }
 0xb08   :  { %v7424_v6 = vpack.c.bf16 %v7389_v0, %v7388_v47 }
 0xb0a   :  { %v9587_v60 = vpop.f32.mrb[60].mxu0  ;;  %9653 = vmatprep.mubr.msk.bf16.mxu1 %vm875_vm3, %v7424_v6 }
 0xb0b   :  { %v7317_v22 = vpop.f32.mrb[61].mxu0  ;;  %9654 = vmatmul.mubr.msk.bf16.gmra.mrb[56].mxu1 %vm875_vm3, %v7425_v55  ;;  %v7394_v1 = vmax.f32 %v9587_v60, 0.0 }
 0xb0c   :  { %v9588_v40 = vpop.f32.mrb[62].mxu0  ;;  %v7392_v36 = vmax.f32 %v7317_v22, 0.0 }
 0xb0d   :  { %v7395_v57 = vmax.f32 %v9588_v40, 0.0  ;;  %v7320_v42 = vpop.f32.mrb[63].mxu0 }
 0xb0e   :  { %v7393_v23 = vmax.f32 %v7320_v42, 0.0 }
 0xb0f   :  { %v7427_v31 = vpack.c.bf16 %v7395_v57, %v7394_v1 }
 0xb10   :  { %v7426_v52 = vpack.c.bf16 %v7393_v23, %v7392_v36 }
 0xb12   :  { %9657 = vmatprep.mubr.msk.bf16.mxu1 %vm875_vm3, %v7426_v52 }
 0xb13   :  { %9658 = vmatmul.mubr.msk.bf16.gmra.mrb[60].mxu1 %vm875_vm3, %v7427_v31 }
 0xb6e   :  { %v9599_v7 = vpop.f32.mrb[0].mxu1 }
 0xb6f   :  { %v15439_v32 = vadd.f32 %v9599_v7, %v15436_v54  ;;  %v7597_v14 = vpop.f32.mrb[1].mxu1 }
 0xb70   :  { %v15442_v24 = vadd.f32 %v15436_v54, %v7597_v14  ;;  %v9600_v12 = vpop.f32.mrb[2].mxu1 }
 0xb71   :  { %7856 = vmax.xlane.f32.xlu1 %v15439_v32  ;;  %v7600_v11 = vpop.f32.mrb[3].mxu1  ;;  %v15447_v50 = vadd.f32 %v9600_v12, %v15436_v54 }
 0xb72   :  { %7852 = vmax.xlane.f32.xlu0 %v15442_v24  ;;  %v15450_v39 = vadd.f32 %v15436_v54, %v7600_v11 }
 0xb75   :  { %7858 = vmax.xlane.f32.xlu1 %v15447_v50 }
 0xb76   :  { %7854 = vmax.xlane.f32.xlu0 %v15450_v39  ;;  %v9603_v51 = vpop.f32.mrb[4].mxu1 }
 0xb77   :  { %v15455_v13 = vadd.f32 %v9603_v51, %v15436_v54  ;;  %v7613_v38 = vpop.f32.mrb[5].mxu1 }
 0xb78   :  { %v9604_v48 = vpop.f32.mrb[6].mxu1  ;;  %v15463_v27 = vadd.f32 %v15436_v54, %v7613_v38 }
 0xb79   :  { %v15458_v25 = vadd.f32 %v9604_v48, %v15436_v54  ;;  %v7616_v9 = vpop.f32.mrb[7].mxu1 }
 0xb7a   :  { %7864 = vmax.xlane.f32.xlu0 %v15455_v13  ;;  %v15466_v26 = vadd.f32 %v15436_v54, %v7616_v9 }
 0xb7b   :  { %7866 = vmax.xlane.f32.xlu1 %v15458_v25 }
 0xb7e   :  { %7860 = vmax.xlane.f32.xlu0 %v15463_v27  ;;  %v9607_v61 = vpop.f32.mrb[8].mxu1 }
 0xb7f   :  { %v15470_v15 = vadd.f32 %v9607_v61, %v15436_v54  ;;  %7862 = vmax.xlane.f32.xlu1 %v15466_v26  ;;  %v7629_v33 = vpop.f32.mrb[9].mxu1 }
 0xb80   :  { %v9608_v20 = vpop.f32.mrb[10].mxu1  ;;  %v15479_v44 = vadd.f32 %v15436_v54, %v7629_v33 }
 0xb81   :  { %v15474_v10 = vadd.f32 %v9608_v20, %v15436_v54  ;;  %v7632_v5 = vpop.f32.mrb[11].mxu1 }
 0xb82   :  { %7872 = vmax.xlane.f32.xlu0 %v15470_v15  ;;  %v15482_v16 = vadd.f32 %v15436_v54, %v7632_v5 }
 0xb83   :  { %7874 = vmax.xlane.f32.xlu1 %v15474_v10 }
 0xb86   :  { %7868 = vmax.xlane.f32.xlu0 %v15479_v44  ;;  %v9611_v29 = vpop.f32.mrb[12].mxu1 }
 0xb87   :  { %v15486_v34 = vadd.f32 %v9611_v29, %v15436_v54  ;;  %7870 = vmax.xlane.f32.xlu1 %v15482_v16  ;;  %v7645_v46 = vpop.f32.mrb[13].mxu1 }
 0xb88   :  { %v9612_v45 = vpop.f32.mrb[14].mxu1  ;;  %v15495_v18 = vadd.f32 %v15436_v54, %v7645_v46 }
 0xb89   :  { %v15490_v35 = vadd.f32 %v9612_v45, %v15436_v54  ;;  %v7648_v17 = vpop.f32.mrb[15].mxu1 }
 0xb8a   :  { %7880 = vmax.xlane.f32.xlu0 %v15486_v34  ;;  %v15498_v43 = vadd.f32 %v15436_v54, %v7648_v17 }
 0xb8b   :  { %7882 = vmax.xlane.f32.xlu1 %v15490_v35 }
 0xb8e   :  { %7876 = vmax.xlane.f32.xlu0 %v15495_v18  ;;  %v9615_v21 = vpop.f32.mrb[16].mxu1 }
 0xb8f   :  { %v15502_v8 = vadd.f32 %v9615_v21, %v15436_v54  ;;  %7878 = vmax.xlane.f32.xlu1 %v15498_v43  ;;  %v7661_v30 = vpop.f32.mrb[17].mxu1 }
 0xb90   :  { %v9616_v53 = vpop.f32.mrb[18].mxu1  ;;  %v15511_v56 = vadd.f32 %v15436_v54, %v7661_v30 }
 0xb91   :  { %v15506_v41 = vadd.f32 %v9616_v53, %v15436_v54  ;;  %v7664_v58 = vpop.f32.mrb[19].mxu1 }
 0xb92   :  { %7888 = vmax.xlane.f32.xlu0 %v15502_v8  ;;  %v15514_v2 = vadd.f32 %v15436_v54, %v7664_v58 }
 0xb93   :  { %7890 = vmax.xlane.f32.xlu1 %v15506_v41 }
 0xb96   :  { %7884 = vmax.xlane.f32.xlu0 %v15511_v56  ;;  %v9619_v4 = vpop.f32.mrb[20].mxu1 }
 0xb97   :  { %v15518_v28 = vadd.f32 %v9619_v4, %v15436_v54  ;;  %7886 = vmax.xlane.f32.xlu1 %v15514_v2  ;;  %v7677_v49 = vpop.f32.mrb[21].mxu1 }
 0xb98   :  { %v9620_v37 = vpop.f32.mrb[22].mxu1  ;;  %v15527_v3 = vadd.f32 %v15436_v54, %v7677_v49 }
 0xb99   :  { %v15522_v62 = vadd.f32 %v9620_v37, %v15436_v54  ;;  %v7680_v19 = vpop.f32.mrb[23].mxu1 }
 0xb9a   :  { %7896 = vmax.xlane.f32.xlu0 %v15518_v28  ;;  %v15530_v63 = vadd.f32 %v15436_v54, %v7680_v19 }
 0xb9b   :  { %7898 = vmax.xlane.f32.xlu1 %v15522_v62 }
 0xb9e   :  { %7892 = vmax.xlane.f32.xlu0 %v15527_v3  ;;  %v9623_v59 = vpop.f32.mrb[24].mxu1 }
 0xb9f   :  { %v15534_v47 = vadd.f32 %v9623_v59, %v15436_v54  ;;  %7894 = vmax.xlane.f32.xlu1 %v15530_v63  ;;  %v7693_v0 = vpop.f32.mrb[25].mxu1 }
 0xba0   :  { %v9624_v55 = vpop.f32.mrb[26].mxu1  ;;  %v15543_v22 = vadd.f32 %v15436_v54, %v7693_v0 }
 0xba1   :  { %v15538_v6 = vadd.f32 %v9624_v55, %v15436_v54  ;;  %v7696_v60 = vpop.f32.mrb[27].mxu1 }
 0xba2   :  { %7904 = vmax.xlane.f32.xlu0 %v15534_v47  ;;  %v15546_v40 = vadd.f32 %v15436_v54, %v7696_v60 }
 0xba3   :  { %7906 = vmax.xlane.f32.xlu1 %v15538_v6 }
 0xba6   :  { %7900 = vmax.xlane.f32.xlu0 %v15543_v22  ;;  %v9627_v1 = vpop.f32.mrb[28].mxu1 }
 0xba7   :  { %v15550_v57 = vadd.f32 %v9627_v1, %v15436_v54  ;;  %7902 = vmax.xlane.f32.xlu1 %v15546_v40  ;;  %v7709_v42 = vpop.f32.mrb[29].mxu1 }
 0xba8   :  { %v9628_v36 = vpop.f32.mrb[30].mxu1  ;;  %v15559_v52 = vadd.f32 %v15436_v54, %v7709_v42 }
 0xba9   :  { %v15554_v23 = vadd.f32 %v9628_v36, %v15436_v54  ;;  %v7712_v31 = vpop.f32.mrb[31].mxu1 }
 0xbaa   :  { %7912 = vmax.xlane.f32.xlu0 %v15550_v57  ;;  %v15562_v7 = vadd.f32 %v15436_v54, %v7712_v31 }
 0xbab   :  { %7914 = vmax.xlane.f32.xlu1 %v15554_v23 }
 0xbae   :  { %7908 = vmax.xlane.f32.xlu0 %v15559_v52  ;;  %v9631_v14 = vpop.f32.mrb[32].mxu1 }
 0xbaf   :  { %v15566_v12 = vadd.f32 %v9631_v14, %v15436_v54  ;;  %7910 = vmax.xlane.f32.xlu1 %v15562_v7  ;;  %v7725_v11 = vpop.f32.mrb[33].mxu1 }
 0xbb0   :  { %v9632_v51 = vpop.f32.mrb[34].mxu1  ;;  %v15575_v9 = vadd.f32 %v15436_v54, %v7725_v11 }
 0xbb1   :  { %v15570_v38 = vadd.f32 %v9632_v51, %v15436_v54  ;;  %v7728_v48 = vpop.f32.mrb[35].mxu1 }
 0xbb2   :  { %7920 = vmax.xlane.f32.xlu0 %v15566_v12  ;;  %v15578_v61 = vadd.f32 %v15436_v54, %v7728_v48 }
 0xbb3   :  { %7922 = vmax.xlane.f32.xlu1 %v15570_v38 }
 0xbb6   :  { %7916 = vmax.xlane.f32.xlu0 %v15575_v9  ;;  %v9635_v33 = vpop.f32.mrb[36].mxu1 }
 0xbb7   :  { %v15582_v20 = vadd.f32 %v9635_v33, %v15436_v54  ;;  %7918 = vmax.xlane.f32.xlu1 %v15578_v61  ;;  %v7741_v5 = vpop.f32.mrb[37].mxu1 }
 0xbb8   :  { %v9636_v29 = vpop.f32.mrb[38].mxu1  ;;  %v15591_v17 = vadd.f32 %v15436_v54, %v7741_v5 }
 0xbb9   :  { %v15586_v46 = vadd.f32 %v9636_v29, %v15436_v54  ;;  %v7744_v45 = vpop.f32.mrb[39].mxu1 }
 0xbba   :  { %7928 = vmax.xlane.f32.xlu0 %v15582_v20  ;;  %v15594_v21 = vadd.f32 %v15436_v54, %v7744_v45 }
 0xbbb   :  { %7930 = vmax.xlane.f32.xlu1 %v15586_v46 }
 0xbbe   :  { %7924 = vmax.xlane.f32.xlu0 %v15591_v17  ;;  %v9639_v30 = vpop.f32.mrb[40].mxu1 }
 0xbbf   :  { %v15598_v53 = vadd.f32 %v9639_v30, %v15436_v54  ;;  %7926 = vmax.xlane.f32.xlu1 %v15594_v21  ;;  %v7757_v58 = vpop.f32.mrb[41].mxu1 }
 0xbc0   :  { %v9640_v4 = vpop.f32.mrb[42].mxu1  ;;  %v15607_v19 = vadd.f32 %v15436_v54, %v7757_v58 }
 0xbc1   :  { %v15602_v49 = vadd.f32 %v9640_v4, %v15436_v54  ;;  %v7760_v37 = vpop.f32.mrb[43].mxu1 }
 0xbc2   :  { %7936 = vmax.xlane.f32.xlu0 %v15598_v53  ;;  %v15610_v59 = vadd.f32 %v15436_v54, %v7760_v37 }
 0xbc3   :  { %7938 = vmax.xlane.f32.xlu1 %v15602_v49 }
 0xbc6   :  { %7932 = vmax.xlane.f32.xlu0 %v15607_v19  ;;  %v9643_v0 = vpop.f32.mrb[44].mxu1 }
 0xbc7   :  { %v15614_v55 = vadd.f32 %v9643_v0, %v15436_v54  ;;  %7934 = vmax.xlane.f32.xlu1 %v15610_v59  ;;  %v7773_v60 = vpop.f32.mrb[45].mxu1 }
 0xbc8   :  { %v9644_v1 = vpop.f32.mrb[46].mxu1  ;;  %v15623_v31 = vadd.f32 %v15436_v54, %v7773_v60 }
 0xbc9   :  { %v15618_v42 = vadd.f32 %v9644_v1, %v15436_v54  ;;  %v7776_v36 = vpop.f32.mrb[47].mxu1 }
 0xbca   :  { %7944 = vmax.xlane.f32.xlu0 %v15614_v55  ;;  %v15626_v14 = vadd.f32 %v15436_v54, %v7776_v36 }
 0xbcb   :  { %7946 = vmax.xlane.f32.xlu1 %v15618_v42 }
 0xbce   :  { %7940 = vmax.xlane.f32.xlu0 %v15623_v31  ;;  %v9647_v11 = vpop.f32.mrb[48].mxu1 }
 0xbcf   :  { %v15630_v51 = vadd.f32 %v9647_v11, %v15436_v54  ;;  %7942 = vmax.xlane.f32.xlu1 %v15626_v14  ;;  %v7789_v48 = vpop.f32.mrb[49].mxu1 }
 0xbd0   :  { %v9648_v33 = vpop.f32.mrb[50].mxu1  ;;  %v15639_v45 = vadd.f32 %v15436_v54, %v7789_v48 }
 0xbd1   :  { %v15634_v5 = vadd.f32 %v9648_v33, %v15436_v54  ;;  %v7792_v29 = vpop.f32.mrb[51].mxu1 }
 0xbd2   :  { %7952 = vmax.xlane.f32.xlu0 %v15630_v51  ;;  %16747 = vst [vmem:[#allocation32_spill] sm:$0xff] %v15639_v45  ;;  %v15642_v30 = vadd.f32 %v15436_v54, %v7792_v29 }
 0xbd3   :  { %7954 = vmax.xlane.f32.xlu1 %v15634_v5 }
 0xbd4   :  { %16748 = vst [vmem:[#allocation33_spill] sm:$0xff] %v15642_v30 }
 0xbd6   :  { %7948 = vmax.xlane.f32.xlu0 %v15639_v45  ;;  %v9651_v58 = vpop.f32.mrb[52].mxu1 }
 0xbd7   :  { %v15646_v4 = vadd.f32 %v9651_v58, %v15436_v54  ;;  %7950 = vmax.xlane.f32.xlu1 %v15642_v30  ;;  %v7805_v37 = vpop.f32.mrb[53].mxu1 }
 0xbd8   :  { %v9652_v0 = vpop.f32.mrb[54].mxu1  ;;  %v15655_v36 = vadd.f32 %v15436_v54, %v7805_v37 }
 0xbd9   :  { %16749 = vst [vmem:[#allocation14_spill] sm:$0xff] %v15646_v4  ;;  %v15650_v60 = vadd.f32 %v9652_v0, %v15436_v54  ;;  %v7808_v1 = vpop.f32.mrb[55].mxu1 }
 0xbda   :  { %7960 = vmax.xlane.f32.xlu0 %v15646_v4  ;;  %16751 = vst [vmem:[#allocation21_spill] sm:$0xff] %v15655_v36  ;;  %v15658_v11 = vadd.f32 %v15436_v54, %v7808_v1 }
 0xbdb   :  { %16750 = vst [vmem:[#allocation15_spill] sm:$0xff] %v15650_v60  ;;  %7962 = vmax.xlane.f32.xlu1 %v15650_v60 }
 0xbdc   :  { %16752 = vst [vmem:[#allocation22_spill] sm:$0xff] %v15658_v11 }
 0xbde   :  { %7956 = vmax.xlane.f32.xlu0 %v15655_v36  ;;  %v9655_v48 = vpop.f32.mrb[56].mxu1 }
 0xbdf   :  { %v15662_v33 = vadd.f32 %v9655_v48, %v15436_v54  ;;  %7958 = vmax.xlane.f32.xlu1 %v15658_v11  ;;  %v7821_v29 = vpop.f32.mrb[57].mxu1 }
 0xbe0   :  { %v9656_v58 = vpop.f32.mrb[58].mxu1  ;;  %v15671_v37 = vadd.f32 %v15436_v54, %v7821_v29 }
 0xbe1   :  { %16753 = vst [vmem:[#allocation23_spill] sm:$0xff] %v15662_v33  ;;  %v15666_v0 = vadd.f32 %v9656_v58, %v15436_v54  ;;  %v7824_v60 = vpop.f32.mrb[59].mxu1 }
 0xbe2   :  { %7968 = vmax.xlane.f32.xlu0 %v15662_v33  ;;  %16755 = vst [vmem:[#allocation28_spill] sm:$0xff] %v15671_v37  ;;  %v15674_v1 = vadd.f32 %v15436_v54, %v7824_v60 }
 0xbe3   :  { %16754 = vst [vmem:[#allocation27_spill] sm:$0xff] %v15666_v0  ;;  %7970 = vmax.xlane.f32.xlu1 %v15666_v0 }
 0xbe4   :  { %16756 = vst [vmem:[#allocation29_spill] sm:$0xff] %v15674_v1 }
 0xbe6   :  { %7964 = vmax.xlane.f32.xlu0 %v15671_v37  ;;  %v9659_v48 = vpop.f32.mrb[60].mxu1 }
 0xbe7   :  { %v15678_v11 = vadd.f32 %v9659_v48, %v15436_v54  ;;  %7966 = vmax.xlane.f32.xlu1 %v15674_v1  ;;  %v7837_v58 = vpop.f32.mrb[61].mxu1 }
 0xbe8   :  { %v9660_v36 = vpop.f32.mrb[62].mxu1  ;;  %v15687_v60 = vadd.f32 %v15436_v54, %v7837_v58 }
 0xbe9   :  { %16757 = vst [vmem:[#allocation30_spill] sm:$0xff] %v15678_v11  ;;  %v15682_v33 = vadd.f32 %v9660_v36, %v15436_v54  ;;  %v7840_v0 = vpop.f32.mrb[63].mxu1 }
 0xbea   :  { %7976 = vmax.xlane.f32.xlu0 %v15678_v11  ;;  %16759 = vst [vmem:[#allocation13_spill] sm:$0xff] %v15687_v60  ;;  %v15690_v29 = vadd.f32 %v15436_v54, %v7840_v0 }
 0xbeb   :  { %16758 = vst [vmem:[#allocation6_spill] sm:$0xff] %v15682_v33  ;;  %7978 = vmax.xlane.f32.xlu1 %v15682_v33 }
 0xbec   :  { %16760 = vst [vmem:[#allocation7_spill] sm:$0xff] %v15690_v29 }
 0xbee   :  { %7972 = vmax.xlane.f32.xlu0 %v15687_v60 }
 0xbef   :  { %7974 = vmax.xlane.f32.xlu1 %v15690_v29 }
 0xbfe   :  { %v7857_v48 = vpop.xlane.xlu1 %7856 }
 0xbff   :  { %v7982_v1 = vsub.f32 %v15439_v32, %v7857_v48  ;;  %v7853_v36 = vpop.xlane.xlu0 %7852 }
 0xc00   :  { %v7980_v37 = vsub.f32 %v15442_v24, %v7853_v36 }
 0xc01   :  { %v8048_v4 = vmul.f32 1.442695, %v7982_v1 }
 0xc02   :  { %v8044_v11 = vmul.f32 1.442695, %v7980_v37  ;;  %v7859_v30 = vpop.xlane.xlu1 %7858 }
 0xc03   :  { %10254 = vpow2.f32 %v8048_v4  ;;  %v7983_v58 = vsub.f32 %v15447_v50, %v7859_v30  ;;  %v7855_v33 = vpop.xlane.xlu0 %7854 }
 0xc04   :  { %v7981_v54 = vsub.f32 %v15450_v39, %v7855_v33  ;;  %10256 = vpow2.f32 %v8044_v11 }
 0xc05   :  { %v8050_v0 = vmul.f32 1.442695, %v7983_v58 }
 0xc06   :  { %v8046_v60 = vmul.f32 1.442695, %v7981_v54 }
 0xc07   :  { %10258 = vpow2.f32 %v8050_v0  ;;  %v7865_v29 = vpop.xlane.xlu0 %7864 }
 0xc08   :  { %v7986_v45 = vsub.f32 %v15455_v13, %v7865_v29  ;;  %v7867_v32 = vpop.xlane.xlu1 %7866  ;;  %10260 = vpow2.f32 %v8046_v60 }
 0xc09   :  { %v7987_v48 = vsub.f32 %v15458_v25, %v7867_v32 }
 0xc0a   :  { %v8056_v24 = vmul.f32 1.442695, %v7986_v45 }
 0xc0b   :  { %v8058_v37 = vmul.f32 1.442695, %v7987_v48  ;;  %v7861_v1 = vpop.xlane.xlu0 %7860 }
 0xc0c   :  { %10262 = vpow2.f32 %v8056_v24  ;;  %v7984_v50 = vsub.f32 %v15463_v27, %v7861_v1  ;;  %v7863_v30 = vpop.xlane.xlu1 %7862 }
 0xc0d   :  { %v15701_v4 = vpop.eup %10254  ;;  %v7985_v39 = vsub.f32 %v15466_v26, %v7863_v30  ;;  %10264 = vpow2.f32 %v8058_v37 }
 0xc0e   :  { %v8052_v11 = vmul.f32 1.442695, %v7984_v50  ;;  %8176 = vadd.xlane.f32.xlu0 %v15701_v4  ;;  %v15705_v29 = vpop.eup %10256 }
 0xc0f   :  { %v8054_v13 = vmul.f32 1.442695, %v7985_v39  ;;  %v7873_v33 = vpop.xlane.xlu0 %7872 }
 0xc10   :  { %10266 = vpow2.f32 %v8052_v11  ;;  %v7990_v25 = vsub.f32 %v15470_v15, %v7873_v33  ;;  %v7875_v45 = vpop.xlane.xlu1 %7874 }
 0xc11   :  { %v15708_v60 = vpop.eup %10258  ;;  %v7991_v27 = vsub.f32 %v15474_v10, %v7875_v45  ;;  %10268 = vpow2.f32 %v8054_v13 }
 0xc12   :  { %v8064_v36 = vmul.f32 1.442695, %v7990_v25  ;;  %8178 = vadd.xlane.f32.xlu1 %v15708_v60  ;;  %8172 = vadd.xlane.f32.xlu0 %v15705_v29  ;;  %v15714_v32 = vpop.eup %10260 }
 0xc13   :  { %v8066_v26 = vmul.f32 1.442695, %v7991_v27  ;;  %v7869_v58 = vpop.xlane.xlu0 %7868 }
 0xc14   :  { %10270 = vpow2.f32 %v8064_v36  ;;  %v7988_v54 = vsub.f32 %v15479_v44, %v7869_v58  ;;  %v7871_v0 = vpop.xlane.xlu1 %7870 }
 0xc15   :  { %v7989_v15 = vsub.f32 %v15482_v16, %v7871_v0  ;;  %10272 = vpow2.f32 %v8066_v26 }
 0xc16   :  { %v15717_v48 = vpop.eup %10262  ;;  %v8060_v24 = vmul.f32 1.442695, %v7988_v54  ;;  %8174 = vadd.xlane.f32.xlu1 %v15714_v32 }
 0xc17   :  { %v8062_v10 = vmul.f32 1.442695, %v7989_v15  ;;  %v7881_v37 = vpop.xlane.xlu0 %7880  ;;  %8184 = vadd.xlane.f32.xlu0 %v15717_v48  ;;  %v15722_v44 = vpop.eup %10264 }
 0xc18   :  { %10274 = vpow2.f32 %v8060_v24  ;;  %v7994_v1 = vsub.f32 %v15486_v34, %v7881_v37  ;;  %v7883_v50 = vpop.xlane.xlu1 %7882 }
 0xc19   :  { %v7995_v30 = vsub.f32 %v15490_v35, %v7883_v50  ;;  %10276 = vpow2.f32 %v8062_v10 }
 0xc1a   :  { %v15725_v39 = vpop.eup %10266  ;;  %v8072_v16 = vmul.f32 1.442695, %v7994_v1  ;;  %8186 = vadd.xlane.f32.xlu1 %v15722_v44 }
 0xc1b   :  { %v8074_v11 = vmul.f32 1.442695, %v7995_v30  ;;  %v7877_v13 = vpop.xlane.xlu0 %7876  ;;  %8180 = vadd.xlane.f32.xlu0 %v15725_v39  ;;  %v15730_v34 = vpop.eup %10268 }
 0xc1c   :  { %10278 = vpow2.f32 %v8072_v16  ;;  %v7992_v33 = vsub.f32 %v15495_v18, %v7877_v13  ;;  %v7879_v25 = vpop.xlane.xlu1 %7878 }
 0xc1d   :  { %v7993_v45 = vsub.f32 %v15498_v43, %v7879_v25  ;;  %10280 = vpow2.f32 %v8074_v11 }
 0xc1e   :  { %v15733_v27 = vpop.eup %10270  ;;  %v8068_v35 = vmul.f32 1.442695, %v7992_v33  ;;  %8182 = vadd.xlane.f32.xlu1 %v15730_v34 }
 0xc1f   :  { %v8070_v36 = vmul.f32 1.442695, %v7993_v45  ;;  %v7889_v26 = vpop.xlane.xlu0 %7888  ;;  %8192 = vadd.xlane.f32.xlu0 %v15733_v27  ;;  %v15738_v18 = vpop.eup %10272 }
 0xc20   :  { %10282 = vpow2.f32 %v8068_v35  ;;  %v7998_v58 = vsub.f32 %v15502_v8, %v7889_v26  ;;  %v7891_v54 = vpop.xlane.xlu1 %7890 }
 0xc21   :  { %v7999_v0 = vsub.f32 %v15506_v41, %v7891_v54  ;;  %10284 = vpow2.f32 %v8070_v36 }
 0xc22   :  { %v15741_v15 = vpop.eup %10274  ;;  %v8080_v43 = vmul.f32 1.442695, %v7998_v58  ;;  %8194 = vadd.xlane.f32.xlu1 %v15738_v18 }
 0xc23   :  { %v8082_v24 = vmul.f32 1.442695, %v7999_v0  ;;  %v7885_v10 = vpop.xlane.xlu0 %7884  ;;  %8188 = vadd.xlane.f32.xlu0 %v15741_v15  ;;  %v15746_v8 = vpop.eup %10276 }
 0xc24   :  { %10286 = vpow2.f32 %v8080_v43  ;;  %v7996_v37 = vsub.f32 %v15511_v56, %v7885_v10  ;;  %v7887_v1 = vpop.xlane.xlu1 %7886 }
 0xc25   :  { %v7997_v50 = vsub.f32 %v15514_v2, %v7887_v1  ;;  %10288 = vpow2.f32 %v8082_v24 }
 0xc26   :  { %v15749_v30 = vpop.eup %10278  ;;  %v8076_v41 = vmul.f32 1.442695, %v7996_v37  ;;  %8190 = vadd.xlane.f32.xlu1 %v15746_v8 }
 0xc27   :  { %v8078_v16 = vmul.f32 1.442695, %v7997_v50  ;;  %v7897_v11 = vpop.xlane.xlu0 %7896  ;;  %8200 = vadd.xlane.f32.xlu0 %v15749_v30  ;;  %v15754_v56 = vpop.eup %10280 }
 0xc28   :  { %10290 = vpow2.f32 %v8076_v41  ;;  %v8002_v13 = vsub.f32 %v15518_v28, %v7897_v11  ;;  %v7899_v33 = vpop.xlane.xlu1 %7898 }
 0xc29   :  { %v8003_v25 = vsub.f32 %v15522_v62, %v7899_v33  ;;  %10292 = vpow2.f32 %v8078_v16 }
 0xc2a   :  { %v15757_v45 = vpop.eup %10282  ;;  %v8088_v2 = vmul.f32 1.442695, %v8002_v13  ;;  %8202 = vadd.xlane.f32.xlu1 %v15754_v56 }
 0xc2b   :  { %v8090_v35 = vmul.f32 1.442695, %v8003_v25  ;;  %v7893_v36 = vpop.xlane.xlu0 %7892  ;;  %8196 = vadd.xlane.f32.xlu0 %v15757_v45  ;;  %v15762_v28 = vpop.eup %10284 }
 0xc2c   :  { %10294 = vpow2.f32 %v8088_v2  ;;  %v8000_v26 = vsub.f32 %v15527_v3, %v7893_v36  ;;  %v7895_v58 = vpop.xlane.xlu1 %7894 }
 0xc2d   :  { %v8001_v54 = vsub.f32 %v15530_v63, %v7895_v58  ;;  %10296 = vpow2.f32 %v8090_v35 }
 0xc2e   :  { %v15765_v0 = vpop.eup %10286  ;;  %v8084_v62 = vmul.f32 1.442695, %v8000_v26  ;;  %8198 = vadd.xlane.f32.xlu1 %v15762_v28 }
 0xc2f   :  { %v8086_v43 = vmul.f32 1.442695, %v8001_v54  ;;  %v7905_v24 = vpop.xlane.xlu0 %7904  ;;  %8208 = vadd.xlane.f32.xlu0 %v15765_v0  ;;  %v15770_v3 = vpop.eup %10288 }
 0xc30   :  { %10298 = vpow2.f32 %v8084_v62  ;;  %v8006_v10 = vsub.f32 %v15534_v47, %v7905_v24  ;;  %v7907_v37 = vpop.xlane.xlu1 %7906 }
 0xc31   :  { %v8007_v1 = vsub.f32 %v15538_v6, %v7907_v37  ;;  %10300 = vpow2.f32 %v8086_v43 }
 0xc32   :  { %v15773_v50 = vpop.eup %10290  ;;  %v8096_v63 = vmul.f32 1.442695, %v8006_v10  ;;  %8210 = vadd.xlane.f32.xlu1 %v15770_v3 }
 0xc33   :  { %v8098_v41 = vmul.f32 1.442695, %v8007_v1  ;;  %v7901_v16 = vpop.xlane.xlu0 %7900  ;;  %8204 = vadd.xlane.f32.xlu0 %v15773_v50  ;;  %v15778_v47 = vpop.eup %10292 }
 0xc34   :  { %10302 = vpow2.f32 %v8096_v63  ;;  %v8004_v11 = vsub.f32 %v15543_v22, %v7901_v16  ;;  %v7903_v13 = vpop.xlane.xlu1 %7902 }
 0xc35   :  { %v8005_v33 = vsub.f32 %v15546_v40, %v7903_v13  ;;  %10304 = vpow2.f32 %v8098_v41 }
 0xc36   :  { %v15781_v25 = vpop.eup %10294  ;;  %v8092_v6 = vmul.f32 1.442695, %v8004_v11  ;;  %8206 = vadd.xlane.f32.xlu1 %v15778_v47 }
 0xc37   :  { %v8094_v2 = vmul.f32 1.442695, %v8005_v33  ;;  %v7913_v35 = vpop.xlane.xlu0 %7912  ;;  %8216 = vadd.xlane.f32.xlu0 %v15781_v25  ;;  %v15786_v22 = vpop.eup %10296 }
 0xc38   :  { %10306 = vpow2.f32 %v8092_v6  ;;  %v8010_v36 = vsub.f32 %v15550_v57, %v7913_v35  ;;  %v7915_v26 = vpop.xlane.xlu1 %7914 }
 0xc39   :  { %v8011_v58 = vsub.f32 %v15554_v23, %v7915_v26  ;;  %10308 = vpow2.f32 %v8094_v2 }
 0xc3a   :  { %v15789_v54 = vpop.eup %10298  ;;  %v8104_v40 = vmul.f32 1.442695, %v8010_v36  ;;  %8218 = vadd.xlane.f32.xlu1 %v15786_v22 }
 0xc3b   :  { %v8106_v62 = vmul.f32 1.442695, %v8011_v58  ;;  %v7909_v43 = vpop.xlane.xlu0 %7908  ;;  %8212 = vadd.xlane.f32.xlu0 %v15789_v54  ;;  %v15794_v57 = vpop.eup %10300 }
 0xc3c   :  { %10310 = vpow2.f32 %v8104_v40  ;;  %v8008_v24 = vsub.f32 %v15559_v52, %v7909_v43  ;;  %v7911_v10 = vpop.xlane.xlu1 %7910 }
 0xc3d   :  { %v8009_v37 = vsub.f32 %v15562_v7, %v7911_v10  ;;  %10312 = vpow2.f32 %v8106_v62 }
 0xc3e   :  { %v15797_v1 = vpop.eup %10302  ;;  %v8100_v23 = vmul.f32 1.442695, %v8008_v24  ;;  %8214 = vadd.xlane.f32.xlu1 %v15794_v57 }
 0xc3f   :  { %v8102_v63 = vmul.f32 1.442695, %v8009_v37  ;;  %v7921_v41 = vpop.xlane.xlu0 %7920  ;;  %8224 = vadd.xlane.f32.xlu0 %v15797_v1  ;;  %v15802_v52 = vpop.eup %10304 }
 0xc40   :  { %10314 = vpow2.f32 %v8100_v23  ;;  %v8014_v16 = vsub.f32 %v15566_v12, %v7921_v41  ;;  %v7923_v11 = vpop.xlane.xlu1 %7922 }
 0xc41   :  { %v8015_v13 = vsub.f32 %v15570_v38, %v7923_v11  ;;  %10316 = vpow2.f32 %v8102_v63 }
 0xc42   :  { %v15805_v33 = vpop.eup %10306  ;;  %v8112_v7 = vmul.f32 1.442695, %v8014_v16  ;;  %8226 = vadd.xlane.f32.xlu1 %v15802_v52 }
 0xc43   :  { %v8114_v6 = vmul.f32 1.442695, %v8015_v13  ;;  %v7917_v2 = vpop.xlane.xlu0 %7916  ;;  %8220 = vadd.xlane.f32.xlu0 %v15805_v33  ;;  %v15810_v12 = vpop.eup %10308 }
 0xc44   :  { %10318 = vpow2.f32 %v8112_v7  ;;  %v8012_v35 = vsub.f32 %v15575_v9, %v7917_v2  ;;  %v7919_v36 = vpop.xlane.xlu1 %7918 }
 0xc45   :  { %v8013_v26 = vsub.f32 %v15578_v61, %v7919_v36  ;;  %10320 = vpow2.f32 %v8114_v6 }
 0xc46   :  { %v15813_v58 = vpop.eup %10310  ;;  %v8108_v38 = vmul.f32 1.442695, %v8012_v35  ;;  %8222 = vadd.xlane.f32.xlu1 %v15810_v12 }
 0xc47   :  { %v8110_v40 = vmul.f32 1.442695, %v8013_v26  ;;  %v7929_v62 = vpop.xlane.xlu0 %7928  ;;  %8232 = vadd.xlane.f32.xlu0 %v15813_v58  ;;  %v15818_v9 = vpop.eup %10312 }
 0xc48   :  { %10322 = vpow2.f32 %v8108_v38  ;;  %v8018_v43 = vsub.f32 %v15582_v20, %v7929_v62  ;;  %v7931_v24 = vpop.xlane.xlu1 %7930 }
 0xc49   :  { %v8019_v10 = vsub.f32 %v15586_v46, %v7931_v24  ;;  %10324 = vpow2.f32 %v8110_v40 }
 0xc4a   :  { %v15821_v37 = vpop.eup %10314  ;;  %v8120_v61 = vmul.f32 1.442695, %v8018_v43  ;;  %8234 = vadd.xlane.f32.xlu1 %v15818_v9 }
 0xc4b   :  { %v8122_v23 = vmul.f32 1.442695, %v8019_v10  ;;  %v7925_v63 = vpop.xlane.xlu0 %7924  ;;  %8228 = vadd.xlane.f32.xlu0 %v15821_v37  ;;  %v15826_v20 = vpop.eup %10316 }
 0xc4c   :  { %10326 = vpow2.f32 %v8120_v61  ;;  %v8016_v41 = vsub.f32 %v15591_v17, %v7925_v63  ;;  %v7927_v16 = vpop.xlane.xlu1 %7926 }
 0xc4d   :  { %v8017_v11 = vsub.f32 %v15594_v21, %v7927_v16  ;;  %10328 = vpow2.f32 %v8122_v23 }
 0xc4e   :  { %v15829_v13 = vpop.eup %10318  ;;  %v8116_v46 = vmul.f32 1.442695, %v8016_v41  ;;  %8230 = vadd.xlane.f32.xlu1 %v15826_v20 }
 0xc4f   :  { %v8118_v7 = vmul.f32 1.442695, %v8017_v11  ;;  %v7937_v6 = vpop.xlane.xlu0 %7936  ;;  %8240 = vadd.xlane.f32.xlu0 %v15829_v13  ;;  %v15834_v17 = vpop.eup %10320 }
 0xc50   :  { %10330 = vpow2.f32 %v8116_v46  ;;  %v8022_v2 = vsub.f32 %v15598_v53, %v7937_v6  ;;  %v7939_v35 = vpop.xlane.xlu1 %7938 }
 0xc51   :  { %v8023_v36 = vsub.f32 %v15602_v49, %v7939_v35  ;;  %10332 = vpow2.f32 %v8118_v7 }
 0xc52   :  { %v15837_v26 = vpop.eup %10322  ;;  %v8128_v21 = vmul.f32 1.442695, %v8022_v2  ;;  %8242 = vadd.xlane.f32.xlu1 %v15834_v17 }
 0xc53   :  { %v8130_v38 = vmul.f32 1.442695, %v8023_v36  ;;  %v7933_v40 = vpop.xlane.xlu0 %7932  ;;  %8236 = vadd.xlane.f32.xlu0 %v15837_v26  ;;  %v15842_v53 = vpop.eup %10324 }
 0xc54   :  { %10334 = vpow2.f32 %v8128_v21  ;;  %v8020_v62 = vsub.f32 %v15607_v19, %v7933_v40  ;;  %v7935_v43 = vpop.xlane.xlu1 %7934 }
 0xc55   :  { %v8021_v24 = vsub.f32 %v15610_v59, %v7935_v43  ;;  %10336 = vpow2.f32 %v8130_v38 }
 0xc56   :  { %v15845_v10 = vpop.eup %10326  ;;  %v8124_v49 = vmul.f32 1.442695, %v8020_v62  ;;  %8238 = vadd.xlane.f32.xlu1 %v15842_v53 }
 0xc57   :  { %v8126_v61 = vmul.f32 1.442695, %v8021_v24  ;;  %v7945_v23 = vpop.xlane.xlu0 %7944  ;;  %8248 = vadd.xlane.f32.xlu0 %v15845_v10  ;;  %v15850_v19 = vpop.eup %10328 }
 0xc58   :  { %10338 = vpow2.f32 %v8124_v49  ;;  %v8026_v63 = vsub.f32 %v15614_v55, %v7945_v23  ;;  %v7947_v41 = vpop.xlane.xlu1 %7946  ;;  %v16761_v23 = vld [vmem:[#allocation32_spill] sm:$0xff] }
 0xc59   :  { %v8027_v16 = vsub.f32 %v15618_v42, %v7947_v41  ;;  %10340 = vpow2.f32 %v8126_v61 }
 0xc5a   :  { %v15853_v11 = vpop.eup %10330  ;;  %v8136_v59 = vmul.f32 1.442695, %v8026_v63  ;;  %8250 = vadd.xlane.f32.xlu1 %v15850_v19 }
 0xc5b   :  { %v8138_v46 = vmul.f32 1.442695, %v8027_v16  ;;  %v7941_v7 = vpop.xlane.xlu0 %7940  ;;  %8244 = vadd.xlane.f32.xlu0 %v15853_v11  ;;  %v15858_v55 = vpop.eup %10332  ;;  %v16762_v16 = vld [vmem:[#allocation33_spill] sm:$0xff] }
 0xc5c   :  { %10342 = vpow2.f32 %v8136_v59  ;;  %v8024_v6 = vsub.f32 %v15623_v31, %v7941_v7  ;;  %v7943_v2 = vpop.xlane.xlu1 %7942 }
 0xc5d   :  { %v8025_v35 = vsub.f32 %v15626_v14, %v7943_v2  ;;  %10344 = vpow2.f32 %v8138_v46  ;;  %v16763_v2 = vld [vmem:[#allocation14_spill] sm:$0xff] }
 0xc5e   :  { %v15861_v36 = vpop.eup %10334  ;;  %v8132_v42 = vmul.f32 1.442695, %v8024_v6  ;;  %8246 = vadd.xlane.f32.xlu1 %v15858_v55 }
 0xc5f   :  { %v8134_v21 = vmul.f32 1.442695, %v8025_v35  ;;  %v7953_v38 = vpop.xlane.xlu0 %7952  ;;  %8256 = vadd.xlane.f32.xlu0 %v15861_v36  ;;  %v15866_v31 = vpop.eup %10336 }
 0xc60   :  { %10346 = vpow2.f32 %v8132_v42  ;;  %v8030_v40 = vsub.f32 %v15630_v51, %v7953_v38  ;;  %v7955_v62 = vpop.xlane.xlu1 %7954  ;;  %v16764_v38 = vld [vmem:[#allocation15_spill] sm:$0xff] }
 0xc61   :  { %v8031_v43 = vsub.f32 %v15634_v5, %v7955_v62  ;;  %10348 = vpow2.f32 %v8134_v21 }
 0xc62   :  { %v15869_v24 = vpop.eup %10338  ;;  %v8144_v14 = vmul.f32 1.442695, %v8030_v40  ;;  %8258 = vadd.xlane.f32.xlu1 %v15866_v31 }
 0xc63   :  { %v8146_v49 = vmul.f32 1.442695, %v8031_v43  ;;  %v7949_v61 = vpop.xlane.xlu0 %7948  ;;  %8252 = vadd.xlane.f32.xlu0 %v15869_v24  ;;  %v15874_v51 = vpop.eup %10340 }
 0xc64   :  { %10350 = vpow2.f32 %v8144_v14  ;;  %v8028_v63 = vsub.f32 %v16761_v23, %v7949_v61  ;;  %v7951_v41 = vpop.xlane.xlu1 %7950  ;;  %v16766_v61 = vld [vmem:[#allocation21_spill] sm:$0xff] }
 0xc65   :  { %v8029_v59 = vsub.f32 %v16762_v16, %v7951_v41  ;;  %10352 = vpow2.f32 %v8146_v49  ;;  %v16768_v16 = vld [vmem:[#allocation22_spill] sm:$0xff] }
 0xc66   :  { %v15877_v46 = vpop.eup %10342  ;;  %v8140_v5 = vmul.f32 1.442695, %v8028_v63  ;;  %8254 = vadd.xlane.f32.xlu1 %v15874_v51 }
 0xc67   :  { %v8142_v7 = vmul.f32 1.442695, %v8029_v59  ;;  %v7961_v6 = vpop.xlane.xlu0 %7960  ;;  %8264 = vadd.xlane.f32.xlu0 %v15877_v46  ;;  %v15882_v21 = vpop.eup %10344 }
 0xc68   :  { %10354 = vpow2.f32 %v8140_v5  ;;  %v8034_v35 = vsub.f32 %v16763_v2, %v7961_v6  ;;  %v7963_v42 = vpop.xlane.xlu1 %7962 }
 0xc69   :  { %v8035_v40 = vsub.f32 %v16764_v38, %v7963_v42  ;;  %10356 = vpow2.f32 %v8142_v7 }
 0xc6a   :  { %v15885_v62 = vpop.eup %10346  ;;  %v8152_v43 = vmul.f32 1.442695, %v8034_v35  ;;  %8266 = vadd.xlane.f32.xlu1 %v15882_v21  ;;  %v16770_v35 = vld [vmem:[#allocation23_spill] sm:$0xff] }
 0xc6b   :  { %16765 = vst [vmem:[#allocation17_spill] sm:$0xff] %v15885_v62  ;;  %v8154_v14 = vmul.f32 1.442695, %v8035_v40  ;;  %v7957_v49 = vpop.xlane.xlu0 %7956  ;;  %8260 = vadd.xlane.f32.xlu0 %v15885_v62  ;;  %v15890_v41 = vpop.eup %10348 }
 0xc6c   :  { %10358 = vpow2.f32 %v8152_v43  ;;  %v8032_v23 = vsub.f32 %v16766_v61, %v7957_v49  ;;  %v7959_v63 = vpop.xlane.xlu1 %7958  ;;  %16767 = vst [vmem:[#allocation18_spill] sm:$0xff] %v15890_v41  ;;  %v16772_v43 = vld [vmem:[#allocation27_spill] sm:$0xff] }
 0xc6d   :  { %v8033_v59 = vsub.f32 %v16768_v16, %v7959_v63  ;;  %10360 = vpow2.f32 %v8154_v14  ;;  %v16774_v16 = vld [vmem:[#allocation28_spill] sm:$0xff] }
 0xc6e   :  { %v15893_v5 = vpop.eup %10350  ;;  %v8148_v6 = vmul.f32 1.442695, %v8032_v23  ;;  %8262 = vadd.xlane.f32.xlu1 %v15890_v41 }
 0xc6f   :  { %16769 = vst [vmem:[#allocation19_spill] sm:$0xff] %v15893_v5  ;;  %v8150_v2 = vmul.f32 1.442695, %v8033_v59  ;;  %v7969_v7 = vpop.xlane.xlu0 %7968  ;;  %8272 = vadd.xlane.f32.xlu0 %v15893_v5  ;;  %v15898_v40 = vpop.eup %10352 }
 0xc70   :  { %10362 = vpow2.f32 %v8148_v6  ;;  %v8038_v42 = vsub.f32 %v16770_v35, %v7969_v7  ;;  %v7971_v38 = vpop.xlane.xlu1 %7970  ;;  %16771 = vst [vmem:[#allocation20_spill] sm:$0xff] %v15898_v40  ;;  %v16776_v35 = vld [vmem:[#allocation29_spill] sm:$0xff] }
 0xc71   :  { %v8039_v49 = vsub.f32 %v16772_v43, %v7971_v38  ;;  %10364 = vpow2.f32 %v8150_v2 }
 0xc72   :  { %v15901_v61 = vpop.eup %10354  ;;  %v8160_v63 = vmul.f32 1.442695, %v8038_v42  ;;  %8274 = vadd.xlane.f32.xlu1 %v15898_v40 }
 0xc73   :  { %16773 = vst [vmem:[#allocation31_spill] sm:$0xff] %v15901_v61  ;;  %v8162_v23 = vmul.f32 1.442695, %v8039_v49  ;;  %v7965_v14 = vpop.xlane.xlu0 %7964  ;;  %8268 = vadd.xlane.f32.xlu0 %v15901_v61  ;;  %v15906_v7 = vpop.eup %10356 }
 0xc74   :  { %10366 = vpow2.f32 %v8160_v63  ;;  %v8036_v59 = vsub.f32 %v16774_v16, %v7965_v14  ;;  %v7967_v6 = vpop.xlane.xlu1 %7966  ;;  %16775 = vst [vmem:[#allocation8_spill] sm:$0xff] %v15906_v7  ;;  %v16779_v16 = vld [vmem:[#allocation30_spill] sm:$0xff] }
 0xc75   :  { %v8037_v5 = vsub.f32 %v16776_v35, %v7967_v6  ;;  %10368 = vpow2.f32 %v8162_v23  ;;  %v16780_v6 = vld [vmem:[#allocation13_spill] sm:$0xff] }
 0xc76   :  { %v15909_v41 = vpop.eup %10358  ;;  %v8156_v38 = vmul.f32 1.442695, %v8036_v59  ;;  %8270 = vadd.xlane.f32.xlu1 %v15906_v7  ;;  %v16782_v7 = vld [vmem:[#allocation7_spill] sm:$0xff] }
 0xc77   :  { %16777 = vst [vmem:[#allocation9_spill] sm:$0xff] %v15909_v41  ;;  %v8158_v42 = vmul.f32 1.442695, %v8037_v5  ;;  %v7977_v2 = vpop.xlane.xlu0 %7976  ;;  %8280 = vadd.xlane.f32.xlu0 %v15909_v41  ;;  %v15913_v49 = vpop.eup %10360  ;;  %v16781_v41 = vld [vmem:[#allocation6_spill] sm:$0xff] }
 0xc78   :  { %10370 = vpow2.f32 %v8156_v38  ;;  %v7979_v43 = vpop.xlane.xlu1 %7978  ;;  %v8042_v59 = vsub.f32 %v16779_v16, %v7977_v2 }
 0xc79   :  { %10372 = vpow2.f32 %v8158_v42  ;;  %v8043_v38 = vsub.f32 %v16781_v41, %v7979_v43 }
 0xc7a   :  { %v15915_v63 = vpop.eup %10362  ;;  %8282 = vadd.xlane.f32.xlu1 %v15913_v49 }
 0xc7b   :  { %16778 = vst [vmem:[#allocation10_spill] sm:$0xff] %v15915_v63  ;;  %8276 = vadd.xlane.f32.xlu0 %v15915_v63  ;;  %v7973_v14 = vpop.xlane.xlu0 %7972  ;;  %v15921_v35 = vpop.eup %10364  ;;  %v8168_v63 = vmul.f32 1.442695, %v8042_v59 }
 0xc7c   :  { %v8040_v23 = vsub.f32 %v16780_v6, %v7973_v14  ;;  %v7975_v5 = vpop.xlane.xlu1 %7974  ;;  %v8170_v14 = vmul.f32 1.442695, %v8043_v38 }
 0xc7d   :  { %v8041_v61 = vsub.f32 %v16782_v7, %v7975_v5 }
 0xc7e   :  { %v15925_v40 = vpop.eup %10366  ;;  %v8164_v62 = vmul.f32 1.442695, %v8040_v23  ;;  %8278 = vadd.xlane.f32.xlu1 %v15921_v35 }
 0xc7f   :  { %v8166_v42 = vmul.f32 1.442695, %v8041_v61  ;;  %8288 = vadd.xlane.f32.xlu0 %v15925_v40  ;;  %v15929_v2 = vpop.eup %10368 }
 0xc80   :  { %10374 = vpow2.f32 %v8164_v62 }
 0xc81   :  { %10376 = vpow2.f32 %v8166_v42 }
 0xc82   :  { %v15931_v16 = vpop.eup %10370  ;;  %8290 = vadd.xlane.f32.xlu1 %v15929_v2  ;;  %10378 = vpow2.f32 %v8168_v63 }
 0xc83   :  { %8284 = vadd.xlane.f32.xlu0 %v15931_v16  ;;  %v15935_v41 = vpop.eup %10372  ;;  %10380 = vpow2.f32 %v8170_v14 }
 0xc86   :  { %8286 = vadd.xlane.f32.xlu1 %v15935_v41 }
 0xc8a   :  { %v15938_v61 = vpop.eup %10374 }
 0xc8b   :  { %v15940_v7 = vpop.eup %10376  ;;  %8292 = vadd.xlane.f32.xlu0 %v15938_v61 }
 0xc8c   :  { %16783 = vst [vmem:[#allocation11_spill] sm:$0xff] %v15940_v7  ;;  %8294 = vadd.xlane.f32.xlu1 %v15940_v7  ;;  %v15944_v62 = vpop.eup %10378 }
 0xc8d   :  { %v15946_v43 = vpop.eup %10380 }
 0xc8e   :  { %16784 = vst [vmem:[#allocation12_spill] sm:$0xff] %v15946_v43 }
 0xc8f   :  { %8296 = vadd.xlane.f32.xlu0 %v15944_v62 }
 0xc90   :  { %8298 = vadd.xlane.f32.xlu1 %v15946_v43 }
 0xc9b   :  { %v8177_v63 = vpop.xlane.xlu0 %8176 }
 0xc9c   :  { %10382 = vrcp.f32 %v8177_v63 }
 0xc9f   :  { %v8179_v59 = vpop.xlane.xlu1 %8178  ;;  %v8173_v6 = vpop.xlane.xlu0 %8172 }
 0xca0   :  { %10384 = vrcp.f32 %v8179_v59 }
 0xca1   :  { %10386 = vrcp.f32 %v8173_v6 }
 0xca3   :  { %v8175_v23 = vpop.xlane.xlu1 %8174 }
 0xca4   :  { %10388 = vrcp.f32 %v8175_v23  ;;  %v8185_v5 = vpop.xlane.xlu0 %8184 }
 0xca5   :  { %10390 = vrcp.f32 %v8185_v5 }
 0xca6   :  { %v10383_v38 = vpop.eup %10382 }
 0xca7   :  { %v8366_v42 = vmul.f32 %v10383_v38, %v15701_v4  ;;  %v8187_v14 = vpop.xlane.xlu1 %8186 }
 0xca8   :  { %10392 = vrcp.f32 %v8187_v14  ;;  %v8181_v7 = vpop.xlane.xlu0 %8180 }
 0xca9   :  { %8430 = vst [vmem:[%s16210_s15 + $0x10] sm:$0xff] %v8366_v42  ;;  %10394 = vrcp.f32 %v8181_v7 }
 0xcaa   :  { %v10385_v63 = vpop.eup %10384 }
 0xcab   :  { %v10387_v43 = vpop.eup %10386  ;;  %v8367_v59 = vmul.f32 %v10385_v63, %v15708_v60  ;;  %v8183_v6 = vpop.xlane.xlu1 %8182 }
 0xcac   :  { %v8364_v23 = vmul.f32 %v10387_v43, %v15705_v29  ;;  %10396 = vrcp.f32 %v8183_v6  ;;  %v8193_v5 = vpop.xlane.xlu0 %8192 }
 0xcad   :  { %8431 = vst [vmem:[%s16210_s15 + $0x18] sm:$0xff] %v8367_v59  ;;  %10398 = vrcp.f32 %v8193_v5 }
 0xcae   :  { %v10389_v4 = vpop.eup %10388  ;;  %8428 = vst [vmem:[%s16210_s15] sm:$0xff] %v8364_v23 }
 0xcaf   :  { %v10391_v7 = vpop.eup %10390  ;;  %v8365_v38 = vmul.f32 %v10389_v4, %v15714_v32  ;;  %v8195_v42 = vpop.xlane.xlu1 %8194 }
 0xcb0   :  { %v8370_v60 = vmul.f32 %v10391_v7, %v15717_v48  ;;  %10400 = vrcp.f32 %v8195_v42  ;;  %v8189_v29 = vpop.xlane.xlu0 %8188 }
 0xcb1   :  { %8429 = vst [vmem:[%s16210_s15 + $0x8] sm:$0xff] %v8365_v38  ;;  %10402 = vrcp.f32 %v8189_v29 }
 0xcb2   :  { %v10393_v43 = vpop.eup %10392  ;;  %8434 = vst [vmem:[%s16210_s15 + $0x30] sm:$0xff] %v8370_v60 }
 0xcb3   :  { %v10395_v14 = vpop.eup %10394  ;;  %v8371_v63 = vmul.f32 %v10393_v43, %v15722_v44  ;;  %v8191_v59 = vpop.xlane.xlu1 %8190 }
 0xcb4   :  { %v8368_v32 = vmul.f32 %v10395_v14, %v15725_v39  ;;  %10404 = vrcp.f32 %v8191_v59  ;;  %v8201_v48 = vpop.xlane.xlu0 %8200 }
 0xcb5   :  { %8435 = vst [vmem:[%s16210_s15 + $0x38] sm:$0xff] %v8371_v63  ;;  %10406 = vrcp.f32 %v8201_v48 }
 0xcb6   :  { %v10397_v6 = vpop.eup %10396  ;;  %8432 = vst [vmem:[%s16210_s15 + $0x20] sm:$0xff] %v8368_v32 }
 0xcb7   :  { %v10399_v23 = vpop.eup %10398  ;;  %v8369_v5 = vmul.f32 %v10397_v6, %v15730_v34  ;;  %v8203_v4 = vpop.xlane.xlu1 %8202 }
 0xcb8   :  { %v8374_v44 = vmul.f32 %v10399_v23, %v15733_v27  ;;  %10408 = vrcp.f32 %v8203_v4  ;;  %v8197_v39 = vpop.xlane.xlu0 %8196 }
 0xcb9   :  { %8433 = vst [vmem:[%s16210_s15 + $0x28] sm:$0xff] %v8369_v5  ;;  %10410 = vrcp.f32 %v8197_v39 }
 0xcba   :  { %v10401_v7 = vpop.eup %10400  ;;  %8438 = vst [vmem:[%s16210_s15 + $0x50] sm:$0xff] %v8374_v44 }
 0xcbb   :  { %v10403_v38 = vpop.eup %10402  ;;  %v8375_v42 = vmul.f32 %v10401_v7, %v15738_v18  ;;  %v8199_v60 = vpop.xlane.xlu1 %8198 }
 0xcbc   :  { %v8372_v34 = vmul.f32 %v10403_v38, %v15741_v15  ;;  %10412 = vrcp.f32 %v8199_v60  ;;  %v8209_v27 = vpop.xlane.xlu0 %8208 }
 0xcbd   :  { %8439 = vst [vmem:[%s16210_s15 + $0x58] sm:$0xff] %v8375_v42  ;;  %10414 = vrcp.f32 %v8209_v27 }
 0xcbe   :  { %v10405_v29 = vpop.eup %10404  ;;  %8436 = vst [vmem:[%s16210_s15 + $0x40] sm:$0xff] %v8372_v34 }
 0xcbf   :  { %v10407_v43 = vpop.eup %10406  ;;  %v8373_v14 = vmul.f32 %v10405_v29, %v15746_v8  ;;  %v8211_v63 = vpop.xlane.xlu1 %8210 }
 0xcc0   :  { %v8378_v18 = vmul.f32 %v10407_v43, %v15749_v30  ;;  %10416 = vrcp.f32 %v8211_v63  ;;  %v8205_v15 = vpop.xlane.xlu0 %8204 }
 0xcc1   :  { %8437 = vst [vmem:[%s16210_s15 + $0x48] sm:$0xff] %v8373_v14  ;;  %10418 = vrcp.f32 %v8205_v15 }
 0xcc2   :  { %v10409_v59 = vpop.eup %10408  ;;  %8442 = vst [vmem:[%s16210_s15 + $0x70] sm:$0xff] %v8378_v18 }
 0xcc3   :  { %v10411_v32 = vpop.eup %10410  ;;  %v8379_v48 = vmul.f32 %v10409_v59, %v15754_v56  ;;  %v8207_v6 = vpop.xlane.xlu1 %8206 }
 0xcc4   :  { %v8376_v8 = vmul.f32 %v10411_v32, %v15757_v45  ;;  %10420 = vrcp.f32 %v8207_v6  ;;  %v8217_v30 = vpop.xlane.xlu0 %8216 }
 0xcc5   :  { %8443 = vst [vmem:[%s16210_s15 + $0x78] sm:$0xff] %v8379_v48  ;;  %10422 = vrcp.f32 %v8217_v30 }
 0xcc6   :  { %v10413_v23 = vpop.eup %10412  ;;  %8440 = vst [vmem:[%s16210_s15 + $0x60] sm:$0xff] %v8376_v8 }
 0xcc7   :  { %v10415_v5 = vpop.eup %10414  ;;  %v8377_v4 = vmul.f32 %v10413_v23, %v15762_v28  ;;  %v8219_v44 = vpop.xlane.xlu1 %8218 }
 0xcc8   :  { %v8382_v56 = vmul.f32 %v10415_v5, %v15765_v0  ;;  %10424 = vrcp.f32 %v8219_v44  ;;  %v8213_v45 = vpop.xlane.xlu0 %8212 }
 0xcc9   :  { %8441 = vst [vmem:[%s16210_s15 + $0x68] sm:$0xff] %v8377_v4  ;;  %10426 = vrcp.f32 %v8213_v45 }
 0xcca   :  { %v10417_v39 = vpop.eup %10416  ;;  %8446 = vst [vmem:[%s16210_s15 + $0x90] sm:$0xff] %v8382_v56 }
 0xccb   :  { %v10419_v7 = vpop.eup %10418  ;;  %v8383_v38 = vmul.f32 %v10417_v39, %v15770_v3  ;;  %v8215_v42 = vpop.xlane.xlu1 %8214 }
 0xccc   :  { %v8380_v28 = vmul.f32 %v10419_v7, %v15773_v50  ;;  %10428 = vrcp.f32 %v8215_v42  ;;  %v8225_v0 = vpop.xlane.xlu0 %8224 }
 0xccd   :  { %8447 = vst [vmem:[%s16210_s15 + $0x98] sm:$0xff] %v8383_v38  ;;  %10430 = vrcp.f32 %v8225_v0 }
 0xcce   :  { %v10421_v60 = vpop.eup %10420  ;;  %8444 = vst [vmem:[%s16210_s15 + $0x80] sm:$0xff] %v8380_v28 }
 0xccf   :  { %v10423_v34 = vpop.eup %10422  ;;  %v8381_v27 = vmul.f32 %v10421_v60, %v15778_v47  ;;  %v8227_v29 = vpop.xlane.xlu1 %8226 }
 0xcd0   :  { %v8386_v3 = vmul.f32 %v10423_v34, %v15781_v25  ;;  %10432 = vrcp.f32 %v8227_v29  ;;  %v8221_v50 = vpop.xlane.xlu0 %8220 }
 0xcd1   :  { %8445 = vst [vmem:[%s16210_s15 + $0x88] sm:$0xff] %v8381_v27  ;;  %10434 = vrcp.f32 %v8221_v50 }
 0xcd2   :  { %v10425_v43 = vpop.eup %10424  ;;  %8450 = vst [vmem:[%s16210_s15 + $0xb0] sm:$0xff] %v8386_v3 }
 0xcd3   :  { %v10427_v14 = vpop.eup %10426  ;;  %v8387_v63 = vmul.f32 %v10425_v43, %v15786_v22  ;;  %v8223_v18 = vpop.xlane.xlu1 %8222 }
 0xcd4   :  { %v8384_v47 = vmul.f32 %v10427_v14, %v15789_v54  ;;  %10436 = vrcp.f32 %v8223_v18  ;;  %v8233_v25 = vpop.xlane.xlu0 %8232 }
 0xcd5   :  { %8451 = vst [vmem:[%s16210_s15 + $0xb8] sm:$0xff] %v8387_v63  ;;  %10438 = vrcp.f32 %v8233_v25 }
 0xcd6   :  { %v10429_v15 = vpop.eup %10428  ;;  %8448 = vst [vmem:[%s16210_s15 + $0xa0] sm:$0xff] %v8384_v47 }
 0xcd7   :  { %v10431_v59 = vpop.eup %10430  ;;  %v8385_v32 = vmul.f32 %v10429_v15, %v15794_v57  ;;  %v8235_v48 = vpop.xlane.xlu1 %8234 }
 0xcd8   :  { %v8390_v22 = vmul.f32 %v10431_v59, %v15797_v1  ;;  %10440 = vrcp.f32 %v8235_v48  ;;  %v8229_v54 = vpop.xlane.xlu0 %8228 }
 0xcd9   :  { %8449 = vst [vmem:[%s16210_s15 + $0xa8] sm:$0xff] %v8385_v32  ;;  %10442 = vrcp.f32 %v8229_v54 }
 0xcda   :  { %v10433_v6 = vpop.eup %10432  ;;  %8454 = vst [vmem:[%s16210_s15 + $0xd0] sm:$0xff] %v8390_v22 }
 0xcdb   :  { %v10435_v8 = vpop.eup %10434  ;;  %v8391_v30 = vmul.f32 %v10433_v6, %v15802_v52  ;;  %v8231_v23 = vpop.xlane.xlu1 %8230 }
 0xcdc   :  { %v8388_v57 = vmul.f32 %v10435_v8, %v15805_v33  ;;  %10444 = vrcp.f32 %v8231_v23  ;;  %v8241_v1 = vpop.xlane.xlu0 %8240 }
 0xcdd   :  { %8455 = vst [vmem:[%s16210_s15 + $0xd8] sm:$0xff] %v8391_v30  ;;  %10446 = vrcp.f32 %v8241_v1 }
 0xcde   :  { %v10437_v5 = vpop.eup %10436  ;;  %8452 = vst [vmem:[%s16210_s15 + $0xc0] sm:$0xff] %v8388_v57 }
 0xcdf   :  { %v10439_v4 = vpop.eup %10438  ;;  %v8389_v44 = vmul.f32 %v10437_v5, %v15810_v12  ;;  %v8243_v56 = vpop.xlane.xlu1 %8242 }
 0xce0   :  { %v8394_v52 = vmul.f32 %v10439_v4, %v15813_v58  ;;  %10448 = vrcp.f32 %v8243_v56  ;;  %v8237_v33 = vpop.xlane.xlu0 %8236 }
 0xce1   :  { %8453 = vst [vmem:[%s16210_s15 + $0xc8] sm:$0xff] %v8389_v44  ;;  %10450 = vrcp.f32 %v8237_v33 }
 0xce2   :  { %v10441_v45 = vpop.eup %10440  ;;  %8458 = vst [vmem:[%s16210_s15 + $0xf0] sm:$0xff] %v8394_v52 }
 0xce3   :  { %v10443_v39 = vpop.eup %10442  ;;  %v8395_v7 = vmul.f32 %v10441_v45, %v15818_v9  ;;  %v8239_v38 = vpop.xlane.xlu1 %8238 }
 0xce4   :  { %v8392_v12 = vmul.f32 %v10443_v39, %v15821_v37  ;;  %10452 = vrcp.f32 %v8239_v38  ;;  %v8249_v58 = vpop.xlane.xlu0 %8248 }
 0xce5   :  { %8459 = vst [vmem:[%s16210_s15 + $0xf8] sm:$0xff] %v8395_v7  ;;  %10454 = vrcp.f32 %v8249_v58  ;;  %v16786_v7 = vld [vmem:[#allocation18_spill] sm:$0xff] }
 0xce6   :  { %v10445_v42 = vpop.eup %10444  ;;  %8456 = vst [vmem:[%s16210_s15 + $0xe0] sm:$0xff] %v8392_v12 }
 0xce7   :  { %v10447_v28 = vpop.eup %10446  ;;  %v8393_v0 = vmul.f32 %v10445_v42, %v15826_v20  ;;  %v8251_v60 = vpop.xlane.xlu1 %8250 }
 0xce8   :  { %v8398_v9 = vmul.f32 %v10447_v28, %v15829_v13  ;;  %10456 = vrcp.f32 %v8251_v60  ;;  %v8245_v37 = vpop.xlane.xlu0 %8244  ;;  %v16788_v60 = vld [vmem:[#allocation20_spill] sm:$0xff] }
 0xce9   :  { %8457 = vst [vmem:[%s16210_s15 + $0xe8] sm:$0xff] %v8393_v0  ;;  %10458 = vrcp.f32 %v8245_v37 }
 0xcea   :  { %v10449_v34 = vpop.eup %10448  ;;  %8462 = vst [vmem:[%s16210_s15 + $0x110] sm:$0xff] %v8398_v9 }
 0xceb   :  { %v10451_v27 = vpop.eup %10450  ;;  %v8399_v29 = vmul.f32 %v10449_v34, %v15834_v17  ;;  %v8247_v3 = vpop.xlane.xlu1 %8246  ;;  %v16789_v34 = vld [vmem:[#allocation31_spill] sm:$0xff] }
 0xcec   :  { %v8396_v20 = vmul.f32 %v10451_v27, %v15837_v26  ;;  %10460 = vrcp.f32 %v8247_v3  ;;  %v8257_v13 = vpop.xlane.xlu0 %8256 }
 0xced   :  { %8463 = vst [vmem:[%s16210_s15 + $0x118] sm:$0xff] %v8399_v29  ;;  %10462 = vrcp.f32 %v8257_v13  ;;  %v16790_v13 = vld [vmem:[#allocation8_spill] sm:$0xff] }
 0xcee   :  { %v10453_v50 = vpop.eup %10452  ;;  %8460 = vst [vmem:[%s16210_s15 + $0x100] sm:$0xff] %v8396_v20 }
 0xcef   :  { %v10455_v43 = vpop.eup %10454  ;;  %v8397_v14 = vmul.f32 %v10453_v50, %v15842_v53  ;;  %v8259_v63 = vpop.xlane.xlu1 %8258 }
 0xcf0   :  { %v8402_v17 = vmul.f32 %v10455_v43, %v15845_v10  ;;  %10464 = vrcp.f32 %v8259_v63  ;;  %v8253_v26 = vpop.xlane.xlu0 %8252 }
 0xcf1   :  { %8461 = vst [vmem:[%s16210_s15 + $0x108] sm:$0xff] %v8397_v14  ;;  %10466 = vrcp.f32 %v8253_v26  ;;  %v16791_v14 = vld [vmem:[#allocation9_spill] sm:$0xff] }
 0xcf2   :  { %v10457_v18 = vpop.eup %10456  ;;  %8466 = vst [vmem:[%s16210_s15 + $0x130] sm:$0xff] %v8402_v17 }
 0xcf3   :  { %v10459_v47 = vpop.eup %10458  ;;  %v8403_v25 = vmul.f32 %v10457_v18, %v15850_v19  ;;  %v8255_v15 = vpop.xlane.xlu1 %8254 }
 0xcf4   :  { %v8400_v53 = vmul.f32 %v10459_v47, %v15853_v11  ;;  %10468 = vrcp.f32 %v8255_v15  ;;  %v8265_v10 = vpop.xlane.xlu0 %8264  ;;  %v16792_v15 = vld [vmem:[#allocation10_spill] sm:$0xff] }
 0xcf5   :  { %8467 = vst [vmem:[%s16210_s15 + $0x138] sm:$0xff] %v8403_v25  ;;  %10470 = vrcp.f32 %v8265_v10 }
 0xcf6   :  { %v10461_v59 = vpop.eup %10460  ;;  %8464 = vst [vmem:[%s16210_s15 + $0x120] sm:$0xff] %v8400_v53 }
 0xcf7   :  { %v10463_v32 = vpop.eup %10462  ;;  %v8401_v48 = vmul.f32 %v10461_v59, %v15858_v55  ;;  %v8267_v22 = vpop.xlane.xlu1 %8266 }
 0xcf8   :  { %v8406_v19 = vmul.f32 %v10463_v32, %v15861_v36  ;;  %10472 = vrcp.f32 %v8267_v22  ;;  %v8261_v11 = vpop.xlane.xlu0 %8260 }
 0xcf9   :  { %8465 = vst [vmem:[%s16210_s15 + $0x128] sm:$0xff] %v8401_v48  ;;  %10474 = vrcp.f32 %v8261_v11 }
 0xcfa   :  { %v10465_v54 = vpop.eup %10464  ;;  %8470 = vst [vmem:[%s16210_s15 + $0x150] sm:$0xff] %v8406_v19 }
 0xcfb   :  { %v10467_v6 = vpop.eup %10466  ;;  %v8407_v8 = vmul.f32 %v10465_v54, %v15866_v31  ;;  %v8263_v30 = vpop.xlane.xlu1 %8262 }
 0xcfc   :  { %v8404_v55 = vmul.f32 %v10467_v6, %v15869_v24  ;;  %10476 = vrcp.f32 %v8263_v30  ;;  %v8273_v36 = vpop.xlane.xlu0 %8272 }
 0xcfd   :  { %8471 = vst [vmem:[%s16210_s15 + $0x158] sm:$0xff] %v8407_v8  ;;  %10478 = vrcp.f32 %v8273_v36  ;;  %v16793_v36 = vld [vmem:[#allocation11_spill] sm:$0xff] }
 0xcfe   :  { %v10469_v23 = vpop.eup %10468  ;;  %8468 = vst [vmem:[%s16210_s15 + $0x140] sm:$0xff] %v8404_v55 }
 0xcff   :  { %v10471_v57 = vpop.eup %10470  ;;  %v8405_v1 = vmul.f32 %v10469_v23, %v15874_v51  ;;  %v8275_v5 = vpop.xlane.xlu1 %8274  ;;  %v16785_v51 = vld [vmem:[#allocation17_spill] sm:$0xff] }
 0xd00   :  { %v8410_v31 = vmul.f32 %v10471_v57, %v15877_v46  ;;  %10480 = vrcp.f32 %v8275_v5  ;;  %v8269_v24 = vpop.xlane.xlu0 %8268  ;;  %v16794_v5 = vld [vmem:[#allocation12_spill] sm:$0xff] }
 0xd01   :  { %8469 = vst [vmem:[%s16210_s15 + $0x148] sm:$0xff] %v8405_v1  ;;  %10482 = vrcp.f32 %v8269_v24 }
 0xd02   :  { %v10473_v4 = vpop.eup %10472  ;;  %8474 = vst [vmem:[%s16210_s15 + $0x170] sm:$0xff] %v8410_v31 }
 0xd03   :  { %v10475_v44 = vpop.eup %10474  ;;  %v8411_v56 = vmul.f32 %v10473_v4, %v15882_v21  ;;  %v8271_v52 = vpop.xlane.xlu1 %8270  ;;  %v16787_v21 = vld [vmem:[#allocation19_spill] sm:$0xff] }
 0xd04   :  { %v8408_v33 = vmul.f32 %v10475_v44, %v16785_v51  ;;  %10484 = vrcp.f32 %v8271_v52  ;;  %v8281_v46 = vpop.xlane.xlu0 %8280 }
 0xd05   :  { %8475 = vst [vmem:[%s16210_s15 + $0x178] sm:$0xff] %v8411_v56  ;;  %10486 = vrcp.f32 %v8281_v46 }
 0xd06   :  { %v10477_v45 = vpop.eup %10476  ;;  %8472 = vst [vmem:[%s16210_s15 + $0x160] sm:$0xff] %v8408_v33 }
 0xd07   :  { %v10479_v39 = vpop.eup %10478  ;;  %v8409_v38 = vmul.f32 %v10477_v45, %v16786_v7  ;;  %v8283_v12 = vpop.xlane.xlu1 %8282 }
 0xd08   :  { %v8414_v58 = vmul.f32 %v10479_v39, %v16787_v21  ;;  %10488 = vrcp.f32 %v8283_v12  ;;  %v8277_v42 = vpop.xlane.xlu0 %8276 }
 0xd09   :  { %8473 = vst [vmem:[%s16210_s15 + $0x168] sm:$0xff] %v8409_v38  ;;  %10490 = vrcp.f32 %v8277_v42 }
 0xd0a   :  { %v10481_v28 = vpop.eup %10480  ;;  %8478 = vst [vmem:[%s16210_s15 + $0x190] sm:$0xff] %v8414_v58 }
 0xd0b   :  { %v10483_v0 = vpop.eup %10482  ;;  %v8415_v9 = vmul.f32 %v10481_v28, %v16788_v60  ;;  %v8279_v37 = vpop.xlane.xlu1 %8278 }
 0xd0c   :  { %v8412_v27 = vmul.f32 %v10483_v0, %v16789_v34  ;;  %10492 = vrcp.f32 %v8279_v37  ;;  %v8289_v29 = vpop.xlane.xlu0 %8288 }
 0xd0d   :  { %8479 = vst [vmem:[%s16210_s15 + $0x198] sm:$0xff] %v8415_v9  ;;  %10494 = vrcp.f32 %v8289_v29 }
 0xd0e   :  { %v10485_v3 = vpop.eup %10484  ;;  %8476 = vst [vmem:[%s16210_s15 + $0x180] sm:$0xff] %v8412_v27 }
 0xd0f   :  { %v10487_v20 = vpop.eup %10486  ;;  %v8413_v50 = vmul.f32 %v10485_v3, %v16790_v13  ;;  %v8291_v43 = vpop.xlane.xlu1 %8290 }
 0xd10   :  { %v8418_v63 = vmul.f32 %v10487_v20, %v16791_v14  ;;  %10496 = vrcp.f32 %v8291_v43  ;;  %v8285_v17 = vpop.xlane.xlu0 %8284 }
 0xd11   :  { %8477 = vst [vmem:[%s16210_s15 + $0x188] sm:$0xff] %v8413_v50  ;;  %10498 = vrcp.f32 %v8285_v17 }
 0xd12   :  { %v10489_v26 = vpop.eup %10488  ;;  %8482 = vst [vmem:[%s16210_s15 + $0x1b0] sm:$0xff] %v8418_v63 }
 0xd13   :  { %v10491_v18 = vpop.eup %10490  ;;  %v8419_v47 = vmul.f32 %v10489_v26, %v15913_v49  ;;  %v8287_v25 = vpop.xlane.xlu1 %8286 }
 0xd14   :  { %v8416_v53 = vmul.f32 %v10491_v18, %v16792_v15  ;;  %10500 = vrcp.f32 %v8287_v25 }
 0xd15   :  { %8483 = vst [vmem:[%s16210_s15 + $0x1b8] sm:$0xff] %v8419_v47 }
 0xd16   :  { %v10493_v10 = vpop.eup %10492  ;;  %8480 = vst [vmem:[%s16210_s15 + $0x1a0] sm:$0xff] %v8416_v53 }
 0xd17   :  { %v10495_v59 = vpop.eup %10494  ;;  %v8417_v32 = vmul.f32 %v10493_v10, %v15921_v35 }
 0xd18   :  { %v8422_v48 = vmul.f32 %v10495_v59, %v15925_v40  ;;  %v8293_v22 = vpop.xlane.xlu0 %8292 }
 0xd19   :  { %8481 = vst [vmem:[%s16210_s15 + $0x1a8] sm:$0xff] %v8417_v32  ;;  %10502 = vrcp.f32 %v8293_v22  ;;  %v8295_v49 = vpop.xlane.xlu1 %8294 }
 0xd1a   :  { %v10497_v19 = vpop.eup %10496  ;;  %8486 = vst [vmem:[%s16210_s15 + $0x1d0] sm:$0xff] %v8422_v48  ;;  %10504 = vrcp.f32 %v8295_v49 }
 0xd1b   :  { %v10499_v11 = vpop.eup %10498  ;;  %v8423_v54 = vmul.f32 %v10497_v19, %v15929_v2 }
 0xd1c   :  { %v8420_v35 = vmul.f32 %v10499_v11, %v15931_v16  ;;  %v8297_v6 = vpop.xlane.xlu0 %8296 }
 0xd1d   :  { %8487 = vst [vmem:[%s16210_s15 + $0x1d8] sm:$0xff] %v8423_v54  ;;  %10506 = vrcp.f32 %v8297_v6  ;;  %v8299_v40 = vpop.xlane.xlu1 %8298 }
 0xd1e   :  { %v10501_v8 = vpop.eup %10500  ;;  %8484 = vst [vmem:[%s16210_s15 + $0x1c0] sm:$0xff] %v8420_v35  ;;  %10508 = vrcp.f32 %v8299_v40 }
 0xd1f   :  { %v8421_v30 = vmul.f32 %v10501_v8, %v15935_v41 }
 0xd21   :  { %8485 = vst [vmem:[%s16210_s15 + $0x1c8] sm:$0xff] %v8421_v30 }
 0xd23   :  { %v10503_v2 = vpop.eup %10502 }
 0xd24   :  { %v10505_v16 = vpop.eup %10504  ;;  %v8424_v55 = vmul.f32 %v10503_v2, %v15938_v61 }
 0xd25   :  { %v8425_v23 = vmul.f32 %v10505_v16, %v16793_v36 }
 0xd26   :  { %8488 = vst [vmem:[%s16210_s15 + $0x1e0] sm:$0xff] %v8424_v55 }
 0xd27   :  { %v10507_v57 = vpop.eup %10506  ;;  %8489 = vst [vmem:[%s16210_s15 + $0x1e8] sm:$0xff] %v8425_v23 }
 0xd28   :  { %v10509_v41 = vpop.eup %10508  ;;  %v8426_v1 = vmul.f32 %v10507_v57, %v15944_v62 }
 0xd29   :  { %v8427_v31 = vmul.f32 %v10509_v41, %v16794_v5 }
 0xd2a   :  { %8490 = vst [vmem:[%s16210_s15 + $0x1f0] sm:$0xff] %v8426_v1 }
 0xd2b   :  { %8491 = vst [vmem:[%s16210_s15 + $0x1f8] sm:$0xff] %v8427_v31 }

</bundles_post_ra>
